<compile_context>
chip_gen: v7x
topology: tpu7x:2x2x1
jax: 0.10.0
libtpu: 0.0.40
codegen_flags: <defaults>
</compile_context>

<pallas_src>
import functools

import jax
import jax.numpy as jnp
from jax.experimental import pallas as pl
from jax.experimental.pallas import tpu as pltpu


def _round_up(x, m):
    return ((x + m - 1) // m) * m


def bow_svm_kernel(
    ids_ref,      # SMEM (B_pad, S_pad) int32   -- scalar-prefetched token ids
    mask_ref,     # VMEM (TB, S_CHUNK) float32  -- attention-mask tile
    emb_ref,      # HBM  (V, D_pad)   float32   -- embedding table (manual DMA gather)
    w1_ref,       # VMEM (D_pad, D_pad) bf16
    b1_ref,       # VMEM (1, D_pad)   f32
    w2_ref,       # VMEM (D_pad, C_pad) bf16
    b2_ref,       # VMEM (1, C_pad)   f32
    out_ref,      # VMEM (TB, C_pad)  f32
    gather_buf,   # VMEM (2, TB, S_CHUNK, D_pad) f32 -- double-buffered gathered rows
    gather_sem,   # DMA semaphores (2,) -- one per buffer slot
    acc_sum,      # VMEM (TB, D_pad) f32 -- masked embedding sum accumulator
    acc_cnt,      # VMEM (TB, 1)     f32 -- valid-token count accumulator
    *,
    tb,
    s_chunk,
):
    b = pl.program_id(0)
    s = pl.program_id(1)
    num_s = pl.num_programs(1)
    slot = s % 2

    def issue_gather(s_idx, buf_slot):
        # One small row DMA per (example, token) of this chunk; all copies of a chunk
        # share one semaphore slot so they run concurrently.
        # TODO(synk): for production S (512+) replace the static unroll with a
        # fori_loop / coarser row-block DMAs to bound code size.
        base_b = b * tb
        base_s = s_idx * s_chunk
        for bi in range(tb):
            for si in range(s_chunk):
                tok = ids_ref[base_b + bi, base_s + si]
                pltpu.make_async_copy(
                    emb_ref.at[tok],
                    gather_buf.at[buf_slot, bi, si],
                    gather_sem.at[buf_slot],
                ).start()

    def wait_gather(buf_slot):
        # All row copies are identically sized and share this slot's semaphore,
        # so waiting once per issued copy drains exactly this chunk's gathers.
        for _ in range(tb * s_chunk):
            pltpu.make_async_copy(
                emb_ref.at[0],
                gather_buf.at[buf_slot, 0, 0],
                gather_sem.at[buf_slot],
            ).wait()

    # Init accumulators and prime the gather pipeline for this batch tile.
    @pl.when(s == 0)
    def _():
        acc_sum[...] = jnp.zeros_like(acc_sum)
        acc_cnt[...] = jnp.zeros_like(acc_cnt)
        issue_gather(s, slot)

    # Prefetch the next sequence chunk into the other slot; its DMAs overlap with
    # this chunk's compute.
    @pl.when(s + 1 < num_s)
    def _():
        issue_gather(s + 1, 1 - slot)

    wait_gather(slot)

    # Masked bag-of-words reduction as an MXU batched matmul:
    #   acc_sum[b, :] += sum_s mask[b, s] * E[ids[b, s], :]
    m = mask_ref[...]                                        # (TB, S_CHUNK) f32
    g = gather_buf[slot].astype(jnp.bfloat16)                # (TB, S_CHUNK, D_pad)
    part = jnp.einsum(
        "bqs,bsd->bqd",
        m.astype(jnp.bfloat16)[:, None, :],
        g,
        preferred_element_type=jnp.float32,
    )                                                        # (TB, 1, D_pad) f32
    acc_sum[...] += part[:, 0, :]
    acc_cnt[...] += jnp.sum(m, axis=1, keepdims=True)

    # Finalize: masked mean -> Linear -> ReLU -> Linear, all on the MXU (bf16 in,
    # f32 accumulate). NOTE: an all-zero mask row yields inf/NaN, matching the
    # PyTorch empty-selection mean; padded batch rows are sliced off by the wrapper.
    @pl.when(s == num_s - 1)
    def _():
        inv = pl.reciprocal(acc_cnt[...], approx=True)       # (TB, 1) on the EUP
        bow = (acc_sum[...] * inv).astype(jnp.bfloat16)      # (TB, D_pad)
        h = jnp.dot(bow, w1_ref[...], preferred_element_type=jnp.float32)
        h = jnp.maximum(h + b1_ref[...], 0.0)
        scores = jnp.dot(h.astype(jnp.bfloat16), w2_ref[...],
                         preferred_element_type=jnp.float32) + b2_ref[...]
        out_ref[...] = scores.astype(out_ref.dtype)


def bow_svm_forward(input_ids, attention_mask, emb_table, w1, b1, w2, b2,
                    *, tb=8, s_chunk_max=512):
    B, S = input_ids.shape
    V, D = emb_table.shape
    C = w2.shape[1]

    # Lane-dense padding: D/C up to 128, batch up to the batch tile (multiple of 8).
    D_pad = _round_up(D, 128)
    C_pad = _round_up(C, 128)
    TB = max(8, _round_up(tb, 8))
    B_pad = _round_up(B, TB)
    # Sequence chunk: whole (8-aligned) sequence when small, otherwise 512-token
    # chunks (multiple of 128) processed as an inner reduction grid axis.
    if _round_up(S, 8) <= s_chunk_max:
        S_CHUNK = _round_up(S, 8)
    else:
        S_CHUNK = s_chunk_max
    S_pad = _round_up(S, S_CHUNK)

    ids_pad = jnp.zeros((B_pad, S_pad), jnp.int32).at[:B, :S].set(
        input_ids.astype(jnp.int32))
    mask_pad = jnp.zeros((B_pad, S_pad), jnp.float32).at[:B, :S].set(
        attention_mask.astype(jnp.float32))
    emb_pad = jnp.zeros((V, D_pad), jnp.float32).at[:, :D].set(
        emb_table.astype(jnp.float32))
    # Weights as bf16 (f32 accumulation in-kernel); biases stay f32 (added post-acc).
    w1_p = jnp.zeros((D_pad, D_pad), jnp.float32).at[:D, :D].set(w1).astype(jnp.bfloat16)
    w2_p = jnp.zeros((D_pad, C_pad), jnp.float32).at[:D, :C].set(w2).astype(jnp.bfloat16)
    b1_p = jnp.zeros((1, D_pad), jnp.float32).at[0, :D].set(b1)
    b2_p = jnp.zeros((1, C_pad), jnp.float32).at[0, :C].set(b2)

    grid = (B_pad // TB, S_pad // S_CHUNK)
    kernel = functools.partial(bow_svm_kernel, tb=TB, s_chunk=S_CHUNK)

    flops = (2 * B_pad * S_pad * D_pad        # masked-mean reduction matmul
             + 2 * B_pad * D_pad * D_pad      # first linear
             + 2 * B_pad * D_pad * C_pad)     # second linear
    bytes_accessed = (ids_pad.size * 4 + mask_pad.size * 4
                      + B_pad * S_pad * D_pad * 4      # gathered embedding rows
                      + w1_p.size * 2 + w2_p.size * 2
                      + b1_p.size * 4 + b2_p.size * 4
                      + B_pad * C_pad * 4)

    out = pl.pallas_call(
        kernel,
        out_shape=jax.ShapeDtypeStruct((B_pad, C_pad), jnp.float32),
        grid_spec=pltpu.PrefetchScalarGridSpec(
            num_scalar_prefetch=1,            # token ids -> SMEM
            grid=grid,
            in_specs=[
                pl.BlockSpec((TB, S_CHUNK), lambda b, s, ids: (b, s)),   # mask
                pl.BlockSpec(memory_space=pl.ANY),                       # emb table (HBM)
                pl.BlockSpec((D_pad, D_pad), lambda b, s, ids: (0, 0)),  # w1
                pl.BlockSpec((1, D_pad), lambda b, s, ids: (0, 0)),      # b1
                pl.BlockSpec((D_pad, C_pad), lambda b, s, ids: (0, 0)),  # w2
                pl.BlockSpec((1, C_pad), lambda b, s, ids: (0, 0)),      # b2
            ],
            out_specs=pl.BlockSpec((TB, C_pad), lambda b, s, ids: (b, 0)),
            scratch_shapes=[
                pltpu.VMEM((2, TB, S_CHUNK, D_pad), jnp.float32),  # gather double-buffer
                pltpu.SemaphoreType.DMA((2,)),
                pltpu.VMEM((TB, D_pad), jnp.float32),              # bow sum accumulator
                pltpu.VMEM((TB, 1), jnp.float32),                  # token count accumulator
            ],
        ),
        compiler_params=pltpu.CompilerParams(
            dimension_semantics=("parallel", "arbitrary"),
            # tiles are sized to stay well under v7x's smaller (64 MiB) VMEM
            vmem_limit_bytes=32 * 1024 * 1024,
        ),
        cost_estimate=pl.CostEstimate(
            flops=flops, transcendentals=B_pad, bytes_accessed=bytes_accessed),
    )(ids_pad, mask_pad, emb_pad, w1_p, b1_p, w2_p, b2_p)

    return out[:B, :C]


if __name__ == "__main__":
    # Small synthetic configuration consistent with the module's forward:
    #   vocab V, embed_dim D, batch B, seq S, num_class C
    B, S, D, C, V = 2, 8, 32, 4, 64

    key = jax.random.PRNGKey(0)
    k_emb, k_w1, k_b1, k_w2, k_b2, k_ids = jax.random.split(key, 6)

    # bert.embeddings.word_embeddings weight (synthetic, deterministic)
    embedding_table = jax.random.normal(k_emb, (V, D), dtype=jnp.float32) * 0.02

    # self.final = Linear(D, D) -> ReLU -> Linear(D, C)
    w1 = jax.random.normal(k_w1, (D, D), dtype=jnp.float32) * 0.05
    b1 = jax.random.normal(k_b1, (D,), dtype=jnp.float32) * 0.01
    w2 = jax.random.normal(k_w2, (D, C), dtype=jnp.float32) * 0.05
    b2 = jax.random.normal(k_b2, (C,), dtype=jnp.float32) * 0.01

    # deterministic inputs
    input_ids = jax.random.randint(k_ids, (B, S), 0, V)
    lengths = jnp.array([5, 7], dtype=jnp.int32)
    attention_mask = (jnp.arange(S)[None, :] < lengths[:, None]).astype(jnp.int32)

    scores = bow_svm_forward(input_ids, attention_mask, embedding_table,
                             w1, b1, w2, b2)
    scores = jax.block_until_ready(scores)

    # pure-JAX reference (same semantics as the PyTorch forward, f32 throughout)
    word_features = jnp.take(embedding_table, input_ids, axis=0)     # (B, S, D)
    mask_f = attention_mask.astype(jnp.float32)
    bow_ref = jnp.sum(word_features * mask_f[:, :, None], axis=1) / jnp.sum(
        mask_f, axis=1, keepdims=True)
    h_ref = jnp.maximum(bow_ref @ w1 + b1, 0.0)
    ref = h_ref @ w2 + b2

    # bf16 MXU matmuls with f32 accumulation -> relaxed tolerance vs the f32 reference
    assert jnp.allclose(scores, ref, atol=5e-3, rtol=5e-2), (scores, ref)

    # forward returns (target_scores, target_scores)
    out = (scores, scores)
    jax.block_until_ready(out)
    print("KERNEL_OK")
</pallas_src>

<mosaic_0001>
module attributes {stable_mosaic.version = 11 : i64} {
  func.func @bow_svm_kernel(%arg0: i32, %arg1: i32, %arg2: memref<8x8xi32, #tpu.memory_space<smem>>, %arg3: memref<8x8xf32, #tpu.memory_space<vmem>>, %arg4: memref<64x128xf32, #tpu.memory_space<any>>, %arg5: memref<128x128xbf16, #tpu.memory_space<vmem>>, %arg6: memref<1x128xf32, #tpu.memory_space<vmem>>, %arg7: memref<128x128xbf16, #tpu.memory_space<vmem>>, %arg8: memref<1x128xf32, #tpu.memory_space<vmem>>, %arg9: memref<8x128xf32, #tpu.memory_space<vmem>>, %arg10: memref<2x8x8x128xf32, #tpu.memory_space<vmem>>, %arg11: memref<2x!tpu.dma_semaphore, #tpu.memory_space<semaphore_mem>>, %arg12: memref<8x128xf32, #tpu.memory_space<vmem>>, %arg13: memref<8x1xf32, #tpu.memory_space<vmem>>) attributes {dimension_semantics = [#tpu.dimension_semantics<parallel>, #tpu.dimension_semantics<arbitrary>], iteration_bounds = array<i64: 1, 1>, scalar_prefetch = 1 : i64, scratch_operands = 4 : i64, tpu.core_type = #tpu.core_type<tc>, window_params = [{transform_indices = @transform_0, window_bounds = array<i64: 8, 8>}, {}, {pipeline_mode = #tpu.pipeline_mode<synchronous>, transform_indices = @transform_2, window_bounds = array<i64: 128, 128>}, {pipeline_mode = #tpu.pipeline_mode<synchronous>, transform_indices = @transform_3, window_bounds = array<i64: 1, 128>}, {pipeline_mode = #tpu.pipeline_mode<synchronous>, transform_indices = @transform_4, window_bounds = array<i64: 128, 128>}, {pipeline_mode = #tpu.pipeline_mode<synchronous>, transform_indices = @transform_5, window_bounds = array<i64: 1, 128>}, {transform_indices = @transform_6, window_bounds = array<i64: 8, 128>}]} {
    %c2_i32 = arith.constant 2 : i32
    %c0_i32 = arith.constant 0 : i32
    %0 = arith.cmpi eq, %c2_i32, %c0_i32 : i32
    %c1_i32 = arith.constant 1 : i32
    %1 = arith.select %0, %c1_i32, %c2_i32 : i32
    %2 = arith.remsi %arg1, %1 : i32
    %c0_i32_0 = arith.constant 0 : i32
    %3 = arith.cmpi ne, %2, %c0_i32_0 : i32
    %c0_i32_1 = arith.constant 0 : i32
    %4 = arith.cmpi slt, %2, %c0_i32_1 : i32
    %c0_i32_2 = arith.constant 0 : i32
    %5 = arith.cmpi slt, %1, %c0_i32_2 : i32
    %6 = arith.xori %4, %5 : i1
    %7 = arith.andi %6, %3 : i1
    %8 = arith.addi %2, %1 : i32
    %9 = arith.select %7, %8, %2 : i32
    %c0_i32_3 = arith.constant 0 : i32
    %10 = arith.cmpi eq, %arg1, %c0_i32_3 : i32
    %11 = arith.extui %10 : i1 to i32
    %c0_i32_4 = arith.constant 0 : i32
    %12 = arith.cmpi ne, %11, %c0_i32_4 : i32
    scf.if %12 {
      %cst_343 = arith.constant 0.000000e+00 : f32
      %421 = vector.broadcast %cst_343 : f32 to vector<8x128xf32>
      %c0_344 = arith.constant 0 : index
      %c0_345 = arith.constant 0 : index
      %422 = vector.load %arg12[%c0_344, %c0_345] : memref<8x128xf32, #tpu.memory_space<vmem>>, vector<8x128xf32>
      tpu.vector_store %arg12[%c0_344, %c0_345], %421 {strides = array<i32>} : memref<8x128xf32, #tpu.memory_space<vmem>>, vector<8x128xf32>,
      %cst_346 = arith.constant 0.000000e+00 : f32
      %423 = vector.broadcast %cst_346 : f32 to vector<8x1xf32>
      %c0_347 = arith.constant 0 : index
      %c0_348 = arith.constant 0 : index
      %424 = vector.load %arg13[%c0_347, %c0_348] : memref<8x1xf32, #tpu.memory_space<vmem>>, vector<8x1xf32>
      tpu.vector_store %arg13[%c0_347, %c0_348], %423 {strides = array<i32>} : memref<8x1xf32, #tpu.memory_space<vmem>>, vector<8x1xf32>,
      %c8_i32 = arith.constant 8 : i32
      %425 = arith.muli %arg0, %c8_i32 : i32
      %c8_i32_349 = arith.constant 8 : i32
      %426 = arith.muli %arg1, %c8_i32_349 : i32
      %c0_i32_350 = arith.constant 0 : i32
      %427 = arith.addi %425, %c0_i32_350 : i32
      %c0_i32_351 = arith.constant 0 : i32
      %428 = arith.addi %426, %c0_i32_351 : i32
      %429 = arith.index_cast %427 : i32 to index
      %430 = arith.index_cast %428 : i32 to index
      %431 = memref.load %arg2[%429, %430] : memref<8x8xi32, #tpu.memory_space<smem>>
      %c0_i32_352 = arith.constant 0 : i32
      %c0_i32_353 = arith.constant 0 : i32
      %c0_i32_354 = arith.constant 0 : i32
      %432 = tpu.memref_slice %arg4[%431, %c0_i32_354] : memref<64x128xf32, #tpu.memory_space<any>> -> memref<1x128xf32, #tpu.memory_space<any>>
      %433 = tpu.memref_squeeze %432 : memref<1x128xf32, #tpu.memory_space<any>> -> memref<128xf32, #tpu.memory_space<any>>
      %c0_i32_355 = arith.constant 0 : i32
      %434 = tpu.memref_slice %arg10[%9, %c0_i32_352, %c0_i32_353, %c0_i32_355] : memref<2x8x8x128xf32, #tpu.memory_space<vmem>> -> memref<1x1x1x128xf32, #tpu.memory_space<vmem>>
      %435 = tpu.memref_squeeze %434 : memref<1x1x1x128xf32, #tpu.memory_space<vmem>> -> memref<128xf32, #tpu.memory_space<vmem>>
      %436 = tpu.memref_slice %arg11[%9] : memref<2x!tpu.dma_semaphore, #tpu.memory_space<semaphore_mem>> -> memref<1x!tpu.dma_semaphore, #tpu.memory_space<semaphore_mem>>
      %437 = tpu.memref_squeeze %436 : memref<1x!tpu.dma_semaphore, #tpu.memory_space<semaphore_mem>> -> memref<!tpu.dma_semaphore, #tpu.memory_space<semaphore_mem>>
      tpu.enqueue_dma source(%433 : memref<128xf32, #tpu.memory_space<any>>) target(%435 : memref<128xf32, #tpu.memory_space<vmem>>) target_semaphore(%437 : memref<!tpu.dma_semaphore, #tpu.memory_space<semaphore_mem>>)
      %c0_i32_356 = arith.constant 0 : i32
      %438 = arith.addi %425, %c0_i32_356 : i32
      %c1_i32_357 = arith.constant 1 : i32
      %439 = arith.addi %426, %c1_i32_357 : i32
      %440 = arith.index_cast %438 : i32 to index
      %441 = arith.index_cast %439 : i32 to index
      %442 = memref.load %arg2[%440, %441] : memref<8x8xi32, #tpu.memory_space<smem>>
      %c0_i32_358 = arith.constant 0 : i32
      %c1_i32_359 = arith.constant 1 : i32
      %c0_i32_360 = arith.constant 0 : i32
      %443 = tpu.memref_slice %arg4[%442, %c0_i32_360] : memref<64x128xf32, #tpu.memory_space<any>> -> memref<1x128xf32, #tpu.memory_space<any>>
      %444 = tpu.memref_squeeze %443 : memref<1x128xf32, #tpu.memory_space<any>> -> memref<128xf32, #tpu.memory_space<any>>
      %c0_i32_361 = arith.constant 0 : i32
      %445 = tpu.memref_slice %arg10[%9, %c0_i32_358, %c1_i32_359, %c0_i32_361] : memref<2x8x8x128xf32, #tpu.memory_space<vmem>> -> memref<1x1x1x128xf32, #tpu.memory_space<vmem>>
      %446 = tpu.memref_squeeze %445 : memref<1x1x1x128xf32, #tpu.memory_space<vmem>> -> memref<128xf32, #tpu.memory_space<vmem>>
      %447 = tpu.memref_slice %arg11[%9] : memref<2x!tpu.dma_semaphore, #tpu.memory_space<semaphore_mem>> -> memref<1x!tpu.dma_semaphore, #tpu.memory_space<semaphore_mem>>
      %448 = tpu.memref_squeeze %447 : memref<1x!tpu.dma_semaphore, #tpu.memory_space<semaphore_mem>> -> memref<!tpu.dma_semaphore, #tpu.memory_space<semaphore_mem>>
      tpu.enqueue_dma source(%444 : memref<128xf32, #tpu.memory_space<any>>) target(%446 : memref<128xf32, #tpu.memory_space<vmem>>) target_semaphore(%448 : memref<!tpu.dma_semaphore, #tpu.memory_space<semaphore_mem>>)
      %c0_i32_362 = arith.constant 0 : i32
      %449 = arith.addi %425, %c0_i32_362 : i32
      %c2_i32_363 = arith.constant 2 : i32
      %450 = arith.addi %426, %c2_i32_363 : i32
      %451 = arith.index_cast %449 : i32 to index
      %452 = arith.index_cast %450 : i32 to index
      %453 = memref.load %arg2[%451, %452] : memref<8x8xi32, #tpu.memory_space<smem>>
      %c0_i32_364 = arith.constant 0 : i32
      %c2_i32_365 = arith.constant 2 : i32
      %c0_i32_366 = arith.constant 0 : i32
      %454 = tpu.memref_slice %arg4[%453, %c0_i32_366] : memref<64x128xf32, #tpu.memory_space<any>> -> memref<1x128xf32, #tpu.memory_space<any>>
      %455 = tpu.memref_squeeze %454 : memref<1x128xf32, #tpu.memory_space<any>> -> memref<128xf32, #tpu.memory_space<any>>
      %c0_i32_367 = arith.constant 0 : i32
      %456 = tpu.memref_slice %arg10[%9, %c0_i32_364, %c2_i32_365, %c0_i32_367] : memref<2x8x8x128xf32, #tpu.memory_space<vmem>> -> memref<1x1x1x128xf32, #tpu.memory_space<vmem>>
      %457 = tpu.memref_squeeze %456 : memref<1x1x1x128xf32, #tpu.memory_space<vmem>> -> memref<128xf32, #tpu.memory_space<vmem>>
      %458 = tpu.memref_slice %arg11[%9] : memref<2x!tpu.dma_semaphore, #tpu.memory_space<semaphore_mem>> -> memref<1x!tpu.dma_semaphore, #tpu.memory_space<semaphore_mem>>
      %459 = tpu.memref_squeeze %458 : memref<1x!tpu.dma_semaphore, #tpu.memory_space<semaphore_mem>> -> memref<!tpu.dma_semaphore, #tpu.memory_space<semaphore_mem>>
      tpu.enqueue_dma source(%455 : memref<128xf32, #tpu.memory_space<any>>) target(%457 : memref<128xf32, #tpu.memory_space<vmem>>) target_semaphore(%459 : memref<!tpu.dma_semaphore, #tpu.memory_space<semaphore_mem>>)
      %c0_i32_368 = arith.constant 0 : i32
      %460 = arith.addi %425, %c0_i32_368 : i32
      %c3_i32 = arith.constant 3 : i32
      %461 = arith.addi %426, %c3_i32 : i32
      %462 = arith.index_cast %460 : i32 to index
      %463 = arith.index_cast %461 : i32 to index
      %464 = memref.load %arg2[%462, %463] : memref<8x8xi32, #tpu.memory_space<smem>>
      %c0_i32_369 = arith.constant 0 : i32
      %c3_i32_370 = arith.constant 3 : i32
      %c0_i32_371 = arith.constant 0 : i32
      %465 = tpu.memref_slice %arg4[%464, %c0_i32_371] : memref<64x128xf32, #tpu.memory_space<any>> -> memref<1x128xf32, #tpu.memory_space<any>>
      %466 = tpu.memref_squeeze %465 : memref<1x128xf32, #tpu.memory_space<any>> -> memref<128xf32, #tpu.memory_space<any>>
      %c0_i32_372 = arith.constant 0 : i32
      %467 = tpu.memref_slice %arg10[%9, %c0_i32_369, %c3_i32_370, %c0_i32_372] : memref<2x8x8x128xf32, #tpu.memory_space<vmem>> -> memref<1x1x1x128xf32, #tpu.memory_space<vmem>>
      %468 = tpu.memref_squeeze %467 : memref<1x1x1x128xf32, #tpu.memory_space<vmem>> -> memref<128xf32, #tpu.memory_space<vmem>>
      %469 = tpu.memref_slice %arg11[%9] : memref<2x!tpu.dma_semaphore, #tpu.memory_space<semaphore_mem>> -> memref<1x!tpu.dma_semaphore, #tpu.memory_space<semaphore_mem>>
      %470 = tpu.memref_squeeze %469 : memref<1x!tpu.dma_semaphore, #tpu.memory_space<semaphore_mem>> -> memref<!tpu.dma_semaphore, #tpu.memory_space<semaphore_mem>>
      tpu.enqueue_dma source(%466 : memref<128xf32, #tpu.memory_space<any>>) target(%468 : memref<128xf32, #tpu.memory_space<vmem>>) target_semaphore(%470 : memref<!tpu.dma_semaphore, #tpu.memory_space<semaphore_mem>>)
      %c0_i32_373 = arith.constant 0 : i32
      %471 = arith.addi %425, %c0_i32_373 : i32
      %c4_i32 = arith.constant 4 : i32
      %472 = arith.addi %426, %c4_i32 : i32
      %473 = arith.index_cast %471 : i32 to index
      %474 = arith.index_cast %472 : i32 to index
      %475 = memref.load %arg2[%473, %474] : memref<8x8xi32, #tpu.memory_space<smem>>
      %c0_i32_374 = arith.constant 0 : i32
      %c4_i32_375 = arith.constant 4 : i32
      %c0_i32_376 = arith.constant 0 : i32
      %476 = tpu.memref_slice %arg4[%475, %c0_i32_376] : memref<64x128xf32, #tpu.memory_space<any>> -> memref<1x128xf32, #tpu.memory_space<any>>
      %477 = tpu.memref_squeeze %476 : memref<1x128xf32, #tpu.memory_space<any>> -> memref<128xf32, #tpu.memory_space<any>>
      %c0_i32_377 = arith.constant 0 : i32
      %478 = tpu.memref_slice %arg10[%9, %c0_i32_374, %c4_i32_375, %c0_i32_377] : memref<2x8x8x128xf32, #tpu.memory_space<vmem>> -> memref<1x1x1x128xf32, #tpu.memory_space<vmem>>
      %479 = tpu.memref_squeeze %478 : memref<1x1x1x128xf32, #tpu.memory_space<vmem>> -> memref<128xf32, #tpu.memory_space<vmem>>
      %480 = tpu.memref_slice %arg11[%9] : memref<2x!tpu.dma_semaphore, #tpu.memory_space<semaphore_mem>> -> memref<1x!tpu.dma_semaphore, #tpu.memory_space<semaphore_mem>>
      %481 = tpu.memref_squeeze %480 : memref<1x!tpu.dma_semaphore, #tpu.memory_space<semaphore_mem>> -> memref<!tpu.dma_semaphore, #tpu.memory_space<semaphore_mem>>
      tpu.enqueue_dma source(%477 : memref<128xf32, #tpu.memory_space<any>>) target(%479 : memref<128xf32, #tpu.memory_space<vmem>>) target_semaphore(%481 : memref<!tpu.dma_semaphore, #tpu.memory_space<semaphore_mem>>)
      %c0_i32_378 = arith.constant 0 : i32
      %482 = arith.addi %425, %c0_i32_378 : i32
      %c5_i32 = arith.constant 5 : i32
      %483 = arith.addi %426, %c5_i32 : i32
      %484 = arith.index_cast %482 : i32 to index
      %485 = arith.index_cast %483 : i32 to index
      %486 = memref.load %arg2[%484, %485] : memref<8x8xi32, #tpu.memory_space<smem>>
      %c0_i32_379 = arith.constant 0 : i32
      %c5_i32_380 = arith.constant 5 : i32
      %c0_i32_381 = arith.constant 0 : i32
      %487 = tpu.memref_slice %arg4[%486, %c0_i32_381] : memref<64x128xf32, #tpu.memory_space<any>> -> memref<1x128xf32, #tpu.memory_space<any>>
      %488 = tpu.memref_squeeze %487 : memref<1x128xf32, #tpu.memory_space<any>> -> memref<128xf32, #tpu.memory_space<any>>
      %c0_i32_382 = arith.constant 0 : i32
      %489 = tpu.memref_slice %arg10[%9, %c0_i32_379, %c5_i32_380, %c0_i32_382] : memref<2x8x8x128xf32, #tpu.memory_space<vmem>> -> memref<1x1x1x128xf32, #tpu.memory_space<vmem>>
      %490 = tpu.memref_squeeze %489 : memref<1x1x1x128xf32, #tpu.memory_space<vmem>> -> memref<128xf32, #tpu.memory_space<vmem>>
      %491 = tpu.memref_slice %arg11[%9] : memref<2x!tpu.dma_semaphore, #tpu.memory_space<semaphore_mem>> -> memref<1x!tpu.dma_semaphore, #tpu.memory_space<semaphore_mem>>
      %492 = tpu.memref_squeeze %491 : memref<1x!tpu.dma_semaphore, #tpu.memory_space<semaphore_mem>> -> memref<!tpu.dma_semaphore, #tpu.memory_space<semaphore_mem>>
      tpu.enqueue_dma source(%488 : memref<128xf32, #tpu.memory_space<any>>) target(%490 : memref<128xf32, #tpu.memory_space<vmem>>) target_semaphore(%492 : memref<!tpu.dma_semaphore, #tpu.memory_space<semaphore_mem>>)
      %c0_i32_383 = arith.constant 0 : i32
      %493 = arith.addi %425, %c0_i32_383 : i32
      %c6_i32 = arith.constant 6 : i32
      %494 = arith.addi %426, %c6_i32 : i32
      %495 = arith.index_cast %493 : i32 to index
      %496 = arith.index_cast %494 : i32 to index
      %497 = memref.load %arg2[%495, %496] : memref<8x8xi32, #tpu.memory_space<smem>>
      %c0_i32_384 = arith.constant 0 : i32
      %c6_i32_385 = arith.constant 6 : i32
      %c0_i32_386 = arith.constant 0 : i32
      %498 = tpu.memref_slice %arg4[%497, %c0_i32_386] : memref<64x128xf32, #tpu.memory_space<any>> -> memref<1x128xf32, #tpu.memory_space<any>>
      %499 = tpu.memref_squeeze %498 : memref<1x128xf32, #tpu.memory_space<any>> -> memref<128xf32, #tpu.memory_space<any>>
      %c0_i32_387 = arith.constant 0 : i32
      %500 = tpu.memref_slice %arg10[%9, %c0_i32_384, %c6_i32_385, %c0_i32_387] : memref<2x8x8x128xf32, #tpu.memory_space<vmem>> -> memref<1x1x1x128xf32, #tpu.memory_space<vmem>>
      %501 = tpu.memref_squeeze %500 : memref<1x1x1x128xf32, #tpu.memory_space<vmem>> -> memref<128xf32, #tpu.memory_space<vmem>>
      %502 = tpu.memref_slice %arg11[%9] : memref<2x!tpu.dma_semaphore, #tpu.memory_space<semaphore_mem>> -> memref<1x!tpu.dma_semaphore, #tpu.memory_space<semaphore_mem>>
      %503 = tpu.memref_squeeze %502 : memref<1x!tpu.dma_semaphore, #tpu.memory_space<semaphore_mem>> -> memref<!tpu.dma_semaphore, #tpu.memory_space<semaphore_mem>>
      tpu.enqueue_dma source(%499 : memref<128xf32, #tpu.memory_space<any>>) target(%501 : memref<128xf32, #tpu.memory_space<vmem>>) target_semaphore(%503 : memref<!tpu.dma_semaphore, #tpu.memory_space<semaphore_mem>>)
      %c0_i32_388 = arith.constant 0 : i32
      %504 = arith.addi %425, %c0_i32_388 : i32
      %c7_i32 = arith.constant 7 : i32
      %505 = arith.addi %426, %c7_i32 : i32
      %506 = arith.index_cast %504 : i32 to index
      %507 = arith.index_cast %505 : i32 to index
      %508 = memref.load %arg2[%506, %507] : memref<8x8xi32, #tpu.memory_space<smem>>
      %c0_i32_389 = arith.constant 0 : i32
      %c7_i32_390 = arith.constant 7 : i32
      %c0_i32_391 = arith.constant 0 : i32
      %509 = tpu.memref_slice %arg4[%508, %c0_i32_391] : memref<64x128xf32, #tpu.memory_space<any>> -> memref<1x128xf32, #tpu.memory_space<any>>
      %510 = tpu.memref_squeeze %509 : memref<1x128xf32, #tpu.memory_space<any>> -> memref<128xf32, #tpu.memory_space<any>>
      %c0_i32_392 = arith.constant 0 : i32
      %511 = tpu.memref_slice %arg10[%9, %c0_i32_389, %c7_i32_390, %c0_i32_392] : memref<2x8x8x128xf32, #tpu.memory_space<vmem>> -> memref<1x1x1x128xf32, #tpu.memory_space<vmem>>
      %512 = tpu.memref_squeeze %511 : memref<1x1x1x128xf32, #tpu.memory_space<vmem>> -> memref<128xf32, #tpu.memory_space<vmem>>
      %513 = tpu.memref_slice %arg11[%9] : memref<2x!tpu.dma_semaphore, #tpu.memory_space<semaphore_mem>> -> memref<1x!tpu.dma_semaphore, #tpu.memory_space<semaphore_mem>>
      %514 = tpu.memref_squeeze %513 : memref<1x!tpu.dma_semaphore, #tpu.memory_space<semaphore_mem>> -> memref<!tpu.dma_semaphore, #tpu.memory_space<semaphore_mem>>
      tpu.enqueue_dma source(%510 : memref<128xf32, #tpu.memory_space<any>>) target(%512 : memref<128xf32, #tpu.memory_space<vmem>>) target_semaphore(%514 : memref<!tpu.dma_semaphore, #tpu.memory_space<semaphore_mem>>)
      %c1_i32_393 = arith.constant 1 : i32
      %515 = arith.addi %425, %c1_i32_393 : i32
      %c0_i32_394 = arith.constant 0 : i32
      %516 = arith.addi %426, %c0_i32_394 : i32
      %517 = arith.index_cast %515 : i32 to index
      %518 = arith.index_cast %516 : i32 to index
      %519 = memref.load %arg2[%517, %518] : memref<8x8xi32, #tpu.memory_space<smem>>
      %c1_i32_395 = arith.constant 1 : i32
      %c0_i32_396 = arith.constant 0 : i32
      %c0_i32_397 = arith.constant 0 : i32
      %520 = tpu.memref_slice %arg4[%519, %c0_i32_397] : memref<64x128xf32, #tpu.memory_space<any>> -> memref<1x128xf32, #tpu.memory_space<any>>
      %521 = tpu.memref_squeeze %520 : memref<1x128xf32, #tpu.memory_space<any>> -> memref<128xf32, #tpu.memory_space<any>>
      %c0_i32_398 = arith.constant 0 : i32
      %522 = tpu.memref_slice %arg10[%9, %c1_i32_395, %c0_i32_396, %c0_i32_398] : memref<2x8x8x128xf32, #tpu.memory_space<vmem>> -> memref<1x1x1x128xf32, #tpu.memory_space<vmem>>
      %523 = tpu.memref_squeeze %522 : memref<1x1x1x128xf32, #tpu.memory_space<vmem>> -> memref<128xf32, #tpu.memory_space<vmem>>
      %524 = tpu.memref_slice %arg11[%9] : memref<2x!tpu.dma_semaphore, #tpu.memory_space<semaphore_mem>> -> memref<1x!tpu.dma_semaphore, #tpu.memory_space<semaphore_mem>>
      %525 = tpu.memref_squeeze %524 : memref<1x!tpu.dma_semaphore, #tpu.memory_space<semaphore_mem>> -> memref<!tpu.dma_semaphore, #tpu.memory_space<semaphore_mem>>
      tpu.enqueue_dma source(%521 : memref<128xf32, #tpu.memory_space<any>>) target(%523 : memref<128xf32, #tpu.memory_space<vmem>>) target_semaphore(%525 : memref<!tpu.dma_semaphore, #tpu.memory_space<semaphore_mem>>)
      %c1_i32_399 = arith.constant 1 : i32
      %526 = arith.addi %425, %c1_i32_399 : i32
      %c1_i32_400 = arith.constant 1 : i32
      %527 = arith.addi %426, %c1_i32_400 : i32
      %528 = arith.index_cast %526 : i32 to index
      %529 = arith.index_cast %527 : i32 to index
      %530 = memref.load %arg2[%528, %529] : memref<8x8xi32, #tpu.memory_space<smem>>
      %c1_i32_401 = arith.constant 1 : i32
      %c1_i32_402 = arith.constant 1 : i32
      %c0_i32_403 = arith.constant 0 : i32
      %531 = tpu.memref_slice %arg4[%530, %c0_i32_403] : memref<64x128xf32, #tpu.memory_space<any>> -> memref<1x128xf32, #tpu.memory_space<any>>
      %532 = tpu.memref_squeeze %531 : memref<1x128xf32, #tpu.memory_space<any>> -> memref<128xf32, #tpu.memory_space<any>>
      %c0_i32_404 = arith.constant 0 : i32
      %533 = tpu.memref_slice %arg10[%9, %c1_i32_401, %c1_i32_402, %c0_i32_404] : memref<2x8x8x128xf32, #tpu.memory_space<vmem>> -> memref<1x1x1x128xf32, #tpu.memory_space<vmem>>
      %534 = tpu.memref_squeeze %533 : memref<1x1x1x128xf32, #tpu.memory_space<vmem>> -> memref<128xf32, #tpu.memory_space<vmem>>
      %535 = tpu.memref_slice %arg11[%9] : memref<2x!tpu.dma_semaphore, #tpu.memory_space<semaphore_mem>> -> memref<1x!tpu.dma_semaphore, #tpu.memory_space<semaphore_mem>>
      %536 = tpu.memref_squeeze %535 : memref<1x!tpu.dma_semaphore, #tpu.memory_space<semaphore_mem>> -> memref<!tpu.dma_semaphore, #tpu.memory_space<semaphore_mem>>
      tpu.enqueue_dma source(%532 : memref<128xf32, #tpu.memory_space<any>>) target(%534 : memref<128xf32, #tpu.memory_space<vmem>>) target_semaphore(%536 : memref<!tpu.dma_semaphore, #tpu.memory_space<semaphore_mem>>)
      %c1_i32_405 = arith.constant 1 : i32
      %537 = arith.addi %425, %c1_i32_405 : i32
      %c2_i32_406 = arith.constant 2 : i32
      %538 = arith.addi %426, %c2_i32_406 : i32
      %539 = arith.index_cast %537 : i32 to index
      %540 = arith.index_cast %538 : i32 to index
      %541 = memref.load %arg2[%539, %540] : memref<8x8xi32, #tpu.memory_space<smem>>
      %c1_i32_407 = arith.constant 1 : i32
      %c2_i32_408 = arith.constant 2 : i32
      %c0_i32_409 = arith.constant 0 : i32
      %542 = tpu.memref_slice %arg4[%541, %c0_i32_409] : memref<64x128xf32, #tpu.memory_space<any>> -> memref<1x128xf32, #tpu.memory_space<any>>
      %543 = tpu.memref_squeeze %542 : memref<1x128xf32, #tpu.memory_space<any>> -> memref<128xf32, #tpu.memory_space<any>>
      %c0_i32_410 = arith.constant 0 : i32
      %544 = tpu.memref_slice %arg10[%9, %c1_i32_407, %c2_i32_408, %c0_i32_410] : memref<2x8x8x128xf32, #tpu.memory_space<vmem>> -> memref<1x1x1x128xf32, #tpu.memory_space<vmem>>
      %545 = tpu.memref_squeeze %544 : memref<1x1x1x128xf32, #tpu.memory_space<vmem>> -> memref<128xf32, #tpu.memory_space<vmem>>
      %546 = tpu.memref_slice %arg11[%9] : memref<2x!tpu.dma_semaphore, #tpu.memory_space<semaphore_mem>> -> memref<1x!tpu.dma_semaphore, #tpu.memory_space<semaphore_mem>>
      %547 = tpu.memref_squeeze %546 : memref<1x!tpu.dma_semaphore, #tpu.memory_space<semaphore_mem>> -> memref<!tpu.dma_semaphore, #tpu.memory_space<semaphore_mem>>
      tpu.enqueue_dma source(%543 : memref<128xf32, #tpu.memory_space<any>>) target(%545 : memref<128xf32, #tpu.memory_space<vmem>>) target_semaphore(%547 : memref<!tpu.dma_semaphore, #tpu.memory_space<semaphore_mem>>)
      %c1_i32_411 = arith.constant 1 : i32
      %548 = arith.addi %425, %c1_i32_411 : i32
      %c3_i32_412 = arith.constant 3 : i32
      %549 = arith.addi %426, %c3_i32_412 : i32
      %550 = arith.index_cast %548 : i32 to index
      %551 = arith.index_cast %549 : i32 to index
      %552 = memref.load %arg2[%550, %551] : memref<8x8xi32, #tpu.memory_space<smem>>
      %c1_i32_413 = arith.constant 1 : i32
      %c3_i32_414 = arith.constant 3 : i32
      %c0_i32_415 = arith.constant 0 : i32
      %553 = tpu.memref_slice %arg4[%552, %c0_i32_415] : memref<64x128xf32, #tpu.memory_space<any>> -> memref<1x128xf32, #tpu.memory_space<any>>
      %554 = tpu.memref_squeeze %553 : memref<1x128xf32, #tpu.memory_space<any>> -> memref<128xf32, #tpu.memory_space<any>>
      %c0_i32_416 = arith.constant 0 : i32
      %555 = tpu.memref_slice %arg10[%9, %c1_i32_413, %c3_i32_414, %c0_i32_416] : memref<2x8x8x128xf32, #tpu.memory_space<vmem>> -> memref<1x1x1x128xf32, #tpu.memory_space<vmem>>
      %556 = tpu.memref_squeeze %555 : memref<1x1x1x128xf32, #tpu.memory_space<vmem>> -> memref<128xf32, #tpu.memory_space<vmem>>
      %557 = tpu.memref_slice %arg11[%9] : memref<2x!tpu.dma_semaphore, #tpu.memory_space<semaphore_mem>> -> memref<1x!tpu.dma_semaphore, #tpu.memory_space<semaphore_mem>>
      %558 = tpu.memref_squeeze %557 : memref<1x!tpu.dma_semaphore, #tpu.memory_space<semaphore_mem>> -> memref<!tpu.dma_semaphore, #tpu.memory_space<semaphore_mem>>
      tpu.enqueue_dma source(%554 : memref<128xf32, #tpu.memory_space<any>>) target(%556 : memref<128xf32, #tpu.memory_space<vmem>>) target_semaphore(%558 : memref<!tpu.dma_semaphore, #tpu.memory_space<semaphore_mem>>)
      %c1_i32_417 = arith.constant 1 : i32
      %559 = arith.addi %425, %c1_i32_417 : i32
      %c4_i32_418 = arith.constant 4 : i32
      %560 = arith.addi %426, %c4_i32_418 : i32
      %561 = arith.index_cast %559 : i32 to index
      %562 = arith.index_cast %560 : i32 to index
      %563 = memref.load %arg2[%561, %562] : memref<8x8xi32, #tpu.memory_space<smem>>
      %c1_i32_419 = arith.constant 1 : i32
      %c4_i32_420 = arith.constant 4 : i32
      %c0_i32_421 = arith.constant 0 : i32
      %564 = tpu.memref_slice %arg4[%563, %c0_i32_421] : memref<64x128xf32, #tpu.memory_space<any>> -> memref<1x128xf32, #tpu.memory_space<any>>
      %565 = tpu.memref_squeeze %564 : memref<1x128xf32, #tpu.memory_space<any>> -> memref<128xf32, #tpu.memory_space<any>>
      %c0_i32_422 = arith.constant 0 : i32
      %566 = tpu.memref_slice %arg10[%9, %c1_i32_419, %c4_i32_420, %c0_i32_422] : memref<2x8x8x128xf32, #tpu.memory_space<vmem>> -> memref<1x1x1x128xf32, #tpu.memory_space<vmem>>
      %567 = tpu.memref_squeeze %566 : memref<1x1x1x128xf32, #tpu.memory_space<vmem>> -> memref<128xf32, #tpu.memory_space<vmem>>
      %568 = tpu.memref_slice %arg11[%9] : memref<2x!tpu.dma_semaphore, #tpu.memory_space<semaphore_mem>> -> memref<1x!tpu.dma_semaphore, #tpu.memory_space<semaphore_mem>>
      %569 = tpu.memref_squeeze %568 : memref<1x!tpu.dma_semaphore, #tpu.memory_space<semaphore_mem>> -> memref<!tpu.dma_semaphore, #tpu.memory_space<semaphore_mem>>
      tpu.enqueue_dma source(%565 : memref<128xf32, #tpu.memory_space<any>>) target(%567 : memref<128xf32, #tpu.memory_space<vmem>>) target_semaphore(%569 : memref<!tpu.dma_semaphore, #tpu.memory_space<semaphore_mem>>)
      %c1_i32_423 = arith.constant 1 : i32
      %570 = arith.addi %425, %c1_i32_423 : i32
      %c5_i32_424 = arith.constant 5 : i32
      %571 = arith.addi %426, %c5_i32_424 : i32
      %572 = arith.index_cast %570 : i32 to index
      %573 = arith.index_cast %571 : i32 to index
      %574 = memref.load %arg2[%572, %573] : memref<8x8xi32, #tpu.memory_space<smem>>
      %c1_i32_425 = arith.constant 1 : i32
      %c5_i32_426 = arith.constant 5 : i32
      %c0_i32_427 = arith.constant 0 : i32
      %575 = tpu.memref_slice %arg4[%574, %c0_i32_427] : memref<64x128xf32, #tpu.memory_space<any>> -> memref<1x128xf32, #tpu.memory_space<any>>
      %576 = tpu.memref_squeeze %575 : memref<1x128xf32, #tpu.memory_space<any>> -> memref<128xf32, #tpu.memory_space<any>>
      %c0_i32_428 = arith.constant 0 : i32
      %577 = tpu.memref_slice %arg10[%9, %c1_i32_425, %c5_i32_426, %c0_i32_428] : memref<2x8x8x128xf32, #tpu.memory_space<vmem>> -> memref<1x1x1x128xf32, #tpu.memory_space<vmem>>
      %578 = tpu.memref_squeeze %577 : memref<1x1x1x128xf32, #tpu.memory_space<vmem>> -> memref<128xf32, #tpu.memory_space<vmem>>
      %579 = tpu.memref_slice %arg11[%9] : memref<2x!tpu.dma_semaphore, #tpu.memory_space<semaphore_mem>> -> memref<1x!tpu.dma_semaphore, #tpu.memory_space<semaphore_mem>>
      %580 = tpu.memref_squeeze %579 : memref<1x!tpu.dma_semaphore, #tpu.memory_space<semaphore_mem>> -> memref<!tpu.dma_semaphore, #tpu.memory_space<semaphore_mem>>
      tpu.enqueue_dma source(%576 : memref<128xf32, #tpu.memory_space<any>>) target(%578 : memref<128xf32, #tpu.memory_space<vmem>>) target_semaphore(%580 : memref<!tpu.dma_semaphore, #tpu.memory_space<semaphore_mem>>)
      %c1_i32_429 = arith.constant 1 : i32
      %581 = arith.addi %425, %c1_i32_429 : i32
      %c6_i32_430 = arith.constant 6 : i32
      %582 = arith.addi %426, %c6_i32_430 : i32
      %583 = arith.index_cast %581 : i32 to index
      %584 = arith.index_cast %582 : i32 to index
      %585 = memref.load %arg2[%583, %584] : memref<8x8xi32, #tpu.memory_space<smem>>
      %c1_i32_431 = arith.constant 1 : i32
      %c6_i32_432 = arith.constant 6 : i32
      %c0_i32_433 = arith.constant 0 : i32
      %586 = tpu.memref_slice %arg4[%585, %c0_i32_433] : memref<64x128xf32, #tpu.memory_space<any>> -> memref<1x128xf32, #tpu.memory_space<any>>
      %587 = tpu.memref_squeeze %586 : memref<1x128xf32, #tpu.memory_space<any>> -> memref<128xf32, #tpu.memory_space<any>>
      %c0_i32_434 = arith.constant 0 : i32
      %588 = tpu.memref_slice %arg10[%9, %c1_i32_431, %c6_i32_432, %c0_i32_434] : memref<2x8x8x128xf32, #tpu.memory_space<vmem>> -> memref<1x1x1x128xf32, #tpu.memory_space<vmem>>
      %589 = tpu.memref_squeeze %588 : memref<1x1x1x128xf32, #tpu.memory_space<vmem>> -> memref<128xf32, #tpu.memory_space<vmem>>
      %590 = tpu.memref_slice %arg11[%9] : memref<2x!tpu.dma_semaphore, #tpu.memory_space<semaphore_mem>> -> memref<1x!tpu.dma_semaphore, #tpu.memory_space<semaphore_mem>>
      %591 = tpu.memref_squeeze %590 : memref<1x!tpu.dma_semaphore, #tpu.memory_space<semaphore_mem>> -> memref<!tpu.dma_semaphore, #tpu.memory_space<semaphore_mem>>
      tpu.enqueue_dma source(%587 : memref<128xf32, #tpu.memory_space<any>>) target(%589 : memref<128xf32, #tpu.memory_space<vmem>>) target_semaphore(%591 : memref<!tpu.dma_semaphore, #tpu.memory_space<semaphore_mem>>)
      %c1_i32_435 = arith.constant 1 : i32
      %592 = arith.addi %425, %c1_i32_435 : i32
      %c7_i32_436 = arith.constant 7 : i32
      %593 = arith.addi %426, %c7_i32_436 : i32
      %594 = arith.index_cast %592 : i32 to index
      %595 = arith.index_cast %593 : i32 to index
      %596 = memref.load %arg2[%594, %595] : memref<8x8xi32, #tpu.memory_space<smem>>
      %c1_i32_437 = arith.constant 1 : i32
      %c7_i32_438 = arith.constant 7 : i32
      %c0_i32_439 = arith.constant 0 : i32
      %597 = tpu.memref_slice %arg4[%596, %c0_i32_439] : memref<64x128xf32, #tpu.memory_space<any>> -> memref<1x128xf32, #tpu.memory_space<any>>
      %598 = tpu.memref_squeeze %597 : memref<1x128xf32, #tpu.memory_space<any>> -> memref<128xf32, #tpu.memory_space<any>>
      %c0_i32_440 = arith.constant 0 : i32
      %599 = tpu.memref_slice %arg10[%9, %c1_i32_437, %c7_i32_438, %c0_i32_440] : memref<2x8x8x128xf32, #tpu.memory_space<vmem>> -> memref<1x1x1x128xf32, #tpu.memory_space<vmem>>
      %600 = tpu.memref_squeeze %599 : memref<1x1x1x128xf32, #tpu.memory_space<vmem>> -> memref<128xf32, #tpu.memory_space<vmem>>
      %601 = tpu.memref_slice %arg11[%9] : memref<2x!tpu.dma_semaphore, #tpu.memory_space<semaphore_mem>> -> memref<1x!tpu.dma_semaphore, #tpu.memory_space<semaphore_mem>>
      %602 = tpu.memref_squeeze %601 : memref<1x!tpu.dma_semaphore, #tpu.memory_space<semaphore_mem>> -> memref<!tpu.dma_semaphore, #tpu.memory_space<semaphore_mem>>
      tpu.enqueue_dma source(%598 : memref<128xf32, #tpu.memory_space<any>>) target(%600 : memref<128xf32, #tpu.memory_space<vmem>>) target_semaphore(%602 : memref<!tpu.dma_semaphore, #tpu.memory_space<semaphore_mem>>)
      %c2_i32_441 = arith.constant 2 : i32
      %603 = arith.addi %425, %c2_i32_441 : i32
      %c0_i32_442 = arith.constant 0 : i32
      %604 = arith.addi %426, %c0_i32_442 : i32
      %605 = arith.index_cast %603 : i32 to index
      %606 = arith.index_cast %604 : i32 to index
      %607 = memref.load %arg2[%605, %606] : memref<8x8xi32, #tpu.memory_space<smem>>
      %c2_i32_443 = arith.constant 2 : i32
      %c0_i32_444 = arith.constant 0 : i32
      %c0_i32_445 = arith.constant 0 : i32
      %608 = tpu.memref_slice %arg4[%607, %c0_i32_445] : memref<64x128xf32, #tpu.memory_space<any>> -> memref<1x128xf32, #tpu.memory_space<any>>
      %609 = tpu.memref_squeeze %608 : memref<1x128xf32, #tpu.memory_space<any>> -> memref<128xf32, #tpu.memory_space<any>>
      %c0_i32_446 = arith.constant 0 : i32
      %610 = tpu.memref_slice %arg10[%9, %c2_i32_443, %c0_i32_444, %c0_i32_446] : memref<2x8x8x128xf32, #tpu.memory_space<vmem>> -> memref<1x1x1x128xf32, #tpu.memory_space<vmem>>
      %611 = tpu.memref_squeeze %610 : memref<1x1x1x128xf32, #tpu.memory_space<vmem>> -> memref<128xf32, #tpu.memory_space<vmem>>
      %612 = tpu.memref_slice %arg11[%9] : memref<2x!tpu.dma_semaphore, #tpu.memory_space<semaphore_mem>> -> memref<1x!tpu.dma_semaphore, #tpu.memory_space<semaphore_mem>>
      %613 = tpu.memref_squeeze %612 : memref<1x!tpu.dma_semaphore, #tpu.memory_space<semaphore_mem>> -> memref<!tpu.dma_semaphore, #tpu.memory_space<semaphore_mem>>
      tpu.enqueue_dma source(%609 : memref<128xf32, #tpu.memory_space<any>>) target(%611 : memref<128xf32, #tpu.memory_space<vmem>>) target_semaphore(%613 : memref<!tpu.dma_semaphore, #tpu.memory_space<semaphore_mem>>)
      %c2_i32_447 = arith.constant 2 : i32
      %614 = arith.addi %425, %c2_i32_447 : i32
      %c1_i32_448 = arith.constant 1 : i32
      %615 = arith.addi %426, %c1_i32_448 : i32
      %616 = arith.index_cast %614 : i32 to index
      %617 = arith.index_cast %615 : i32 to index
      %618 = memref.load %arg2[%616, %617] : memref<8x8xi32, #tpu.memory_space<smem>>
      %c2_i32_449 = arith.constant 2 : i32
      %c1_i32_450 = arith.constant 1 : i32
      %c0_i32_451 = arith.constant 0 : i32
      %619 = tpu.memref_slice %arg4[%618, %c0_i32_451] : memref<64x128xf32, #tpu.memory_space<any>> -> memref<1x128xf32, #tpu.memory_space<any>>
      %620 = tpu.memref_squeeze %619 : memref<1x128xf32, #tpu.memory_space<any>> -> memref<128xf32, #tpu.memory_space<any>>
      %c0_i32_452 = arith.constant 0 : i32
      %621 = tpu.memref_slice %arg10[%9, %c2_i32_449, %c1_i32_450, %c0_i32_452] : memref<2x8x8x128xf32, #tpu.memory_space<vmem>> -> memref<1x1x1x128xf32, #tpu.memory_space<vmem>>
      %622 = tpu.memref_squeeze %621 : memref<1x1x1x128xf32, #tpu.memory_space<vmem>> -> memref<128xf32, #tpu.memory_space<vmem>>
      %623 = tpu.memref_slice %arg11[%9] : memref<2x!tpu.dma_semaphore, #tpu.memory_space<semaphore_mem>> -> memref<1x!tpu.dma_semaphore, #tpu.memory_space<semaphore_mem>>
      %624 = tpu.memref_squeeze %623 : memref<1x!tpu.dma_semaphore, #tpu.memory_space<semaphore_mem>> -> memref<!tpu.dma_semaphore, #tpu.memory_space<semaphore_mem>>
      tpu.enqueue_dma source(%620 : memref<128xf32, #tpu.memory_space<any>>) target(%622 : memref<128xf32, #tpu.memory_space<vmem>>) target_semaphore(%624 : memref<!tpu.dma_semaphore, #tpu.memory_space<semaphore_mem>>)
      %c2_i32_453 = arith.constant 2 : i32
      %625 = arith.addi %425, %c2_i32_453 : i32
      %c2_i32_454 = arith.constant 2 : i32
      %626 = arith.addi %426, %c2_i32_454 : i32
      %627 = arith.index_cast %625 : i32 to index
      %628 = arith.index_cast %626 : i32 to index
      %629 = memref.load %arg2[%627, %628] : memref<8x8xi32, #tpu.memory_space<smem>>
      %c2_i32_455 = arith.constant 2 : i32
      %c2_i32_456 = arith.constant 2 : i32
      %c0_i32_457 = arith.constant 0 : i32
      %630 = tpu.memref_slice %arg4[%629, %c0_i32_457] : memref<64x128xf32, #tpu.memory_space<any>> -> memref<1x128xf32, #tpu.memory_space<any>>
      %631 = tpu.memref_squeeze %630 : memref<1x128xf32, #tpu.memory_space<any>> -> memref<128xf32, #tpu.memory_space<any>>
      %c0_i32_458 = arith.constant 0 : i32
      %632 = tpu.memref_slice %arg10[%9, %c2_i32_455, %c2_i32_456, %c0_i32_458] : memref<2x8x8x128xf32, #tpu.memory_space<vmem>> -> memref<1x1x1x128xf32, #tpu.memory_space<vmem>>
      %633 = tpu.memref_squeeze %632 : memref<1x1x1x128xf32, #tpu.memory_space<vmem>> -> memref<128xf32, #tpu.memory_space<vmem>>
      %634 = tpu.memref_slice %arg11[%9] : memref<2x!tpu.dma_semaphore, #tpu.memory_space<semaphore_mem>> -> memref<1x!tpu.dma_semaphore, #tpu.memory_space<semaphore_mem>>
      %635 = tpu.memref_squeeze %634 : memref<1x!tpu.dma_semaphore, #tpu.memory_space<semaphore_mem>> -> memref<!tpu.dma_semaphore, #tpu.memory_space<semaphore_mem>>
      tpu.enqueue_dma source(%631 : memref<128xf32, #tpu.memory_space<any>>) target(%633 : memref<128xf32, #tpu.memory_space<vmem>>) target_semaphore(%635 : memref<!tpu.dma_semaphore, #tpu.memory_space<semaphore_mem>>)
      %c2_i32_459 = arith.constant 2 : i32
      %636 = arith.addi %425, %c2_i32_459 : i32
      %c3_i32_460 = arith.constant 3 : i32
      %637 = arith.addi %426, %c3_i32_460 : i32
      %638 = arith.index_cast %636 : i32 to index
      %639 = arith.index_cast %637 : i32 to index
      %640 = memref.load %arg2[%638, %639] : memref<8x8xi32, #tpu.memory_space<smem>>
      %c2_i32_461 = arith.constant 2 : i32
      %c3_i32_462 = arith.constant 3 : i32
      %c0_i32_463 = arith.constant 0 : i32
      %641 = tpu.memref_slice %arg4[%640, %c0_i32_463] : memref<64x128xf32, #tpu.memory_space<any>> -> memref<1x128xf32, #tpu.memory_space<any>>
      %642 = tpu.memref_squeeze %641 : memref<1x128xf32, #tpu.memory_space<any>> -> memref<128xf32, #tpu.memory_space<any>>
      %c0_i32_464 = arith.constant 0 : i32
      %643 = tpu.memref_slice %arg10[%9, %c2_i32_461, %c3_i32_462, %c0_i32_464] : memref<2x8x8x128xf32, #tpu.memory_space<vmem>> -> memref<1x1x1x128xf32, #tpu.memory_space<vmem>>
      %644 = tpu.memref_squeeze %643 : memref<1x1x1x128xf32, #tpu.memory_space<vmem>> -> memref<128xf32, #tpu.memory_space<vmem>>
      %645 = tpu.memref_slice %arg11[%9] : memref<2x!tpu.dma_semaphore, #tpu.memory_space<semaphore_mem>> -> memref<1x!tpu.dma_semaphore, #tpu.memory_space<semaphore_mem>>
      %646 = tpu.memref_squeeze %645 : memref<1x!tpu.dma_semaphore, #tpu.memory_space<semaphore_mem>> -> memref<!tpu.dma_semaphore, #tpu.memory_space<semaphore_mem>>
      tpu.enqueue_dma source(%642 : memref<128xf32, #tpu.memory_space<any>>) target(%644 : memref<128xf32, #tpu.memory_space<vmem>>) target_semaphore(%646 : memref<!tpu.dma_semaphore, #tpu.memory_space<semaphore_mem>>)
      %c2_i32_465 = arith.constant 2 : i32
      %647 = arith.addi %425, %c2_i32_465 : i32
      %c4_i32_466 = arith.constant 4 : i32
      %648 = arith.addi %426, %c4_i32_466 : i32
      %649 = arith.index_cast %647 : i32 to index
      %650 = arith.index_cast %648 : i32 to index
      %651 = memref.load %arg2[%649, %650] : memref<8x8xi32, #tpu.memory_space<smem>>
      %c2_i32_467 = arith.constant 2 : i32
      %c4_i32_468 = arith.constant 4 : i32
      %c0_i32_469 = arith.constant 0 : i32
      %652 = tpu.memref_slice %arg4[%651, %c0_i32_469] : memref<64x128xf32, #tpu.memory_space<any>> -> memref<1x128xf32, #tpu.memory_space<any>>
      %653 = tpu.memref_squeeze %652 : memref<1x128xf32, #tpu.memory_space<any>> -> memref<128xf32, #tpu.memory_space<any>>
      %c0_i32_470 = arith.constant 0 : i32
      %654 = tpu.memref_slice %arg10[%9, %c2_i32_467, %c4_i32_468, %c0_i32_470] : memref<2x8x8x128xf32, #tpu.memory_space<vmem>> -> memref<1x1x1x128xf32, #tpu.memory_space<vmem>>
      %655 = tpu.memref_squeeze %654 : memref<1x1x1x128xf32, #tpu.memory_space<vmem>> -> memref<128xf32, #tpu.memory_space<vmem>>
      %656 = tpu.memref_slice %arg11[%9] : memref<2x!tpu.dma_semaphore, #tpu.memory_space<semaphore_mem>> -> memref<1x!tpu.dma_semaphore, #tpu.memory_space<semaphore_mem>>
      %657 = tpu.memref_squeeze %656 : memref<1x!tpu.dma_semaphore, #tpu.memory_space<semaphore_mem>> -> memref<!tpu.dma_semaphore, #tpu.memory_space<semaphore_mem>>
      tpu.enqueue_dma source(%653 : memref<128xf32, #tpu.memory_space<any>>) target(%655 : memref<128xf32, #tpu.memory_space<vmem>>) target_semaphore(%657 : memref<!tpu.dma_semaphore, #tpu.memory_space<semaphore_mem>>)
      %c2_i32_471 = arith.constant 2 : i32
      %658 = arith.addi %425, %c2_i32_471 : i32
      %c5_i32_472 = arith.constant 5 : i32
      %659 = arith.addi %426, %c5_i32_472 : i32
      %660 = arith.index_cast %658 : i32 to index
      %661 = arith.index_cast %659 : i32 to index
      %662 = memref.load %arg2[%660, %661] : memref<8x8xi32, #tpu.memory_space<smem>>
      %c2_i32_473 = arith.constant 2 : i32
      %c5_i32_474 = arith.constant 5 : i32
      %c0_i32_475 = arith.constant 0 : i32
      %663 = tpu.memref_slice %arg4[%662, %c0_i32_475] : memref<64x128xf32, #tpu.memory_space<any>> -> memref<1x128xf32, #tpu.memory_space<any>>
      %664 = tpu.memref_squeeze %663 : memref<1x128xf32, #tpu.memory_space<any>> -> memref<128xf32, #tpu.memory_space<any>>
      %c0_i32_476 = arith.constant 0 : i32
      %665 = tpu.memref_slice %arg10[%9, %c2_i32_473, %c5_i32_474, %c0_i32_476] : memref<2x8x8x128xf32, #tpu.memory_space<vmem>> -> memref<1x1x1x128xf32, #tpu.memory_space<vmem>>
      %666 = tpu.memref_squeeze %665 : memref<1x1x1x128xf32, #tpu.memory_space<vmem>> -> memref<128xf32, #tpu.memory_space<vmem>>
      %667 = tpu.memref_slice %arg11[%9] : memref<2x!tpu.dma_semaphore, #tpu.memory_space<semaphore_mem>> -> memref<1x!tpu.dma_semaphore, #tpu.memory_space<semaphore_mem>>
      %668 = tpu.memref_squeeze %667 : memref<1x!tpu.dma_semaphore, #tpu.memory_space<semaphore_mem>> -> memref<!tpu.dma_semaphore, #tpu.memory_space<semaphore_mem>>
      tpu.enqueue_dma source(%664 : memref<128xf32, #tpu.memory_space<any>>) target(%666 : memref<128xf32, #tpu.memory_space<vmem>>) target_semaphore(%668 : memref<!tpu.dma_semaphore, #tpu.memory_space<semaphore_mem>>)
      %c2_i32_477 = arith.constant 2 : i32
      %669 = arith.addi %425, %c2_i32_477 : i32
      %c6_i32_478 = arith.constant 6 : i32
      %670 = arith.addi %426, %c6_i32_478 : i32
      %671 = arith.index_cast %669 : i32 to index
      %672 = arith.index_cast %670 : i32 to index
      %673 = memref.load %arg2[%671, %672] : memref<8x8xi32, #tpu.memory_space<smem>>
      %c2_i32_479 = arith.constant 2 : i32
      %c6_i32_480 = arith.constant 6 : i32
      %c0_i32_481 = arith.constant 0 : i32
      %674 = tpu.memref_slice %arg4[%673, %c0_i32_481] : memref<64x128xf32, #tpu.memory_space<any>> -> memref<1x128xf32, #tpu.memory_space<any>>
      %675 = tpu.memref_squeeze %674 : memref<1x128xf32, #tpu.memory_space<any>> -> memref<128xf32, #tpu.memory_space<any>>
      %c0_i32_482 = arith.constant 0 : i32
      %676 = tpu.memref_slice %arg10[%9, %c2_i32_479, %c6_i32_480, %c0_i32_482] : memref<2x8x8x128xf32, #tpu.memory_space<vmem>> -> memref<1x1x1x128xf32, #tpu.memory_space<vmem>>
      %677 = tpu.memref_squeeze %676 : memref<1x1x1x128xf32, #tpu.memory_space<vmem>> -> memref<128xf32, #tpu.memory_space<vmem>>
      %678 = tpu.memref_slice %arg11[%9] : memref<2x!tpu.dma_semaphore, #tpu.memory_space<semaphore_mem>> -> memref<1x!tpu.dma_semaphore, #tpu.memory_space<semaphore_mem>>
      %679 = tpu.memref_squeeze %678 : memref<1x!tpu.dma_semaphore, #tpu.memory_space<semaphore_mem>> -> memref<!tpu.dma_semaphore, #tpu.memory_space<semaphore_mem>>
      tpu.enqueue_dma source(%675 : memref<128xf32, #tpu.memory_space<any>>) target(%677 : memref<128xf32, #tpu.memory_space<vmem>>) target_semaphore(%679 : memref<!tpu.dma_semaphore, #tpu.memory_space<semaphore_mem>>)
      %c2_i32_483 = arith.constant 2 : i32
      %680 = arith.addi %425, %c2_i32_483 : i32
      %c7_i32_484 = arith.constant 7 : i32
      %681 = arith.addi %426, %c7_i32_484 : i32
      %682 = arith.index_cast %680 : i32 to index
      %683 = arith.index_cast %681 : i32 to index
      %684 = memref.load %arg2[%682, %683] : memref<8x8xi32, #tpu.memory_space<smem>>
      %c2_i32_485 = arith.constant 2 : i32
      %c7_i32_486 = arith.constant 7 : i32
      %c0_i32_487 = arith.constant 0 : i32
      %685 = tpu.memref_slice %arg4[%684, %c0_i32_487] : memref<64x128xf32, #tpu.memory_space<any>> -> memref<1x128xf32, #tpu.memory_space<any>>
      %686 = tpu.memref_squeeze %685 : memref<1x128xf32, #tpu.memory_space<any>> -> memref<128xf32, #tpu.memory_space<any>>
      %c0_i32_488 = arith.constant 0 : i32
      %687 = tpu.memref_slice %arg10[%9, %c2_i32_485, %c7_i32_486, %c0_i32_488] : memref<2x8x8x128xf32, #tpu.memory_space<vmem>> -> memref<1x1x1x128xf32, #tpu.memory_space<vmem>>
      %688 = tpu.memref_squeeze %687 : memref<1x1x1x128xf32, #tpu.memory_space<vmem>> -> memref<128xf32, #tpu.memory_space<vmem>>
      %689 = tpu.memref_slice %arg11[%9] : memref<2x!tpu.dma_semaphore, #tpu.memory_space<semaphore_mem>> -> memref<1x!tpu.dma_semaphore, #tpu.memory_space<semaphore_mem>>
      %690 = tpu.memref_squeeze %689 : memref<1x!tpu.dma_semaphore, #tpu.memory_space<semaphore_mem>> -> memref<!tpu.dma_semaphore, #tpu.memory_space<semaphore_mem>>
      tpu.enqueue_dma source(%686 : memref<128xf32, #tpu.memory_space<any>>) target(%688 : memref<128xf32, #tpu.memory_space<vmem>>) target_semaphore(%690 : memref<!tpu.dma_semaphore, #tpu.memory_space<semaphore_mem>>)
      %c3_i32_489 = arith.constant 3 : i32
      %691 = arith.addi %425, %c3_i32_489 : i32
      %c0_i32_490 = arith.constant 0 : i32
      %692 = arith.addi %426, %c0_i32_490 : i32
      %693 = arith.index_cast %691 : i32 to index
      %694 = arith.index_cast %692 : i32 to index
      %695 = memref.load %arg2[%693, %694] : memref<8x8xi32, #tpu.memory_space<smem>>
      %c3_i32_491 = arith.constant 3 : i32
      %c0_i32_492 = arith.constant 0 : i32
      %c0_i32_493 = arith.constant 0 : i32
      %696 = tpu.memref_slice %arg4[%695, %c0_i32_493] : memref<64x128xf32, #tpu.memory_space<any>> -> memref<1x128xf32, #tpu.memory_space<any>>
      %697 = tpu.memref_squeeze %696 : memref<1x128xf32, #tpu.memory_space<any>> -> memref<128xf32, #tpu.memory_space<any>>
      %c0_i32_494 = arith.constant 0 : i32
      %698 = tpu.memref_slice %arg10[%9, %c3_i32_491, %c0_i32_492, %c0_i32_494] : memref<2x8x8x128xf32, #tpu.memory_space<vmem>> -> memref<1x1x1x128xf32, #tpu.memory_space<vmem>>
      %699 = tpu.memref_squeeze %698 : memref<1x1x1x128xf32, #tpu.memory_space<vmem>> -> memref<128xf32, #tpu.memory_space<vmem>>
      %700 = tpu.memref_slice %arg11[%9] : memref<2x!tpu.dma_semaphore, #tpu.memory_space<semaphore_mem>> -> memref<1x!tpu.dma_semaphore, #tpu.memory_space<semaphore_mem>>
      %701 = tpu.memref_squeeze %700 : memref<1x!tpu.dma_semaphore, #tpu.memory_space<semaphore_mem>> -> memref<!tpu.dma_semaphore, #tpu.memory_space<semaphore_mem>>
      tpu.enqueue_dma source(%697 : memref<128xf32, #tpu.memory_space<any>>) target(%699 : memref<128xf32, #tpu.memory_space<vmem>>) target_semaphore(%701 : memref<!tpu.dma_semaphore, #tpu.memory_space<semaphore_mem>>)
      %c3_i32_495 = arith.constant 3 : i32
      %702 = arith.addi %425, %c3_i32_495 : i32
      %c1_i32_496 = arith.constant 1 : i32
      %703 = arith.addi %426, %c1_i32_496 : i32
      %704 = arith.index_cast %702 : i32 to index
      %705 = arith.index_cast %703 : i32 to index
      %706 = memref.load %arg2[%704, %705] : memref<8x8xi32, #tpu.memory_space<smem>>
      %c3_i32_497 = arith.constant 3 : i32
      %c1_i32_498 = arith.constant 1 : i32
      %c0_i32_499 = arith.constant 0 : i32
      %707 = tpu.memref_slice %arg4[%706, %c0_i32_499] : memref<64x128xf32, #tpu.memory_space<any>> -> memref<1x128xf32, #tpu.memory_space<any>>
      %708 = tpu.memref_squeeze %707 : memref<1x128xf32, #tpu.memory_space<any>> -> memref<128xf32, #tpu.memory_space<any>>
      %c0_i32_500 = arith.constant 0 : i32
      %709 = tpu.memref_slice %arg10[%9, %c3_i32_497, %c1_i32_498, %c0_i32_500] : memref<2x8x8x128xf32, #tpu.memory_space<vmem>> -> memref<1x1x1x128xf32, #tpu.memory_space<vmem>>
      %710 = tpu.memref_squeeze %709 : memref<1x1x1x128xf32, #tpu.memory_space<vmem>> -> memref<128xf32, #tpu.memory_space<vmem>>
      %711 = tpu.memref_slice %arg11[%9] : memref<2x!tpu.dma_semaphore, #tpu.memory_space<semaphore_mem>> -> memref<1x!tpu.dma_semaphore, #tpu.memory_space<semaphore_mem>>
      %712 = tpu.memref_squeeze %711 : memref<1x!tpu.dma_semaphore, #tpu.memory_space<semaphore_mem>> -> memref<!tpu.dma_semaphore, #tpu.memory_space<semaphore_mem>>
      tpu.enqueue_dma source(%708 : memref<128xf32, #tpu.memory_space<any>>) target(%710 : memref<128xf32, #tpu.memory_space<vmem>>) target_semaphore(%712 : memref<!tpu.dma_semaphore, #tpu.memory_space<semaphore_mem>>)
      %c3_i32_501 = arith.constant 3 : i32
      %713 = arith.addi %425, %c3_i32_501 : i32
      %c2_i32_502 = arith.constant 2 : i32
      %714 = arith.addi %426, %c2_i32_502 : i32
      %715 = arith.index_cast %713 : i32 to index
      %716 = arith.index_cast %714 : i32 to index
      %717 = memref.load %arg2[%715, %716] : memref<8x8xi32, #tpu.memory_space<smem>>
      %c3_i32_503 = arith.constant 3 : i32
      %c2_i32_504 = arith.constant 2 : i32
      %c0_i32_505 = arith.constant 0 : i32
      %718 = tpu.memref_slice %arg4[%717, %c0_i32_505] : memref<64x128xf32, #tpu.memory_space<any>> -> memref<1x128xf32, #tpu.memory_space<any>>
      %719 = tpu.memref_squeeze %718 : memref<1x128xf32, #tpu.memory_space<any>> -> memref<128xf32, #tpu.memory_space<any>>
      %c0_i32_506 = arith.constant 0 : i32
      %720 = tpu.memref_slice %arg10[%9, %c3_i32_503, %c2_i32_504, %c0_i32_506] : memref<2x8x8x128xf32, #tpu.memory_space<vmem>> -> memref<1x1x1x128xf32, #tpu.memory_space<vmem>>
      %721 = tpu.memref_squeeze %720 : memref<1x1x1x128xf32, #tpu.memory_space<vmem>> -> memref<128xf32, #tpu.memory_space<vmem>>
      %722 = tpu.memref_slice %arg11[%9] : memref<2x!tpu.dma_semaphore, #tpu.memory_space<semaphore_mem>> -> memref<1x!tpu.dma_semaphore, #tpu.memory_space<semaphore_mem>>
      %723 = tpu.memref_squeeze %722 : memref<1x!tpu.dma_semaphore, #tpu.memory_space<semaphore_mem>> -> memref<!tpu.dma_semaphore, #tpu.memory_space<semaphore_mem>>
      tpu.enqueue_dma source(%719 : memref<128xf32, #tpu.memory_space<any>>) target(%721 : memref<128xf32, #tpu.memory_space<vmem>>) target_semaphore(%723 : memref<!tpu.dma_semaphore, #tpu.memory_space<semaphore_mem>>)
      %c3_i32_507 = arith.constant 3 : i32
      %724 = arith.addi %425, %c3_i32_507 : i32
      %c3_i32_508 = arith.constant 3 : i32
      %725 = arith.addi %426, %c3_i32_508 : i32
      %726 = arith.index_cast %724 : i32 to index
      %727 = arith.index_cast %725 : i32 to index
      %728 = memref.load %arg2[%726, %727] : memref<8x8xi32, #tpu.memory_space<smem>>
      %c3_i32_509 = arith.constant 3 : i32
      %c3_i32_510 = arith.constant 3 : i32
      %c0_i32_511 = arith.constant 0 : i32
      %729 = tpu.memref_slice %arg4[%728, %c0_i32_511] : memref<64x128xf32, #tpu.memory_space<any>> -> memref<1x128xf32, #tpu.memory_space<any>>
      %730 = tpu.memref_squeeze %729 : memref<1x128xf32, #tpu.memory_space<any>> -> memref<128xf32, #tpu.memory_space<any>>
      %c0_i32_512 = arith.constant 0 : i32
      %731 = tpu.memref_slice %arg10[%9, %c3_i32_509, %c3_i32_510, %c0_i32_512] : memref<2x8x8x128xf32, #tpu.memory_space<vmem>> -> memref<1x1x1x128xf32, #tpu.memory_space<vmem>>
      %732 = tpu.memref_squeeze %731 : memref<1x1x1x128xf32, #tpu.memory_space<vmem>> -> memref<128xf32, #tpu.memory_space<vmem>>
      %733 = tpu.memref_slice %arg11[%9] : memref<2x!tpu.dma_semaphore, #tpu.memory_space<semaphore_mem>> -> memref<1x!tpu.dma_semaphore, #tpu.memory_space<semaphore_mem>>
      %734 = tpu.memref_squeeze %733 : memref<1x!tpu.dma_semaphore, #tpu.memory_space<semaphore_mem>> -> memref<!tpu.dma_semaphore, #tpu.memory_space<semaphore_mem>>
      tpu.enqueue_dma source(%730 : memref<128xf32, #tpu.memory_space<any>>) target(%732 : memref<128xf32, #tpu.memory_space<vmem>>) target_semaphore(%734 : memref<!tpu.dma_semaphore, #tpu.memory_space<semaphore_mem>>)
      %c3_i32_513 = arith.constant 3 : i32
      %735 = arith.addi %425, %c3_i32_513 : i32
      %c4_i32_514 = arith.constant 4 : i32
      %736 = arith.addi %426, %c4_i32_514 : i32
      %737 = arith.index_cast %735 : i32 to index
      %738 = arith.index_cast %736 : i32 to index
      %739 = memref.load %arg2[%737, %738] : memref<8x8xi32, #tpu.memory_space<smem>>
      %c3_i32_515 = arith.constant 3 : i32
      %c4_i32_516 = arith.constant 4 : i32
      %c0_i32_517 = arith.constant 0 : i32
      %740 = tpu.memref_slice %arg4[%739, %c0_i32_517] : memref<64x128xf32, #tpu.memory_space<any>> -> memref<1x128xf32, #tpu.memory_space<any>>
      %741 = tpu.memref_squeeze %740 : memref<1x128xf32, #tpu.memory_space<any>> -> memref<128xf32, #tpu.memory_space<any>>
      %c0_i32_518 = arith.constant 0 : i32
      %742 = tpu.memref_slice %arg10[%9, %c3_i32_515, %c4_i32_516, %c0_i32_518] : memref<2x8x8x128xf32, #tpu.memory_space<vmem>> -> memref<1x1x1x128xf32, #tpu.memory_space<vmem>>
      %743 = tpu.memref_squeeze %742 : memref<1x1x1x128xf32, #tpu.memory_space<vmem>> -> memref<128xf32, #tpu.memory_space<vmem>>
      %744 = tpu.memref_slice %arg11[%9] : memref<2x!tpu.dma_semaphore, #tpu.memory_space<semaphore_mem>> -> memref<1x!tpu.dma_semaphore, #tpu.memory_space<semaphore_mem>>
      %745 = tpu.memref_squeeze %744 : memref<1x!tpu.dma_semaphore, #tpu.memory_space<semaphore_mem>> -> memref<!tpu.dma_semaphore, #tpu.memory_space<semaphore_mem>>
      tpu.enqueue_dma source(%741 : memref<128xf32, #tpu.memory_space<any>>) target(%743 : memref<128xf32, #tpu.memory_space<vmem>>) target_semaphore(%745 : memref<!tpu.dma_semaphore, #tpu.memory_space<semaphore_mem>>)
      %c3_i32_519 = arith.constant 3 : i32
      %746 = arith.addi %425, %c3_i32_519 : i32
      %c5_i32_520 = arith.constant 5 : i32
      %747 = arith.addi %426, %c5_i32_520 : i32
      %748 = arith.index_cast %746 : i32 to index
      %749 = arith.index_cast %747 : i32 to index
      %750 = memref.load %arg2[%748, %749] : memref<8x8xi32, #tpu.memory_space<smem>>
      %c3_i32_521 = arith.constant 3 : i32
      %c5_i32_522 = arith.constant 5 : i32
      %c0_i32_523 = arith.constant 0 : i32
      %751 = tpu.memref_slice %arg4[%750, %c0_i32_523] : memref<64x128xf32, #tpu.memory_space<any>> -> memref<1x128xf32, #tpu.memory_space<any>>
      %752 = tpu.memref_squeeze %751 : memref<1x128xf32, #tpu.memory_space<any>> -> memref<128xf32, #tpu.memory_space<any>>
      %c0_i32_524 = arith.constant 0 : i32
      %753 = tpu.memref_slice %arg10[%9, %c3_i32_521, %c5_i32_522, %c0_i32_524] : memref<2x8x8x128xf32, #tpu.memory_space<vmem>> -> memref<1x1x1x128xf32, #tpu.memory_space<vmem>>
      %754 = tpu.memref_squeeze %753 : memref<1x1x1x128xf32, #tpu.memory_space<vmem>> -> memref<128xf32, #tpu.memory_space<vmem>>
      %755 = tpu.memref_slice %arg11[%9] : memref<2x!tpu.dma_semaphore, #tpu.memory_space<semaphore_mem>> -> memref<1x!tpu.dma_semaphore, #tpu.memory_space<semaphore_mem>>
      %756 = tpu.memref_squeeze %755 : memref<1x!tpu.dma_semaphore, #tpu.memory_space<semaphore_mem>> -> memref<!tpu.dma_semaphore, #tpu.memory_space<semaphore_mem>>
      tpu.enqueue_dma source(%752 : memref<128xf32, #tpu.memory_space<any>>) target(%754 : memref<128xf32, #tpu.memory_space<vmem>>) target_semaphore(%756 : memref<!tpu.dma_semaphore, #tpu.memory_space<semaphore_mem>>)
      %c3_i32_525 = arith.constant 3 : i32
      %757 = arith.addi %425, %c3_i32_525 : i32
      %c6_i32_526 = arith.constant 6 : i32
      %758 = arith.addi %426, %c6_i32_526 : i32
      %759 = arith.index_cast %757 : i32 to index
      %760 = arith.index_cast %758 : i32 to index
      %761 = memref.load %arg2[%759, %760] : memref<8x8xi32, #tpu.memory_space<smem>>
      %c3_i32_527 = arith.constant 3 : i32
      %c6_i32_528 = arith.constant 6 : i32
      %c0_i32_529 = arith.constant 0 : i32
      %762 = tpu.memref_slice %arg4[%761, %c0_i32_529] : memref<64x128xf32, #tpu.memory_space<any>> -> memref<1x128xf32, #tpu.memory_space<any>>
      %763 = tpu.memref_squeeze %762 : memref<1x128xf32, #tpu.memory_space<any>> -> memref<128xf32, #tpu.memory_space<any>>
      %c0_i32_530 = arith.constant 0 : i32
      %764 = tpu.memref_slice %arg10[%9, %c3_i32_527, %c6_i32_528, %c0_i32_530] : memref<2x8x8x128xf32, #tpu.memory_space<vmem>> -> memref<1x1x1x128xf32, #tpu.memory_space<vmem>>
      %765 = tpu.memref_squeeze %764 : memref<1x1x1x128xf32, #tpu.memory_space<vmem>> -> memref<128xf32, #tpu.memory_space<vmem>>
      %766 = tpu.memref_slice %arg11[%9] : memref<2x!tpu.dma_semaphore, #tpu.memory_space<semaphore_mem>> -> memref<1x!tpu.dma_semaphore, #tpu.memory_space<semaphore_mem>>
      %767 = tpu.memref_squeeze %766 : memref<1x!tpu.dma_semaphore, #tpu.memory_space<semaphore_mem>> -> memref<!tpu.dma_semaphore, #tpu.memory_space<semaphore_mem>>
      tpu.enqueue_dma source(%763 : memref<128xf32, #tpu.memory_space<any>>) target(%765 : memref<128xf32, #tpu.memory_space<vmem>>) target_semaphore(%767 : memref<!tpu.dma_semaphore, #tpu.memory_space<semaphore_mem>>)
      %c3_i32_531 = arith.constant 3 : i32
      %768 = arith.addi %425, %c3_i32_531 : i32
      %c7_i32_532 = arith.constant 7 : i32
      %769 = arith.addi %426, %c7_i32_532 : i32
      %770 = arith.index_cast %768 : i32 to index
      %771 = arith.index_cast %769 : i32 to index
      %772 = memref.load %arg2[%770, %771] : memref<8x8xi32, #tpu.memory_space<smem>>
      %c3_i32_533 = arith.constant 3 : i32
      %c7_i32_534 = arith.constant 7 : i32
      %c0_i32_535 = arith.constant 0 : i32
      %773 = tpu.memref_slice %arg4[%772, %c0_i32_535] : memref<64x128xf32, #tpu.memory_space<any>> -> memref<1x128xf32, #tpu.memory_space<any>>
      %774 = tpu.memref_squeeze %773 : memref<1x128xf32, #tpu.memory_space<any>> -> memref<128xf32, #tpu.memory_space<any>>
      %c0_i32_536 = arith.constant 0 : i32
      %775 = tpu.memref_slice %arg10[%9, %c3_i32_533, %c7_i32_534, %c0_i32_536] : memref<2x8x8x128xf32, #tpu.memory_space<vmem>> -> memref<1x1x1x128xf32, #tpu.memory_space<vmem>>
      %776 = tpu.memref_squeeze %775 : memref<1x1x1x128xf32, #tpu.memory_space<vmem>> -> memref<128xf32, #tpu.memory_space<vmem>>
      %777 = tpu.memref_slice %arg11[%9] : memref<2x!tpu.dma_semaphore, #tpu.memory_space<semaphore_mem>> -> memref<1x!tpu.dma_semaphore, #tpu.memory_space<semaphore_mem>>
      %778 = tpu.memref_squeeze %777 : memref<1x!tpu.dma_semaphore, #tpu.memory_space<semaphore_mem>> -> memref<!tpu.dma_semaphore, #tpu.memory_space<semaphore_mem>>
      tpu.enqueue_dma source(%774 : memref<128xf32, #tpu.memory_space<any>>) target(%776 : memref<128xf32, #tpu.memory_space<vmem>>) target_semaphore(%778 : memref<!tpu.dma_semaphore, #tpu.memory_space<semaphore_mem>>)
      %c4_i32_537 = arith.constant 4 : i32
      %779 = arith.addi %425, %c4_i32_537 : i32
      %c0_i32_538 = arith.constant 0 : i32
      %780 = arith.addi %426, %c0_i32_538 : i32
      %781 = arith.index_cast %779 : i32 to index
      %782 = arith.index_cast %780 : i32 to index
      %783 = memref.load %arg2[%781, %782] : memref<8x8xi32, #tpu.memory_space<smem>>
      %c4_i32_539 = arith.constant 4 : i32
      %c0_i32_540 = arith.constant 0 : i32
      %c0_i32_541 = arith.constant 0 : i32
      %784 = tpu.memref_slice %arg4[%783, %c0_i32_541] : memref<64x128xf32, #tpu.memory_space<any>> -> memref<1x128xf32, #tpu.memory_space<any>>
      %785 = tpu.memref_squeeze %784 : memref<1x128xf32, #tpu.memory_space<any>> -> memref<128xf32, #tpu.memory_space<any>>
      %c0_i32_542 = arith.constant 0 : i32
      %786 = tpu.memref_slice %arg10[%9, %c4_i32_539, %c0_i32_540, %c0_i32_542] : memref<2x8x8x128xf32, #tpu.memory_space<vmem>> -> memref<1x1x1x128xf32, #tpu.memory_space<vmem>>
      %787 = tpu.memref_squeeze %786 : memref<1x1x1x128xf32, #tpu.memory_space<vmem>> -> memref<128xf32, #tpu.memory_space<vmem>>
      %788 = tpu.memref_slice %arg11[%9] : memref<2x!tpu.dma_semaphore, #tpu.memory_space<semaphore_mem>> -> memref<1x!tpu.dma_semaphore, #tpu.memory_space<semaphore_mem>>
      %789 = tpu.memref_squeeze %788 : memref<1x!tpu.dma_semaphore, #tpu.memory_space<semaphore_mem>> -> memref<!tpu.dma_semaphore, #tpu.memory_space<semaphore_mem>>
      tpu.enqueue_dma source(%785 : memref<128xf32, #tpu.memory_space<any>>) target(%787 : memref<128xf32, #tpu.memory_space<vmem>>) target_semaphore(%789 : memref<!tpu.dma_semaphore, #tpu.memory_space<semaphore_mem>>)
      %c4_i32_543 = arith.constant 4 : i32
      %790 = arith.addi %425, %c4_i32_543 : i32
      %c1_i32_544 = arith.constant 1 : i32
      %791 = arith.addi %426, %c1_i32_544 : i32
      %792 = arith.index_cast %790 : i32 to index
      %793 = arith.index_cast %791 : i32 to index
      %794 = memref.load %arg2[%792, %793] : memref<8x8xi32, #tpu.memory_space<smem>>
      %c4_i32_545 = arith.constant 4 : i32
      %c1_i32_546 = arith.constant 1 : i32
      %c0_i32_547 = arith.constant 0 : i32
      %795 = tpu.memref_slice %arg4[%794, %c0_i32_547] : memref<64x128xf32, #tpu.memory_space<any>> -> memref<1x128xf32, #tpu.memory_space<any>>
      %796 = tpu.memref_squeeze %795 : memref<1x128xf32, #tpu.memory_space<any>> -> memref<128xf32, #tpu.memory_space<any>>
      %c0_i32_548 = arith.constant 0 : i32
      %797 = tpu.memref_slice %arg10[%9, %c4_i32_545, %c1_i32_546, %c0_i32_548] : memref<2x8x8x128xf32, #tpu.memory_space<vmem>> -> memref<1x1x1x128xf32, #tpu.memory_space<vmem>>
      %798 = tpu.memref_squeeze %797 : memref<1x1x1x128xf32, #tpu.memory_space<vmem>> -> memref<128xf32, #tpu.memory_space<vmem>>
      %799 = tpu.memref_slice %arg11[%9] : memref<2x!tpu.dma_semaphore, #tpu.memory_space<semaphore_mem>> -> memref<1x!tpu.dma_semaphore, #tpu.memory_space<semaphore_mem>>
      %800 = tpu.memref_squeeze %799 : memref<1x!tpu.dma_semaphore, #tpu.memory_space<semaphore_mem>> -> memref<!tpu.dma_semaphore, #tpu.memory_space<semaphore_mem>>
      tpu.enqueue_dma source(%796 : memref<128xf32, #tpu.memory_space<any>>) target(%798 : memref<128xf32, #tpu.memory_space<vmem>>) target_semaphore(%800 : memref<!tpu.dma_semaphore, #tpu.memory_space<semaphore_mem>>)
      %c4_i32_549 = arith.constant 4 : i32
      %801 = arith.addi %425, %c4_i32_549 : i32
      %c2_i32_550 = arith.constant 2 : i32
      %802 = arith.addi %426, %c2_i32_550 : i32
      %803 = arith.index_cast %801 : i32 to index
      %804 = arith.index_cast %802 : i32 to index
      %805 = memref.load %arg2[%803, %804] : memref<8x8xi32, #tpu.memory_space<smem>>
      %c4_i32_551 = arith.constant 4 : i32
      %c2_i32_552 = arith.constant 2 : i32
      %c0_i32_553 = arith.constant 0 : i32
      %806 = tpu.memref_slice %arg4[%805, %c0_i32_553] : memref<64x128xf32, #tpu.memory_space<any>> -> memref<1x128xf32, #tpu.memory_space<any>>
      %807 = tpu.memref_squeeze %806 : memref<1x128xf32, #tpu.memory_space<any>> -> memref<128xf32, #tpu.memory_space<any>>
      %c0_i32_554 = arith.constant 0 : i32
      %808 = tpu.memref_slice %arg10[%9, %c4_i32_551, %c2_i32_552, %c0_i32_554] : memref<2x8x8x128xf32, #tpu.memory_space<vmem>> -> memref<1x1x1x128xf32, #tpu.memory_space<vmem>>
      %809 = tpu.memref_squeeze %808 : memref<1x1x1x128xf32, #tpu.memory_space<vmem>> -> memref<128xf32, #tpu.memory_space<vmem>>
      %810 = tpu.memref_slice %arg11[%9] : memref<2x!tpu.dma_semaphore, #tpu.memory_space<semaphore_mem>> -> memref<1x!tpu.dma_semaphore, #tpu.memory_space<semaphore_mem>>
      %811 = tpu.memref_squeeze %810 : memref<1x!tpu.dma_semaphore, #tpu.memory_space<semaphore_mem>> -> memref<!tpu.dma_semaphore, #tpu.memory_space<semaphore_mem>>
      tpu.enqueue_dma source(%807 : memref<128xf32, #tpu.memory_space<any>>) target(%809 : memref<128xf32, #tpu.memory_space<vmem>>) target_semaphore(%811 : memref<!tpu.dma_semaphore, #tpu.memory_space<semaphore_mem>>)
      %c4_i32_555 = arith.constant 4 : i32
      %812 = arith.addi %425, %c4_i32_555 : i32
      %c3_i32_556 = arith.constant 3 : i32
      %813 = arith.addi %426, %c3_i32_556 : i32
      %814 = arith.index_cast %812 : i32 to index
      %815 = arith.index_cast %813 : i32 to index
      %816 = memref.load %arg2[%814, %815] : memref<8x8xi32, #tpu.memory_space<smem>>
      %c4_i32_557 = arith.constant 4 : i32
      %c3_i32_558 = arith.constant 3 : i32
      %c0_i32_559 = arith.constant 0 : i32
      %817 = tpu.memref_slice %arg4[%816, %c0_i32_559] : memref<64x128xf32, #tpu.memory_space<any>> -> memref<1x128xf32, #tpu.memory_space<any>>
      %818 = tpu.memref_squeeze %817 : memref<1x128xf32, #tpu.memory_space<any>> -> memref<128xf32, #tpu.memory_space<any>>
      %c0_i32_560 = arith.constant 0 : i32
      %819 = tpu.memref_slice %arg10[%9, %c4_i32_557, %c3_i32_558, %c0_i32_560] : memref<2x8x8x128xf32, #tpu.memory_space<vmem>> -> memref<1x1x1x128xf32, #tpu.memory_space<vmem>>
      %820 = tpu.memref_squeeze %819 : memref<1x1x1x128xf32, #tpu.memory_space<vmem>> -> memref<128xf32, #tpu.memory_space<vmem>>
      %821 = tpu.memref_slice %arg11[%9] : memref<2x!tpu.dma_semaphore, #tpu.memory_space<semaphore_mem>> -> memref<1x!tpu.dma_semaphore, #tpu.memory_space<semaphore_mem>>
      %822 = tpu.memref_squeeze %821 : memref<1x!tpu.dma_semaphore, #tpu.memory_space<semaphore_mem>> -> memref<!tpu.dma_semaphore, #tpu.memory_space<semaphore_mem>>
      tpu.enqueue_dma source(%818 : memref<128xf32, #tpu.memory_space<any>>) target(%820 : memref<128xf32, #tpu.memory_space<vmem>>) target_semaphore(%822 : memref<!tpu.dma_semaphore, #tpu.memory_space<semaphore_mem>>)
      %c4_i32_561 = arith.constant 4 : i32
      %823 = arith.addi %425, %c4_i32_561 : i32
      %c4_i32_562 = arith.constant 4 : i32
      %824 = arith.addi %426, %c4_i32_562 : i32
      %825 = arith.index_cast %823 : i32 to index
      %826 = arith.index_cast %824 : i32 to index
      %827 = memref.load %arg2[%825, %826] : memref<8x8xi32, #tpu.memory_space<smem>>
      %c4_i32_563 = arith.constant 4 : i32
      %c4_i32_564 = arith.constant 4 : i32
      %c0_i32_565 = arith.constant 0 : i32
      %828 = tpu.memref_slice %arg4[%827, %c0_i32_565] : memref<64x128xf32, #tpu.memory_space<any>> -> memref<1x128xf32, #tpu.memory_space<any>>
      %829 = tpu.memref_squeeze %828 : memref<1x128xf32, #tpu.memory_space<any>> -> memref<128xf32, #tpu.memory_space<any>>
      %c0_i32_566 = arith.constant 0 : i32
      %830 = tpu.memref_slice %arg10[%9, %c4_i32_563, %c4_i32_564, %c0_i32_566] : memref<2x8x8x128xf32, #tpu.memory_space<vmem>> -> memref<1x1x1x128xf32, #tpu.memory_space<vmem>>
      %831 = tpu.memref_squeeze %830 : memref<1x1x1x128xf32, #tpu.memory_space<vmem>> -> memref<128xf32, #tpu.memory_space<vmem>>
      %832 = tpu.memref_slice %arg11[%9] : memref<2x!tpu.dma_semaphore, #tpu.memory_space<semaphore_mem>> -> memref<1x!tpu.dma_semaphore, #tpu.memory_space<semaphore_mem>>
      %833 = tpu.memref_squeeze %832 : memref<1x!tpu.dma_semaphore, #tpu.memory_space<semaphore_mem>> -> memref<!tpu.dma_semaphore, #tpu.memory_space<semaphore_mem>>
      tpu.enqueue_dma source(%829 : memref<128xf32, #tpu.memory_space<any>>) target(%831 : memref<128xf32, #tpu.memory_space<vmem>>) target_semaphore(%833 : memref<!tpu.dma_semaphore, #tpu.memory_space<semaphore_mem>>)
      %c4_i32_567 = arith.constant 4 : i32
      %834 = arith.addi %425, %c4_i32_567 : i32
      %c5_i32_568 = arith.constant 5 : i32
      %835 = arith.addi %426, %c5_i32_568 : i32
      %836 = arith.index_cast %834 : i32 to index
      %837 = arith.index_cast %835 : i32 to index
      %838 = memref.load %arg2[%836, %837] : memref<8x8xi32, #tpu.memory_space<smem>>
      %c4_i32_569 = arith.constant 4 : i32
      %c5_i32_570 = arith.constant 5 : i32
      %c0_i32_571 = arith.constant 0 : i32
      %839 = tpu.memref_slice %arg4[%838, %c0_i32_571] : memref<64x128xf32, #tpu.memory_space<any>> -> memref<1x128xf32, #tpu.memory_space<any>>
      %840 = tpu.memref_squeeze %839 : memref<1x128xf32, #tpu.memory_space<any>> -> memref<128xf32, #tpu.memory_space<any>>
      %c0_i32_572 = arith.constant 0 : i32
      %841 = tpu.memref_slice %arg10[%9, %c4_i32_569, %c5_i32_570, %c0_i32_572] : memref<2x8x8x128xf32, #tpu.memory_space<vmem>> -> memref<1x1x1x128xf32, #tpu.memory_space<vmem>>
      %842 = tpu.memref_squeeze %841 : memref<1x1x1x128xf32, #tpu.memory_space<vmem>> -> memref<128xf32, #tpu.memory_space<vmem>>
      %843 = tpu.memref_slice %arg11[%9] : memref<2x!tpu.dma_semaphore, #tpu.memory_space<semaphore_mem>> -> memref<1x!tpu.dma_semaphore, #tpu.memory_space<semaphore_mem>>
      %844 = tpu.memref_squeeze %843 : memref<1x!tpu.dma_semaphore, #tpu.memory_space<semaphore_mem>> -> memref<!tpu.dma_semaphore, #tpu.memory_space<semaphore_mem>>
      tpu.enqueue_dma source(%840 : memref<128xf32, #tpu.memory_space<any>>) target(%842 : memref<128xf32, #tpu.memory_space<vmem>>) target_semaphore(%844 : memref<!tpu.dma_semaphore, #tpu.memory_space<semaphore_mem>>)
      %c4_i32_573 = arith.constant 4 : i32
      %845 = arith.addi %425, %c4_i32_573 : i32
      %c6_i32_574 = arith.constant 6 : i32
      %846 = arith.addi %426, %c6_i32_574 : i32
      %847 = arith.index_cast %845 : i32 to index
      %848 = arith.index_cast %846 : i32 to index
      %849 = memref.load %arg2[%847, %848] : memref<8x8xi32, #tpu.memory_space<smem>>
      %c4_i32_575 = arith.constant 4 : i32
      %c6_i32_576 = arith.constant 6 : i32
      %c0_i32_577 = arith.constant 0 : i32
      %850 = tpu.memref_slice %arg4[%849, %c0_i32_577] : memref<64x128xf32, #tpu.memory_space<any>> -> memref<1x128xf32, #tpu.memory_space<any>>
      %851 = tpu.memref_squeeze %850 : memref<1x128xf32, #tpu.memory_space<any>> -> memref<128xf32, #tpu.memory_space<any>>
      %c0_i32_578 = arith.constant 0 : i32
      %852 = tpu.memref_slice %arg10[%9, %c4_i32_575, %c6_i32_576, %c0_i32_578] : memref<2x8x8x128xf32, #tpu.memory_space<vmem>> -> memref<1x1x1x128xf32, #tpu.memory_space<vmem>>
      %853 = tpu.memref_squeeze %852 : memref<1x1x1x128xf32, #tpu.memory_space<vmem>> -> memref<128xf32, #tpu.memory_space<vmem>>
      %854 = tpu.memref_slice %arg11[%9] : memref<2x!tpu.dma_semaphore, #tpu.memory_space<semaphore_mem>> -> memref<1x!tpu.dma_semaphore, #tpu.memory_space<semaphore_mem>>
      %855 = tpu.memref_squeeze %854 : memref<1x!tpu.dma_semaphore, #tpu.memory_space<semaphore_mem>> -> memref<!tpu.dma_semaphore, #tpu.memory_space<semaphore_mem>>
      tpu.enqueue_dma source(%851 : memref<128xf32, #tpu.memory_space<any>>) target(%853 : memref<128xf32, #tpu.memory_space<vmem>>) target_semaphore(%855 : memref<!tpu.dma_semaphore, #tpu.memory_space<semaphore_mem>>)
      %c4_i32_579 = arith.constant 4 : i32
      %856 = arith.addi %425, %c4_i32_579 : i32
      %c7_i32_580 = arith.constant 7 : i32
      %857 = arith.addi %426, %c7_i32_580 : i32
      %858 = arith.index_cast %856 : i32 to index
      %859 = arith.index_cast %857 : i32 to index
      %860 = memref.load %arg2[%858, %859] : memref<8x8xi32, #tpu.memory_space<smem>>
      %c4_i32_581 = arith.constant 4 : i32
      %c7_i32_582 = arith.constant 7 : i32
      %c0_i32_583 = arith.constant 0 : i32
      %861 = tpu.memref_slice %arg4[%860, %c0_i32_583] : memref<64x128xf32, #tpu.memory_space<any>> -> memref<1x128xf32, #tpu.memory_space<any>>
      %862 = tpu.memref_squeeze %861 : memref<1x128xf32, #tpu.memory_space<any>> -> memref<128xf32, #tpu.memory_space<any>>
      %c0_i32_584 = arith.constant 0 : i32
      %863 = tpu.memref_slice %arg10[%9, %c4_i32_581, %c7_i32_582, %c0_i32_584] : memref<2x8x8x128xf32, #tpu.memory_space<vmem>> -> memref<1x1x1x128xf32, #tpu.memory_space<vmem>>
      %864 = tpu.memref_squeeze %863 : memref<1x1x1x128xf32, #tpu.memory_space<vmem>> -> memref<128xf32, #tpu.memory_space<vmem>>
      %865 = tpu.memref_slice %arg11[%9] : memref<2x!tpu.dma_semaphore, #tpu.memory_space<semaphore_mem>> -> memref<1x!tpu.dma_semaphore, #tpu.memory_space<semaphore_mem>>
      %866 = tpu.memref_squeeze %865 : memref<1x!tpu.dma_semaphore, #tpu.memory_space<semaphore_mem>> -> memref<!tpu.dma_semaphore, #tpu.memory_space<semaphore_mem>>
      tpu.enqueue_dma source(%862 : memref<128xf32, #tpu.memory_space<any>>) target(%864 : memref<128xf32, #tpu.memory_space<vmem>>) target_semaphore(%866 : memref<!tpu.dma_semaphore, #tpu.memory_space<semaphore_mem>>)
      %c5_i32_585 = arith.constant 5 : i32
      %867 = arith.addi %425, %c5_i32_585 : i32
      %c0_i32_586 = arith.constant 0 : i32
      %868 = arith.addi %426, %c0_i32_586 : i32
      %869 = arith.index_cast %867 : i32 to index
      %870 = arith.index_cast %868 : i32 to index
      %871 = memref.load %arg2[%869, %870] : memref<8x8xi32, #tpu.memory_space<smem>>
      %c5_i32_587 = arith.constant 5 : i32
      %c0_i32_588 = arith.constant 0 : i32
      %c0_i32_589 = arith.constant 0 : i32
      %872 = tpu.memref_slice %arg4[%871, %c0_i32_589] : memref<64x128xf32, #tpu.memory_space<any>> -> memref<1x128xf32, #tpu.memory_space<any>>
      %873 = tpu.memref_squeeze %872 : memref<1x128xf32, #tpu.memory_space<any>> -> memref<128xf32, #tpu.memory_space<any>>
      %c0_i32_590 = arith.constant 0 : i32
      %874 = tpu.memref_slice %arg10[%9, %c5_i32_587, %c0_i32_588, %c0_i32_590] : memref<2x8x8x128xf32, #tpu.memory_space<vmem>> -> memref<1x1x1x128xf32, #tpu.memory_space<vmem>>
      %875 = tpu.memref_squeeze %874 : memref<1x1x1x128xf32, #tpu.memory_space<vmem>> -> memref<128xf32, #tpu.memory_space<vmem>>
      %876 = tpu.memref_slice %arg11[%9] : memref<2x!tpu.dma_semaphore, #tpu.memory_space<semaphore_mem>> -> memref<1x!tpu.dma_semaphore, #tpu.memory_space<semaphore_mem>>
      %877 = tpu.memref_squeeze %876 : memref<1x!tpu.dma_semaphore, #tpu.memory_space<semaphore_mem>> -> memref<!tpu.dma_semaphore, #tpu.memory_space<semaphore_mem>>
      tpu.enqueue_dma source(%873 : memref<128xf32, #tpu.memory_space<any>>) target(%875 : memref<128xf32, #tpu.memory_space<vmem>>) target_semaphore(%877 : memref<!tpu.dma_semaphore, #tpu.memory_space<semaphore_mem>>)
      %c5_i32_591 = arith.constant 5 : i32
      %878 = arith.addi %425, %c5_i32_591 : i32
      %c1_i32_592 = arith.constant 1 : i32
      %879 = arith.addi %426, %c1_i32_592 : i32
      %880 = arith.index_cast %878 : i32 to index
      %881 = arith.index_cast %879 : i32 to index
      %882 = memref.load %arg2[%880, %881] : memref<8x8xi32, #tpu.memory_space<smem>>
      %c5_i32_593 = arith.constant 5 : i32
      %c1_i32_594 = arith.constant 1 : i32
      %c0_i32_595 = arith.constant 0 : i32
      %883 = tpu.memref_slice %arg4[%882, %c0_i32_595] : memref<64x128xf32, #tpu.memory_space<any>> -> memref<1x128xf32, #tpu.memory_space<any>>
      %884 = tpu.memref_squeeze %883 : memref<1x128xf32, #tpu.memory_space<any>> -> memref<128xf32, #tpu.memory_space<any>>
      %c0_i32_596 = arith.constant 0 : i32
      %885 = tpu.memref_slice %arg10[%9, %c5_i32_593, %c1_i32_594, %c0_i32_596] : memref<2x8x8x128xf32, #tpu.memory_space<vmem>> -> memref<1x1x1x128xf32, #tpu.memory_space<vmem>>
      %886 = tpu.memref_squeeze %885 : memref<1x1x1x128xf32, #tpu.memory_space<vmem>> -> memref<128xf32, #tpu.memory_space<vmem>>
      %887 = tpu.memref_slice %arg11[%9] : memref<2x!tpu.dma_semaphore, #tpu.memory_space<semaphore_mem>> -> memref<1x!tpu.dma_semaphore, #tpu.memory_space<semaphore_mem>>
      %888 = tpu.memref_squeeze %887 : memref<1x!tpu.dma_semaphore, #tpu.memory_space<semaphore_mem>> -> memref<!tpu.dma_semaphore, #tpu.memory_space<semaphore_mem>>
      tpu.enqueue_dma source(%884 : memref<128xf32, #tpu.memory_space<any>>) target(%886 : memref<128xf32, #tpu.memory_space<vmem>>) target_semaphore(%888 : memref<!tpu.dma_semaphore, #tpu.memory_space<semaphore_mem>>)
      %c5_i32_597 = arith.constant 5 : i32
      %889 = arith.addi %425, %c5_i32_597 : i32
      %c2_i32_598 = arith.constant 2 : i32
      %890 = arith.addi %426, %c2_i32_598 : i32
      %891 = arith.index_cast %889 : i32 to index
      %892 = arith.index_cast %890 : i32 to index
      %893 = memref.load %arg2[%891, %892] : memref<8x8xi32, #tpu.memory_space<smem>>
      %c5_i32_599 = arith.constant 5 : i32
      %c2_i32_600 = arith.constant 2 : i32
      %c0_i32_601 = arith.constant 0 : i32
      %894 = tpu.memref_slice %arg4[%893, %c0_i32_601] : memref<64x128xf32, #tpu.memory_space<any>> -> memref<1x128xf32, #tpu.memory_space<any>>
      %895 = tpu.memref_squeeze %894 : memref<1x128xf32, #tpu.memory_space<any>> -> memref<128xf32, #tpu.memory_space<any>>
      %c0_i32_602 = arith.constant 0 : i32
      %896 = tpu.memref_slice %arg10[%9, %c5_i32_599, %c2_i32_600, %c0_i32_602] : memref<2x8x8x128xf32, #tpu.memory_space<vmem>> -> memref<1x1x1x128xf32, #tpu.memory_space<vmem>>
      %897 = tpu.memref_squeeze %896 : memref<1x1x1x128xf32, #tpu.memory_space<vmem>> -> memref<128xf32, #tpu.memory_space<vmem>>
      %898 = tpu.memref_slice %arg11[%9] : memref<2x!tpu.dma_semaphore, #tpu.memory_space<semaphore_mem>> -> memref<1x!tpu.dma_semaphore, #tpu.memory_space<semaphore_mem>>
      %899 = tpu.memref_squeeze %898 : memref<1x!tpu.dma_semaphore, #tpu.memory_space<semaphore_mem>> -> memref<!tpu.dma_semaphore, #tpu.memory_space<semaphore_mem>>
      tpu.enqueue_dma source(%895 : memref<128xf32, #tpu.memory_space<any>>) target(%897 : memref<128xf32, #tpu.memory_space<vmem>>) target_semaphore(%899 : memref<!tpu.dma_semaphore, #tpu.memory_space<semaphore_mem>>)
      %c5_i32_603 = arith.constant 5 : i32
      %900 = arith.addi %425, %c5_i32_603 : i32
      %c3_i32_604 = arith.constant 3 : i32
      %901 = arith.addi %426, %c3_i32_604 : i32
      %902 = arith.index_cast %900 : i32 to index
      %903 = arith.index_cast %901 : i32 to index
      %904 = memref.load %arg2[%902, %903] : memref<8x8xi32, #tpu.memory_space<smem>>
      %c5_i32_605 = arith.constant 5 : i32
      %c3_i32_606 = arith.constant 3 : i32
      %c0_i32_607 = arith.constant 0 : i32
      %905 = tpu.memref_slice %arg4[%904, %c0_i32_607] : memref<64x128xf32, #tpu.memory_space<any>> -> memref<1x128xf32, #tpu.memory_space<any>>
      %906 = tpu.memref_squeeze %905 : memref<1x128xf32, #tpu.memory_space<any>> -> memref<128xf32, #tpu.memory_space<any>>
      %c0_i32_608 = arith.constant 0 : i32
      %907 = tpu.memref_slice %arg10[%9, %c5_i32_605, %c3_i32_606, %c0_i32_608] : memref<2x8x8x128xf32, #tpu.memory_space<vmem>> -> memref<1x1x1x128xf32, #tpu.memory_space<vmem>>
      %908 = tpu.memref_squeeze %907 : memref<1x1x1x128xf32, #tpu.memory_space<vmem>> -> memref<128xf32, #tpu.memory_space<vmem>>
      %909 = tpu.memref_slice %arg11[%9] : memref<2x!tpu.dma_semaphore, #tpu.memory_space<semaphore_mem>> -> memref<1x!tpu.dma_semaphore, #tpu.memory_space<semaphore_mem>>
      %910 = tpu.memref_squeeze %909 : memref<1x!tpu.dma_semaphore, #tpu.memory_space<semaphore_mem>> -> memref<!tpu.dma_semaphore, #tpu.memory_space<semaphore_mem>>
      tpu.enqueue_dma source(%906 : memref<128xf32, #tpu.memory_space<any>>) target(%908 : memref<128xf32, #tpu.memory_space<vmem>>) target_semaphore(%910 : memref<!tpu.dma_semaphore, #tpu.memory_space<semaphore_mem>>)
      %c5_i32_609 = arith.constant 5 : i32
      %911 = arith.addi %425, %c5_i32_609 : i32
      %c4_i32_610 = arith.constant 4 : i32
      %912 = arith.addi %426, %c4_i32_610 : i32
      %913 = arith.index_cast %911 : i32 to index
      %914 = arith.index_cast %912 : i32 to index
      %915 = memref.load %arg2[%913, %914] : memref<8x8xi32, #tpu.memory_space<smem>>
      %c5_i32_611 = arith.constant 5 : i32
      %c4_i32_612 = arith.constant 4 : i32
      %c0_i32_613 = arith.constant 0 : i32
      %916 = tpu.memref_slice %arg4[%915, %c0_i32_613] : memref<64x128xf32, #tpu.memory_space<any>> -> memref<1x128xf32, #tpu.memory_space<any>>
      %917 = tpu.memref_squeeze %916 : memref<1x128xf32, #tpu.memory_space<any>> -> memref<128xf32, #tpu.memory_space<any>>
      %c0_i32_614 = arith.constant 0 : i32
      %918 = tpu.memref_slice %arg10[%9, %c5_i32_611, %c4_i32_612, %c0_i32_614] : memref<2x8x8x128xf32, #tpu.memory_space<vmem>> -> memref<1x1x1x128xf32, #tpu.memory_space<vmem>>
      %919 = tpu.memref_squeeze %918 : memref<1x1x1x128xf32, #tpu.memory_space<vmem>> -> memref<128xf32, #tpu.memory_space<vmem>>
      %920 = tpu.memref_slice %arg11[%9] : memref<2x!tpu.dma_semaphore, #tpu.memory_space<semaphore_mem>> -> memref<1x!tpu.dma_semaphore, #tpu.memory_space<semaphore_mem>>
      %921 = tpu.memref_squeeze %920 : memref<1x!tpu.dma_semaphore, #tpu.memory_space<semaphore_mem>> -> memref<!tpu.dma_semaphore, #tpu.memory_space<semaphore_mem>>
      tpu.enqueue_dma source(%917 : memref<128xf32, #tpu.memory_space<any>>) target(%919 : memref<128xf32, #tpu.memory_space<vmem>>) target_semaphore(%921 : memref<!tpu.dma_semaphore, #tpu.memory_space<semaphore_mem>>)
      %c5_i32_615 = arith.constant 5 : i32
      %922 = arith.addi %425, %c5_i32_615 : i32
      %c5_i32_616 = arith.constant 5 : i32
      %923 = arith.addi %426, %c5_i32_616 : i32
      %924 = arith.index_cast %922 : i32 to index
      %925 = arith.index_cast %923 : i32 to index
      %926 = memref.load %arg2[%924, %925] : memref<8x8xi32, #tpu.memory_space<smem>>
      %c5_i32_617 = arith.constant 5 : i32
      %c5_i32_618 = arith.constant 5 : i32
      %c0_i32_619 = arith.constant 0 : i32
      %927 = tpu.memref_slice %arg4[%926, %c0_i32_619] : memref<64x128xf32, #tpu.memory_space<any>> -> memref<1x128xf32, #tpu.memory_space<any>>
      %928 = tpu.memref_squeeze %927 : memref<1x128xf32, #tpu.memory_space<any>> -> memref<128xf32, #tpu.memory_space<any>>
      %c0_i32_620 = arith.constant 0 : i32
      %929 = tpu.memref_slice %arg10[%9, %c5_i32_617, %c5_i32_618, %c0_i32_620] : memref<2x8x8x128xf32, #tpu.memory_space<vmem>> -> memref<1x1x1x128xf32, #tpu.memory_space<vmem>>
      %930 = tpu.memref_squeeze %929 : memref<1x1x1x128xf32, #tpu.memory_space<vmem>> -> memref<128xf32, #tpu.memory_space<vmem>>
      %931 = tpu.memref_slice %arg11[%9] : memref<2x!tpu.dma_semaphore, #tpu.memory_space<semaphore_mem>> -> memref<1x!tpu.dma_semaphore, #tpu.memory_space<semaphore_mem>>
      %932 = tpu.memref_squeeze %931 : memref<1x!tpu.dma_semaphore, #tpu.memory_space<semaphore_mem>> -> memref<!tpu.dma_semaphore, #tpu.memory_space<semaphore_mem>>
      tpu.enqueue_dma source(%928 : memref<128xf32, #tpu.memory_space<any>>) target(%930 : memref<128xf32, #tpu.memory_space<vmem>>) target_semaphore(%932 : memref<!tpu.dma_semaphore, #tpu.memory_space<semaphore_mem>>)
      %c5_i32_621 = arith.constant 5 : i32
      %933 = arith.addi %425, %c5_i32_621 : i32
      %c6_i32_622 = arith.constant 6 : i32
      %934 = arith.addi %426, %c6_i32_622 : i32
      %935 = arith.index_cast %933 : i32 to index
      %936 = arith.index_cast %934 : i32 to index
      %937 = memref.load %arg2[%935, %936] : memref<8x8xi32, #tpu.memory_space<smem>>
      %c5_i32_623 = arith.constant 5 : i32
      %c6_i32_624 = arith.constant 6 : i32
      %c0_i32_625 = arith.constant 0 : i32
      %938 = tpu.memref_slice %arg4[%937, %c0_i32_625] : memref<64x128xf32, #tpu.memory_space<any>> -> memref<1x128xf32, #tpu.memory_space<any>>
      %939 = tpu.memref_squeeze %938 : memref<1x128xf32, #tpu.memory_space<any>> -> memref<128xf32, #tpu.memory_space<any>>
      %c0_i32_626 = arith.constant 0 : i32
      %940 = tpu.memref_slice %arg10[%9, %c5_i32_623, %c6_i32_624, %c0_i32_626] : memref<2x8x8x128xf32, #tpu.memory_space<vmem>> -> memref<1x1x1x128xf32, #tpu.memory_space<vmem>>
      %941 = tpu.memref_squeeze %940 : memref<1x1x1x128xf32, #tpu.memory_space<vmem>> -> memref<128xf32, #tpu.memory_space<vmem>>
      %942 = tpu.memref_slice %arg11[%9] : memref<2x!tpu.dma_semaphore, #tpu.memory_space<semaphore_mem>> -> memref<1x!tpu.dma_semaphore, #tpu.memory_space<semaphore_mem>>
      %943 = tpu.memref_squeeze %942 : memref<1x!tpu.dma_semaphore, #tpu.memory_space<semaphore_mem>> -> memref<!tpu.dma_semaphore, #tpu.memory_space<semaphore_mem>>
      tpu.enqueue_dma source(%939 : memref<128xf32, #tpu.memory_space<any>>) target(%941 : memref<128xf32, #tpu.memory_space<vmem>>) target_semaphore(%943 : memref<!tpu.dma_semaphore, #tpu.memory_space<semaphore_mem>>)
      %c5_i32_627 = arith.constant 5 : i32
      %944 = arith.addi %425, %c5_i32_627 : i32
      %c7_i32_628 = arith.constant 7 : i32
      %945 = arith.addi %426, %c7_i32_628 : i32
      %946 = arith.index_cast %944 : i32 to index
      %947 = arith.index_cast %945 : i32 to index
      %948 = memref.load %arg2[%946, %947] : memref<8x8xi32, #tpu.memory_space<smem>>
      %c5_i32_629 = arith.constant 5 : i32
      %c7_i32_630 = arith.constant 7 : i32
      %c0_i32_631 = arith.constant 0 : i32
      %949 = tpu.memref_slice %arg4[%948, %c0_i32_631] : memref<64x128xf32, #tpu.memory_space<any>> -> memref<1x128xf32, #tpu.memory_space<any>>
      %950 = tpu.memref_squeeze %949 : memref<1x128xf32, #tpu.memory_space<any>> -> memref<128xf32, #tpu.memory_space<any>>
      %c0_i32_632 = arith.constant 0 : i32
      %951 = tpu.memref_slice %arg10[%9, %c5_i32_629, %c7_i32_630, %c0_i32_632] : memref<2x8x8x128xf32, #tpu.memory_space<vmem>> -> memref<1x1x1x128xf32, #tpu.memory_space<vmem>>
      %952 = tpu.memref_squeeze %951 : memref<1x1x1x128xf32, #tpu.memory_space<vmem>> -> memref<128xf32, #tpu.memory_space<vmem>>
      %953 = tpu.memref_slice %arg11[%9] : memref<2x!tpu.dma_semaphore, #tpu.memory_space<semaphore_mem>> -> memref<1x!tpu.dma_semaphore, #tpu.memory_space<semaphore_mem>>
      %954 = tpu.memref_squeeze %953 : memref<1x!tpu.dma_semaphore, #tpu.memory_space<semaphore_mem>> -> memref<!tpu.dma_semaphore, #tpu.memory_space<semaphore_mem>>
      tpu.enqueue_dma source(%950 : memref<128xf32, #tpu.memory_space<any>>) target(%952 : memref<128xf32, #tpu.memory_space<vmem>>) target_semaphore(%954 : memref<!tpu.dma_semaphore, #tpu.memory_space<semaphore_mem>>)
      %c6_i32_633 = arith.constant 6 : i32
      %955 = arith.addi %425, %c6_i32_633 : i32
      %c0_i32_634 = arith.constant 0 : i32
      %956 = arith.addi %426, %c0_i32_634 : i32
      %957 = arith.index_cast %955 : i32 to index
      %958 = arith.index_cast %956 : i32 to index
      %959 = memref.load %arg2[%957, %958] : memref<8x8xi32, #tpu.memory_space<smem>>
      %c6_i32_635 = arith.constant 6 : i32
      %c0_i32_636 = arith.constant 0 : i32
      %c0_i32_637 = arith.constant 0 : i32
      %960 = tpu.memref_slice %arg4[%959, %c0_i32_637] : memref<64x128xf32, #tpu.memory_space<any>> -> memref<1x128xf32, #tpu.memory_space<any>>
      %961 = tpu.memref_squeeze %960 : memref<1x128xf32, #tpu.memory_space<any>> -> memref<128xf32, #tpu.memory_space<any>>
      %c0_i32_638 = arith.constant 0 : i32
      %962 = tpu.memref_slice %arg10[%9, %c6_i32_635, %c0_i32_636, %c0_i32_638] : memref<2x8x8x128xf32, #tpu.memory_space<vmem>> -> memref<1x1x1x128xf32, #tpu.memory_space<vmem>>
      %963 = tpu.memref_squeeze %962 : memref<1x1x1x128xf32, #tpu.memory_space<vmem>> -> memref<128xf32, #tpu.memory_space<vmem>>
      %964 = tpu.memref_slice %arg11[%9] : memref<2x!tpu.dma_semaphore, #tpu.memory_space<semaphore_mem>> -> memref<1x!tpu.dma_semaphore, #tpu.memory_space<semaphore_mem>>
      %965 = tpu.memref_squeeze %964 : memref<1x!tpu.dma_semaphore, #tpu.memory_space<semaphore_mem>> -> memref<!tpu.dma_semaphore, #tpu.memory_space<semaphore_mem>>
      tpu.enqueue_dma source(%961 : memref<128xf32, #tpu.memory_space<any>>) target(%963 : memref<128xf32, #tpu.memory_space<vmem>>) target_semaphore(%965 : memref<!tpu.dma_semaphore, #tpu.memory_space<semaphore_mem>>)
      %c6_i32_639 = arith.constant 6 : i32
      %966 = arith.addi %425, %c6_i32_639 : i32
      %c1_i32_640 = arith.constant 1 : i32
      %967 = arith.addi %426, %c1_i32_640 : i32
      %968 = arith.index_cast %966 : i32 to index
      %969 = arith.index_cast %967 : i32 to index
      %970 = memref.load %arg2[%968, %969] : memref<8x8xi32, #tpu.memory_space<smem>>
      %c6_i32_641 = arith.constant 6 : i32
      %c1_i32_642 = arith.constant 1 : i32
      %c0_i32_643 = arith.constant 0 : i32
      %971 = tpu.memref_slice %arg4[%970, %c0_i32_643] : memref<64x128xf32, #tpu.memory_space<any>> -> memref<1x128xf32, #tpu.memory_space<any>>
      %972 = tpu.memref_squeeze %971 : memref<1x128xf32, #tpu.memory_space<any>> -> memref<128xf32, #tpu.memory_space<any>>
      %c0_i32_644 = arith.constant 0 : i32
      %973 = tpu.memref_slice %arg10[%9, %c6_i32_641, %c1_i32_642, %c0_i32_644] : memref<2x8x8x128xf32, #tpu.memory_space<vmem>> -> memref<1x1x1x128xf32, #tpu.memory_space<vmem>>
      %974 = tpu.memref_squeeze %973 : memref<1x1x1x128xf32, #tpu.memory_space<vmem>> -> memref<128xf32, #tpu.memory_space<vmem>>
      %975 = tpu.memref_slice %arg11[%9] : memref<2x!tpu.dma_semaphore, #tpu.memory_space<semaphore_mem>> -> memref<1x!tpu.dma_semaphore, #tpu.memory_space<semaphore_mem>>
      %976 = tpu.memref_squeeze %975 : memref<1x!tpu.dma_semaphore, #tpu.memory_space<semaphore_mem>> -> memref<!tpu.dma_semaphore, #tpu.memory_space<semaphore_mem>>
      tpu.enqueue_dma source(%972 : memref<128xf32, #tpu.memory_space<any>>) target(%974 : memref<128xf32, #tpu.memory_space<vmem>>) target_semaphore(%976 : memref<!tpu.dma_semaphore, #tpu.memory_space<semaphore_mem>>)
      %c6_i32_645 = arith.constant 6 : i32
      %977 = arith.addi %425, %c6_i32_645 : i32
      %c2_i32_646 = arith.constant 2 : i32
      %978 = arith.addi %426, %c2_i32_646 : i32
      %979 = arith.index_cast %977 : i32 to index
      %980 = arith.index_cast %978 : i32 to index
      %981 = memref.load %arg2[%979, %980] : memref<8x8xi32, #tpu.memory_space<smem>>
      %c6_i32_647 = arith.constant 6 : i32
      %c2_i32_648 = arith.constant 2 : i32
      %c0_i32_649 = arith.constant 0 : i32
      %982 = tpu.memref_slice %arg4[%981, %c0_i32_649] : memref<64x128xf32, #tpu.memory_space<any>> -> memref<1x128xf32, #tpu.memory_space<any>>
      %983 = tpu.memref_squeeze %982 : memref<1x128xf32, #tpu.memory_space<any>> -> memref<128xf32, #tpu.memory_space<any>>
      %c0_i32_650 = arith.constant 0 : i32
      %984 = tpu.memref_slice %arg10[%9, %c6_i32_647, %c2_i32_648, %c0_i32_650] : memref<2x8x8x128xf32, #tpu.memory_space<vmem>> -> memref<1x1x1x128xf32, #tpu.memory_space<vmem>>
      %985 = tpu.memref_squeeze %984 : memref<1x1x1x128xf32, #tpu.memory_space<vmem>> -> memref<128xf32, #tpu.memory_space<vmem>>
      %986 = tpu.memref_slice %arg11[%9] : memref<2x!tpu.dma_semaphore, #tpu.memory_space<semaphore_mem>> -> memref<1x!tpu.dma_semaphore, #tpu.memory_space<semaphore_mem>>
      %987 = tpu.memref_squeeze %986 : memref<1x!tpu.dma_semaphore, #tpu.memory_space<semaphore_mem>> -> memref<!tpu.dma_semaphore, #tpu.memory_space<semaphore_mem>>
      tpu.enqueue_dma source(%983 : memref<128xf32, #tpu.memory_space<any>>) target(%985 : memref<128xf32, #tpu.memory_space<vmem>>) target_semaphore(%987 : memref<!tpu.dma_semaphore, #tpu.memory_space<semaphore_mem>>)
      %c6_i32_651 = arith.constant 6 : i32
      %988 = arith.addi %425, %c6_i32_651 : i32
      %c3_i32_652 = arith.constant 3 : i32
      %989 = arith.addi %426, %c3_i32_652 : i32
      %990 = arith.index_cast %988 : i32 to index
      %991 = arith.index_cast %989 : i32 to index
      %992 = memref.load %arg2[%990, %991] : memref<8x8xi32, #tpu.memory_space<smem>>
      %c6_i32_653 = arith.constant 6 : i32
      %c3_i32_654 = arith.constant 3 : i32
      %c0_i32_655 = arith.constant 0 : i32
      %993 = tpu.memref_slice %arg4[%992, %c0_i32_655] : memref<64x128xf32, #tpu.memory_space<any>> -> memref<1x128xf32, #tpu.memory_space<any>>
      %994 = tpu.memref_squeeze %993 : memref<1x128xf32, #tpu.memory_space<any>> -> memref<128xf32, #tpu.memory_space<any>>
      %c0_i32_656 = arith.constant 0 : i32
      %995 = tpu.memref_slice %arg10[%9, %c6_i32_653, %c3_i32_654, %c0_i32_656] : memref<2x8x8x128xf32, #tpu.memory_space<vmem>> -> memref<1x1x1x128xf32, #tpu.memory_space<vmem>>
      %996 = tpu.memref_squeeze %995 : memref<1x1x1x128xf32, #tpu.memory_space<vmem>> -> memref<128xf32, #tpu.memory_space<vmem>>
      %997 = tpu.memref_slice %arg11[%9] : memref<2x!tpu.dma_semaphore, #tpu.memory_space<semaphore_mem>> -> memref<1x!tpu.dma_semaphore, #tpu.memory_space<semaphore_mem>>
      %998 = tpu.memref_squeeze %997 : memref<1x!tpu.dma_semaphore, #tpu.memory_space<semaphore_mem>> -> memref<!tpu.dma_semaphore, #tpu.memory_space<semaphore_mem>>
      tpu.enqueue_dma source(%994 : memref<128xf32, #tpu.memory_space<any>>) target(%996 : memref<128xf32, #tpu.memory_space<vmem>>) target_semaphore(%998 : memref<!tpu.dma_semaphore, #tpu.memory_space<semaphore_mem>>)
      %c6_i32_657 = arith.constant 6 : i32
      %999 = arith.addi %425, %c6_i32_657 : i32
      %c4_i32_658 = arith.constant 4 : i32
      %1000 = arith.addi %426, %c4_i32_658 : i32
      %1001 = arith.index_cast %999 : i32 to index
      %1002 = arith.index_cast %1000 : i32 to index
      %1003 = memref.load %arg2[%1001, %1002] : memref<8x8xi32, #tpu.memory_space<smem>>
      %c6_i32_659 = arith.constant 6 : i32
      %c4_i32_660 = arith.constant 4 : i32
      %c0_i32_661 = arith.constant 0 : i32
      %1004 = tpu.memref_slice %arg4[%1003, %c0_i32_661] : memref<64x128xf32, #tpu.memory_space<any>> -> memref<1x128xf32, #tpu.memory_space<any>>
      %1005 = tpu.memref_squeeze %1004 : memref<1x128xf32, #tpu.memory_space<any>> -> memref<128xf32, #tpu.memory_space<any>>
      %c0_i32_662 = arith.constant 0 : i32
      %1006 = tpu.memref_slice %arg10[%9, %c6_i32_659, %c4_i32_660, %c0_i32_662] : memref<2x8x8x128xf32, #tpu.memory_space<vmem>> -> memref<1x1x1x128xf32, #tpu.memory_space<vmem>>
      %1007 = tpu.memref_squeeze %1006 : memref<1x1x1x128xf32, #tpu.memory_space<vmem>> -> memref<128xf32, #tpu.memory_space<vmem>>
      %1008 = tpu.memref_slice %arg11[%9] : memref<2x!tpu.dma_semaphore, #tpu.memory_space<semaphore_mem>> -> memref<1x!tpu.dma_semaphore, #tpu.memory_space<semaphore_mem>>
      %1009 = tpu.memref_squeeze %1008 : memref<1x!tpu.dma_semaphore, #tpu.memory_space<semaphore_mem>> -> memref<!tpu.dma_semaphore, #tpu.memory_space<semaphore_mem>>
      tpu.enqueue_dma source(%1005 : memref<128xf32, #tpu.memory_space<any>>) target(%1007 : memref<128xf32, #tpu.memory_space<vmem>>) target_semaphore(%1009 : memref<!tpu.dma_semaphore, #tpu.memory_space<semaphore_mem>>)
      %c6_i32_663 = arith.constant 6 : i32
      %1010 = arith.addi %425, %c6_i32_663 : i32
      %c5_i32_664 = arith.constant 5 : i32
      %1011 = arith.addi %426, %c5_i32_664 : i32
      %1012 = arith.index_cast %1010 : i32 to index
      %1013 = arith.index_cast %1011 : i32 to index
      %1014 = memref.load %arg2[%1012, %1013] : memref<8x8xi32, #tpu.memory_space<smem>>
      %c6_i32_665 = arith.constant 6 : i32
      %c5_i32_666 = arith.constant 5 : i32
      %c0_i32_667 = arith.constant 0 : i32
      %1015 = tpu.memref_slice %arg4[%1014, %c0_i32_667] : memref<64x128xf32, #tpu.memory_space<any>> -> memref<1x128xf32, #tpu.memory_space<any>>
      %1016 = tpu.memref_squeeze %1015 : memref<1x128xf32, #tpu.memory_space<any>> -> memref<128xf32, #tpu.memory_space<any>>
      %c0_i32_668 = arith.constant 0 : i32
      %1017 = tpu.memref_slice %arg10[%9, %c6_i32_665, %c5_i32_666, %c0_i32_668] : memref<2x8x8x128xf32, #tpu.memory_space<vmem>> -> memref<1x1x1x128xf32, #tpu.memory_space<vmem>>
      %1018 = tpu.memref_squeeze %1017 : memref<1x1x1x128xf32, #tpu.memory_space<vmem>> -> memref<128xf32, #tpu.memory_space<vmem>>
      %1019 = tpu.memref_slice %arg11[%9] : memref<2x!tpu.dma_semaphore, #tpu.memory_space<semaphore_mem>> -> memref<1x!tpu.dma_semaphore, #tpu.memory_space<semaphore_mem>>
      %1020 = tpu.memref_squeeze %1019 : memref<1x!tpu.dma_semaphore, #tpu.memory_space<semaphore_mem>> -> memref<!tpu.dma_semaphore, #tpu.memory_space<semaphore_mem>>
      tpu.enqueue_dma source(%1016 : memref<128xf32, #tpu.memory_space<any>>) target(%1018 : memref<128xf32, #tpu.memory_space<vmem>>) target_semaphore(%1020 : memref<!tpu.dma_semaphore, #tpu.memory_space<semaphore_mem>>)
      %c6_i32_669 = arith.constant 6 : i32
      %1021 = arith.addi %425, %c6_i32_669 : i32
      %c6_i32_670 = arith.constant 6 : i32
      %1022 = arith.addi %426, %c6_i32_670 : i32
      %1023 = arith.index_cast %1021 : i32 to index
      %1024 = arith.index_cast %1022 : i32 to index
      %1025 = memref.load %arg2[%1023, %1024] : memref<8x8xi32, #tpu.memory_space<smem>>
      %c6_i32_671 = arith.constant 6 : i32
      %c6_i32_672 = arith.constant 6 : i32
      %c0_i32_673 = arith.constant 0 : i32
      %1026 = tpu.memref_slice %arg4[%1025, %c0_i32_673] : memref<64x128xf32, #tpu.memory_space<any>> -> memref<1x128xf32, #tpu.memory_space<any>>
      %1027 = tpu.memref_squeeze %1026 : memref<1x128xf32, #tpu.memory_space<any>> -> memref<128xf32, #tpu.memory_space<any>>
      %c0_i32_674 = arith.constant 0 : i32
      %1028 = tpu.memref_slice %arg10[%9, %c6_i32_671, %c6_i32_672, %c0_i32_674] : memref<2x8x8x128xf32, #tpu.memory_space<vmem>> -> memref<1x1x1x128xf32, #tpu.memory_space<vmem>>
      %1029 = tpu.memref_squeeze %1028 : memref<1x1x1x128xf32, #tpu.memory_space<vmem>> -> memref<128xf32, #tpu.memory_space<vmem>>
      %1030 = tpu.memref_slice %arg11[%9] : memref<2x!tpu.dma_semaphore, #tpu.memory_space<semaphore_mem>> -> memref<1x!tpu.dma_semaphore, #tpu.memory_space<semaphore_mem>>
      %1031 = tpu.memref_squeeze %1030 : memref<1x!tpu.dma_semaphore, #tpu.memory_space<semaphore_mem>> -> memref<!tpu.dma_semaphore, #tpu.memory_space<semaphore_mem>>
      tpu.enqueue_dma source(%1027 : memref<128xf32, #tpu.memory_space<any>>) target(%1029 : memref<128xf32, #tpu.memory_space<vmem>>) target_semaphore(%1031 : memref<!tpu.dma_semaphore, #tpu.memory_space<semaphore_mem>>)
      %c6_i32_675 = arith.constant 6 : i32
      %1032 = arith.addi %425, %c6_i32_675 : i32
      %c7_i32_676 = arith.constant 7 : i32
      %1033 = arith.addi %426, %c7_i32_676 : i32
      %1034 = arith.index_cast %1032 : i32 to index
      %1035 = arith.index_cast %1033 : i32 to index
      %1036 = memref.load %arg2[%1034, %1035] : memref<8x8xi32, #tpu.memory_space<smem>>
      %c6_i32_677 = arith.constant 6 : i32
      %c7_i32_678 = arith.constant 7 : i32
      %c0_i32_679 = arith.constant 0 : i32
      %1037 = tpu.memref_slice %arg4[%1036, %c0_i32_679] : memref<64x128xf32, #tpu.memory_space<any>> -> memref<1x128xf32, #tpu.memory_space<any>>
      %1038 = tpu.memref_squeeze %1037 : memref<1x128xf32, #tpu.memory_space<any>> -> memref<128xf32, #tpu.memory_space<any>>
      %c0_i32_680 = arith.constant 0 : i32
      %1039 = tpu.memref_slice %arg10[%9, %c6_i32_677, %c7_i32_678, %c0_i32_680] : memref<2x8x8x128xf32, #tpu.memory_space<vmem>> -> memref<1x1x1x128xf32, #tpu.memory_space<vmem>>
      %1040 = tpu.memref_squeeze %1039 : memref<1x1x1x128xf32, #tpu.memory_space<vmem>> -> memref<128xf32, #tpu.memory_space<vmem>>
      %1041 = tpu.memref_slice %arg11[%9] : memref<2x!tpu.dma_semaphore, #tpu.memory_space<semaphore_mem>> -> memref<1x!tpu.dma_semaphore, #tpu.memory_space<semaphore_mem>>
      %1042 = tpu.memref_squeeze %1041 : memref<1x!tpu.dma_semaphore, #tpu.memory_space<semaphore_mem>> -> memref<!tpu.dma_semaphore, #tpu.memory_space<semaphore_mem>>
      tpu.enqueue_dma source(%1038 : memref<128xf32, #tpu.memory_space<any>>) target(%1040 : memref<128xf32, #tpu.memory_space<vmem>>) target_semaphore(%1042 : memref<!tpu.dma_semaphore, #tpu.memory_space<semaphore_mem>>)
      %c7_i32_681 = arith.constant 7 : i32
      %1043 = arith.addi %425, %c7_i32_681 : i32
      %c0_i32_682 = arith.constant 0 : i32
      %1044 = arith.addi %426, %c0_i32_682 : i32
      %1045 = arith.index_cast %1043 : i32 to index
      %1046 = arith.index_cast %1044 : i32 to index
      %1047 = memref.load %arg2[%1045, %1046] : memref<8x8xi32, #tpu.memory_space<smem>>
      %c7_i32_683 = arith.constant 7 : i32
      %c0_i32_684 = arith.constant 0 : i32
      %c0_i32_685 = arith.constant 0 : i32
      %1048 = tpu.memref_slice %arg4[%1047, %c0_i32_685] : memref<64x128xf32, #tpu.memory_space<any>> -> memref<1x128xf32, #tpu.memory_space<any>>
      %1049 = tpu.memref_squeeze %1048 : memref<1x128xf32, #tpu.memory_space<any>> -> memref<128xf32, #tpu.memory_space<any>>
      %c0_i32_686 = arith.constant 0 : i32
      %1050 = tpu.memref_slice %arg10[%9, %c7_i32_683, %c0_i32_684, %c0_i32_686] : memref<2x8x8x128xf32, #tpu.memory_space<vmem>> -> memref<1x1x1x128xf32, #tpu.memory_space<vmem>>
      %1051 = tpu.memref_squeeze %1050 : memref<1x1x1x128xf32, #tpu.memory_space<vmem>> -> memref<128xf32, #tpu.memory_space<vmem>>
      %1052 = tpu.memref_slice %arg11[%9] : memref<2x!tpu.dma_semaphore, #tpu.memory_space<semaphore_mem>> -> memref<1x!tpu.dma_semaphore, #tpu.memory_space<semaphore_mem>>
      %1053 = tpu.memref_squeeze %1052 : memref<1x!tpu.dma_semaphore, #tpu.memory_space<semaphore_mem>> -> memref<!tpu.dma_semaphore, #tpu.memory_space<semaphore_mem>>
      tpu.enqueue_dma source(%1049 : memref<128xf32, #tpu.memory_space<any>>) target(%1051 : memref<128xf32, #tpu.memory_space<vmem>>) target_semaphore(%1053 : memref<!tpu.dma_semaphore, #tpu.memory_space<semaphore_mem>>)
      %c7_i32_687 = arith.constant 7 : i32
      %1054 = arith.addi %425, %c7_i32_687 : i32
      %c1_i32_688 = arith.constant 1 : i32
      %1055 = arith.addi %426, %c1_i32_688 : i32
      %1056 = arith.index_cast %1054 : i32 to index
      %1057 = arith.index_cast %1055 : i32 to index
      %1058 = memref.load %arg2[%1056, %1057] : memref<8x8xi32, #tpu.memory_space<smem>>
      %c7_i32_689 = arith.constant 7 : i32
      %c1_i32_690 = arith.constant 1 : i32
      %c0_i32_691 = arith.constant 0 : i32
      %1059 = tpu.memref_slice %arg4[%1058, %c0_i32_691] : memref<64x128xf32, #tpu.memory_space<any>> -> memref<1x128xf32, #tpu.memory_space<any>>
      %1060 = tpu.memref_squeeze %1059 : memref<1x128xf32, #tpu.memory_space<any>> -> memref<128xf32, #tpu.memory_space<any>>
      %c0_i32_692 = arith.constant 0 : i32
      %1061 = tpu.memref_slice %arg10[%9, %c7_i32_689, %c1_i32_690, %c0_i32_692] : memref<2x8x8x128xf32, #tpu.memory_space<vmem>> -> memref<1x1x1x128xf32, #tpu.memory_space<vmem>>
      %1062 = tpu.memref_squeeze %1061 : memref<1x1x1x128xf32, #tpu.memory_space<vmem>> -> memref<128xf32, #tpu.memory_space<vmem>>
      %1063 = tpu.memref_slice %arg11[%9] : memref<2x!tpu.dma_semaphore, #tpu.memory_space<semaphore_mem>> -> memref<1x!tpu.dma_semaphore, #tpu.memory_space<semaphore_mem>>
      %1064 = tpu.memref_squeeze %1063 : memref<1x!tpu.dma_semaphore, #tpu.memory_space<semaphore_mem>> -> memref<!tpu.dma_semaphore, #tpu.memory_space<semaphore_mem>>
      tpu.enqueue_dma source(%1060 : memref<128xf32, #tpu.memory_space<any>>) target(%1062 : memref<128xf32, #tpu.memory_space<vmem>>) target_semaphore(%1064 : memref<!tpu.dma_semaphore, #tpu.memory_space<semaphore_mem>>)
      %c7_i32_693 = arith.constant 7 : i32
      %1065 = arith.addi %425, %c7_i32_693 : i32
      %c2_i32_694 = arith.constant 2 : i32
      %1066 = arith.addi %426, %c2_i32_694 : i32
      %1067 = arith.index_cast %1065 : i32 to index
      %1068 = arith.index_cast %1066 : i32 to index
      %1069 = memref.load %arg2[%1067, %1068] : memref<8x8xi32, #tpu.memory_space<smem>>
      %c7_i32_695 = arith.constant 7 : i32
      %c2_i32_696 = arith.constant 2 : i32
      %c0_i32_697 = arith.constant 0 : i32
      %1070 = tpu.memref_slice %arg4[%1069, %c0_i32_697] : memref<64x128xf32, #tpu.memory_space<any>> -> memref<1x128xf32, #tpu.memory_space<any>>
      %1071 = tpu.memref_squeeze %1070 : memref<1x128xf32, #tpu.memory_space<any>> -> memref<128xf32, #tpu.memory_space<any>>
      %c0_i32_698 = arith.constant 0 : i32
      %1072 = tpu.memref_slice %arg10[%9, %c7_i32_695, %c2_i32_696, %c0_i32_698] : memref<2x8x8x128xf32, #tpu.memory_space<vmem>> -> memref<1x1x1x128xf32, #tpu.memory_space<vmem>>
      %1073 = tpu.memref_squeeze %1072 : memref<1x1x1x128xf32, #tpu.memory_space<vmem>> -> memref<128xf32, #tpu.memory_space<vmem>>
      %1074 = tpu.memref_slice %arg11[%9] : memref<2x!tpu.dma_semaphore, #tpu.memory_space<semaphore_mem>> -> memref<1x!tpu.dma_semaphore, #tpu.memory_space<semaphore_mem>>
      %1075 = tpu.memref_squeeze %1074 : memref<1x!tpu.dma_semaphore, #tpu.memory_space<semaphore_mem>> -> memref<!tpu.dma_semaphore, #tpu.memory_space<semaphore_mem>>
      tpu.enqueue_dma source(%1071 : memref<128xf32, #tpu.memory_space<any>>) target(%1073 : memref<128xf32, #tpu.memory_space<vmem>>) target_semaphore(%1075 : memref<!tpu.dma_semaphore, #tpu.memory_space<semaphore_mem>>)
      %c7_i32_699 = arith.constant 7 : i32
      %1076 = arith.addi %425, %c7_i32_699 : i32
      %c3_i32_700 = arith.constant 3 : i32
      %1077 = arith.addi %426, %c3_i32_700 : i32
      %1078 = arith.index_cast %1076 : i32 to index
      %1079 = arith.index_cast %1077 : i32 to index
      %1080 = memref.load %arg2[%1078, %1079] : memref<8x8xi32, #tpu.memory_space<smem>>
      %c7_i32_701 = arith.constant 7 : i32
      %c3_i32_702 = arith.constant 3 : i32
      %c0_i32_703 = arith.constant 0 : i32
      %1081 = tpu.memref_slice %arg4[%1080, %c0_i32_703] : memref<64x128xf32, #tpu.memory_space<any>> -> memref<1x128xf32, #tpu.memory_space<any>>
      %1082 = tpu.memref_squeeze %1081 : memref<1x128xf32, #tpu.memory_space<any>> -> memref<128xf32, #tpu.memory_space<any>>
      %c0_i32_704 = arith.constant 0 : i32
      %1083 = tpu.memref_slice %arg10[%9, %c7_i32_701, %c3_i32_702, %c0_i32_704] : memref<2x8x8x128xf32, #tpu.memory_space<vmem>> -> memref<1x1x1x128xf32, #tpu.memory_space<vmem>>
      %1084 = tpu.memref_squeeze %1083 : memref<1x1x1x128xf32, #tpu.memory_space<vmem>> -> memref<128xf32, #tpu.memory_space<vmem>>
      %1085 = tpu.memref_slice %arg11[%9] : memref<2x!tpu.dma_semaphore, #tpu.memory_space<semaphore_mem>> -> memref<1x!tpu.dma_semaphore, #tpu.memory_space<semaphore_mem>>
      %1086 = tpu.memref_squeeze %1085 : memref<1x!tpu.dma_semaphore, #tpu.memory_space<semaphore_mem>> -> memref<!tpu.dma_semaphore, #tpu.memory_space<semaphore_mem>>
      tpu.enqueue_dma source(%1082 : memref<128xf32, #tpu.memory_space<any>>) target(%1084 : memref<128xf32, #tpu.memory_space<vmem>>) target_semaphore(%1086 : memref<!tpu.dma_semaphore, #tpu.memory_space<semaphore_mem>>)
      %c7_i32_705 = arith.constant 7 : i32
      %1087 = arith.addi %425, %c7_i32_705 : i32
      %c4_i32_706 = arith.constant 4 : i32
      %1088 = arith.addi %426, %c4_i32_706 : i32
      %1089 = arith.index_cast %1087 : i32 to index
      %1090 = arith.index_cast %1088 : i32 to index
      %1091 = memref.load %arg2[%1089, %1090] : memref<8x8xi32, #tpu.memory_space<smem>>
      %c7_i32_707 = arith.constant 7 : i32
      %c4_i32_708 = arith.constant 4 : i32
      %c0_i32_709 = arith.constant 0 : i32
      %1092 = tpu.memref_slice %arg4[%1091, %c0_i32_709] : memref<64x128xf32, #tpu.memory_space<any>> -> memref<1x128xf32, #tpu.memory_space<any>>
      %1093 = tpu.memref_squeeze %1092 : memref<1x128xf32, #tpu.memory_space<any>> -> memref<128xf32, #tpu.memory_space<any>>
      %c0_i32_710 = arith.constant 0 : i32
      %1094 = tpu.memref_slice %arg10[%9, %c7_i32_707, %c4_i32_708, %c0_i32_710] : memref<2x8x8x128xf32, #tpu.memory_space<vmem>> -> memref<1x1x1x128xf32, #tpu.memory_space<vmem>>
      %1095 = tpu.memref_squeeze %1094 : memref<1x1x1x128xf32, #tpu.memory_space<vmem>> -> memref<128xf32, #tpu.memory_space<vmem>>
      %1096 = tpu.memref_slice %arg11[%9] : memref<2x!tpu.dma_semaphore, #tpu.memory_space<semaphore_mem>> -> memref<1x!tpu.dma_semaphore, #tpu.memory_space<semaphore_mem>>
      %1097 = tpu.memref_squeeze %1096 : memref<1x!tpu.dma_semaphore, #tpu.memory_space<semaphore_mem>> -> memref<!tpu.dma_semaphore, #tpu.memory_space<semaphore_mem>>
      tpu.enqueue_dma source(%1093 : memref<128xf32, #tpu.memory_space<any>>) target(%1095 : memref<128xf32, #tpu.memory_space<vmem>>) target_semaphore(%1097 : memref<!tpu.dma_semaphore, #tpu.memory_space<semaphore_mem>>)
      %c7_i32_711 = arith.constant 7 : i32
      %1098 = arith.addi %425, %c7_i32_711 : i32
      %c5_i32_712 = arith.constant 5 : i32
      %1099 = arith.addi %426, %c5_i32_712 : i32
      %1100 = arith.index_cast %1098 : i32 to index
      %1101 = arith.index_cast %1099 : i32 to index
      %1102 = memref.load %arg2[%1100, %1101] : memref<8x8xi32, #tpu.memory_space<smem>>
      %c7_i32_713 = arith.constant 7 : i32
      %c5_i32_714 = arith.constant 5 : i32
      %c0_i32_715 = arith.constant 0 : i32
      %1103 = tpu.memref_slice %arg4[%1102, %c0_i32_715] : memref<64x128xf32, #tpu.memory_space<any>> -> memref<1x128xf32, #tpu.memory_space<any>>
      %1104 = tpu.memref_squeeze %1103 : memref<1x128xf32, #tpu.memory_space<any>> -> memref<128xf32, #tpu.memory_space<any>>
      %c0_i32_716 = arith.constant 0 : i32
      %1105 = tpu.memref_slice %arg10[%9, %c7_i32_713, %c5_i32_714, %c0_i32_716] : memref<2x8x8x128xf32, #tpu.memory_space<vmem>> -> memref<1x1x1x128xf32, #tpu.memory_space<vmem>>
      %1106 = tpu.memref_squeeze %1105 : memref<1x1x1x128xf32, #tpu.memory_space<vmem>> -> memref<128xf32, #tpu.memory_space<vmem>>
      %1107 = tpu.memref_slice %arg11[%9] : memref<2x!tpu.dma_semaphore, #tpu.memory_space<semaphore_mem>> -> memref<1x!tpu.dma_semaphore, #tpu.memory_space<semaphore_mem>>
      %1108 = tpu.memref_squeeze %1107 : memref<1x!tpu.dma_semaphore, #tpu.memory_space<semaphore_mem>> -> memref<!tpu.dma_semaphore, #tpu.memory_space<semaphore_mem>>
      tpu.enqueue_dma source(%1104 : memref<128xf32, #tpu.memory_space<any>>) target(%1106 : memref<128xf32, #tpu.memory_space<vmem>>) target_semaphore(%1108 : memref<!tpu.dma_semaphore, #tpu.memory_space<semaphore_mem>>)
      %c7_i32_717 = arith.constant 7 : i32
      %1109 = arith.addi %425, %c7_i32_717 : i32
      %c6_i32_718 = arith.constant 6 : i32
      %1110 = arith.addi %426, %c6_i32_718 : i32
      %1111 = arith.index_cast %1109 : i32 to index
      %1112 = arith.index_cast %1110 : i32 to index
      %1113 = memref.load %arg2[%1111, %1112] : memref<8x8xi32, #tpu.memory_space<smem>>
      %c7_i32_719 = arith.constant 7 : i32
      %c6_i32_720 = arith.constant 6 : i32
      %c0_i32_721 = arith.constant 0 : i32
      %1114 = tpu.memref_slice %arg4[%1113, %c0_i32_721] : memref<64x128xf32, #tpu.memory_space<any>> -> memref<1x128xf32, #tpu.memory_space<any>>
      %1115 = tpu.memref_squeeze %1114 : memref<1x128xf32, #tpu.memory_space<any>> -> memref<128xf32, #tpu.memory_space<any>>
      %c0_i32_722 = arith.constant 0 : i32
      %1116 = tpu.memref_slice %arg10[%9, %c7_i32_719, %c6_i32_720, %c0_i32_722] : memref<2x8x8x128xf32, #tpu.memory_space<vmem>> -> memref<1x1x1x128xf32, #tpu.memory_space<vmem>>
      %1117 = tpu.memref_squeeze %1116 : memref<1x1x1x128xf32, #tpu.memory_space<vmem>> -> memref<128xf32, #tpu.memory_space<vmem>>
      %1118 = tpu.memref_slice %arg11[%9] : memref<2x!tpu.dma_semaphore, #tpu.memory_space<semaphore_mem>> -> memref<1x!tpu.dma_semaphore, #tpu.memory_space<semaphore_mem>>
      %1119 = tpu.memref_squeeze %1118 : memref<1x!tpu.dma_semaphore, #tpu.memory_space<semaphore_mem>> -> memref<!tpu.dma_semaphore, #tpu.memory_space<semaphore_mem>>
      tpu.enqueue_dma source(%1115 : memref<128xf32, #tpu.memory_space<any>>) target(%1117 : memref<128xf32, #tpu.memory_space<vmem>>) target_semaphore(%1119 : memref<!tpu.dma_semaphore, #tpu.memory_space<semaphore_mem>>)
      %c7_i32_723 = arith.constant 7 : i32
      %1120 = arith.addi %425, %c7_i32_723 : i32
      %c7_i32_724 = arith.constant 7 : i32
      %1121 = arith.addi %426, %c7_i32_724 : i32
      %1122 = arith.index_cast %1120 : i32 to index
      %1123 = arith.index_cast %1121 : i32 to index
      %1124 = memref.load %arg2[%1122, %1123] : memref<8x8xi32, #tpu.memory_space<smem>>
      %c7_i32_725 = arith.constant 7 : i32
      %c7_i32_726 = arith.constant 7 : i32
      %c0_i32_727 = arith.constant 0 : i32
      %1125 = tpu.memref_slice %arg4[%1124, %c0_i32_727] : memref<64x128xf32, #tpu.memory_space<any>> -> memref<1x128xf32, #tpu.memory_space<any>>
      %1126 = tpu.memref_squeeze %1125 : memref<1x128xf32, #tpu.memory_space<any>> -> memref<128xf32, #tpu.memory_space<any>>
      %c0_i32_728 = arith.constant 0 : i32
      %1127 = tpu.memref_slice %arg10[%9, %c7_i32_725, %c7_i32_726, %c0_i32_728] : memref<2x8x8x128xf32, #tpu.memory_space<vmem>> -> memref<1x1x1x128xf32, #tpu.memory_space<vmem>>
      %1128 = tpu.memref_squeeze %1127 : memref<1x1x1x128xf32, #tpu.memory_space<vmem>> -> memref<128xf32, #tpu.memory_space<vmem>>
      %1129 = tpu.memref_slice %arg11[%9] : memref<2x!tpu.dma_semaphore, #tpu.memory_space<semaphore_mem>> -> memref<1x!tpu.dma_semaphore, #tpu.memory_space<semaphore_mem>>
      %1130 = tpu.memref_squeeze %1129 : memref<1x!tpu.dma_semaphore, #tpu.memory_space<semaphore_mem>> -> memref<!tpu.dma_semaphore, #tpu.memory_space<semaphore_mem>>
      tpu.enqueue_dma source(%1126 : memref<128xf32, #tpu.memory_space<any>>) target(%1128 : memref<128xf32, #tpu.memory_space<vmem>>) target_semaphore(%1130 : memref<!tpu.dma_semaphore, #tpu.memory_space<semaphore_mem>>)
    } else {
    }
    %c1_i32_5 = arith.constant 1 : i32
    %13 = arith.addi %arg1, %c1_i32_5 : i32
    %c1_i32_6 = arith.constant 1 : i32
    %14 = arith.cmpi slt, %13, %c1_i32_6 : i32
    %15 = arith.extui %14 : i1 to i32
    %c0_i32_7 = arith.constant 0 : i32
    %16 = arith.cmpi ne, %15, %c0_i32_7 : i32
    scf.if %16 {
      %c1_i32_343 = arith.constant 1 : i32
      %421 = arith.addi %arg1, %c1_i32_343 : i32
      %c1_i32_344 = arith.constant 1 : i32
      %422 = arith.subi %c1_i32_344, %9 : i32
      %c8_i32 = arith.constant 8 : i32
      %423 = arith.muli %arg0, %c8_i32 : i32
      %c8_i32_345 = arith.constant 8 : i32
      %424 = arith.muli %421, %c8_i32_345 : i32
      %c0_i32_346 = arith.constant 0 : i32
      %425 = arith.addi %423, %c0_i32_346 : i32
      %c0_i32_347 = arith.constant 0 : i32
      %426 = arith.addi %424, %c0_i32_347 : i32
      %427 = arith.index_cast %425 : i32 to index
      %428 = arith.index_cast %426 : i32 to index
      %429 = memref.load %arg2[%427, %428] : memref<8x8xi32, #tpu.memory_space<smem>>
      %c0_i32_348 = arith.constant 0 : i32
      %c0_i32_349 = arith.constant 0 : i32
      %c0_i32_350 = arith.constant 0 : i32
      %430 = tpu.memref_slice %arg4[%429, %c0_i32_350] : memref<64x128xf32, #tpu.memory_space<any>> -> memref<1x128xf32, #tpu.memory_space<any>>
      %431 = tpu.memref_squeeze %430 : memref<1x128xf32, #tpu.memory_space<any>> -> memref<128xf32, #tpu.memory_space<any>>
      %c0_i32_351 = arith.constant 0 : i32
      %432 = tpu.memref_slice %arg10[%422, %c0_i32_348, %c0_i32_349, %c0_i32_351] : memref<2x8x8x128xf32, #tpu.memory_space<vmem>> -> memref<1x1x1x128xf32, #tpu.memory_space<vmem>>
      %433 = tpu.memref_squeeze %432 : memref<1x1x1x128xf32, #tpu.memory_space<vmem>> -> memref<128xf32, #tpu.memory_space<vmem>>
      %434 = tpu.memref_slice %arg11[%422] : memref<2x!tpu.dma_semaphore, #tpu.memory_space<semaphore_mem>> -> memref<1x!tpu.dma_semaphore, #tpu.memory_space<semaphore_mem>>
      %435 = tpu.memref_squeeze %434 : memref<1x!tpu.dma_semaphore, #tpu.memory_space<semaphore_mem>> -> memref<!tpu.dma_semaphore, #tpu.memory_space<semaphore_mem>>
      tpu.enqueue_dma source(%431 : memref<128xf32, #tpu.memory_space<any>>) target(%433 : memref<128xf32, #tpu.memory_space<vmem>>) target_semaphore(%435 : memref<!tpu.dma_semaphore, #tpu.memory_space<semaphore_mem>>)
      %c0_i32_352 = arith.constant 0 : i32
      %436 = arith.addi %423, %c0_i32_352 : i32
      %c1_i32_353 = arith.constant 1 : i32
      %437 = arith.addi %424, %c1_i32_353 : i32
      %438 = arith.index_cast %436 : i32 to index
      %439 = arith.index_cast %437 : i32 to index
      %440 = memref.load %arg2[%438, %439] : memref<8x8xi32, #tpu.memory_space<smem>>
      %c0_i32_354 = arith.constant 0 : i32
      %c1_i32_355 = arith.constant 1 : i32
      %c0_i32_356 = arith.constant 0 : i32
      %441 = tpu.memref_slice %arg4[%440, %c0_i32_356] : memref<64x128xf32, #tpu.memory_space<any>> -> memref<1x128xf32, #tpu.memory_space<any>>
      %442 = tpu.memref_squeeze %441 : memref<1x128xf32, #tpu.memory_space<any>> -> memref<128xf32, #tpu.memory_space<any>>
      %c0_i32_357 = arith.constant 0 : i32
      %443 = tpu.memref_slice %arg10[%422, %c0_i32_354, %c1_i32_355, %c0_i32_357] : memref<2x8x8x128xf32, #tpu.memory_space<vmem>> -> memref<1x1x1x128xf32, #tpu.memory_space<vmem>>
      %444 = tpu.memref_squeeze %443 : memref<1x1x1x128xf32, #tpu.memory_space<vmem>> -> memref<128xf32, #tpu.memory_space<vmem>>
      %445 = tpu.memref_slice %arg11[%422] : memref<2x!tpu.dma_semaphore, #tpu.memory_space<semaphore_mem>> -> memref<1x!tpu.dma_semaphore, #tpu.memory_space<semaphore_mem>>
      %446 = tpu.memref_squeeze %445 : memref<1x!tpu.dma_semaphore, #tpu.memory_space<semaphore_mem>> -> memref<!tpu.dma_semaphore, #tpu.memory_space<semaphore_mem>>
      tpu.enqueue_dma source(%442 : memref<128xf32, #tpu.memory_space<any>>) target(%444 : memref<128xf32, #tpu.memory_space<vmem>>) target_semaphore(%446 : memref<!tpu.dma_semaphore, #tpu.memory_space<semaphore_mem>>)
      %c0_i32_358 = arith.constant 0 : i32
      %447 = arith.addi %423, %c0_i32_358 : i32
      %c2_i32_359 = arith.constant 2 : i32
      %448 = arith.addi %424, %c2_i32_359 : i32
      %449 = arith.index_cast %447 : i32 to index
      %450 = arith.index_cast %448 : i32 to index
      %451 = memref.load %arg2[%449, %450] : memref<8x8xi32, #tpu.memory_space<smem>>
      %c0_i32_360 = arith.constant 0 : i32
      %c2_i32_361 = arith.constant 2 : i32
      %c0_i32_362 = arith.constant 0 : i32
      %452 = tpu.memref_slice %arg4[%451, %c0_i32_362] : memref<64x128xf32, #tpu.memory_space<any>> -> memref<1x128xf32, #tpu.memory_space<any>>
      %453 = tpu.memref_squeeze %452 : memref<1x128xf32, #tpu.memory_space<any>> -> memref<128xf32, #tpu.memory_space<any>>
      %c0_i32_363 = arith.constant 0 : i32
      %454 = tpu.memref_slice %arg10[%422, %c0_i32_360, %c2_i32_361, %c0_i32_363] : memref<2x8x8x128xf32, #tpu.memory_space<vmem>> -> memref<1x1x1x128xf32, #tpu.memory_space<vmem>>
      %455 = tpu.memref_squeeze %454 : memref<1x1x1x128xf32, #tpu.memory_space<vmem>> -> memref<128xf32, #tpu.memory_space<vmem>>
      %456 = tpu.memref_slice %arg11[%422] : memref<2x!tpu.dma_semaphore, #tpu.memory_space<semaphore_mem>> -> memref<1x!tpu.dma_semaphore, #tpu.memory_space<semaphore_mem>>
      %457 = tpu.memref_squeeze %456 : memref<1x!tpu.dma_semaphore, #tpu.memory_space<semaphore_mem>> -> memref<!tpu.dma_semaphore, #tpu.memory_space<semaphore_mem>>
      tpu.enqueue_dma source(%453 : memref<128xf32, #tpu.memory_space<any>>) target(%455 : memref<128xf32, #tpu.memory_space<vmem>>) target_semaphore(%457 : memref<!tpu.dma_semaphore, #tpu.memory_space<semaphore_mem>>)
      %c0_i32_364 = arith.constant 0 : i32
      %458 = arith.addi %423, %c0_i32_364 : i32
      %c3_i32 = arith.constant 3 : i32
      %459 = arith.addi %424, %c3_i32 : i32
      %460 = arith.index_cast %458 : i32 to index
      %461 = arith.index_cast %459 : i32 to index
      %462 = memref.load %arg2[%460, %461] : memref<8x8xi32, #tpu.memory_space<smem>>
      %c0_i32_365 = arith.constant 0 : i32
      %c3_i32_366 = arith.constant 3 : i32
      %c0_i32_367 = arith.constant 0 : i32
      %463 = tpu.memref_slice %arg4[%462, %c0_i32_367] : memref<64x128xf32, #tpu.memory_space<any>> -> memref<1x128xf32, #tpu.memory_space<any>>
      %464 = tpu.memref_squeeze %463 : memref<1x128xf32, #tpu.memory_space<any>> -> memref<128xf32, #tpu.memory_space<any>>
      %c0_i32_368 = arith.constant 0 : i32
      %465 = tpu.memref_slice %arg10[%422, %c0_i32_365, %c3_i32_366, %c0_i32_368] : memref<2x8x8x128xf32, #tpu.memory_space<vmem>> -> memref<1x1x1x128xf32, #tpu.memory_space<vmem>>
      %466 = tpu.memref_squeeze %465 : memref<1x1x1x128xf32, #tpu.memory_space<vmem>> -> memref<128xf32, #tpu.memory_space<vmem>>
      %467 = tpu.memref_slice %arg11[%422] : memref<2x!tpu.dma_semaphore, #tpu.memory_space<semaphore_mem>> -> memref<1x!tpu.dma_semaphore, #tpu.memory_space<semaphore_mem>>
      %468 = tpu.memref_squeeze %467 : memref<1x!tpu.dma_semaphore, #tpu.memory_space<semaphore_mem>> -> memref<!tpu.dma_semaphore, #tpu.memory_space<semaphore_mem>>
      tpu.enqueue_dma source(%464 : memref<128xf32, #tpu.memory_space<any>>) target(%466 : memref<128xf32, #tpu.memory_space<vmem>>) target_semaphore(%468 : memref<!tpu.dma_semaphore, #tpu.memory_space<semaphore_mem>>)
      %c0_i32_369 = arith.constant 0 : i32
      %469 = arith.addi %423, %c0_i32_369 : i32
      %c4_i32 = arith.constant 4 : i32
      %470 = arith.addi %424, %c4_i32 : i32
      %471 = arith.index_cast %469 : i32 to index
      %472 = arith.index_cast %470 : i32 to index
      %473 = memref.load %arg2[%471, %472] : memref<8x8xi32, #tpu.memory_space<smem>>
      %c0_i32_370 = arith.constant 0 : i32
      %c4_i32_371 = arith.constant 4 : i32
      %c0_i32_372 = arith.constant 0 : i32
      %474 = tpu.memref_slice %arg4[%473, %c0_i32_372] : memref<64x128xf32, #tpu.memory_space<any>> -> memref<1x128xf32, #tpu.memory_space<any>>
      %475 = tpu.memref_squeeze %474 : memref<1x128xf32, #tpu.memory_space<any>> -> memref<128xf32, #tpu.memory_space<any>>
      %c0_i32_373 = arith.constant 0 : i32
      %476 = tpu.memref_slice %arg10[%422, %c0_i32_370, %c4_i32_371, %c0_i32_373] : memref<2x8x8x128xf32, #tpu.memory_space<vmem>> -> memref<1x1x1x128xf32, #tpu.memory_space<vmem>>
      %477 = tpu.memref_squeeze %476 : memref<1x1x1x128xf32, #tpu.memory_space<vmem>> -> memref<128xf32, #tpu.memory_space<vmem>>
      %478 = tpu.memref_slice %arg11[%422] : memref<2x!tpu.dma_semaphore, #tpu.memory_space<semaphore_mem>> -> memref<1x!tpu.dma_semaphore, #tpu.memory_space<semaphore_mem>>
      %479 = tpu.memref_squeeze %478 : memref<1x!tpu.dma_semaphore, #tpu.memory_space<semaphore_mem>> -> memref<!tpu.dma_semaphore, #tpu.memory_space<semaphore_mem>>
      tpu.enqueue_dma source(%475 : memref<128xf32, #tpu.memory_space<any>>) target(%477 : memref<128xf32, #tpu.memory_space<vmem>>) target_semaphore(%479 : memref<!tpu.dma_semaphore, #tpu.memory_space<semaphore_mem>>)
      %c0_i32_374 = arith.constant 0 : i32
      %480 = arith.addi %423, %c0_i32_374 : i32
      %c5_i32 = arith.constant 5 : i32
      %481 = arith.addi %424, %c5_i32 : i32
      %482 = arith.index_cast %480 : i32 to index
      %483 = arith.index_cast %481 : i32 to index
      %484 = memref.load %arg2[%482, %483] : memref<8x8xi32, #tpu.memory_space<smem>>
      %c0_i32_375 = arith.constant 0 : i32
      %c5_i32_376 = arith.constant 5 : i32
      %c0_i32_377 = arith.constant 0 : i32
      %485 = tpu.memref_slice %arg4[%484, %c0_i32_377] : memref<64x128xf32, #tpu.memory_space<any>> -> memref<1x128xf32, #tpu.memory_space<any>>
      %486 = tpu.memref_squeeze %485 : memref<1x128xf32, #tpu.memory_space<any>> -> memref<128xf32, #tpu.memory_space<any>>
      %c0_i32_378 = arith.constant 0 : i32
      %487 = tpu.memref_slice %arg10[%422, %c0_i32_375, %c5_i32_376, %c0_i32_378] : memref<2x8x8x128xf32, #tpu.memory_space<vmem>> -> memref<1x1x1x128xf32, #tpu.memory_space<vmem>>
      %488 = tpu.memref_squeeze %487 : memref<1x1x1x128xf32, #tpu.memory_space<vmem>> -> memref<128xf32, #tpu.memory_space<vmem>>
      %489 = tpu.memref_slice %arg11[%422] : memref<2x!tpu.dma_semaphore, #tpu.memory_space<semaphore_mem>> -> memref<1x!tpu.dma_semaphore, #tpu.memory_space<semaphore_mem>>
      %490 = tpu.memref_squeeze %489 : memref<1x!tpu.dma_semaphore, #tpu.memory_space<semaphore_mem>> -> memref<!tpu.dma_semaphore, #tpu.memory_space<semaphore_mem>>
      tpu.enqueue_dma source(%486 : memref<128xf32, #tpu.memory_space<any>>) target(%488 : memref<128xf32, #tpu.memory_space<vmem>>) target_semaphore(%490 : memref<!tpu.dma_semaphore, #tpu.memory_space<semaphore_mem>>)
      %c0_i32_379 = arith.constant 0 : i32
      %491 = arith.addi %423, %c0_i32_379 : i32
      %c6_i32 = arith.constant 6 : i32
      %492 = arith.addi %424, %c6_i32 : i32
      %493 = arith.index_cast %491 : i32 to index
      %494 = arith.index_cast %492 : i32 to index
      %495 = memref.load %arg2[%493, %494] : memref<8x8xi32, #tpu.memory_space<smem>>
      %c0_i32_380 = arith.constant 0 : i32
      %c6_i32_381 = arith.constant 6 : i32
      %c0_i32_382 = arith.constant 0 : i32
      %496 = tpu.memref_slice %arg4[%495, %c0_i32_382] : memref<64x128xf32, #tpu.memory_space<any>> -> memref<1x128xf32, #tpu.memory_space<any>>
      %497 = tpu.memref_squeeze %496 : memref<1x128xf32, #tpu.memory_space<any>> -> memref<128xf32, #tpu.memory_space<any>>
      %c0_i32_383 = arith.constant 0 : i32
      %498 = tpu.memref_slice %arg10[%422, %c0_i32_380, %c6_i32_381, %c0_i32_383] : memref<2x8x8x128xf32, #tpu.memory_space<vmem>> -> memref<1x1x1x128xf32, #tpu.memory_space<vmem>>
      %499 = tpu.memref_squeeze %498 : memref<1x1x1x128xf32, #tpu.memory_space<vmem>> -> memref<128xf32, #tpu.memory_space<vmem>>
      %500 = tpu.memref_slice %arg11[%422] : memref<2x!tpu.dma_semaphore, #tpu.memory_space<semaphore_mem>> -> memref<1x!tpu.dma_semaphore, #tpu.memory_space<semaphore_mem>>
      %501 = tpu.memref_squeeze %500 : memref<1x!tpu.dma_semaphore, #tpu.memory_space<semaphore_mem>> -> memref<!tpu.dma_semaphore, #tpu.memory_space<semaphore_mem>>
      tpu.enqueue_dma source(%497 : memref<128xf32, #tpu.memory_space<any>>) target(%499 : memref<128xf32, #tpu.memory_space<vmem>>) target_semaphore(%501 : memref<!tpu.dma_semaphore, #tpu.memory_space<semaphore_mem>>)
      %c0_i32_384 = arith.constant 0 : i32
      %502 = arith.addi %423, %c0_i32_384 : i32
      %c7_i32 = arith.constant 7 : i32
      %503 = arith.addi %424, %c7_i32 : i32
      %504 = arith.index_cast %502 : i32 to index
      %505 = arith.index_cast %503 : i32 to index
      %506 = memref.load %arg2[%504, %505] : memref<8x8xi32, #tpu.memory_space<smem>>
      %c0_i32_385 = arith.constant 0 : i32
      %c7_i32_386 = arith.constant 7 : i32
      %c0_i32_387 = arith.constant 0 : i32
      %507 = tpu.memref_slice %arg4[%506, %c0_i32_387] : memref<64x128xf32, #tpu.memory_space<any>> -> memref<1x128xf32, #tpu.memory_space<any>>
      %508 = tpu.memref_squeeze %507 : memref<1x128xf32, #tpu.memory_space<any>> -> memref<128xf32, #tpu.memory_space<any>>
      %c0_i32_388 = arith.constant 0 : i32
      %509 = tpu.memref_slice %arg10[%422, %c0_i32_385, %c7_i32_386, %c0_i32_388] : memref<2x8x8x128xf32, #tpu.memory_space<vmem>> -> memref<1x1x1x128xf32, #tpu.memory_space<vmem>>
      %510 = tpu.memref_squeeze %509 : memref<1x1x1x128xf32, #tpu.memory_space<vmem>> -> memref<128xf32, #tpu.memory_space<vmem>>
      %511 = tpu.memref_slice %arg11[%422] : memref<2x!tpu.dma_semaphore, #tpu.memory_space<semaphore_mem>> -> memref<1x!tpu.dma_semaphore, #tpu.memory_space<semaphore_mem>>
      %512 = tpu.memref_squeeze %511 : memref<1x!tpu.dma_semaphore, #tpu.memory_space<semaphore_mem>> -> memref<!tpu.dma_semaphore, #tpu.memory_space<semaphore_mem>>
      tpu.enqueue_dma source(%508 : memref<128xf32, #tpu.memory_space<any>>) target(%510 : memref<128xf32, #tpu.memory_space<vmem>>) target_semaphore(%512 : memref<!tpu.dma_semaphore, #tpu.memory_space<semaphore_mem>>)
      %c1_i32_389 = arith.constant 1 : i32
      %513 = arith.addi %423, %c1_i32_389 : i32
      %c0_i32_390 = arith.constant 0 : i32
      %514 = arith.addi %424, %c0_i32_390 : i32
      %515 = arith.index_cast %513 : i32 to index
      %516 = arith.index_cast %514 : i32 to index
      %517 = memref.load %arg2[%515, %516] : memref<8x8xi32, #tpu.memory_space<smem>>
      %c1_i32_391 = arith.constant 1 : i32
      %c0_i32_392 = arith.constant 0 : i32
      %c0_i32_393 = arith.constant 0 : i32
      %518 = tpu.memref_slice %arg4[%517, %c0_i32_393] : memref<64x128xf32, #tpu.memory_space<any>> -> memref<1x128xf32, #tpu.memory_space<any>>
      %519 = tpu.memref_squeeze %518 : memref<1x128xf32, #tpu.memory_space<any>> -> memref<128xf32, #tpu.memory_space<any>>
      %c0_i32_394 = arith.constant 0 : i32
      %520 = tpu.memref_slice %arg10[%422, %c1_i32_391, %c0_i32_392, %c0_i32_394] : memref<2x8x8x128xf32, #tpu.memory_space<vmem>> -> memref<1x1x1x128xf32, #tpu.memory_space<vmem>>
      %521 = tpu.memref_squeeze %520 : memref<1x1x1x128xf32, #tpu.memory_space<vmem>> -> memref<128xf32, #tpu.memory_space<vmem>>
      %522 = tpu.memref_slice %arg11[%422] : memref<2x!tpu.dma_semaphore, #tpu.memory_space<semaphore_mem>> -> memref<1x!tpu.dma_semaphore, #tpu.memory_space<semaphore_mem>>
      %523 = tpu.memref_squeeze %522 : memref<1x!tpu.dma_semaphore, #tpu.memory_space<semaphore_mem>> -> memref<!tpu.dma_semaphore, #tpu.memory_space<semaphore_mem>>
      tpu.enqueue_dma source(%519 : memref<128xf32, #tpu.memory_space<any>>) target(%521 : memref<128xf32, #tpu.memory_space<vmem>>) target_semaphore(%523 : memref<!tpu.dma_semaphore, #tpu.memory_space<semaphore_mem>>)
      %c1_i32_395 = arith.constant 1 : i32
      %524 = arith.addi %423, %c1_i32_395 : i32
      %c1_i32_396 = arith.constant 1 : i32
      %525 = arith.addi %424, %c1_i32_396 : i32
      %526 = arith.index_cast %524 : i32 to index
      %527 = arith.index_cast %525 : i32 to index
      %528 = memref.load %arg2[%526, %527] : memref<8x8xi32, #tpu.memory_space<smem>>
      %c1_i32_397 = arith.constant 1 : i32
      %c1_i32_398 = arith.constant 1 : i32
      %c0_i32_399 = arith.constant 0 : i32
      %529 = tpu.memref_slice %arg4[%528, %c0_i32_399] : memref<64x128xf32, #tpu.memory_space<any>> -> memref<1x128xf32, #tpu.memory_space<any>>
      %530 = tpu.memref_squeeze %529 : memref<1x128xf32, #tpu.memory_space<any>> -> memref<128xf32, #tpu.memory_space<any>>
      %c0_i32_400 = arith.constant 0 : i32
      %531 = tpu.memref_slice %arg10[%422, %c1_i32_397, %c1_i32_398, %c0_i32_400] : memref<2x8x8x128xf32, #tpu.memory_space<vmem>> -> memref<1x1x1x128xf32, #tpu.memory_space<vmem>>
      %532 = tpu.memref_squeeze %531 : memref<1x1x1x128xf32, #tpu.memory_space<vmem>> -> memref<128xf32, #tpu.memory_space<vmem>>
      %533 = tpu.memref_slice %arg11[%422] : memref<2x!tpu.dma_semaphore, #tpu.memory_space<semaphore_mem>> -> memref<1x!tpu.dma_semaphore, #tpu.memory_space<semaphore_mem>>
      %534 = tpu.memref_squeeze %533 : memref<1x!tpu.dma_semaphore, #tpu.memory_space<semaphore_mem>> -> memref<!tpu.dma_semaphore, #tpu.memory_space<semaphore_mem>>
      tpu.enqueue_dma source(%530 : memref<128xf32, #tpu.memory_space<any>>) target(%532 : memref<128xf32, #tpu.memory_space<vmem>>) target_semaphore(%534 : memref<!tpu.dma_semaphore, #tpu.memory_space<semaphore_mem>>)
      %c1_i32_401 = arith.constant 1 : i32
      %535 = arith.addi %423, %c1_i32_401 : i32
      %c2_i32_402 = arith.constant 2 : i32
      %536 = arith.addi %424, %c2_i32_402 : i32
      %537 = arith.index_cast %535 : i32 to index
      %538 = arith.index_cast %536 : i32 to index
      %539 = memref.load %arg2[%537, %538] : memref<8x8xi32, #tpu.memory_space<smem>>
      %c1_i32_403 = arith.constant 1 : i32
      %c2_i32_404 = arith.constant 2 : i32
      %c0_i32_405 = arith.constant 0 : i32
      %540 = tpu.memref_slice %arg4[%539, %c0_i32_405] : memref<64x128xf32, #tpu.memory_space<any>> -> memref<1x128xf32, #tpu.memory_space<any>>
      %541 = tpu.memref_squeeze %540 : memref<1x128xf32, #tpu.memory_space<any>> -> memref<128xf32, #tpu.memory_space<any>>
      %c0_i32_406 = arith.constant 0 : i32
      %542 = tpu.memref_slice %arg10[%422, %c1_i32_403, %c2_i32_404, %c0_i32_406] : memref<2x8x8x128xf32, #tpu.memory_space<vmem>> -> memref<1x1x1x128xf32, #tpu.memory_space<vmem>>
      %543 = tpu.memref_squeeze %542 : memref<1x1x1x128xf32, #tpu.memory_space<vmem>> -> memref<128xf32, #tpu.memory_space<vmem>>
      %544 = tpu.memref_slice %arg11[%422] : memref<2x!tpu.dma_semaphore, #tpu.memory_space<semaphore_mem>> -> memref<1x!tpu.dma_semaphore, #tpu.memory_space<semaphore_mem>>
      %545 = tpu.memref_squeeze %544 : memref<1x!tpu.dma_semaphore, #tpu.memory_space<semaphore_mem>> -> memref<!tpu.dma_semaphore, #tpu.memory_space<semaphore_mem>>
      tpu.enqueue_dma source(%541 : memref<128xf32, #tpu.memory_space<any>>) target(%543 : memref<128xf32, #tpu.memory_space<vmem>>) target_semaphore(%545 : memref<!tpu.dma_semaphore, #tpu.memory_space<semaphore_mem>>)
      %c1_i32_407 = arith.constant 1 : i32
      %546 = arith.addi %423, %c1_i32_407 : i32
      %c3_i32_408 = arith.constant 3 : i32
      %547 = arith.addi %424, %c3_i32_408 : i32
      %548 = arith.index_cast %546 : i32 to index
      %549 = arith.index_cast %547 : i32 to index
      %550 = memref.load %arg2[%548, %549] : memref<8x8xi32, #tpu.memory_space<smem>>
      %c1_i32_409 = arith.constant 1 : i32
      %c3_i32_410 = arith.constant 3 : i32
      %c0_i32_411 = arith.constant 0 : i32
      %551 = tpu.memref_slice %arg4[%550, %c0_i32_411] : memref<64x128xf32, #tpu.memory_space<any>> -> memref<1x128xf32, #tpu.memory_space<any>>
      %552 = tpu.memref_squeeze %551 : memref<1x128xf32, #tpu.memory_space<any>> -> memref<128xf32, #tpu.memory_space<any>>
      %c0_i32_412 = arith.constant 0 : i32
      %553 = tpu.memref_slice %arg10[%422, %c1_i32_409, %c3_i32_410, %c0_i32_412] : memref<2x8x8x128xf32, #tpu.memory_space<vmem>> -> memref<1x1x1x128xf32, #tpu.memory_space<vmem>>
      %554 = tpu.memref_squeeze %553 : memref<1x1x1x128xf32, #tpu.memory_space<vmem>> -> memref<128xf32, #tpu.memory_space<vmem>>
      %555 = tpu.memref_slice %arg11[%422] : memref<2x!tpu.dma_semaphore, #tpu.memory_space<semaphore_mem>> -> memref<1x!tpu.dma_semaphore, #tpu.memory_space<semaphore_mem>>
      %556 = tpu.memref_squeeze %555 : memref<1x!tpu.dma_semaphore, #tpu.memory_space<semaphore_mem>> -> memref<!tpu.dma_semaphore, #tpu.memory_space<semaphore_mem>>
      tpu.enqueue_dma source(%552 : memref<128xf32, #tpu.memory_space<any>>) target(%554 : memref<128xf32, #tpu.memory_space<vmem>>) target_semaphore(%556 : memref<!tpu.dma_semaphore, #tpu.memory_space<semaphore_mem>>)
      %c1_i32_413 = arith.constant 1 : i32
      %557 = arith.addi %423, %c1_i32_413 : i32
      %c4_i32_414 = arith.constant 4 : i32
      %558 = arith.addi %424, %c4_i32_414 : i32
      %559 = arith.index_cast %557 : i32 to index
      %560 = arith.index_cast %558 : i32 to index
      %561 = memref.load %arg2[%559, %560] : memref<8x8xi32, #tpu.memory_space<smem>>
      %c1_i32_415 = arith.constant 1 : i32
      %c4_i32_416 = arith.constant 4 : i32
      %c0_i32_417 = arith.constant 0 : i32
      %562 = tpu.memref_slice %arg4[%561, %c0_i32_417] : memref<64x128xf32, #tpu.memory_space<any>> -> memref<1x128xf32, #tpu.memory_space<any>>
      %563 = tpu.memref_squeeze %562 : memref<1x128xf32, #tpu.memory_space<any>> -> memref<128xf32, #tpu.memory_space<any>>
      %c0_i32_418 = arith.constant 0 : i32
      %564 = tpu.memref_slice %arg10[%422, %c1_i32_415, %c4_i32_416, %c0_i32_418] : memref<2x8x8x128xf32, #tpu.memory_space<vmem>> -> memref<1x1x1x128xf32, #tpu.memory_space<vmem>>
      %565 = tpu.memref_squeeze %564 : memref<1x1x1x128xf32, #tpu.memory_space<vmem>> -> memref<128xf32, #tpu.memory_space<vmem>>
      %566 = tpu.memref_slice %arg11[%422] : memref<2x!tpu.dma_semaphore, #tpu.memory_space<semaphore_mem>> -> memref<1x!tpu.dma_semaphore, #tpu.memory_space<semaphore_mem>>
      %567 = tpu.memref_squeeze %566 : memref<1x!tpu.dma_semaphore, #tpu.memory_space<semaphore_mem>> -> memref<!tpu.dma_semaphore, #tpu.memory_space<semaphore_mem>>
      tpu.enqueue_dma source(%563 : memref<128xf32, #tpu.memory_space<any>>) target(%565 : memref<128xf32, #tpu.memory_space<vmem>>) target_semaphore(%567 : memref<!tpu.dma_semaphore, #tpu.memory_space<semaphore_mem>>)
      %c1_i32_419 = arith.constant 1 : i32
      %568 = arith.addi %423, %c1_i32_419 : i32
      %c5_i32_420 = arith.constant 5 : i32
      %569 = arith.addi %424, %c5_i32_420 : i32
      %570 = arith.index_cast %568 : i32 to index
      %571 = arith.index_cast %569 : i32 to index
      %572 = memref.load %arg2[%570, %571] : memref<8x8xi32, #tpu.memory_space<smem>>
      %c1_i32_421 = arith.constant 1 : i32
      %c5_i32_422 = arith.constant 5 : i32
      %c0_i32_423 = arith.constant 0 : i32
      %573 = tpu.memref_slice %arg4[%572, %c0_i32_423] : memref<64x128xf32, #tpu.memory_space<any>> -> memref<1x128xf32, #tpu.memory_space<any>>
      %574 = tpu.memref_squeeze %573 : memref<1x128xf32, #tpu.memory_space<any>> -> memref<128xf32, #tpu.memory_space<any>>
      %c0_i32_424 = arith.constant 0 : i32
      %575 = tpu.memref_slice %arg10[%422, %c1_i32_421, %c5_i32_422, %c0_i32_424] : memref<2x8x8x128xf32, #tpu.memory_space<vmem>> -> memref<1x1x1x128xf32, #tpu.memory_space<vmem>>
      %576 = tpu.memref_squeeze %575 : memref<1x1x1x128xf32, #tpu.memory_space<vmem>> -> memref<128xf32, #tpu.memory_space<vmem>>
      %577 = tpu.memref_slice %arg11[%422] : memref<2x!tpu.dma_semaphore, #tpu.memory_space<semaphore_mem>> -> memref<1x!tpu.dma_semaphore, #tpu.memory_space<semaphore_mem>>
      %578 = tpu.memref_squeeze %577 : memref<1x!tpu.dma_semaphore, #tpu.memory_space<semaphore_mem>> -> memref<!tpu.dma_semaphore, #tpu.memory_space<semaphore_mem>>
      tpu.enqueue_dma source(%574 : memref<128xf32, #tpu.memory_space<any>>) target(%576 : memref<128xf32, #tpu.memory_space<vmem>>) target_semaphore(%578 : memref<!tpu.dma_semaphore, #tpu.memory_space<semaphore_mem>>)
      %c1_i32_425 = arith.constant 1 : i32
      %579 = arith.addi %423, %c1_i32_425 : i32
      %c6_i32_426 = arith.constant 6 : i32
      %580 = arith.addi %424, %c6_i32_426 : i32
      %581 = arith.index_cast %579 : i32 to index
      %582 = arith.index_cast %580 : i32 to index
      %583 = memref.load %arg2[%581, %582] : memref<8x8xi32, #tpu.memory_space<smem>>
      %c1_i32_427 = arith.constant 1 : i32
      %c6_i32_428 = arith.constant 6 : i32
      %c0_i32_429 = arith.constant 0 : i32
      %584 = tpu.memref_slice %arg4[%583, %c0_i32_429] : memref<64x128xf32, #tpu.memory_space<any>> -> memref<1x128xf32, #tpu.memory_space<any>>
      %585 = tpu.memref_squeeze %584 : memref<1x128xf32, #tpu.memory_space<any>> -> memref<128xf32, #tpu.memory_space<any>>
      %c0_i32_430 = arith.constant 0 : i32
      %586 = tpu.memref_slice %arg10[%422, %c1_i32_427, %c6_i32_428, %c0_i32_430] : memref<2x8x8x128xf32, #tpu.memory_space<vmem>> -> memref<1x1x1x128xf32, #tpu.memory_space<vmem>>
      %587 = tpu.memref_squeeze %586 : memref<1x1x1x128xf32, #tpu.memory_space<vmem>> -> memref<128xf32, #tpu.memory_space<vmem>>
      %588 = tpu.memref_slice %arg11[%422] : memref<2x!tpu.dma_semaphore, #tpu.memory_space<semaphore_mem>> -> memref<1x!tpu.dma_semaphore, #tpu.memory_space<semaphore_mem>>
      %589 = tpu.memref_squeeze %588 : memref<1x!tpu.dma_semaphore, #tpu.memory_space<semaphore_mem>> -> memref<!tpu.dma_semaphore, #tpu.memory_space<semaphore_mem>>
      tpu.enqueue_dma source(%585 : memref<128xf32, #tpu.memory_space<any>>) target(%587 : memref<128xf32, #tpu.memory_space<vmem>>) target_semaphore(%589 : memref<!tpu.dma_semaphore, #tpu.memory_space<semaphore_mem>>)
      %c1_i32_431 = arith.constant 1 : i32
      %590 = arith.addi %423, %c1_i32_431 : i32
      %c7_i32_432 = arith.constant 7 : i32
      %591 = arith.addi %424, %c7_i32_432 : i32
      %592 = arith.index_cast %590 : i32 to index
      %593 = arith.index_cast %591 : i32 to index
      %594 = memref.load %arg2[%592, %593] : memref<8x8xi32, #tpu.memory_space<smem>>
      %c1_i32_433 = arith.constant 1 : i32
      %c7_i32_434 = arith.constant 7 : i32
      %c0_i32_435 = arith.constant 0 : i32
      %595 = tpu.memref_slice %arg4[%594, %c0_i32_435] : memref<64x128xf32, #tpu.memory_space<any>> -> memref<1x128xf32, #tpu.memory_space<any>>
      %596 = tpu.memref_squeeze %595 : memref<1x128xf32, #tpu.memory_space<any>> -> memref<128xf32, #tpu.memory_space<any>>
      %c0_i32_436 = arith.constant 0 : i32
      %597 = tpu.memref_slice %arg10[%422, %c1_i32_433, %c7_i32_434, %c0_i32_436] : memref<2x8x8x128xf32, #tpu.memory_space<vmem>> -> memref<1x1x1x128xf32, #tpu.memory_space<vmem>>
      %598 = tpu.memref_squeeze %597 : memref<1x1x1x128xf32, #tpu.memory_space<vmem>> -> memref<128xf32, #tpu.memory_space<vmem>>
      %599 = tpu.memref_slice %arg11[%422] : memref<2x!tpu.dma_semaphore, #tpu.memory_space<semaphore_mem>> -> memref<1x!tpu.dma_semaphore, #tpu.memory_space<semaphore_mem>>
      %600 = tpu.memref_squeeze %599 : memref<1x!tpu.dma_semaphore, #tpu.memory_space<semaphore_mem>> -> memref<!tpu.dma_semaphore, #tpu.memory_space<semaphore_mem>>
      tpu.enqueue_dma source(%596 : memref<128xf32, #tpu.memory_space<any>>) target(%598 : memref<128xf32, #tpu.memory_space<vmem>>) target_semaphore(%600 : memref<!tpu.dma_semaphore, #tpu.memory_space<semaphore_mem>>)
      %c2_i32_437 = arith.constant 2 : i32
      %601 = arith.addi %423, %c2_i32_437 : i32
      %c0_i32_438 = arith.constant 0 : i32
      %602 = arith.addi %424, %c0_i32_438 : i32
      %603 = arith.index_cast %601 : i32 to index
      %604 = arith.index_cast %602 : i32 to index
      %605 = memref.load %arg2[%603, %604] : memref<8x8xi32, #tpu.memory_space<smem>>
      %c2_i32_439 = arith.constant 2 : i32
      %c0_i32_440 = arith.constant 0 : i32
      %c0_i32_441 = arith.constant 0 : i32
      %606 = tpu.memref_slice %arg4[%605, %c0_i32_441] : memref<64x128xf32, #tpu.memory_space<any>> -> memref<1x128xf32, #tpu.memory_space<any>>
      %607 = tpu.memref_squeeze %606 : memref<1x128xf32, #tpu.memory_space<any>> -> memref<128xf32, #tpu.memory_space<any>>
      %c0_i32_442 = arith.constant 0 : i32
      %608 = tpu.memref_slice %arg10[%422, %c2_i32_439, %c0_i32_440, %c0_i32_442] : memref<2x8x8x128xf32, #tpu.memory_space<vmem>> -> memref<1x1x1x128xf32, #tpu.memory_space<vmem>>
      %609 = tpu.memref_squeeze %608 : memref<1x1x1x128xf32, #tpu.memory_space<vmem>> -> memref<128xf32, #tpu.memory_space<vmem>>
      %610 = tpu.memref_slice %arg11[%422] : memref<2x!tpu.dma_semaphore, #tpu.memory_space<semaphore_mem>> -> memref<1x!tpu.dma_semaphore, #tpu.memory_space<semaphore_mem>>
      %611 = tpu.memref_squeeze %610 : memref<1x!tpu.dma_semaphore, #tpu.memory_space<semaphore_mem>> -> memref<!tpu.dma_semaphore, #tpu.memory_space<semaphore_mem>>
      tpu.enqueue_dma source(%607 : memref<128xf32, #tpu.memory_space<any>>) target(%609 : memref<128xf32, #tpu.memory_space<vmem>>) target_semaphore(%611 : memref<!tpu.dma_semaphore, #tpu.memory_space<semaphore_mem>>)
      %c2_i32_443 = arith.constant 2 : i32
      %612 = arith.addi %423, %c2_i32_443 : i32
      %c1_i32_444 = arith.constant 1 : i32
      %613 = arith.addi %424, %c1_i32_444 : i32
      %614 = arith.index_cast %612 : i32 to index
      %615 = arith.index_cast %613 : i32 to index
      %616 = memref.load %arg2[%614, %615] : memref<8x8xi32, #tpu.memory_space<smem>>
      %c2_i32_445 = arith.constant 2 : i32
      %c1_i32_446 = arith.constant 1 : i32
      %c0_i32_447 = arith.constant 0 : i32
      %617 = tpu.memref_slice %arg4[%616, %c0_i32_447] : memref<64x128xf32, #tpu.memory_space<any>> -> memref<1x128xf32, #tpu.memory_space<any>>
      %618 = tpu.memref_squeeze %617 : memref<1x128xf32, #tpu.memory_space<any>> -> memref<128xf32, #tpu.memory_space<any>>
      %c0_i32_448 = arith.constant 0 : i32
      %619 = tpu.memref_slice %arg10[%422, %c2_i32_445, %c1_i32_446, %c0_i32_448] : memref<2x8x8x128xf32, #tpu.memory_space<vmem>> -> memref<1x1x1x128xf32, #tpu.memory_space<vmem>>
      %620 = tpu.memref_squeeze %619 : memref<1x1x1x128xf32, #tpu.memory_space<vmem>> -> memref<128xf32, #tpu.memory_space<vmem>>
      %621 = tpu.memref_slice %arg11[%422] : memref<2x!tpu.dma_semaphore, #tpu.memory_space<semaphore_mem>> -> memref<1x!tpu.dma_semaphore, #tpu.memory_space<semaphore_mem>>
      %622 = tpu.memref_squeeze %621 : memref<1x!tpu.dma_semaphore, #tpu.memory_space<semaphore_mem>> -> memref<!tpu.dma_semaphore, #tpu.memory_space<semaphore_mem>>
      tpu.enqueue_dma source(%618 : memref<128xf32, #tpu.memory_space<any>>) target(%620 : memref<128xf32, #tpu.memory_space<vmem>>) target_semaphore(%622 : memref<!tpu.dma_semaphore, #tpu.memory_space<semaphore_mem>>)
      %c2_i32_449 = arith.constant 2 : i32
      %623 = arith.addi %423, %c2_i32_449 : i32
      %c2_i32_450 = arith.constant 2 : i32
      %624 = arith.addi %424, %c2_i32_450 : i32
      %625 = arith.index_cast %623 : i32 to index
      %626 = arith.index_cast %624 : i32 to index
      %627 = memref.load %arg2[%625, %626] : memref<8x8xi32, #tpu.memory_space<smem>>
      %c2_i32_451 = arith.constant 2 : i32
      %c2_i32_452 = arith.constant 2 : i32
      %c0_i32_453 = arith.constant 0 : i32
      %628 = tpu.memref_slice %arg4[%627, %c0_i32_453] : memref<64x128xf32, #tpu.memory_space<any>> -> memref<1x128xf32, #tpu.memory_space<any>>
      %629 = tpu.memref_squeeze %628 : memref<1x128xf32, #tpu.memory_space<any>> -> memref<128xf32, #tpu.memory_space<any>>
      %c0_i32_454 = arith.constant 0 : i32
      %630 = tpu.memref_slice %arg10[%422, %c2_i32_451, %c2_i32_452, %c0_i32_454] : memref<2x8x8x128xf32, #tpu.memory_space<vmem>> -> memref<1x1x1x128xf32, #tpu.memory_space<vmem>>
      %631 = tpu.memref_squeeze %630 : memref<1x1x1x128xf32, #tpu.memory_space<vmem>> -> memref<128xf32, #tpu.memory_space<vmem>>
      %632 = tpu.memref_slice %arg11[%422] : memref<2x!tpu.dma_semaphore, #tpu.memory_space<semaphore_mem>> -> memref<1x!tpu.dma_semaphore, #tpu.memory_space<semaphore_mem>>
      %633 = tpu.memref_squeeze %632 : memref<1x!tpu.dma_semaphore, #tpu.memory_space<semaphore_mem>> -> memref<!tpu.dma_semaphore, #tpu.memory_space<semaphore_mem>>
      tpu.enqueue_dma source(%629 : memref<128xf32, #tpu.memory_space<any>>) target(%631 : memref<128xf32, #tpu.memory_space<vmem>>) target_semaphore(%633 : memref<!tpu.dma_semaphore, #tpu.memory_space<semaphore_mem>>)
      %c2_i32_455 = arith.constant 2 : i32
      %634 = arith.addi %423, %c2_i32_455 : i32
      %c3_i32_456 = arith.constant 3 : i32
      %635 = arith.addi %424, %c3_i32_456 : i32
      %636 = arith.index_cast %634 : i32 to index
      %637 = arith.index_cast %635 : i32 to index
      %638 = memref.load %arg2[%636, %637] : memref<8x8xi32, #tpu.memory_space<smem>>
      %c2_i32_457 = arith.constant 2 : i32
      %c3_i32_458 = arith.constant 3 : i32
      %c0_i32_459 = arith.constant 0 : i32
      %639 = tpu.memref_slice %arg4[%638, %c0_i32_459] : memref<64x128xf32, #tpu.memory_space<any>> -> memref<1x128xf32, #tpu.memory_space<any>>
      %640 = tpu.memref_squeeze %639 : memref<1x128xf32, #tpu.memory_space<any>> -> memref<128xf32, #tpu.memory_space<any>>
      %c0_i32_460 = arith.constant 0 : i32
      %641 = tpu.memref_slice %arg10[%422, %c2_i32_457, %c3_i32_458, %c0_i32_460] : memref<2x8x8x128xf32, #tpu.memory_space<vmem>> -> memref<1x1x1x128xf32, #tpu.memory_space<vmem>>
      %642 = tpu.memref_squeeze %641 : memref<1x1x1x128xf32, #tpu.memory_space<vmem>> -> memref<128xf32, #tpu.memory_space<vmem>>
      %643 = tpu.memref_slice %arg11[%422] : memref<2x!tpu.dma_semaphore, #tpu.memory_space<semaphore_mem>> -> memref<1x!tpu.dma_semaphore, #tpu.memory_space<semaphore_mem>>
      %644 = tpu.memref_squeeze %643 : memref<1x!tpu.dma_semaphore, #tpu.memory_space<semaphore_mem>> -> memref<!tpu.dma_semaphore, #tpu.memory_space<semaphore_mem>>
      tpu.enqueue_dma source(%640 : memref<128xf32, #tpu.memory_space<any>>) target(%642 : memref<128xf32, #tpu.memory_space<vmem>>) target_semaphore(%644 : memref<!tpu.dma_semaphore, #tpu.memory_space<semaphore_mem>>)
      %c2_i32_461 = arith.constant 2 : i32
      %645 = arith.addi %423, %c2_i32_461 : i32
      %c4_i32_462 = arith.constant 4 : i32
      %646 = arith.addi %424, %c4_i32_462 : i32
      %647 = arith.index_cast %645 : i32 to index
      %648 = arith.index_cast %646 : i32 to index
      %649 = memref.load %arg2[%647, %648] : memref<8x8xi32, #tpu.memory_space<smem>>
      %c2_i32_463 = arith.constant 2 : i32
      %c4_i32_464 = arith.constant 4 : i32
      %c0_i32_465 = arith.constant 0 : i32
      %650 = tpu.memref_slice %arg4[%649, %c0_i32_465] : memref<64x128xf32, #tpu.memory_space<any>> -> memref<1x128xf32, #tpu.memory_space<any>>
      %651 = tpu.memref_squeeze %650 : memref<1x128xf32, #tpu.memory_space<any>> -> memref<128xf32, #tpu.memory_space<any>>
      %c0_i32_466 = arith.constant 0 : i32
      %652 = tpu.memref_slice %arg10[%422, %c2_i32_463, %c4_i32_464, %c0_i32_466] : memref<2x8x8x128xf32, #tpu.memory_space<vmem>> -> memref<1x1x1x128xf32, #tpu.memory_space<vmem>>
      %653 = tpu.memref_squeeze %652 : memref<1x1x1x128xf32, #tpu.memory_space<vmem>> -> memref<128xf32, #tpu.memory_space<vmem>>
      %654 = tpu.memref_slice %arg11[%422] : memref<2x!tpu.dma_semaphore, #tpu.memory_space<semaphore_mem>> -> memref<1x!tpu.dma_semaphore, #tpu.memory_space<semaphore_mem>>
      %655 = tpu.memref_squeeze %654 : memref<1x!tpu.dma_semaphore, #tpu.memory_space<semaphore_mem>> -> memref<!tpu.dma_semaphore, #tpu.memory_space<semaphore_mem>>
      tpu.enqueue_dma source(%651 : memref<128xf32, #tpu.memory_space<any>>) target(%653 : memref<128xf32, #tpu.memory_space<vmem>>) target_semaphore(%655 : memref<!tpu.dma_semaphore, #tpu.memory_space<semaphore_mem>>)
      %c2_i32_467 = arith.constant 2 : i32
      %656 = arith.addi %423, %c2_i32_467 : i32
      %c5_i32_468 = arith.constant 5 : i32
      %657 = arith.addi %424, %c5_i32_468 : i32
      %658 = arith.index_cast %656 : i32 to index
      %659 = arith.index_cast %657 : i32 to index
      %660 = memref.load %arg2[%658, %659] : memref<8x8xi32, #tpu.memory_space<smem>>
      %c2_i32_469 = arith.constant 2 : i32
      %c5_i32_470 = arith.constant 5 : i32
      %c0_i32_471 = arith.constant 0 : i32
      %661 = tpu.memref_slice %arg4[%660, %c0_i32_471] : memref<64x128xf32, #tpu.memory_space<any>> -> memref<1x128xf32, #tpu.memory_space<any>>
      %662 = tpu.memref_squeeze %661 : memref<1x128xf32, #tpu.memory_space<any>> -> memref<128xf32, #tpu.memory_space<any>>
      %c0_i32_472 = arith.constant 0 : i32
      %663 = tpu.memref_slice %arg10[%422, %c2_i32_469, %c5_i32_470, %c0_i32_472] : memref<2x8x8x128xf32, #tpu.memory_space<vmem>> -> memref<1x1x1x128xf32, #tpu.memory_space<vmem>>
      %664 = tpu.memref_squeeze %663 : memref<1x1x1x128xf32, #tpu.memory_space<vmem>> -> memref<128xf32, #tpu.memory_space<vmem>>
      %665 = tpu.memref_slice %arg11[%422] : memref<2x!tpu.dma_semaphore, #tpu.memory_space<semaphore_mem>> -> memref<1x!tpu.dma_semaphore, #tpu.memory_space<semaphore_mem>>
      %666 = tpu.memref_squeeze %665 : memref<1x!tpu.dma_semaphore, #tpu.memory_space<semaphore_mem>> -> memref<!tpu.dma_semaphore, #tpu.memory_space<semaphore_mem>>
      tpu.enqueue_dma source(%662 : memref<128xf32, #tpu.memory_space<any>>) target(%664 : memref<128xf32, #tpu.memory_space<vmem>>) target_semaphore(%666 : memref<!tpu.dma_semaphore, #tpu.memory_space<semaphore_mem>>)
      %c2_i32_473 = arith.constant 2 : i32
      %667 = arith.addi %423, %c2_i32_473 : i32
      %c6_i32_474 = arith.constant 6 : i32
      %668 = arith.addi %424, %c6_i32_474 : i32
      %669 = arith.index_cast %667 : i32 to index
      %670 = arith.index_cast %668 : i32 to index
      %671 = memref.load %arg2[%669, %670] : memref<8x8xi32, #tpu.memory_space<smem>>
      %c2_i32_475 = arith.constant 2 : i32
      %c6_i32_476 = arith.constant 6 : i32
      %c0_i32_477 = arith.constant 0 : i32
      %672 = tpu.memref_slice %arg4[%671, %c0_i32_477] : memref<64x128xf32, #tpu.memory_space<any>> -> memref<1x128xf32, #tpu.memory_space<any>>
      %673 = tpu.memref_squeeze %672 : memref<1x128xf32, #tpu.memory_space<any>> -> memref<128xf32, #tpu.memory_space<any>>
      %c0_i32_478 = arith.constant 0 : i32
      %674 = tpu.memref_slice %arg10[%422, %c2_i32_475, %c6_i32_476, %c0_i32_478] : memref<2x8x8x128xf32, #tpu.memory_space<vmem>> -> memref<1x1x1x128xf32, #tpu.memory_space<vmem>>
      %675 = tpu.memref_squeeze %674 : memref<1x1x1x128xf32, #tpu.memory_space<vmem>> -> memref<128xf32, #tpu.memory_space<vmem>>
      %676 = tpu.memref_slice %arg11[%422] : memref<2x!tpu.dma_semaphore, #tpu.memory_space<semaphore_mem>> -> memref<1x!tpu.dma_semaphore, #tpu.memory_space<semaphore_mem>>
      %677 = tpu.memref_squeeze %676 : memref<1x!tpu.dma_semaphore, #tpu.memory_space<semaphore_mem>> -> memref<!tpu.dma_semaphore, #tpu.memory_space<semaphore_mem>>
      tpu.enqueue_dma source(%673 : memref<128xf32, #tpu.memory_space<any>>) target(%675 : memref<128xf32, #tpu.memory_space<vmem>>) target_semaphore(%677 : memref<!tpu.dma_semaphore, #tpu.memory_space<semaphore_mem>>)
      %c2_i32_479 = arith.constant 2 : i32
      %678 = arith.addi %423, %c2_i32_479 : i32
      %c7_i32_480 = arith.constant 7 : i32
      %679 = arith.addi %424, %c7_i32_480 : i32
      %680 = arith.index_cast %678 : i32 to index
      %681 = arith.index_cast %679 : i32 to index
      %682 = memref.load %arg2[%680, %681] : memref<8x8xi32, #tpu.memory_space<smem>>
      %c2_i32_481 = arith.constant 2 : i32
      %c7_i32_482 = arith.constant 7 : i32
      %c0_i32_483 = arith.constant 0 : i32
      %683 = tpu.memref_slice %arg4[%682, %c0_i32_483] : memref<64x128xf32, #tpu.memory_space<any>> -> memref<1x128xf32, #tpu.memory_space<any>>
      %684 = tpu.memref_squeeze %683 : memref<1x128xf32, #tpu.memory_space<any>> -> memref<128xf32, #tpu.memory_space<any>>
      %c0_i32_484 = arith.constant 0 : i32
      %685 = tpu.memref_slice %arg10[%422, %c2_i32_481, %c7_i32_482, %c0_i32_484] : memref<2x8x8x128xf32, #tpu.memory_space<vmem>> -> memref<1x1x1x128xf32, #tpu.memory_space<vmem>>
      %686 = tpu.memref_squeeze %685 : memref<1x1x1x128xf32, #tpu.memory_space<vmem>> -> memref<128xf32, #tpu.memory_space<vmem>>
      %687 = tpu.memref_slice %arg11[%422] : memref<2x!tpu.dma_semaphore, #tpu.memory_space<semaphore_mem>> -> memref<1x!tpu.dma_semaphore, #tpu.memory_space<semaphore_mem>>
      %688 = tpu.memref_squeeze %687 : memref<1x!tpu.dma_semaphore, #tpu.memory_space<semaphore_mem>> -> memref<!tpu.dma_semaphore, #tpu.memory_space<semaphore_mem>>
      tpu.enqueue_dma source(%684 : memref<128xf32, #tpu.memory_space<any>>) target(%686 : memref<128xf32, #tpu.memory_space<vmem>>) target_semaphore(%688 : memref<!tpu.dma_semaphore, #tpu.memory_space<semaphore_mem>>)
      %c3_i32_485 = arith.constant 3 : i32
      %689 = arith.addi %423, %c3_i32_485 : i32
      %c0_i32_486 = arith.constant 0 : i32
      %690 = arith.addi %424, %c0_i32_486 : i32
      %691 = arith.index_cast %689 : i32 to index
      %692 = arith.index_cast %690 : i32 to index
      %693 = memref.load %arg2[%691, %692] : memref<8x8xi32, #tpu.memory_space<smem>>
      %c3_i32_487 = arith.constant 3 : i32
      %c0_i32_488 = arith.constant 0 : i32
      %c0_i32_489 = arith.constant 0 : i32
      %694 = tpu.memref_slice %arg4[%693, %c0_i32_489] : memref<64x128xf32, #tpu.memory_space<any>> -> memref<1x128xf32, #tpu.memory_space<any>>
      %695 = tpu.memref_squeeze %694 : memref<1x128xf32, #tpu.memory_space<any>> -> memref<128xf32, #tpu.memory_space<any>>
      %c0_i32_490 = arith.constant 0 : i32
      %696 = tpu.memref_slice %arg10[%422, %c3_i32_487, %c0_i32_488, %c0_i32_490] : memref<2x8x8x128xf32, #tpu.memory_space<vmem>> -> memref<1x1x1x128xf32, #tpu.memory_space<vmem>>
      %697 = tpu.memref_squeeze %696 : memref<1x1x1x128xf32, #tpu.memory_space<vmem>> -> memref<128xf32, #tpu.memory_space<vmem>>
      %698 = tpu.memref_slice %arg11[%422] : memref<2x!tpu.dma_semaphore, #tpu.memory_space<semaphore_mem>> -> memref<1x!tpu.dma_semaphore, #tpu.memory_space<semaphore_mem>>
      %699 = tpu.memref_squeeze %698 : memref<1x!tpu.dma_semaphore, #tpu.memory_space<semaphore_mem>> -> memref<!tpu.dma_semaphore, #tpu.memory_space<semaphore_mem>>
      tpu.enqueue_dma source(%695 : memref<128xf32, #tpu.memory_space<any>>) target(%697 : memref<128xf32, #tpu.memory_space<vmem>>) target_semaphore(%699 : memref<!tpu.dma_semaphore, #tpu.memory_space<semaphore_mem>>)
      %c3_i32_491 = arith.constant 3 : i32
      %700 = arith.addi %423, %c3_i32_491 : i32
      %c1_i32_492 = arith.constant 1 : i32
      %701 = arith.addi %424, %c1_i32_492 : i32
      %702 = arith.index_cast %700 : i32 to index
      %703 = arith.index_cast %701 : i32 to index
      %704 = memref.load %arg2[%702, %703] : memref<8x8xi32, #tpu.memory_space<smem>>
      %c3_i32_493 = arith.constant 3 : i32
      %c1_i32_494 = arith.constant 1 : i32
      %c0_i32_495 = arith.constant 0 : i32
      %705 = tpu.memref_slice %arg4[%704, %c0_i32_495] : memref<64x128xf32, #tpu.memory_space<any>> -> memref<1x128xf32, #tpu.memory_space<any>>
      %706 = tpu.memref_squeeze %705 : memref<1x128xf32, #tpu.memory_space<any>> -> memref<128xf32, #tpu.memory_space<any>>
      %c0_i32_496 = arith.constant 0 : i32
      %707 = tpu.memref_slice %arg10[%422, %c3_i32_493, %c1_i32_494, %c0_i32_496] : memref<2x8x8x128xf32, #tpu.memory_space<vmem>> -> memref<1x1x1x128xf32, #tpu.memory_space<vmem>>
      %708 = tpu.memref_squeeze %707 : memref<1x1x1x128xf32, #tpu.memory_space<vmem>> -> memref<128xf32, #tpu.memory_space<vmem>>
      %709 = tpu.memref_slice %arg11[%422] : memref<2x!tpu.dma_semaphore, #tpu.memory_space<semaphore_mem>> -> memref<1x!tpu.dma_semaphore, #tpu.memory_space<semaphore_mem>>
      %710 = tpu.memref_squeeze %709 : memref<1x!tpu.dma_semaphore, #tpu.memory_space<semaphore_mem>> -> memref<!tpu.dma_semaphore, #tpu.memory_space<semaphore_mem>>
      tpu.enqueue_dma source(%706 : memref<128xf32, #tpu.memory_space<any>>) target(%708 : memref<128xf32, #tpu.memory_space<vmem>>) target_semaphore(%710 : memref<!tpu.dma_semaphore, #tpu.memory_space<semaphore_mem>>)
      %c3_i32_497 = arith.constant 3 : i32
      %711 = arith.addi %423, %c3_i32_497 : i32
      %c2_i32_498 = arith.constant 2 : i32
      %712 = arith.addi %424, %c2_i32_498 : i32
      %713 = arith.index_cast %711 : i32 to index
      %714 = arith.index_cast %712 : i32 to index
      %715 = memref.load %arg2[%713, %714] : memref<8x8xi32, #tpu.memory_space<smem>>
      %c3_i32_499 = arith.constant 3 : i32
      %c2_i32_500 = arith.constant 2 : i32
      %c0_i32_501 = arith.constant 0 : i32
      %716 = tpu.memref_slice %arg4[%715, %c0_i32_501] : memref<64x128xf32, #tpu.memory_space<any>> -> memref<1x128xf32, #tpu.memory_space<any>>
      %717 = tpu.memref_squeeze %716 : memref<1x128xf32, #tpu.memory_space<any>> -> memref<128xf32, #tpu.memory_space<any>>
      %c0_i32_502 = arith.constant 0 : i32
      %718 = tpu.memref_slice %arg10[%422, %c3_i32_499, %c2_i32_500, %c0_i32_502] : memref<2x8x8x128xf32, #tpu.memory_space<vmem>> -> memref<1x1x1x128xf32, #tpu.memory_space<vmem>>
      %719 = tpu.memref_squeeze %718 : memref<1x1x1x128xf32, #tpu.memory_space<vmem>> -> memref<128xf32, #tpu.memory_space<vmem>>
      %720 = tpu.memref_slice %arg11[%422] : memref<2x!tpu.dma_semaphore, #tpu.memory_space<semaphore_mem>> -> memref<1x!tpu.dma_semaphore, #tpu.memory_space<semaphore_mem>>
      %721 = tpu.memref_squeeze %720 : memref<1x!tpu.dma_semaphore, #tpu.memory_space<semaphore_mem>> -> memref<!tpu.dma_semaphore, #tpu.memory_space<semaphore_mem>>
      tpu.enqueue_dma source(%717 : memref<128xf32, #tpu.memory_space<any>>) target(%719 : memref<128xf32, #tpu.memory_space<vmem>>) target_semaphore(%721 : memref<!tpu.dma_semaphore, #tpu.memory_space<semaphore_mem>>)
      %c3_i32_503 = arith.constant 3 : i32
      %722 = arith.addi %423, %c3_i32_503 : i32
      %c3_i32_504 = arith.constant 3 : i32
      %723 = arith.addi %424, %c3_i32_504 : i32
      %724 = arith.index_cast %722 : i32 to index
      %725 = arith.index_cast %723 : i32 to index
      %726 = memref.load %arg2[%724, %725] : memref<8x8xi32, #tpu.memory_space<smem>>
      %c3_i32_505 = arith.constant 3 : i32
      %c3_i32_506 = arith.constant 3 : i32
      %c0_i32_507 = arith.constant 0 : i32
      %727 = tpu.memref_slice %arg4[%726, %c0_i32_507] : memref<64x128xf32, #tpu.memory_space<any>> -> memref<1x128xf32, #tpu.memory_space<any>>
      %728 = tpu.memref_squeeze %727 : memref<1x128xf32, #tpu.memory_space<any>> -> memref<128xf32, #tpu.memory_space<any>>
      %c0_i32_508 = arith.constant 0 : i32
      %729 = tpu.memref_slice %arg10[%422, %c3_i32_505, %c3_i32_506, %c0_i32_508] : memref<2x8x8x128xf32, #tpu.memory_space<vmem>> -> memref<1x1x1x128xf32, #tpu.memory_space<vmem>>
      %730 = tpu.memref_squeeze %729 : memref<1x1x1x128xf32, #tpu.memory_space<vmem>> -> memref<128xf32, #tpu.memory_space<vmem>>
      %731 = tpu.memref_slice %arg11[%422] : memref<2x!tpu.dma_semaphore, #tpu.memory_space<semaphore_mem>> -> memref<1x!tpu.dma_semaphore, #tpu.memory_space<semaphore_mem>>
      %732 = tpu.memref_squeeze %731 : memref<1x!tpu.dma_semaphore, #tpu.memory_space<semaphore_mem>> -> memref<!tpu.dma_semaphore, #tpu.memory_space<semaphore_mem>>
      tpu.enqueue_dma source(%728 : memref<128xf32, #tpu.memory_space<any>>) target(%730 : memref<128xf32, #tpu.memory_space<vmem>>) target_semaphore(%732 : memref<!tpu.dma_semaphore, #tpu.memory_space<semaphore_mem>>)
      %c3_i32_509 = arith.constant 3 : i32
      %733 = arith.addi %423, %c3_i32_509 : i32
      %c4_i32_510 = arith.constant 4 : i32
      %734 = arith.addi %424, %c4_i32_510 : i32
      %735 = arith.index_cast %733 : i32 to index
      %736 = arith.index_cast %734 : i32 to index
      %737 = memref.load %arg2[%735, %736] : memref<8x8xi32, #tpu.memory_space<smem>>
      %c3_i32_511 = arith.constant 3 : i32
      %c4_i32_512 = arith.constant 4 : i32
      %c0_i32_513 = arith.constant 0 : i32
      %738 = tpu.memref_slice %arg4[%737, %c0_i32_513] : memref<64x128xf32, #tpu.memory_space<any>> -> memref<1x128xf32, #tpu.memory_space<any>>
      %739 = tpu.memref_squeeze %738 : memref<1x128xf32, #tpu.memory_space<any>> -> memref<128xf32, #tpu.memory_space<any>>
      %c0_i32_514 = arith.constant 0 : i32
      %740 = tpu.memref_slice %arg10[%422, %c3_i32_511, %c4_i32_512, %c0_i32_514] : memref<2x8x8x128xf32, #tpu.memory_space<vmem>> -> memref<1x1x1x128xf32, #tpu.memory_space<vmem>>
      %741 = tpu.memref_squeeze %740 : memref<1x1x1x128xf32, #tpu.memory_space<vmem>> -> memref<128xf32, #tpu.memory_space<vmem>>
      %742 = tpu.memref_slice %arg11[%422] : memref<2x!tpu.dma_semaphore, #tpu.memory_space<semaphore_mem>> -> memref<1x!tpu.dma_semaphore, #tpu.memory_space<semaphore_mem>>
      %743 = tpu.memref_squeeze %742 : memref<1x!tpu.dma_semaphore, #tpu.memory_space<semaphore_mem>> -> memref<!tpu.dma_semaphore, #tpu.memory_space<semaphore_mem>>
      tpu.enqueue_dma source(%739 : memref<128xf32, #tpu.memory_space<any>>) target(%741 : memref<128xf32, #tpu.memory_space<vmem>>) target_semaphore(%743 : memref<!tpu.dma_semaphore, #tpu.memory_space<semaphore_mem>>)
      %c3_i32_515 = arith.constant 3 : i32
      %744 = arith.addi %423, %c3_i32_515 : i32
      %c5_i32_516 = arith.constant 5 : i32
      %745 = arith.addi %424, %c5_i32_516 : i32
      %746 = arith.index_cast %744 : i32 to index
      %747 = arith.index_cast %745 : i32 to index
      %748 = memref.load %arg2[%746, %747] : memref<8x8xi32, #tpu.memory_space<smem>>
      %c3_i32_517 = arith.constant 3 : i32
      %c5_i32_518 = arith.constant 5 : i32
      %c0_i32_519 = arith.constant 0 : i32
      %749 = tpu.memref_slice %arg4[%748, %c0_i32_519] : memref<64x128xf32, #tpu.memory_space<any>> -> memref<1x128xf32, #tpu.memory_space<any>>
      %750 = tpu.memref_squeeze %749 : memref<1x128xf32, #tpu.memory_space<any>> -> memref<128xf32, #tpu.memory_space<any>>
      %c0_i32_520 = arith.constant 0 : i32
      %751 = tpu.memref_slice %arg10[%422, %c3_i32_517, %c5_i32_518, %c0_i32_520] : memref<2x8x8x128xf32, #tpu.memory_space<vmem>> -> memref<1x1x1x128xf32, #tpu.memory_space<vmem>>
      %752 = tpu.memref_squeeze %751 : memref<1x1x1x128xf32, #tpu.memory_space<vmem>> -> memref<128xf32, #tpu.memory_space<vmem>>
      %753 = tpu.memref_slice %arg11[%422] : memref<2x!tpu.dma_semaphore, #tpu.memory_space<semaphore_mem>> -> memref<1x!tpu.dma_semaphore, #tpu.memory_space<semaphore_mem>>
      %754 = tpu.memref_squeeze %753 : memref<1x!tpu.dma_semaphore, #tpu.memory_space<semaphore_mem>> -> memref<!tpu.dma_semaphore, #tpu.memory_space<semaphore_mem>>
      tpu.enqueue_dma source(%750 : memref<128xf32, #tpu.memory_space<any>>) target(%752 : memref<128xf32, #tpu.memory_space<vmem>>) target_semaphore(%754 : memref<!tpu.dma_semaphore, #tpu.memory_space<semaphore_mem>>)
      %c3_i32_521 = arith.constant 3 : i32
      %755 = arith.addi %423, %c3_i32_521 : i32
      %c6_i32_522 = arith.constant 6 : i32
      %756 = arith.addi %424, %c6_i32_522 : i32
      %757 = arith.index_cast %755 : i32 to index
      %758 = arith.index_cast %756 : i32 to index
      %759 = memref.load %arg2[%757, %758] : memref<8x8xi32, #tpu.memory_space<smem>>
      %c3_i32_523 = arith.constant 3 : i32
      %c6_i32_524 = arith.constant 6 : i32
      %c0_i32_525 = arith.constant 0 : i32
      %760 = tpu.memref_slice %arg4[%759, %c0_i32_525] : memref<64x128xf32, #tpu.memory_space<any>> -> memref<1x128xf32, #tpu.memory_space<any>>
      %761 = tpu.memref_squeeze %760 : memref<1x128xf32, #tpu.memory_space<any>> -> memref<128xf32, #tpu.memory_space<any>>
      %c0_i32_526 = arith.constant 0 : i32
      %762 = tpu.memref_slice %arg10[%422, %c3_i32_523, %c6_i32_524, %c0_i32_526] : memref<2x8x8x128xf32, #tpu.memory_space<vmem>> -> memref<1x1x1x128xf32, #tpu.memory_space<vmem>>
      %763 = tpu.memref_squeeze %762 : memref<1x1x1x128xf32, #tpu.memory_space<vmem>> -> memref<128xf32, #tpu.memory_space<vmem>>
      %764 = tpu.memref_slice %arg11[%422] : memref<2x!tpu.dma_semaphore, #tpu.memory_space<semaphore_mem>> -> memref<1x!tpu.dma_semaphore, #tpu.memory_space<semaphore_mem>>
      %765 = tpu.memref_squeeze %764 : memref<1x!tpu.dma_semaphore, #tpu.memory_space<semaphore_mem>> -> memref<!tpu.dma_semaphore, #tpu.memory_space<semaphore_mem>>
      tpu.enqueue_dma source(%761 : memref<128xf32, #tpu.memory_space<any>>) target(%763 : memref<128xf32, #tpu.memory_space<vmem>>) target_semaphore(%765 : memref<!tpu.dma_semaphore, #tpu.memory_space<semaphore_mem>>)
      %c3_i32_527 = arith.constant 3 : i32
      %766 = arith.addi %423, %c3_i32_527 : i32
      %c7_i32_528 = arith.constant 7 : i32
      %767 = arith.addi %424, %c7_i32_528 : i32
      %768 = arith.index_cast %766 : i32 to index
      %769 = arith.index_cast %767 : i32 to index
      %770 = memref.load %arg2[%768, %769] : memref<8x8xi32, #tpu.memory_space<smem>>
      %c3_i32_529 = arith.constant 3 : i32
      %c7_i32_530 = arith.constant 7 : i32
      %c0_i32_531 = arith.constant 0 : i32
      %771 = tpu.memref_slice %arg4[%770, %c0_i32_531] : memref<64x128xf32, #tpu.memory_space<any>> -> memref<1x128xf32, #tpu.memory_space<any>>
      %772 = tpu.memref_squeeze %771 : memref<1x128xf32, #tpu.memory_space<any>> -> memref<128xf32, #tpu.memory_space<any>>
      %c0_i32_532 = arith.constant 0 : i32
      %773 = tpu.memref_slice %arg10[%422, %c3_i32_529, %c7_i32_530, %c0_i32_532] : memref<2x8x8x128xf32, #tpu.memory_space<vmem>> -> memref<1x1x1x128xf32, #tpu.memory_space<vmem>>
      %774 = tpu.memref_squeeze %773 : memref<1x1x1x128xf32, #tpu.memory_space<vmem>> -> memref<128xf32, #tpu.memory_space<vmem>>
      %775 = tpu.memref_slice %arg11[%422] : memref<2x!tpu.dma_semaphore, #tpu.memory_space<semaphore_mem>> -> memref<1x!tpu.dma_semaphore, #tpu.memory_space<semaphore_mem>>
      %776 = tpu.memref_squeeze %775 : memref<1x!tpu.dma_semaphore, #tpu.memory_space<semaphore_mem>> -> memref<!tpu.dma_semaphore, #tpu.memory_space<semaphore_mem>>
      tpu.enqueue_dma source(%772 : memref<128xf32, #tpu.memory_space<any>>) target(%774 : memref<128xf32, #tpu.memory_space<vmem>>) target_semaphore(%776 : memref<!tpu.dma_semaphore, #tpu.memory_space<semaphore_mem>>)
      %c4_i32_533 = arith.constant 4 : i32
      %777 = arith.addi %423, %c4_i32_533 : i32
      %c0_i32_534 = arith.constant 0 : i32
      %778 = arith.addi %424, %c0_i32_534 : i32
      %779 = arith.index_cast %777 : i32 to index
      %780 = arith.index_cast %778 : i32 to index
      %781 = memref.load %arg2[%779, %780] : memref<8x8xi32, #tpu.memory_space<smem>>
      %c4_i32_535 = arith.constant 4 : i32
      %c0_i32_536 = arith.constant 0 : i32
      %c0_i32_537 = arith.constant 0 : i32
      %782 = tpu.memref_slice %arg4[%781, %c0_i32_537] : memref<64x128xf32, #tpu.memory_space<any>> -> memref<1x128xf32, #tpu.memory_space<any>>
      %783 = tpu.memref_squeeze %782 : memref<1x128xf32, #tpu.memory_space<any>> -> memref<128xf32, #tpu.memory_space<any>>
      %c0_i32_538 = arith.constant 0 : i32
      %784 = tpu.memref_slice %arg10[%422, %c4_i32_535, %c0_i32_536, %c0_i32_538] : memref<2x8x8x128xf32, #tpu.memory_space<vmem>> -> memref<1x1x1x128xf32, #tpu.memory_space<vmem>>
      %785 = tpu.memref_squeeze %784 : memref<1x1x1x128xf32, #tpu.memory_space<vmem>> -> memref<128xf32, #tpu.memory_space<vmem>>
      %786 = tpu.memref_slice %arg11[%422] : memref<2x!tpu.dma_semaphore, #tpu.memory_space<semaphore_mem>> -> memref<1x!tpu.dma_semaphore, #tpu.memory_space<semaphore_mem>>
      %787 = tpu.memref_squeeze %786 : memref<1x!tpu.dma_semaphore, #tpu.memory_space<semaphore_mem>> -> memref<!tpu.dma_semaphore, #tpu.memory_space<semaphore_mem>>
      tpu.enqueue_dma source(%783 : memref<128xf32, #tpu.memory_space<any>>) target(%785 : memref<128xf32, #tpu.memory_space<vmem>>) target_semaphore(%787 : memref<!tpu.dma_semaphore, #tpu.memory_space<semaphore_mem>>)
      %c4_i32_539 = arith.constant 4 : i32
      %788 = arith.addi %423, %c4_i32_539 : i32
      %c1_i32_540 = arith.constant 1 : i32
      %789 = arith.addi %424, %c1_i32_540 : i32
      %790 = arith.index_cast %788 : i32 to index
      %791 = arith.index_cast %789 : i32 to index
      %792 = memref.load %arg2[%790, %791] : memref<8x8xi32, #tpu.memory_space<smem>>
      %c4_i32_541 = arith.constant 4 : i32
      %c1_i32_542 = arith.constant 1 : i32
      %c0_i32_543 = arith.constant 0 : i32
      %793 = tpu.memref_slice %arg4[%792, %c0_i32_543] : memref<64x128xf32, #tpu.memory_space<any>> -> memref<1x128xf32, #tpu.memory_space<any>>
      %794 = tpu.memref_squeeze %793 : memref<1x128xf32, #tpu.memory_space<any>> -> memref<128xf32, #tpu.memory_space<any>>
      %c0_i32_544 = arith.constant 0 : i32
      %795 = tpu.memref_slice %arg10[%422, %c4_i32_541, %c1_i32_542, %c0_i32_544] : memref<2x8x8x128xf32, #tpu.memory_space<vmem>> -> memref<1x1x1x128xf32, #tpu.memory_space<vmem>>
      %796 = tpu.memref_squeeze %795 : memref<1x1x1x128xf32, #tpu.memory_space<vmem>> -> memref<128xf32, #tpu.memory_space<vmem>>
      %797 = tpu.memref_slice %arg11[%422] : memref<2x!tpu.dma_semaphore, #tpu.memory_space<semaphore_mem>> -> memref<1x!tpu.dma_semaphore, #tpu.memory_space<semaphore_mem>>
      %798 = tpu.memref_squeeze %797 : memref<1x!tpu.dma_semaphore, #tpu.memory_space<semaphore_mem>> -> memref<!tpu.dma_semaphore, #tpu.memory_space<semaphore_mem>>
      tpu.enqueue_dma source(%794 : memref<128xf32, #tpu.memory_space<any>>) target(%796 : memref<128xf32, #tpu.memory_space<vmem>>) target_semaphore(%798 : memref<!tpu.dma_semaphore, #tpu.memory_space<semaphore_mem>>)
      %c4_i32_545 = arith.constant 4 : i32
      %799 = arith.addi %423, %c4_i32_545 : i32
      %c2_i32_546 = arith.constant 2 : i32
      %800 = arith.addi %424, %c2_i32_546 : i32
      %801 = arith.index_cast %799 : i32 to index
      %802 = arith.index_cast %800 : i32 to index
      %803 = memref.load %arg2[%801, %802] : memref<8x8xi32, #tpu.memory_space<smem>>
      %c4_i32_547 = arith.constant 4 : i32
      %c2_i32_548 = arith.constant 2 : i32
      %c0_i32_549 = arith.constant 0 : i32
      %804 = tpu.memref_slice %arg4[%803, %c0_i32_549] : memref<64x128xf32, #tpu.memory_space<any>> -> memref<1x128xf32, #tpu.memory_space<any>>
      %805 = tpu.memref_squeeze %804 : memref<1x128xf32, #tpu.memory_space<any>> -> memref<128xf32, #tpu.memory_space<any>>
      %c0_i32_550 = arith.constant 0 : i32
      %806 = tpu.memref_slice %arg10[%422, %c4_i32_547, %c2_i32_548, %c0_i32_550] : memref<2x8x8x128xf32, #tpu.memory_space<vmem>> -> memref<1x1x1x128xf32, #tpu.memory_space<vmem>>
      %807 = tpu.memref_squeeze %806 : memref<1x1x1x128xf32, #tpu.memory_space<vmem>> -> memref<128xf32, #tpu.memory_space<vmem>>
      %808 = tpu.memref_slice %arg11[%422] : memref<2x!tpu.dma_semaphore, #tpu.memory_space<semaphore_mem>> -> memref<1x!tpu.dma_semaphore, #tpu.memory_space<semaphore_mem>>
      %809 = tpu.memref_squeeze %808 : memref<1x!tpu.dma_semaphore, #tpu.memory_space<semaphore_mem>> -> memref<!tpu.dma_semaphore, #tpu.memory_space<semaphore_mem>>
      tpu.enqueue_dma source(%805 : memref<128xf32, #tpu.memory_space<any>>) target(%807 : memref<128xf32, #tpu.memory_space<vmem>>) target_semaphore(%809 : memref<!tpu.dma_semaphore, #tpu.memory_space<semaphore_mem>>)
      %c4_i32_551 = arith.constant 4 : i32
      %810 = arith.addi %423, %c4_i32_551 : i32
      %c3_i32_552 = arith.constant 3 : i32
      %811 = arith.addi %424, %c3_i32_552 : i32
      %812 = arith.index_cast %810 : i32 to index
      %813 = arith.index_cast %811 : i32 to index
      %814 = memref.load %arg2[%812, %813] : memref<8x8xi32, #tpu.memory_space<smem>>
      %c4_i32_553 = arith.constant 4 : i32
      %c3_i32_554 = arith.constant 3 : i32
      %c0_i32_555 = arith.constant 0 : i32
      %815 = tpu.memref_slice %arg4[%814, %c0_i32_555] : memref<64x128xf32, #tpu.memory_space<any>> -> memref<1x128xf32, #tpu.memory_space<any>>
      %816 = tpu.memref_squeeze %815 : memref<1x128xf32, #tpu.memory_space<any>> -> memref<128xf32, #tpu.memory_space<any>>
      %c0_i32_556 = arith.constant 0 : i32
      %817 = tpu.memref_slice %arg10[%422, %c4_i32_553, %c3_i32_554, %c0_i32_556] : memref<2x8x8x128xf32, #tpu.memory_space<vmem>> -> memref<1x1x1x128xf32, #tpu.memory_space<vmem>>
      %818 = tpu.memref_squeeze %817 : memref<1x1x1x128xf32, #tpu.memory_space<vmem>> -> memref<128xf32, #tpu.memory_space<vmem>>
      %819 = tpu.memref_slice %arg11[%422] : memref<2x!tpu.dma_semaphore, #tpu.memory_space<semaphore_mem>> -> memref<1x!tpu.dma_semaphore, #tpu.memory_space<semaphore_mem>>
      %820 = tpu.memref_squeeze %819 : memref<1x!tpu.dma_semaphore, #tpu.memory_space<semaphore_mem>> -> memref<!tpu.dma_semaphore, #tpu.memory_space<semaphore_mem>>
      tpu.enqueue_dma source(%816 : memref<128xf32, #tpu.memory_space<any>>) target(%818 : memref<128xf32, #tpu.memory_space<vmem>>) target_semaphore(%820 : memref<!tpu.dma_semaphore, #tpu.memory_space<semaphore_mem>>)
      %c4_i32_557 = arith.constant 4 : i32
      %821 = arith.addi %423, %c4_i32_557 : i32
      %c4_i32_558 = arith.constant 4 : i32
      %822 = arith.addi %424, %c4_i32_558 : i32
      %823 = arith.index_cast %821 : i32 to index
      %824 = arith.index_cast %822 : i32 to index
      %825 = memref.load %arg2[%823, %824] : memref<8x8xi32, #tpu.memory_space<smem>>
      %c4_i32_559 = arith.constant 4 : i32
      %c4_i32_560 = arith.constant 4 : i32
      %c0_i32_561 = arith.constant 0 : i32
      %826 = tpu.memref_slice %arg4[%825, %c0_i32_561] : memref<64x128xf32, #tpu.memory_space<any>> -> memref<1x128xf32, #tpu.memory_space<any>>
      %827 = tpu.memref_squeeze %826 : memref<1x128xf32, #tpu.memory_space<any>> -> memref<128xf32, #tpu.memory_space<any>>
      %c0_i32_562 = arith.constant 0 : i32
      %828 = tpu.memref_slice %arg10[%422, %c4_i32_559, %c4_i32_560, %c0_i32_562] : memref<2x8x8x128xf32, #tpu.memory_space<vmem>> -> memref<1x1x1x128xf32, #tpu.memory_space<vmem>>
      %829 = tpu.memref_squeeze %828 : memref<1x1x1x128xf32, #tpu.memory_space<vmem>> -> memref<128xf32, #tpu.memory_space<vmem>>
      %830 = tpu.memref_slice %arg11[%422] : memref<2x!tpu.dma_semaphore, #tpu.memory_space<semaphore_mem>> -> memref<1x!tpu.dma_semaphore, #tpu.memory_space<semaphore_mem>>
      %831 = tpu.memref_squeeze %830 : memref<1x!tpu.dma_semaphore, #tpu.memory_space<semaphore_mem>> -> memref<!tpu.dma_semaphore, #tpu.memory_space<semaphore_mem>>
      tpu.enqueue_dma source(%827 : memref<128xf32, #tpu.memory_space<any>>) target(%829 : memref<128xf32, #tpu.memory_space<vmem>>) target_semaphore(%831 : memref<!tpu.dma_semaphore, #tpu.memory_space<semaphore_mem>>)
      %c4_i32_563 = arith.constant 4 : i32
      %832 = arith.addi %423, %c4_i32_563 : i32
      %c5_i32_564 = arith.constant 5 : i32
      %833 = arith.addi %424, %c5_i32_564 : i32
      %834 = arith.index_cast %832 : i32 to index
      %835 = arith.index_cast %833 : i32 to index
      %836 = memref.load %arg2[%834, %835] : memref<8x8xi32, #tpu.memory_space<smem>>
      %c4_i32_565 = arith.constant 4 : i32
      %c5_i32_566 = arith.constant 5 : i32
      %c0_i32_567 = arith.constant 0 : i32
      %837 = tpu.memref_slice %arg4[%836, %c0_i32_567] : memref<64x128xf32, #tpu.memory_space<any>> -> memref<1x128xf32, #tpu.memory_space<any>>
      %838 = tpu.memref_squeeze %837 : memref<1x128xf32, #tpu.memory_space<any>> -> memref<128xf32, #tpu.memory_space<any>>
      %c0_i32_568 = arith.constant 0 : i32
      %839 = tpu.memref_slice %arg10[%422, %c4_i32_565, %c5_i32_566, %c0_i32_568] : memref<2x8x8x128xf32, #tpu.memory_space<vmem>> -> memref<1x1x1x128xf32, #tpu.memory_space<vmem>>
      %840 = tpu.memref_squeeze %839 : memref<1x1x1x128xf32, #tpu.memory_space<vmem>> -> memref<128xf32, #tpu.memory_space<vmem>>
      %841 = tpu.memref_slice %arg11[%422] : memref<2x!tpu.dma_semaphore, #tpu.memory_space<semaphore_mem>> -> memref<1x!tpu.dma_semaphore, #tpu.memory_space<semaphore_mem>>
      %842 = tpu.memref_squeeze %841 : memref<1x!tpu.dma_semaphore, #tpu.memory_space<semaphore_mem>> -> memref<!tpu.dma_semaphore, #tpu.memory_space<semaphore_mem>>
      tpu.enqueue_dma source(%838 : memref<128xf32, #tpu.memory_space<any>>) target(%840 : memref<128xf32, #tpu.memory_space<vmem>>) target_semaphore(%842 : memref<!tpu.dma_semaphore, #tpu.memory_space<semaphore_mem>>)
      %c4_i32_569 = arith.constant 4 : i32
      %843 = arith.addi %423, %c4_i32_569 : i32
      %c6_i32_570 = arith.constant 6 : i32
      %844 = arith.addi %424, %c6_i32_570 : i32
      %845 = arith.index_cast %843 : i32 to index
      %846 = arith.index_cast %844 : i32 to index
      %847 = memref.load %arg2[%845, %846] : memref<8x8xi32, #tpu.memory_space<smem>>
      %c4_i32_571 = arith.constant 4 : i32
      %c6_i32_572 = arith.constant 6 : i32
      %c0_i32_573 = arith.constant 0 : i32
      %848 = tpu.memref_slice %arg4[%847, %c0_i32_573] : memref<64x128xf32, #tpu.memory_space<any>> -> memref<1x128xf32, #tpu.memory_space<any>>
      %849 = tpu.memref_squeeze %848 : memref<1x128xf32, #tpu.memory_space<any>> -> memref<128xf32, #tpu.memory_space<any>>
      %c0_i32_574 = arith.constant 0 : i32
      %850 = tpu.memref_slice %arg10[%422, %c4_i32_571, %c6_i32_572, %c0_i32_574] : memref<2x8x8x128xf32, #tpu.memory_space<vmem>> -> memref<1x1x1x128xf32, #tpu.memory_space<vmem>>
      %851 = tpu.memref_squeeze %850 : memref<1x1x1x128xf32, #tpu.memory_space<vmem>> -> memref<128xf32, #tpu.memory_space<vmem>>
      %852 = tpu.memref_slice %arg11[%422] : memref<2x!tpu.dma_semaphore, #tpu.memory_space<semaphore_mem>> -> memref<1x!tpu.dma_semaphore, #tpu.memory_space<semaphore_mem>>
      %853 = tpu.memref_squeeze %852 : memref<1x!tpu.dma_semaphore, #tpu.memory_space<semaphore_mem>> -> memref<!tpu.dma_semaphore, #tpu.memory_space<semaphore_mem>>
      tpu.enqueue_dma source(%849 : memref<128xf32, #tpu.memory_space<any>>) target(%851 : memref<128xf32, #tpu.memory_space<vmem>>) target_semaphore(%853 : memref<!tpu.dma_semaphore, #tpu.memory_space<semaphore_mem>>)
      %c4_i32_575 = arith.constant 4 : i32
      %854 = arith.addi %423, %c4_i32_575 : i32
      %c7_i32_576 = arith.constant 7 : i32
      %855 = arith.addi %424, %c7_i32_576 : i32
      %856 = arith.index_cast %854 : i32 to index
      %857 = arith.index_cast %855 : i32 to index
      %858 = memref.load %arg2[%856, %857] : memref<8x8xi32, #tpu.memory_space<smem>>
      %c4_i32_577 = arith.constant 4 : i32
      %c7_i32_578 = arith.constant 7 : i32
      %c0_i32_579 = arith.constant 0 : i32
      %859 = tpu.memref_slice %arg4[%858, %c0_i32_579] : memref<64x128xf32, #tpu.memory_space<any>> -> memref<1x128xf32, #tpu.memory_space<any>>
      %860 = tpu.memref_squeeze %859 : memref<1x128xf32, #tpu.memory_space<any>> -> memref<128xf32, #tpu.memory_space<any>>
      %c0_i32_580 = arith.constant 0 : i32
      %861 = tpu.memref_slice %arg10[%422, %c4_i32_577, %c7_i32_578, %c0_i32_580] : memref<2x8x8x128xf32, #tpu.memory_space<vmem>> -> memref<1x1x1x128xf32, #tpu.memory_space<vmem>>
      %862 = tpu.memref_squeeze %861 : memref<1x1x1x128xf32, #tpu.memory_space<vmem>> -> memref<128xf32, #tpu.memory_space<vmem>>
      %863 = tpu.memref_slice %arg11[%422] : memref<2x!tpu.dma_semaphore, #tpu.memory_space<semaphore_mem>> -> memref<1x!tpu.dma_semaphore, #tpu.memory_space<semaphore_mem>>
      %864 = tpu.memref_squeeze %863 : memref<1x!tpu.dma_semaphore, #tpu.memory_space<semaphore_mem>> -> memref<!tpu.dma_semaphore, #tpu.memory_space<semaphore_mem>>
      tpu.enqueue_dma source(%860 : memref<128xf32, #tpu.memory_space<any>>) target(%862 : memref<128xf32, #tpu.memory_space<vmem>>) target_semaphore(%864 : memref<!tpu.dma_semaphore, #tpu.memory_space<semaphore_mem>>)
      %c5_i32_581 = arith.constant 5 : i32
      %865 = arith.addi %423, %c5_i32_581 : i32
      %c0_i32_582 = arith.constant 0 : i32
      %866 = arith.addi %424, %c0_i32_582 : i32
      %867 = arith.index_cast %865 : i32 to index
      %868 = arith.index_cast %866 : i32 to index
      %869 = memref.load %arg2[%867, %868] : memref<8x8xi32, #tpu.memory_space<smem>>
      %c5_i32_583 = arith.constant 5 : i32
      %c0_i32_584 = arith.constant 0 : i32
      %c0_i32_585 = arith.constant 0 : i32
      %870 = tpu.memref_slice %arg4[%869, %c0_i32_585] : memref<64x128xf32, #tpu.memory_space<any>> -> memref<1x128xf32, #tpu.memory_space<any>>
      %871 = tpu.memref_squeeze %870 : memref<1x128xf32, #tpu.memory_space<any>> -> memref<128xf32, #tpu.memory_space<any>>
      %c0_i32_586 = arith.constant 0 : i32
      %872 = tpu.memref_slice %arg10[%422, %c5_i32_583, %c0_i32_584, %c0_i32_586] : memref<2x8x8x128xf32, #tpu.memory_space<vmem>> -> memref<1x1x1x128xf32, #tpu.memory_space<vmem>>
      %873 = tpu.memref_squeeze %872 : memref<1x1x1x128xf32, #tpu.memory_space<vmem>> -> memref<128xf32, #tpu.memory_space<vmem>>
      %874 = tpu.memref_slice %arg11[%422] : memref<2x!tpu.dma_semaphore, #tpu.memory_space<semaphore_mem>> -> memref<1x!tpu.dma_semaphore, #tpu.memory_space<semaphore_mem>>
      %875 = tpu.memref_squeeze %874 : memref<1x!tpu.dma_semaphore, #tpu.memory_space<semaphore_mem>> -> memref<!tpu.dma_semaphore, #tpu.memory_space<semaphore_mem>>
      tpu.enqueue_dma source(%871 : memref<128xf32, #tpu.memory_space<any>>) target(%873 : memref<128xf32, #tpu.memory_space<vmem>>) target_semaphore(%875 : memref<!tpu.dma_semaphore, #tpu.memory_space<semaphore_mem>>)
      %c5_i32_587 = arith.constant 5 : i32
      %876 = arith.addi %423, %c5_i32_587 : i32
      %c1_i32_588 = arith.constant 1 : i32
      %877 = arith.addi %424, %c1_i32_588 : i32
      %878 = arith.index_cast %876 : i32 to index
      %879 = arith.index_cast %877 : i32 to index
      %880 = memref.load %arg2[%878, %879] : memref<8x8xi32, #tpu.memory_space<smem>>
      %c5_i32_589 = arith.constant 5 : i32
      %c1_i32_590 = arith.constant 1 : i32
      %c0_i32_591 = arith.constant 0 : i32
      %881 = tpu.memref_slice %arg4[%880, %c0_i32_591] : memref<64x128xf32, #tpu.memory_space<any>> -> memref<1x128xf32, #tpu.memory_space<any>>
      %882 = tpu.memref_squeeze %881 : memref<1x128xf32, #tpu.memory_space<any>> -> memref<128xf32, #tpu.memory_space<any>>
      %c0_i32_592 = arith.constant 0 : i32
      %883 = tpu.memref_slice %arg10[%422, %c5_i32_589, %c1_i32_590, %c0_i32_592] : memref<2x8x8x128xf32, #tpu.memory_space<vmem>> -> memref<1x1x1x128xf32, #tpu.memory_space<vmem>>
      %884 = tpu.memref_squeeze %883 : memref<1x1x1x128xf32, #tpu.memory_space<vmem>> -> memref<128xf32, #tpu.memory_space<vmem>>
      %885 = tpu.memref_slice %arg11[%422] : memref<2x!tpu.dma_semaphore, #tpu.memory_space<semaphore_mem>> -> memref<1x!tpu.dma_semaphore, #tpu.memory_space<semaphore_mem>>
      %886 = tpu.memref_squeeze %885 : memref<1x!tpu.dma_semaphore, #tpu.memory_space<semaphore_mem>> -> memref<!tpu.dma_semaphore, #tpu.memory_space<semaphore_mem>>
      tpu.enqueue_dma source(%882 : memref<128xf32, #tpu.memory_space<any>>) target(%884 : memref<128xf32, #tpu.memory_space<vmem>>) target_semaphore(%886 : memref<!tpu.dma_semaphore, #tpu.memory_space<semaphore_mem>>)
      %c5_i32_593 = arith.constant 5 : i32
      %887 = arith.addi %423, %c5_i32_593 : i32
      %c2_i32_594 = arith.constant 2 : i32
      %888 = arith.addi %424, %c2_i32_594 : i32
      %889 = arith.index_cast %887 : i32 to index
      %890 = arith.index_cast %888 : i32 to index
      %891 = memref.load %arg2[%889, %890] : memref<8x8xi32, #tpu.memory_space<smem>>
      %c5_i32_595 = arith.constant 5 : i32
      %c2_i32_596 = arith.constant 2 : i32
      %c0_i32_597 = arith.constant 0 : i32
      %892 = tpu.memref_slice %arg4[%891, %c0_i32_597] : memref<64x128xf32, #tpu.memory_space<any>> -> memref<1x128xf32, #tpu.memory_space<any>>
      %893 = tpu.memref_squeeze %892 : memref<1x128xf32, #tpu.memory_space<any>> -> memref<128xf32, #tpu.memory_space<any>>
      %c0_i32_598 = arith.constant 0 : i32
      %894 = tpu.memref_slice %arg10[%422, %c5_i32_595, %c2_i32_596, %c0_i32_598] : memref<2x8x8x128xf32, #tpu.memory_space<vmem>> -> memref<1x1x1x128xf32, #tpu.memory_space<vmem>>
      %895 = tpu.memref_squeeze %894 : memref<1x1x1x128xf32, #tpu.memory_space<vmem>> -> memref<128xf32, #tpu.memory_space<vmem>>
      %896 = tpu.memref_slice %arg11[%422] : memref<2x!tpu.dma_semaphore, #tpu.memory_space<semaphore_mem>> -> memref<1x!tpu.dma_semaphore, #tpu.memory_space<semaphore_mem>>
      %897 = tpu.memref_squeeze %896 : memref<1x!tpu.dma_semaphore, #tpu.memory_space<semaphore_mem>> -> memref<!tpu.dma_semaphore, #tpu.memory_space<semaphore_mem>>
      tpu.enqueue_dma source(%893 : memref<128xf32, #tpu.memory_space<any>>) target(%895 : memref<128xf32, #tpu.memory_space<vmem>>) target_semaphore(%897 : memref<!tpu.dma_semaphore, #tpu.memory_space<semaphore_mem>>)
      %c5_i32_599 = arith.constant 5 : i32
      %898 = arith.addi %423, %c5_i32_599 : i32
      %c3_i32_600 = arith.constant 3 : i32
      %899 = arith.addi %424, %c3_i32_600 : i32
      %900 = arith.index_cast %898 : i32 to index
      %901 = arith.index_cast %899 : i32 to index
      %902 = memref.load %arg2[%900, %901] : memref<8x8xi32, #tpu.memory_space<smem>>
      %c5_i32_601 = arith.constant 5 : i32
      %c3_i32_602 = arith.constant 3 : i32
      %c0_i32_603 = arith.constant 0 : i32
      %903 = tpu.memref_slice %arg4[%902, %c0_i32_603] : memref<64x128xf32, #tpu.memory_space<any>> -> memref<1x128xf32, #tpu.memory_space<any>>
      %904 = tpu.memref_squeeze %903 : memref<1x128xf32, #tpu.memory_space<any>> -> memref<128xf32, #tpu.memory_space<any>>
      %c0_i32_604 = arith.constant 0 : i32
      %905 = tpu.memref_slice %arg10[%422, %c5_i32_601, %c3_i32_602, %c0_i32_604] : memref<2x8x8x128xf32, #tpu.memory_space<vmem>> -> memref<1x1x1x128xf32, #tpu.memory_space<vmem>>
      %906 = tpu.memref_squeeze %905 : memref<1x1x1x128xf32, #tpu.memory_space<vmem>> -> memref<128xf32, #tpu.memory_space<vmem>>
      %907 = tpu.memref_slice %arg11[%422] : memref<2x!tpu.dma_semaphore, #tpu.memory_space<semaphore_mem>> -> memref<1x!tpu.dma_semaphore, #tpu.memory_space<semaphore_mem>>
      %908 = tpu.memref_squeeze %907 : memref<1x!tpu.dma_semaphore, #tpu.memory_space<semaphore_mem>> -> memref<!tpu.dma_semaphore, #tpu.memory_space<semaphore_mem>>
      tpu.enqueue_dma source(%904 : memref<128xf32, #tpu.memory_space<any>>) target(%906 : memref<128xf32, #tpu.memory_space<vmem>>) target_semaphore(%908 : memref<!tpu.dma_semaphore, #tpu.memory_space<semaphore_mem>>)
      %c5_i32_605 = arith.constant 5 : i32
      %909 = arith.addi %423, %c5_i32_605 : i32
      %c4_i32_606 = arith.constant 4 : i32
      %910 = arith.addi %424, %c4_i32_606 : i32
      %911 = arith.index_cast %909 : i32 to index
      %912 = arith.index_cast %910 : i32 to index
      %913 = memref.load %arg2[%911, %912] : memref<8x8xi32, #tpu.memory_space<smem>>
      %c5_i32_607 = arith.constant 5 : i32
      %c4_i32_608 = arith.constant 4 : i32
      %c0_i32_609 = arith.constant 0 : i32
      %914 = tpu.memref_slice %arg4[%913, %c0_i32_609] : memref<64x128xf32, #tpu.memory_space<any>> -> memref<1x128xf32, #tpu.memory_space<any>>
      %915 = tpu.memref_squeeze %914 : memref<1x128xf32, #tpu.memory_space<any>> -> memref<128xf32, #tpu.memory_space<any>>
      %c0_i32_610 = arith.constant 0 : i32
      %916 = tpu.memref_slice %arg10[%422, %c5_i32_607, %c4_i32_608, %c0_i32_610] : memref<2x8x8x128xf32, #tpu.memory_space<vmem>> -> memref<1x1x1x128xf32, #tpu.memory_space<vmem>>
      %917 = tpu.memref_squeeze %916 : memref<1x1x1x128xf32, #tpu.memory_space<vmem>> -> memref<128xf32, #tpu.memory_space<vmem>>
      %918 = tpu.memref_slice %arg11[%422] : memref<2x!tpu.dma_semaphore, #tpu.memory_space<semaphore_mem>> -> memref<1x!tpu.dma_semaphore, #tpu.memory_space<semaphore_mem>>
      %919 = tpu.memref_squeeze %918 : memref<1x!tpu.dma_semaphore, #tpu.memory_space<semaphore_mem>> -> memref<!tpu.dma_semaphore, #tpu.memory_space<semaphore_mem>>
      tpu.enqueue_dma source(%915 : memref<128xf32, #tpu.memory_space<any>>) target(%917 : memref<128xf32, #tpu.memory_space<vmem>>) target_semaphore(%919 : memref<!tpu.dma_semaphore, #tpu.memory_space<semaphore_mem>>)
      %c5_i32_611 = arith.constant 5 : i32
      %920 = arith.addi %423, %c5_i32_611 : i32
      %c5_i32_612 = arith.constant 5 : i32
      %921 = arith.addi %424, %c5_i32_612 : i32
      %922 = arith.index_cast %920 : i32 to index
      %923 = arith.index_cast %921 : i32 to index
      %924 = memref.load %arg2[%922, %923] : memref<8x8xi32, #tpu.memory_space<smem>>
      %c5_i32_613 = arith.constant 5 : i32
      %c5_i32_614 = arith.constant 5 : i32
      %c0_i32_615 = arith.constant 0 : i32
      %925 = tpu.memref_slice %arg4[%924, %c0_i32_615] : memref<64x128xf32, #tpu.memory_space<any>> -> memref<1x128xf32, #tpu.memory_space<any>>
      %926 = tpu.memref_squeeze %925 : memref<1x128xf32, #tpu.memory_space<any>> -> memref<128xf32, #tpu.memory_space<any>>
      %c0_i32_616 = arith.constant 0 : i32
      %927 = tpu.memref_slice %arg10[%422, %c5_i32_613, %c5_i32_614, %c0_i32_616] : memref<2x8x8x128xf32, #tpu.memory_space<vmem>> -> memref<1x1x1x128xf32, #tpu.memory_space<vmem>>
      %928 = tpu.memref_squeeze %927 : memref<1x1x1x128xf32, #tpu.memory_space<vmem>> -> memref<128xf32, #tpu.memory_space<vmem>>
      %929 = tpu.memref_slice %arg11[%422] : memref<2x!tpu.dma_semaphore, #tpu.memory_space<semaphore_mem>> -> memref<1x!tpu.dma_semaphore, #tpu.memory_space<semaphore_mem>>
      %930 = tpu.memref_squeeze %929 : memref<1x!tpu.dma_semaphore, #tpu.memory_space<semaphore_mem>> -> memref<!tpu.dma_semaphore, #tpu.memory_space<semaphore_mem>>
      tpu.enqueue_dma source(%926 : memref<128xf32, #tpu.memory_space<any>>) target(%928 : memref<128xf32, #tpu.memory_space<vmem>>) target_semaphore(%930 : memref<!tpu.dma_semaphore, #tpu.memory_space<semaphore_mem>>)
      %c5_i32_617 = arith.constant 5 : i32
      %931 = arith.addi %423, %c5_i32_617 : i32
      %c6_i32_618 = arith.constant 6 : i32
      %932 = arith.addi %424, %c6_i32_618 : i32
      %933 = arith.index_cast %931 : i32 to index
      %934 = arith.index_cast %932 : i32 to index
      %935 = memref.load %arg2[%933, %934] : memref<8x8xi32, #tpu.memory_space<smem>>
      %c5_i32_619 = arith.constant 5 : i32
      %c6_i32_620 = arith.constant 6 : i32
      %c0_i32_621 = arith.constant 0 : i32
      %936 = tpu.memref_slice %arg4[%935, %c0_i32_621] : memref<64x128xf32, #tpu.memory_space<any>> -> memref<1x128xf32, #tpu.memory_space<any>>
      %937 = tpu.memref_squeeze %936 : memref<1x128xf32, #tpu.memory_space<any>> -> memref<128xf32, #tpu.memory_space<any>>
      %c0_i32_622 = arith.constant 0 : i32
      %938 = tpu.memref_slice %arg10[%422, %c5_i32_619, %c6_i32_620, %c0_i32_622] : memref<2x8x8x128xf32, #tpu.memory_space<vmem>> -> memref<1x1x1x128xf32, #tpu.memory_space<vmem>>
      %939 = tpu.memref_squeeze %938 : memref<1x1x1x128xf32, #tpu.memory_space<vmem>> -> memref<128xf32, #tpu.memory_space<vmem>>
      %940 = tpu.memref_slice %arg11[%422] : memref<2x!tpu.dma_semaphore, #tpu.memory_space<semaphore_mem>> -> memref<1x!tpu.dma_semaphore, #tpu.memory_space<semaphore_mem>>
      %941 = tpu.memref_squeeze %940 : memref<1x!tpu.dma_semaphore, #tpu.memory_space<semaphore_mem>> -> memref<!tpu.dma_semaphore, #tpu.memory_space<semaphore_mem>>
      tpu.enqueue_dma source(%937 : memref<128xf32, #tpu.memory_space<any>>) target(%939 : memref<128xf32, #tpu.memory_space<vmem>>) target_semaphore(%941 : memref<!tpu.dma_semaphore, #tpu.memory_space<semaphore_mem>>)
      %c5_i32_623 = arith.constant 5 : i32
      %942 = arith.addi %423, %c5_i32_623 : i32
      %c7_i32_624 = arith.constant 7 : i32
      %943 = arith.addi %424, %c7_i32_624 : i32
      %944 = arith.index_cast %942 : i32 to index
      %945 = arith.index_cast %943 : i32 to index
      %946 = memref.load %arg2[%944, %945] : memref<8x8xi32, #tpu.memory_space<smem>>
      %c5_i32_625 = arith.constant 5 : i32
      %c7_i32_626 = arith.constant 7 : i32
      %c0_i32_627 = arith.constant 0 : i32
      %947 = tpu.memref_slice %arg4[%946, %c0_i32_627] : memref<64x128xf32, #tpu.memory_space<any>> -> memref<1x128xf32, #tpu.memory_space<any>>
      %948 = tpu.memref_squeeze %947 : memref<1x128xf32, #tpu.memory_space<any>> -> memref<128xf32, #tpu.memory_space<any>>
      %c0_i32_628 = arith.constant 0 : i32
      %949 = tpu.memref_slice %arg10[%422, %c5_i32_625, %c7_i32_626, %c0_i32_628] : memref<2x8x8x128xf32, #tpu.memory_space<vmem>> -> memref<1x1x1x128xf32, #tpu.memory_space<vmem>>
      %950 = tpu.memref_squeeze %949 : memref<1x1x1x128xf32, #tpu.memory_space<vmem>> -> memref<128xf32, #tpu.memory_space<vmem>>
      %951 = tpu.memref_slice %arg11[%422] : memref<2x!tpu.dma_semaphore, #tpu.memory_space<semaphore_mem>> -> memref<1x!tpu.dma_semaphore, #tpu.memory_space<semaphore_mem>>
      %952 = tpu.memref_squeeze %951 : memref<1x!tpu.dma_semaphore, #tpu.memory_space<semaphore_mem>> -> memref<!tpu.dma_semaphore, #tpu.memory_space<semaphore_mem>>
      tpu.enqueue_dma source(%948 : memref<128xf32, #tpu.memory_space<any>>) target(%950 : memref<128xf32, #tpu.memory_space<vmem>>) target_semaphore(%952 : memref<!tpu.dma_semaphore, #tpu.memory_space<semaphore_mem>>)
      %c6_i32_629 = arith.constant 6 : i32
      %953 = arith.addi %423, %c6_i32_629 : i32
      %c0_i32_630 = arith.constant 0 : i32
      %954 = arith.addi %424, %c0_i32_630 : i32
      %955 = arith.index_cast %953 : i32 to index
      %956 = arith.index_cast %954 : i32 to index
      %957 = memref.load %arg2[%955, %956] : memref<8x8xi32, #tpu.memory_space<smem>>
      %c6_i32_631 = arith.constant 6 : i32
      %c0_i32_632 = arith.constant 0 : i32
      %c0_i32_633 = arith.constant 0 : i32
      %958 = tpu.memref_slice %arg4[%957, %c0_i32_633] : memref<64x128xf32, #tpu.memory_space<any>> -> memref<1x128xf32, #tpu.memory_space<any>>
      %959 = tpu.memref_squeeze %958 : memref<1x128xf32, #tpu.memory_space<any>> -> memref<128xf32, #tpu.memory_space<any>>
      %c0_i32_634 = arith.constant 0 : i32
      %960 = tpu.memref_slice %arg10[%422, %c6_i32_631, %c0_i32_632, %c0_i32_634] : memref<2x8x8x128xf32, #tpu.memory_space<vmem>> -> memref<1x1x1x128xf32, #tpu.memory_space<vmem>>
      %961 = tpu.memref_squeeze %960 : memref<1x1x1x128xf32, #tpu.memory_space<vmem>> -> memref<128xf32, #tpu.memory_space<vmem>>
      %962 = tpu.memref_slice %arg11[%422] : memref<2x!tpu.dma_semaphore, #tpu.memory_space<semaphore_mem>> -> memref<1x!tpu.dma_semaphore, #tpu.memory_space<semaphore_mem>>
      %963 = tpu.memref_squeeze %962 : memref<1x!tpu.dma_semaphore, #tpu.memory_space<semaphore_mem>> -> memref<!tpu.dma_semaphore, #tpu.memory_space<semaphore_mem>>
      tpu.enqueue_dma source(%959 : memref<128xf32, #tpu.memory_space<any>>) target(%961 : memref<128xf32, #tpu.memory_space<vmem>>) target_semaphore(%963 : memref<!tpu.dma_semaphore, #tpu.memory_space<semaphore_mem>>)
      %c6_i32_635 = arith.constant 6 : i32
      %964 = arith.addi %423, %c6_i32_635 : i32
      %c1_i32_636 = arith.constant 1 : i32
      %965 = arith.addi %424, %c1_i32_636 : i32
      %966 = arith.index_cast %964 : i32 to index
      %967 = arith.index_cast %965 : i32 to index
      %968 = memref.load %arg2[%966, %967] : memref<8x8xi32, #tpu.memory_space<smem>>
      %c6_i32_637 = arith.constant 6 : i32
      %c1_i32_638 = arith.constant 1 : i32
      %c0_i32_639 = arith.constant 0 : i32
      %969 = tpu.memref_slice %arg4[%968, %c0_i32_639] : memref<64x128xf32, #tpu.memory_space<any>> -> memref<1x128xf32, #tpu.memory_space<any>>
      %970 = tpu.memref_squeeze %969 : memref<1x128xf32, #tpu.memory_space<any>> -> memref<128xf32, #tpu.memory_space<any>>
      %c0_i32_640 = arith.constant 0 : i32
      %971 = tpu.memref_slice %arg10[%422, %c6_i32_637, %c1_i32_638, %c0_i32_640] : memref<2x8x8x128xf32, #tpu.memory_space<vmem>> -> memref<1x1x1x128xf32, #tpu.memory_space<vmem>>
      %972 = tpu.memref_squeeze %971 : memref<1x1x1x128xf32, #tpu.memory_space<vmem>> -> memref<128xf32, #tpu.memory_space<vmem>>
      %973 = tpu.memref_slice %arg11[%422] : memref<2x!tpu.dma_semaphore, #tpu.memory_space<semaphore_mem>> -> memref<1x!tpu.dma_semaphore, #tpu.memory_space<semaphore_mem>>
      %974 = tpu.memref_squeeze %973 : memref<1x!tpu.dma_semaphore, #tpu.memory_space<semaphore_mem>> -> memref<!tpu.dma_semaphore, #tpu.memory_space<semaphore_mem>>
      tpu.enqueue_dma source(%970 : memref<128xf32, #tpu.memory_space<any>>) target(%972 : memref<128xf32, #tpu.memory_space<vmem>>) target_semaphore(%974 : memref<!tpu.dma_semaphore, #tpu.memory_space<semaphore_mem>>)
      %c6_i32_641 = arith.constant 6 : i32
      %975 = arith.addi %423, %c6_i32_641 : i32
      %c2_i32_642 = arith.constant 2 : i32
      %976 = arith.addi %424, %c2_i32_642 : i32
      %977 = arith.index_cast %975 : i32 to index
      %978 = arith.index_cast %976 : i32 to index
      %979 = memref.load %arg2[%977, %978] : memref<8x8xi32, #tpu.memory_space<smem>>
      %c6_i32_643 = arith.constant 6 : i32
      %c2_i32_644 = arith.constant 2 : i32
      %c0_i32_645 = arith.constant 0 : i32
      %980 = tpu.memref_slice %arg4[%979, %c0_i32_645] : memref<64x128xf32, #tpu.memory_space<any>> -> memref<1x128xf32, #tpu.memory_space<any>>
      %981 = tpu.memref_squeeze %980 : memref<1x128xf32, #tpu.memory_space<any>> -> memref<128xf32, #tpu.memory_space<any>>
      %c0_i32_646 = arith.constant 0 : i32
      %982 = tpu.memref_slice %arg10[%422, %c6_i32_643, %c2_i32_644, %c0_i32_646] : memref<2x8x8x128xf32, #tpu.memory_space<vmem>> -> memref<1x1x1x128xf32, #tpu.memory_space<vmem>>
      %983 = tpu.memref_squeeze %982 : memref<1x1x1x128xf32, #tpu.memory_space<vmem>> -> memref<128xf32, #tpu.memory_space<vmem>>
      %984 = tpu.memref_slice %arg11[%422] : memref<2x!tpu.dma_semaphore, #tpu.memory_space<semaphore_mem>> -> memref<1x!tpu.dma_semaphore, #tpu.memory_space<semaphore_mem>>
      %985 = tpu.memref_squeeze %984 : memref<1x!tpu.dma_semaphore, #tpu.memory_space<semaphore_mem>> -> memref<!tpu.dma_semaphore, #tpu.memory_space<semaphore_mem>>
      tpu.enqueue_dma source(%981 : memref<128xf32, #tpu.memory_space<any>>) target(%983 : memref<128xf32, #tpu.memory_space<vmem>>) target_semaphore(%985 : memref<!tpu.dma_semaphore, #tpu.memory_space<semaphore_mem>>)
      %c6_i32_647 = arith.constant 6 : i32
      %986 = arith.addi %423, %c6_i32_647 : i32
      %c3_i32_648 = arith.constant 3 : i32
      %987 = arith.addi %424, %c3_i32_648 : i32
      %988 = arith.index_cast %986 : i32 to index
      %989 = arith.index_cast %987 : i32 to index
      %990 = memref.load %arg2[%988, %989] : memref<8x8xi32, #tpu.memory_space<smem>>
      %c6_i32_649 = arith.constant 6 : i32
      %c3_i32_650 = arith.constant 3 : i32
      %c0_i32_651 = arith.constant 0 : i32
      %991 = tpu.memref_slice %arg4[%990, %c0_i32_651] : memref<64x128xf32, #tpu.memory_space<any>> -> memref<1x128xf32, #tpu.memory_space<any>>
      %992 = tpu.memref_squeeze %991 : memref<1x128xf32, #tpu.memory_space<any>> -> memref<128xf32, #tpu.memory_space<any>>
      %c0_i32_652 = arith.constant 0 : i32
      %993 = tpu.memref_slice %arg10[%422, %c6_i32_649, %c3_i32_650, %c0_i32_652] : memref<2x8x8x128xf32, #tpu.memory_space<vmem>> -> memref<1x1x1x128xf32, #tpu.memory_space<vmem>>
      %994 = tpu.memref_squeeze %993 : memref<1x1x1x128xf32, #tpu.memory_space<vmem>> -> memref<128xf32, #tpu.memory_space<vmem>>
      %995 = tpu.memref_slice %arg11[%422] : memref<2x!tpu.dma_semaphore, #tpu.memory_space<semaphore_mem>> -> memref<1x!tpu.dma_semaphore, #tpu.memory_space<semaphore_mem>>
      %996 = tpu.memref_squeeze %995 : memref<1x!tpu.dma_semaphore, #tpu.memory_space<semaphore_mem>> -> memref<!tpu.dma_semaphore, #tpu.memory_space<semaphore_mem>>
      tpu.enqueue_dma source(%992 : memref<128xf32, #tpu.memory_space<any>>) target(%994 : memref<128xf32, #tpu.memory_space<vmem>>) target_semaphore(%996 : memref<!tpu.dma_semaphore, #tpu.memory_space<semaphore_mem>>)
      %c6_i32_653 = arith.constant 6 : i32
      %997 = arith.addi %423, %c6_i32_653 : i32
      %c4_i32_654 = arith.constant 4 : i32
      %998 = arith.addi %424, %c4_i32_654 : i32
      %999 = arith.index_cast %997 : i32 to index
      %1000 = arith.index_cast %998 : i32 to index
      %1001 = memref.load %arg2[%999, %1000] : memref<8x8xi32, #tpu.memory_space<smem>>
      %c6_i32_655 = arith.constant 6 : i32
      %c4_i32_656 = arith.constant 4 : i32
      %c0_i32_657 = arith.constant 0 : i32
      %1002 = tpu.memref_slice %arg4[%1001, %c0_i32_657] : memref<64x128xf32, #tpu.memory_space<any>> -> memref<1x128xf32, #tpu.memory_space<any>>
      %1003 = tpu.memref_squeeze %1002 : memref<1x128xf32, #tpu.memory_space<any>> -> memref<128xf32, #tpu.memory_space<any>>
      %c0_i32_658 = arith.constant 0 : i32
      %1004 = tpu.memref_slice %arg10[%422, %c6_i32_655, %c4_i32_656, %c0_i32_658] : memref<2x8x8x128xf32, #tpu.memory_space<vmem>> -> memref<1x1x1x128xf32, #tpu.memory_space<vmem>>
      %1005 = tpu.memref_squeeze %1004 : memref<1x1x1x128xf32, #tpu.memory_space<vmem>> -> memref<128xf32, #tpu.memory_space<vmem>>
      %1006 = tpu.memref_slice %arg11[%422] : memref<2x!tpu.dma_semaphore, #tpu.memory_space<semaphore_mem>> -> memref<1x!tpu.dma_semaphore, #tpu.memory_space<semaphore_mem>>
      %1007 = tpu.memref_squeeze %1006 : memref<1x!tpu.dma_semaphore, #tpu.memory_space<semaphore_mem>> -> memref<!tpu.dma_semaphore, #tpu.memory_space<semaphore_mem>>
      tpu.enqueue_dma source(%1003 : memref<128xf32, #tpu.memory_space<any>>) target(%1005 : memref<128xf32, #tpu.memory_space<vmem>>) target_semaphore(%1007 : memref<!tpu.dma_semaphore, #tpu.memory_space<semaphore_mem>>)
      %c6_i32_659 = arith.constant 6 : i32
      %1008 = arith.addi %423, %c6_i32_659 : i32
      %c5_i32_660 = arith.constant 5 : i32
      %1009 = arith.addi %424, %c5_i32_660 : i32
      %1010 = arith.index_cast %1008 : i32 to index
      %1011 = arith.index_cast %1009 : i32 to index
      %1012 = memref.load %arg2[%1010, %1011] : memref<8x8xi32, #tpu.memory_space<smem>>
      %c6_i32_661 = arith.constant 6 : i32
      %c5_i32_662 = arith.constant 5 : i32
      %c0_i32_663 = arith.constant 0 : i32
      %1013 = tpu.memref_slice %arg4[%1012, %c0_i32_663] : memref<64x128xf32, #tpu.memory_space<any>> -> memref<1x128xf32, #tpu.memory_space<any>>
      %1014 = tpu.memref_squeeze %1013 : memref<1x128xf32, #tpu.memory_space<any>> -> memref<128xf32, #tpu.memory_space<any>>
      %c0_i32_664 = arith.constant 0 : i32
      %1015 = tpu.memref_slice %arg10[%422, %c6_i32_661, %c5_i32_662, %c0_i32_664] : memref<2x8x8x128xf32, #tpu.memory_space<vmem>> -> memref<1x1x1x128xf32, #tpu.memory_space<vmem>>
      %1016 = tpu.memref_squeeze %1015 : memref<1x1x1x128xf32, #tpu.memory_space<vmem>> -> memref<128xf32, #tpu.memory_space<vmem>>
      %1017 = tpu.memref_slice %arg11[%422] : memref<2x!tpu.dma_semaphore, #tpu.memory_space<semaphore_mem>> -> memref<1x!tpu.dma_semaphore, #tpu.memory_space<semaphore_mem>>
      %1018 = tpu.memref_squeeze %1017 : memref<1x!tpu.dma_semaphore, #tpu.memory_space<semaphore_mem>> -> memref<!tpu.dma_semaphore, #tpu.memory_space<semaphore_mem>>
      tpu.enqueue_dma source(%1014 : memref<128xf32, #tpu.memory_space<any>>) target(%1016 : memref<128xf32, #tpu.memory_space<vmem>>) target_semaphore(%1018 : memref<!tpu.dma_semaphore, #tpu.memory_space<semaphore_mem>>)
      %c6_i32_665 = arith.constant 6 : i32
      %1019 = arith.addi %423, %c6_i32_665 : i32
      %c6_i32_666 = arith.constant 6 : i32
      %1020 = arith.addi %424, %c6_i32_666 : i32
      %1021 = arith.index_cast %1019 : i32 to index
      %1022 = arith.index_cast %1020 : i32 to index
      %1023 = memref.load %arg2[%1021, %1022] : memref<8x8xi32, #tpu.memory_space<smem>>
      %c6_i32_667 = arith.constant 6 : i32
      %c6_i32_668 = arith.constant 6 : i32
      %c0_i32_669 = arith.constant 0 : i32
      %1024 = tpu.memref_slice %arg4[%1023, %c0_i32_669] : memref<64x128xf32, #tpu.memory_space<any>> -> memref<1x128xf32, #tpu.memory_space<any>>
      %1025 = tpu.memref_squeeze %1024 : memref<1x128xf32, #tpu.memory_space<any>> -> memref<128xf32, #tpu.memory_space<any>>
      %c0_i32_670 = arith.constant 0 : i32
      %1026 = tpu.memref_slice %arg10[%422, %c6_i32_667, %c6_i32_668, %c0_i32_670] : memref<2x8x8x128xf32, #tpu.memory_space<vmem>> -> memref<1x1x1x128xf32, #tpu.memory_space<vmem>>
      %1027 = tpu.memref_squeeze %1026 : memref<1x1x1x128xf32, #tpu.memory_space<vmem>> -> memref<128xf32, #tpu.memory_space<vmem>>
      %1028 = tpu.memref_slice %arg11[%422] : memref<2x!tpu.dma_semaphore, #tpu.memory_space<semaphore_mem>> -> memref<1x!tpu.dma_semaphore, #tpu.memory_space<semaphore_mem>>
      %1029 = tpu.memref_squeeze %1028 : memref<1x!tpu.dma_semaphore, #tpu.memory_space<semaphore_mem>> -> memref<!tpu.dma_semaphore, #tpu.memory_space<semaphore_mem>>
      tpu.enqueue_dma source(%1025 : memref<128xf32, #tpu.memory_space<any>>) target(%1027 : memref<128xf32, #tpu.memory_space<vmem>>) target_semaphore(%1029 : memref<!tpu.dma_semaphore, #tpu.memory_space<semaphore_mem>>)
      %c6_i32_671 = arith.constant 6 : i32
      %1030 = arith.addi %423, %c6_i32_671 : i32
      %c7_i32_672 = arith.constant 7 : i32
      %1031 = arith.addi %424, %c7_i32_672 : i32
      %1032 = arith.index_cast %1030 : i32 to index
      %1033 = arith.index_cast %1031 : i32 to index
      %1034 = memref.load %arg2[%1032, %1033] : memref<8x8xi32, #tpu.memory_space<smem>>
      %c6_i32_673 = arith.constant 6 : i32
      %c7_i32_674 = arith.constant 7 : i32
      %c0_i32_675 = arith.constant 0 : i32
      %1035 = tpu.memref_slice %arg4[%1034, %c0_i32_675] : memref<64x128xf32, #tpu.memory_space<any>> -> memref<1x128xf32, #tpu.memory_space<any>>
      %1036 = tpu.memref_squeeze %1035 : memref<1x128xf32, #tpu.memory_space<any>> -> memref<128xf32, #tpu.memory_space<any>>
      %c0_i32_676 = arith.constant 0 : i32
      %1037 = tpu.memref_slice %arg10[%422, %c6_i32_673, %c7_i32_674, %c0_i32_676] : memref<2x8x8x128xf32, #tpu.memory_space<vmem>> -> memref<1x1x1x128xf32, #tpu.memory_space<vmem>>
      %1038 = tpu.memref_squeeze %1037 : memref<1x1x1x128xf32, #tpu.memory_space<vmem>> -> memref<128xf32, #tpu.memory_space<vmem>>
      %1039 = tpu.memref_slice %arg11[%422] : memref<2x!tpu.dma_semaphore, #tpu.memory_space<semaphore_mem>> -> memref<1x!tpu.dma_semaphore, #tpu.memory_space<semaphore_mem>>
      %1040 = tpu.memref_squeeze %1039 : memref<1x!tpu.dma_semaphore, #tpu.memory_space<semaphore_mem>> -> memref<!tpu.dma_semaphore, #tpu.memory_space<semaphore_mem>>
      tpu.enqueue_dma source(%1036 : memref<128xf32, #tpu.memory_space<any>>) target(%1038 : memref<128xf32, #tpu.memory_space<vmem>>) target_semaphore(%1040 : memref<!tpu.dma_semaphore, #tpu.memory_space<semaphore_mem>>)
      %c7_i32_677 = arith.constant 7 : i32
      %1041 = arith.addi %423, %c7_i32_677 : i32
      %c0_i32_678 = arith.constant 0 : i32
      %1042 = arith.addi %424, %c0_i32_678 : i32
      %1043 = arith.index_cast %1041 : i32 to index
      %1044 = arith.index_cast %1042 : i32 to index
      %1045 = memref.load %arg2[%1043, %1044] : memref<8x8xi32, #tpu.memory_space<smem>>
      %c7_i32_679 = arith.constant 7 : i32
      %c0_i32_680 = arith.constant 0 : i32
      %c0_i32_681 = arith.constant 0 : i32
      %1046 = tpu.memref_slice %arg4[%1045, %c0_i32_681] : memref<64x128xf32, #tpu.memory_space<any>> -> memref<1x128xf32, #tpu.memory_space<any>>
      %1047 = tpu.memref_squeeze %1046 : memref<1x128xf32, #tpu.memory_space<any>> -> memref<128xf32, #tpu.memory_space<any>>
      %c0_i32_682 = arith.constant 0 : i32
      %1048 = tpu.memref_slice %arg10[%422, %c7_i32_679, %c0_i32_680, %c0_i32_682] : memref<2x8x8x128xf32, #tpu.memory_space<vmem>> -> memref<1x1x1x128xf32, #tpu.memory_space<vmem>>
      %1049 = tpu.memref_squeeze %1048 : memref<1x1x1x128xf32, #tpu.memory_space<vmem>> -> memref<128xf32, #tpu.memory_space<vmem>>
      %1050 = tpu.memref_slice %arg11[%422] : memref<2x!tpu.dma_semaphore, #tpu.memory_space<semaphore_mem>> -> memref<1x!tpu.dma_semaphore, #tpu.memory_space<semaphore_mem>>
      %1051 = tpu.memref_squeeze %1050 : memref<1x!tpu.dma_semaphore, #tpu.memory_space<semaphore_mem>> -> memref<!tpu.dma_semaphore, #tpu.memory_space<semaphore_mem>>
      tpu.enqueue_dma source(%1047 : memref<128xf32, #tpu.memory_space<any>>) target(%1049 : memref<128xf32, #tpu.memory_space<vmem>>) target_semaphore(%1051 : memref<!tpu.dma_semaphore, #tpu.memory_space<semaphore_mem>>)
      %c7_i32_683 = arith.constant 7 : i32
      %1052 = arith.addi %423, %c7_i32_683 : i32
      %c1_i32_684 = arith.constant 1 : i32
      %1053 = arith.addi %424, %c1_i32_684 : i32
      %1054 = arith.index_cast %1052 : i32 to index
      %1055 = arith.index_cast %1053 : i32 to index
      %1056 = memref.load %arg2[%1054, %1055] : memref<8x8xi32, #tpu.memory_space<smem>>
      %c7_i32_685 = arith.constant 7 : i32
      %c1_i32_686 = arith.constant 1 : i32
      %c0_i32_687 = arith.constant 0 : i32
      %1057 = tpu.memref_slice %arg4[%1056, %c0_i32_687] : memref<64x128xf32, #tpu.memory_space<any>> -> memref<1x128xf32, #tpu.memory_space<any>>
      %1058 = tpu.memref_squeeze %1057 : memref<1x128xf32, #tpu.memory_space<any>> -> memref<128xf32, #tpu.memory_space<any>>
      %c0_i32_688 = arith.constant 0 : i32
      %1059 = tpu.memref_slice %arg10[%422, %c7_i32_685, %c1_i32_686, %c0_i32_688] : memref<2x8x8x128xf32, #tpu.memory_space<vmem>> -> memref<1x1x1x128xf32, #tpu.memory_space<vmem>>
      %1060 = tpu.memref_squeeze %1059 : memref<1x1x1x128xf32, #tpu.memory_space<vmem>> -> memref<128xf32, #tpu.memory_space<vmem>>
      %1061 = tpu.memref_slice %arg11[%422] : memref<2x!tpu.dma_semaphore, #tpu.memory_space<semaphore_mem>> -> memref<1x!tpu.dma_semaphore, #tpu.memory_space<semaphore_mem>>
      %1062 = tpu.memref_squeeze %1061 : memref<1x!tpu.dma_semaphore, #tpu.memory_space<semaphore_mem>> -> memref<!tpu.dma_semaphore, #tpu.memory_space<semaphore_mem>>
      tpu.enqueue_dma source(%1058 : memref<128xf32, #tpu.memory_space<any>>) target(%1060 : memref<128xf32, #tpu.memory_space<vmem>>) target_semaphore(%1062 : memref<!tpu.dma_semaphore, #tpu.memory_space<semaphore_mem>>)
      %c7_i32_689 = arith.constant 7 : i32
      %1063 = arith.addi %423, %c7_i32_689 : i32
      %c2_i32_690 = arith.constant 2 : i32
      %1064 = arith.addi %424, %c2_i32_690 : i32
      %1065 = arith.index_cast %1063 : i32 to index
      %1066 = arith.index_cast %1064 : i32 to index
      %1067 = memref.load %arg2[%1065, %1066] : memref<8x8xi32, #tpu.memory_space<smem>>
      %c7_i32_691 = arith.constant 7 : i32
      %c2_i32_692 = arith.constant 2 : i32
      %c0_i32_693 = arith.constant 0 : i32
      %1068 = tpu.memref_slice %arg4[%1067, %c0_i32_693] : memref<64x128xf32, #tpu.memory_space<any>> -> memref<1x128xf32, #tpu.memory_space<any>>
      %1069 = tpu.memref_squeeze %1068 : memref<1x128xf32, #tpu.memory_space<any>> -> memref<128xf32, #tpu.memory_space<any>>
      %c0_i32_694 = arith.constant 0 : i32
      %1070 = tpu.memref_slice %arg10[%422, %c7_i32_691, %c2_i32_692, %c0_i32_694] : memref<2x8x8x128xf32, #tpu.memory_space<vmem>> -> memref<1x1x1x128xf32, #tpu.memory_space<vmem>>
      %1071 = tpu.memref_squeeze %1070 : memref<1x1x1x128xf32, #tpu.memory_space<vmem>> -> memref<128xf32, #tpu.memory_space<vmem>>
      %1072 = tpu.memref_slice %arg11[%422] : memref<2x!tpu.dma_semaphore, #tpu.memory_space<semaphore_mem>> -> memref<1x!tpu.dma_semaphore, #tpu.memory_space<semaphore_mem>>
      %1073 = tpu.memref_squeeze %1072 : memref<1x!tpu.dma_semaphore, #tpu.memory_space<semaphore_mem>> -> memref<!tpu.dma_semaphore, #tpu.memory_space<semaphore_mem>>
      tpu.enqueue_dma source(%1069 : memref<128xf32, #tpu.memory_space<any>>) target(%1071 : memref<128xf32, #tpu.memory_space<vmem>>) target_semaphore(%1073 : memref<!tpu.dma_semaphore, #tpu.memory_space<semaphore_mem>>)
      %c7_i32_695 = arith.constant 7 : i32
      %1074 = arith.addi %423, %c7_i32_695 : i32
      %c3_i32_696 = arith.constant 3 : i32
      %1075 = arith.addi %424, %c3_i32_696 : i32
      %1076 = arith.index_cast %1074 : i32 to index
      %1077 = arith.index_cast %1075 : i32 to index
      %1078 = memref.load %arg2[%1076, %1077] : memref<8x8xi32, #tpu.memory_space<smem>>
      %c7_i32_697 = arith.constant 7 : i32
      %c3_i32_698 = arith.constant 3 : i32
      %c0_i32_699 = arith.constant 0 : i32
      %1079 = tpu.memref_slice %arg4[%1078, %c0_i32_699] : memref<64x128xf32, #tpu.memory_space<any>> -> memref<1x128xf32, #tpu.memory_space<any>>
      %1080 = tpu.memref_squeeze %1079 : memref<1x128xf32, #tpu.memory_space<any>> -> memref<128xf32, #tpu.memory_space<any>>
      %c0_i32_700 = arith.constant 0 : i32
      %1081 = tpu.memref_slice %arg10[%422, %c7_i32_697, %c3_i32_698, %c0_i32_700] : memref<2x8x8x128xf32, #tpu.memory_space<vmem>> -> memref<1x1x1x128xf32, #tpu.memory_space<vmem>>
      %1082 = tpu.memref_squeeze %1081 : memref<1x1x1x128xf32, #tpu.memory_space<vmem>> -> memref<128xf32, #tpu.memory_space<vmem>>
      %1083 = tpu.memref_slice %arg11[%422] : memref<2x!tpu.dma_semaphore, #tpu.memory_space<semaphore_mem>> -> memref<1x!tpu.dma_semaphore, #tpu.memory_space<semaphore_mem>>
      %1084 = tpu.memref_squeeze %1083 : memref<1x!tpu.dma_semaphore, #tpu.memory_space<semaphore_mem>> -> memref<!tpu.dma_semaphore, #tpu.memory_space<semaphore_mem>>
      tpu.enqueue_dma source(%1080 : memref<128xf32, #tpu.memory_space<any>>) target(%1082 : memref<128xf32, #tpu.memory_space<vmem>>) target_semaphore(%1084 : memref<!tpu.dma_semaphore, #tpu.memory_space<semaphore_mem>>)
      %c7_i32_701 = arith.constant 7 : i32
      %1085 = arith.addi %423, %c7_i32_701 : i32
      %c4_i32_702 = arith.constant 4 : i32
      %1086 = arith.addi %424, %c4_i32_702 : i32
      %1087 = arith.index_cast %1085 : i32 to index
      %1088 = arith.index_cast %1086 : i32 to index
      %1089 = memref.load %arg2[%1087, %1088] : memref<8x8xi32, #tpu.memory_space<smem>>
      %c7_i32_703 = arith.constant 7 : i32
      %c4_i32_704 = arith.constant 4 : i32
      %c0_i32_705 = arith.constant 0 : i32
      %1090 = tpu.memref_slice %arg4[%1089, %c0_i32_705] : memref<64x128xf32, #tpu.memory_space<any>> -> memref<1x128xf32, #tpu.memory_space<any>>
      %1091 = tpu.memref_squeeze %1090 : memref<1x128xf32, #tpu.memory_space<any>> -> memref<128xf32, #tpu.memory_space<any>>
      %c0_i32_706 = arith.constant 0 : i32
      %1092 = tpu.memref_slice %arg10[%422, %c7_i32_703, %c4_i32_704, %c0_i32_706] : memref<2x8x8x128xf32, #tpu.memory_space<vmem>> -> memref<1x1x1x128xf32, #tpu.memory_space<vmem>>
      %1093 = tpu.memref_squeeze %1092 : memref<1x1x1x128xf32, #tpu.memory_space<vmem>> -> memref<128xf32, #tpu.memory_space<vmem>>
      %1094 = tpu.memref_slice %arg11[%422] : memref<2x!tpu.dma_semaphore, #tpu.memory_space<semaphore_mem>> -> memref<1x!tpu.dma_semaphore, #tpu.memory_space<semaphore_mem>>
      %1095 = tpu.memref_squeeze %1094 : memref<1x!tpu.dma_semaphore, #tpu.memory_space<semaphore_mem>> -> memref<!tpu.dma_semaphore, #tpu.memory_space<semaphore_mem>>
      tpu.enqueue_dma source(%1091 : memref<128xf32, #tpu.memory_space<any>>) target(%1093 : memref<128xf32, #tpu.memory_space<vmem>>) target_semaphore(%1095 : memref<!tpu.dma_semaphore, #tpu.memory_space<semaphore_mem>>)
      %c7_i32_707 = arith.constant 7 : i32
      %1096 = arith.addi %423, %c7_i32_707 : i32
      %c5_i32_708 = arith.constant 5 : i32
      %1097 = arith.addi %424, %c5_i32_708 : i32
      %1098 = arith.index_cast %1096 : i32 to index
      %1099 = arith.index_cast %1097 : i32 to index
      %1100 = memref.load %arg2[%1098, %1099] : memref<8x8xi32, #tpu.memory_space<smem>>
      %c7_i32_709 = arith.constant 7 : i32
      %c5_i32_710 = arith.constant 5 : i32
      %c0_i32_711 = arith.constant 0 : i32
      %1101 = tpu.memref_slice %arg4[%1100, %c0_i32_711] : memref<64x128xf32, #tpu.memory_space<any>> -> memref<1x128xf32, #tpu.memory_space<any>>
      %1102 = tpu.memref_squeeze %1101 : memref<1x128xf32, #tpu.memory_space<any>> -> memref<128xf32, #tpu.memory_space<any>>
      %c0_i32_712 = arith.constant 0 : i32
      %1103 = tpu.memref_slice %arg10[%422, %c7_i32_709, %c5_i32_710, %c0_i32_712] : memref<2x8x8x128xf32, #tpu.memory_space<vmem>> -> memref<1x1x1x128xf32, #tpu.memory_space<vmem>>
      %1104 = tpu.memref_squeeze %1103 : memref<1x1x1x128xf32, #tpu.memory_space<vmem>> -> memref<128xf32, #tpu.memory_space<vmem>>
      %1105 = tpu.memref_slice %arg11[%422] : memref<2x!tpu.dma_semaphore, #tpu.memory_space<semaphore_mem>> -> memref<1x!tpu.dma_semaphore, #tpu.memory_space<semaphore_mem>>
      %1106 = tpu.memref_squeeze %1105 : memref<1x!tpu.dma_semaphore, #tpu.memory_space<semaphore_mem>> -> memref<!tpu.dma_semaphore, #tpu.memory_space<semaphore_mem>>
      tpu.enqueue_dma source(%1102 : memref<128xf32, #tpu.memory_space<any>>) target(%1104 : memref<128xf32, #tpu.memory_space<vmem>>) target_semaphore(%1106 : memref<!tpu.dma_semaphore, #tpu.memory_space<semaphore_mem>>)
      %c7_i32_713 = arith.constant 7 : i32
      %1107 = arith.addi %423, %c7_i32_713 : i32
      %c6_i32_714 = arith.constant 6 : i32
      %1108 = arith.addi %424, %c6_i32_714 : i32
      %1109 = arith.index_cast %1107 : i32 to index
      %1110 = arith.index_cast %1108 : i32 to index
      %1111 = memref.load %arg2[%1109, %1110] : memref<8x8xi32, #tpu.memory_space<smem>>
      %c7_i32_715 = arith.constant 7 : i32
      %c6_i32_716 = arith.constant 6 : i32
      %c0_i32_717 = arith.constant 0 : i32
      %1112 = tpu.memref_slice %arg4[%1111, %c0_i32_717] : memref<64x128xf32, #tpu.memory_space<any>> -> memref<1x128xf32, #tpu.memory_space<any>>
      %1113 = tpu.memref_squeeze %1112 : memref<1x128xf32, #tpu.memory_space<any>> -> memref<128xf32, #tpu.memory_space<any>>
      %c0_i32_718 = arith.constant 0 : i32
      %1114 = tpu.memref_slice %arg10[%422, %c7_i32_715, %c6_i32_716, %c0_i32_718] : memref<2x8x8x128xf32, #tpu.memory_space<vmem>> -> memref<1x1x1x128xf32, #tpu.memory_space<vmem>>
      %1115 = tpu.memref_squeeze %1114 : memref<1x1x1x128xf32, #tpu.memory_space<vmem>> -> memref<128xf32, #tpu.memory_space<vmem>>
      %1116 = tpu.memref_slice %arg11[%422] : memref<2x!tpu.dma_semaphore, #tpu.memory_space<semaphore_mem>> -> memref<1x!tpu.dma_semaphore, #tpu.memory_space<semaphore_mem>>
      %1117 = tpu.memref_squeeze %1116 : memref<1x!tpu.dma_semaphore, #tpu.memory_space<semaphore_mem>> -> memref<!tpu.dma_semaphore, #tpu.memory_space<semaphore_mem>>
      tpu.enqueue_dma source(%1113 : memref<128xf32, #tpu.memory_space<any>>) target(%1115 : memref<128xf32, #tpu.memory_space<vmem>>) target_semaphore(%1117 : memref<!tpu.dma_semaphore, #tpu.memory_space<semaphore_mem>>)
      %c7_i32_719 = arith.constant 7 : i32
      %1118 = arith.addi %423, %c7_i32_719 : i32
      %c7_i32_720 = arith.constant 7 : i32
      %1119 = arith.addi %424, %c7_i32_720 : i32
      %1120 = arith.index_cast %1118 : i32 to index
      %1121 = arith.index_cast %1119 : i32 to index
      %1122 = memref.load %arg2[%1120, %1121] : memref<8x8xi32, #tpu.memory_space<smem>>
      %c7_i32_721 = arith.constant 7 : i32
      %c7_i32_722 = arith.constant 7 : i32
      %c0_i32_723 = arith.constant 0 : i32
      %1123 = tpu.memref_slice %arg4[%1122, %c0_i32_723] : memref<64x128xf32, #tpu.memory_space<any>> -> memref<1x128xf32, #tpu.memory_space<any>>
      %1124 = tpu.memref_squeeze %1123 : memref<1x128xf32, #tpu.memory_space<any>> -> memref<128xf32, #tpu.memory_space<any>>
      %c0_i32_724 = arith.constant 0 : i32
      %1125 = tpu.memref_slice %arg10[%422, %c7_i32_721, %c7_i32_722, %c0_i32_724] : memref<2x8x8x128xf32, #tpu.memory_space<vmem>> -> memref<1x1x1x128xf32, #tpu.memory_space<vmem>>
      %1126 = tpu.memref_squeeze %1125 : memref<1x1x1x128xf32, #tpu.memory_space<vmem>> -> memref<128xf32, #tpu.memory_space<vmem>>
      %1127 = tpu.memref_slice %arg11[%422] : memref<2x!tpu.dma_semaphore, #tpu.memory_space<semaphore_mem>> -> memref<1x!tpu.dma_semaphore, #tpu.memory_space<semaphore_mem>>
      %1128 = tpu.memref_squeeze %1127 : memref<1x!tpu.dma_semaphore, #tpu.memory_space<semaphore_mem>> -> memref<!tpu.dma_semaphore, #tpu.memory_space<semaphore_mem>>
      tpu.enqueue_dma source(%1124 : memref<128xf32, #tpu.memory_space<any>>) target(%1126 : memref<128xf32, #tpu.memory_space<vmem>>) target_semaphore(%1128 : memref<!tpu.dma_semaphore, #tpu.memory_space<semaphore_mem>>)
    } else {
    }
    %c0_i32_8 = arith.constant 0 : i32
    %c0_i32_9 = arith.constant 0 : i32
    %c0_i32_10 = arith.constant 0 : i32
    %c0_i32_11 = arith.constant 0 : i32
    %17 = tpu.memref_slice %arg4[%c0_i32_8, %c0_i32_11] : memref<64x128xf32, #tpu.memory_space<any>> -> memref<1x128xf32, #tpu.memory_space<any>>
    %18 = tpu.memref_squeeze %17 : memref<1x128xf32, #tpu.memory_space<any>> -> memref<128xf32, #tpu.memory_space<any>>
    %c0_i32_12 = arith.constant 0 : i32
    %19 = tpu.memref_slice %arg10[%9, %c0_i32_9, %c0_i32_10, %c0_i32_12] : memref<2x8x8x128xf32, #tpu.memory_space<vmem>> -> memref<1x1x1x128xf32, #tpu.memory_space<vmem>>
    %20 = tpu.memref_squeeze %19 : memref<1x1x1x128xf32, #tpu.memory_space<vmem>> -> memref<128xf32, #tpu.memory_space<vmem>>
    %21 = tpu.memref_slice %arg11[%9] : memref<2x!tpu.dma_semaphore, #tpu.memory_space<semaphore_mem>> -> memref<1x!tpu.dma_semaphore, #tpu.memory_space<semaphore_mem>>
    %22 = tpu.memref_squeeze %21 : memref<1x!tpu.dma_semaphore, #tpu.memory_space<semaphore_mem>> -> memref<!tpu.dma_semaphore, #tpu.memory_space<semaphore_mem>>
    tpu.wait_dma2 semaphore(%22 : memref<!tpu.dma_semaphore, #tpu.memory_space<semaphore_mem>>) src(%18 : memref<128xf32, #tpu.memory_space<any>>) dst(%20 : memref<128xf32, #tpu.memory_space<vmem>>)
    %c0_i32_13 = arith.constant 0 : i32
    %c0_i32_14 = arith.constant 0 : i32
    %c0_i32_15 = arith.constant 0 : i32
    %c0_i32_16 = arith.constant 0 : i32
    %23 = tpu.memref_slice %arg4[%c0_i32_13, %c0_i32_16] : memref<64x128xf32, #tpu.memory_space<any>> -> memref<1x128xf32, #tpu.memory_space<any>>
    %24 = tpu.memref_squeeze %23 : memref<1x128xf32, #tpu.memory_space<any>> -> memref<128xf32, #tpu.memory_space<any>>
    %c0_i32_17 = arith.constant 0 : i32
    %25 = tpu.memref_slice %arg10[%9, %c0_i32_14, %c0_i32_15, %c0_i32_17] : memref<2x8x8x128xf32, #tpu.memory_space<vmem>> -> memref<1x1x1x128xf32, #tpu.memory_space<vmem>>
    %26 = tpu.memref_squeeze %25 : memref<1x1x1x128xf32, #tpu.memory_space<vmem>> -> memref<128xf32, #tpu.memory_space<vmem>>
    %27 = tpu.memref_slice %arg11[%9] : memref<2x!tpu.dma_semaphore, #tpu.memory_space<semaphore_mem>> -> memref<1x!tpu.dma_semaphore, #tpu.memory_space<semaphore_mem>>
    %28 = tpu.memref_squeeze %27 : memref<1x!tpu.dma_semaphore, #tpu.memory_space<semaphore_mem>> -> memref<!tpu.dma_semaphore, #tpu.memory_space<semaphore_mem>>
    tpu.wait_dma2 semaphore(%28 : memref<!tpu.dma_semaphore, #tpu.memory_space<semaphore_mem>>) src(%24 : memref<128xf32, #tpu.memory_space<any>>) dst(%26 : memref<128xf32, #tpu.memory_space<vmem>>)
    %c0_i32_18 = arith.constant 0 : i32
    %c0_i32_19 = arith.constant 0 : i32
    %c0_i32_20 = arith.constant 0 : i32
    %c0_i32_21 = arith.constant 0 : i32
    %29 = tpu.memref_slice %arg4[%c0_i32_18, %c0_i32_21] : memref<64x128xf32, #tpu.memory_space<any>> -> memref<1x128xf32, #tpu.memory_space<any>>
    %30 = tpu.memref_squeeze %29 : memref<1x128xf32, #tpu.memory_space<any>> -> memref<128xf32, #tpu.memory_space<any>>
    %c0_i32_22 = arith.constant 0 : i32
    %31 = tpu.memref_slice %arg10[%9, %c0_i32_19, %c0_i32_20, %c0_i32_22] : memref<2x8x8x128xf32, #tpu.memory_space<vmem>> -> memref<1x1x1x128xf32, #tpu.memory_space<vmem>>
    %32 = tpu.memref_squeeze %31 : memref<1x1x1x128xf32, #tpu.memory_space<vmem>> -> memref<128xf32, #tpu.memory_space<vmem>>
    %33 = tpu.memref_slice %arg11[%9] : memref<2x!tpu.dma_semaphore, #tpu.memory_space<semaphore_mem>> -> memref<1x!tpu.dma_semaphore, #tpu.memory_space<semaphore_mem>>
    %34 = tpu.memref_squeeze %33 : memref<1x!tpu.dma_semaphore, #tpu.memory_space<semaphore_mem>> -> memref<!tpu.dma_semaphore, #tpu.memory_space<semaphore_mem>>
    tpu.wait_dma2 semaphore(%34 : memref<!tpu.dma_semaphore, #tpu.memory_space<semaphore_mem>>) src(%30 : memref<128xf32, #tpu.memory_space<any>>) dst(%32 : memref<128xf32, #tpu.memory_space<vmem>>)
    %c0_i32_23 = arith.constant 0 : i32
    %c0_i32_24 = arith.constant 0 : i32
    %c0_i32_25 = arith.constant 0 : i32
    %c0_i32_26 = arith.constant 0 : i32
    %35 = tpu.memref_slice %arg4[%c0_i32_23, %c0_i32_26] : memref<64x128xf32, #tpu.memory_space<any>> -> memref<1x128xf32, #tpu.memory_space<any>>
    %36 = tpu.memref_squeeze %35 : memref<1x128xf32, #tpu.memory_space<any>> -> memref<128xf32, #tpu.memory_space<any>>
    %c0_i32_27 = arith.constant 0 : i32
    %37 = tpu.memref_slice %arg10[%9, %c0_i32_24, %c0_i32_25, %c0_i32_27] : memref<2x8x8x128xf32, #tpu.memory_space<vmem>> -> memref<1x1x1x128xf32, #tpu.memory_space<vmem>>
    %38 = tpu.memref_squeeze %37 : memref<1x1x1x128xf32, #tpu.memory_space<vmem>> -> memref<128xf32, #tpu.memory_space<vmem>>
    %39 = tpu.memref_slice %arg11[%9] : memref<2x!tpu.dma_semaphore, #tpu.memory_space<semaphore_mem>> -> memref<1x!tpu.dma_semaphore, #tpu.memory_space<semaphore_mem>>
    %40 = tpu.memref_squeeze %39 : memref<1x!tpu.dma_semaphore, #tpu.memory_space<semaphore_mem>> -> memref<!tpu.dma_semaphore, #tpu.memory_space<semaphore_mem>>
    tpu.wait_dma2 semaphore(%40 : memref<!tpu.dma_semaphore, #tpu.memory_space<semaphore_mem>>) src(%36 : memref<128xf32, #tpu.memory_space<any>>) dst(%38 : memref<128xf32, #tpu.memory_space<vmem>>)
    %c0_i32_28 = arith.constant 0 : i32
    %c0_i32_29 = arith.constant 0 : i32
    %c0_i32_30 = arith.constant 0 : i32
    %c0_i32_31 = arith.constant 0 : i32
    %41 = tpu.memref_slice %arg4[%c0_i32_28, %c0_i32_31] : memref<64x128xf32, #tpu.memory_space<any>> -> memref<1x128xf32, #tpu.memory_space<any>>
    %42 = tpu.memref_squeeze %41 : memref<1x128xf32, #tpu.memory_space<any>> -> memref<128xf32, #tpu.memory_space<any>>
    %c0_i32_32 = arith.constant 0 : i32
    %43 = tpu.memref_slice %arg10[%9, %c0_i32_29, %c0_i32_30, %c0_i32_32] : memref<2x8x8x128xf32, #tpu.memory_space<vmem>> -> memref<1x1x1x128xf32, #tpu.memory_space<vmem>>
    %44 = tpu.memref_squeeze %43 : memref<1x1x1x128xf32, #tpu.memory_space<vmem>> -> memref<128xf32, #tpu.memory_space<vmem>>
    %45 = tpu.memref_slice %arg11[%9] : memref<2x!tpu.dma_semaphore, #tpu.memory_space<semaphore_mem>> -> memref<1x!tpu.dma_semaphore, #tpu.memory_space<semaphore_mem>>
    %46 = tpu.memref_squeeze %45 : memref<1x!tpu.dma_semaphore, #tpu.memory_space<semaphore_mem>> -> memref<!tpu.dma_semaphore, #tpu.memory_space<semaphore_mem>>
    tpu.wait_dma2 semaphore(%46 : memref<!tpu.dma_semaphore, #tpu.memory_space<semaphore_mem>>) src(%42 : memref<128xf32, #tpu.memory_space<any>>) dst(%44 : memref<128xf32, #tpu.memory_space<vmem>>)
    %c0_i32_33 = arith.constant 0 : i32
    %c0_i32_34 = arith.constant 0 : i32
    %c0_i32_35 = arith.constant 0 : i32
    %c0_i32_36 = arith.constant 0 : i32
    %47 = tpu.memref_slice %arg4[%c0_i32_33, %c0_i32_36] : memref<64x128xf32, #tpu.memory_space<any>> -> memref<1x128xf32, #tpu.memory_space<any>>
    %48 = tpu.memref_squeeze %47 : memref<1x128xf32, #tpu.memory_space<any>> -> memref<128xf32, #tpu.memory_space<any>>
    %c0_i32_37 = arith.constant 0 : i32
    %49 = tpu.memref_slice %arg10[%9, %c0_i32_34, %c0_i32_35, %c0_i32_37] : memref<2x8x8x128xf32, #tpu.memory_space<vmem>> -> memref<1x1x1x128xf32, #tpu.memory_space<vmem>>
    %50 = tpu.memref_squeeze %49 : memref<1x1x1x128xf32, #tpu.memory_space<vmem>> -> memref<128xf32, #tpu.memory_space<vmem>>
    %51 = tpu.memref_slice %arg11[%9] : memref<2x!tpu.dma_semaphore, #tpu.memory_space<semaphore_mem>> -> memref<1x!tpu.dma_semaphore, #tpu.memory_space<semaphore_mem>>
    %52 = tpu.memref_squeeze %51 : memref<1x!tpu.dma_semaphore, #tpu.memory_space<semaphore_mem>> -> memref<!tpu.dma_semaphore, #tpu.memory_space<semaphore_mem>>
    tpu.wait_dma2 semaphore(%52 : memref<!tpu.dma_semaphore, #tpu.memory_space<semaphore_mem>>) src(%48 : memref<128xf32, #tpu.memory_space<any>>) dst(%50 : memref<128xf32, #tpu.memory_space<vmem>>)
    %c0_i32_38 = arith.constant 0 : i32
    %c0_i32_39 = arith.constant 0 : i32
    %c0_i32_40 = arith.constant 0 : i32
    %c0_i32_41 = arith.constant 0 : i32
    %53 = tpu.memref_slice %arg4[%c0_i32_38, %c0_i32_41] : memref<64x128xf32, #tpu.memory_space<any>> -> memref<1x128xf32, #tpu.memory_space<any>>
    %54 = tpu.memref_squeeze %53 : memref<1x128xf32, #tpu.memory_space<any>> -> memref<128xf32, #tpu.memory_space<any>>
    %c0_i32_42 = arith.constant 0 : i32
    %55 = tpu.memref_slice %arg10[%9, %c0_i32_39, %c0_i32_40, %c0_i32_42] : memref<2x8x8x128xf32, #tpu.memory_space<vmem>> -> memref<1x1x1x128xf32, #tpu.memory_space<vmem>>
    %56 = tpu.memref_squeeze %55 : memref<1x1x1x128xf32, #tpu.memory_space<vmem>> -> memref<128xf32, #tpu.memory_space<vmem>>
    %57 = tpu.memref_slice %arg11[%9] : memref<2x!tpu.dma_semaphore, #tpu.memory_space<semaphore_mem>> -> memref<1x!tpu.dma_semaphore, #tpu.memory_space<semaphore_mem>>
    %58 = tpu.memref_squeeze %57 : memref<1x!tpu.dma_semaphore, #tpu.memory_space<semaphore_mem>> -> memref<!tpu.dma_semaphore, #tpu.memory_space<semaphore_mem>>
    tpu.wait_dma2 semaphore(%58 : memref<!tpu.dma_semaphore, #tpu.memory_space<semaphore_mem>>) src(%54 : memref<128xf32, #tpu.memory_space<any>>) dst(%56 : memref<128xf32, #tpu.memory_space<vmem>>)
    %c0_i32_43 = arith.constant 0 : i32
    %c0_i32_44 = arith.constant 0 : i32
    %c0_i32_45 = arith.constant 0 : i32
    %c0_i32_46 = arith.constant 0 : i32
    %59 = tpu.memref_slice %arg4[%c0_i32_43, %c0_i32_46] : memref<64x128xf32, #tpu.memory_space<any>> -> memref<1x128xf32, #tpu.memory_space<any>>
    %60 = tpu.memref_squeeze %59 : memref<1x128xf32, #tpu.memory_space<any>> -> memref<128xf32, #tpu.memory_space<any>>
    %c0_i32_47 = arith.constant 0 : i32
    %61 = tpu.memref_slice %arg10[%9, %c0_i32_44, %c0_i32_45, %c0_i32_47] : memref<2x8x8x128xf32, #tpu.memory_space<vmem>> -> memref<1x1x1x128xf32, #tpu.memory_space<vmem>>
    %62 = tpu.memref_squeeze %61 : memref<1x1x1x128xf32, #tpu.memory_space<vmem>> -> memref<128xf32, #tpu.memory_space<vmem>>
    %63 = tpu.memref_slice %arg11[%9] : memref<2x!tpu.dma_semaphore, #tpu.memory_space<semaphore_mem>> -> memref<1x!tpu.dma_semaphore, #tpu.memory_space<semaphore_mem>>
    %64 = tpu.memref_squeeze %63 : memref<1x!tpu.dma_semaphore, #tpu.memory_space<semaphore_mem>> -> memref<!tpu.dma_semaphore, #tpu.memory_space<semaphore_mem>>
    tpu.wait_dma2 semaphore(%64 : memref<!tpu.dma_semaphore, #tpu.memory_space<semaphore_mem>>) src(%60 : memref<128xf32, #tpu.memory_space<any>>) dst(%62 : memref<128xf32, #tpu.memory_space<vmem>>)
    %c0_i32_48 = arith.constant 0 : i32
    %c0_i32_49 = arith.constant 0 : i32
    %c0_i32_50 = arith.constant 0 : i32
    %c0_i32_51 = arith.constant 0 : i32
    %65 = tpu.memref_slice %arg4[%c0_i32_48, %c0_i32_51] : memref<64x128xf32, #tpu.memory_space<any>> -> memref<1x128xf32, #tpu.memory_space<any>>
    %66 = tpu.memref_squeeze %65 : memref<1x128xf32, #tpu.memory_space<any>> -> memref<128xf32, #tpu.memory_space<any>>
    %c0_i32_52 = arith.constant 0 : i32
    %67 = tpu.memref_slice %arg10[%9, %c0_i32_49, %c0_i32_50, %c0_i32_52] : memref<2x8x8x128xf32, #tpu.memory_space<vmem>> -> memref<1x1x1x128xf32, #tpu.memory_space<vmem>>
    %68 = tpu.memref_squeeze %67 : memref<1x1x1x128xf32, #tpu.memory_space<vmem>> -> memref<128xf32, #tpu.memory_space<vmem>>
    %69 = tpu.memref_slice %arg11[%9] : memref<2x!tpu.dma_semaphore, #tpu.memory_space<semaphore_mem>> -> memref<1x!tpu.dma_semaphore, #tpu.memory_space<semaphore_mem>>
    %70 = tpu.memref_squeeze %69 : memref<1x!tpu.dma_semaphore, #tpu.memory_space<semaphore_mem>> -> memref<!tpu.dma_semaphore, #tpu.memory_space<semaphore_mem>>
    tpu.wait_dma2 semaphore(%70 : memref<!tpu.dma_semaphore, #tpu.memory_space<semaphore_mem>>) src(%66 : memref<128xf32, #tpu.memory_space<any>>) dst(%68 : memref<128xf32, #tpu.memory_space<vmem>>)
    %c0_i32_53 = arith.constant 0 : i32
    %c0_i32_54 = arith.constant 0 : i32
    %c0_i32_55 = arith.constant 0 : i32
    %c0_i32_56 = arith.constant 0 : i32
    %71 = tpu.memref_slice %arg4[%c0_i32_53, %c0_i32_56] : memref<64x128xf32, #tpu.memory_space<any>> -> memref<1x128xf32, #tpu.memory_space<any>>
    %72 = tpu.memref_squeeze %71 : memref<1x128xf32, #tpu.memory_space<any>> -> memref<128xf32, #tpu.memory_space<any>>
    %c0_i32_57 = arith.constant 0 : i32
    %73 = tpu.memref_slice %arg10[%9, %c0_i32_54, %c0_i32_55, %c0_i32_57] : memref<2x8x8x128xf32, #tpu.memory_space<vmem>> -> memref<1x1x1x128xf32, #tpu.memory_space<vmem>>
    %74 = tpu.memref_squeeze %73 : memref<1x1x1x128xf32, #tpu.memory_space<vmem>> -> memref<128xf32, #tpu.memory_space<vmem>>
    %75 = tpu.memref_slice %arg11[%9] : memref<2x!tpu.dma_semaphore, #tpu.memory_space<semaphore_mem>> -> memref<1x!tpu.dma_semaphore, #tpu.memory_space<semaphore_mem>>
    %76 = tpu.memref_squeeze %75 : memref<1x!tpu.dma_semaphore, #tpu.memory_space<semaphore_mem>> -> memref<!tpu.dma_semaphore, #tpu.memory_space<semaphore_mem>>
    tpu.wait_dma2 semaphore(%76 : memref<!tpu.dma_semaphore, #tpu.memory_space<semaphore_mem>>) src(%72 : memref<128xf32, #tpu.memory_space<any>>) dst(%74 : memref<128xf32, #tpu.memory_space<vmem>>)
    %c0_i32_58 = arith.constant 0 : i32
    %c0_i32_59 = arith.constant 0 : i32
    %c0_i32_60 = arith.constant 0 : i32
    %c0_i32_61 = arith.constant 0 : i32
    %77 = tpu.memref_slice %arg4[%c0_i32_58, %c0_i32_61] : memref<64x128xf32, #tpu.memory_space<any>> -> memref<1x128xf32, #tpu.memory_space<any>>
    %78 = tpu.memref_squeeze %77 : memref<1x128xf32, #tpu.memory_space<any>> -> memref<128xf32, #tpu.memory_space<any>>
    %c0_i32_62 = arith.constant 0 : i32
    %79 = tpu.memref_slice %arg10[%9, %c0_i32_59, %c0_i32_60, %c0_i32_62] : memref<2x8x8x128xf32, #tpu.memory_space<vmem>> -> memref<1x1x1x128xf32, #tpu.memory_space<vmem>>
    %80 = tpu.memref_squeeze %79 : memref<1x1x1x128xf32, #tpu.memory_space<vmem>> -> memref<128xf32, #tpu.memory_space<vmem>>
    %81 = tpu.memref_slice %arg11[%9] : memref<2x!tpu.dma_semaphore, #tpu.memory_space<semaphore_mem>> -> memref<1x!tpu.dma_semaphore, #tpu.memory_space<semaphore_mem>>
    %82 = tpu.memref_squeeze %81 : memref<1x!tpu.dma_semaphore, #tpu.memory_space<semaphore_mem>> -> memref<!tpu.dma_semaphore, #tpu.memory_space<semaphore_mem>>
    tpu.wait_dma2 semaphore(%82 : memref<!tpu.dma_semaphore, #tpu.memory_space<semaphore_mem>>) src(%78 : memref<128xf32, #tpu.memory_space<any>>) dst(%80 : memref<128xf32, #tpu.memory_space<vmem>>)
    %c0_i32_63 = arith.constant 0 : i32
    %c0_i32_64 = arith.constant 0 : i32
    %c0_i32_65 = arith.constant 0 : i32
    %c0_i32_66 = arith.constant 0 : i32
    %83 = tpu.memref_slice %arg4[%c0_i32_63, %c0_i32_66] : memref<64x128xf32, #tpu.memory_space<any>> -> memref<1x128xf32, #tpu.memory_space<any>>
    %84 = tpu.memref_squeeze %83 : memref<1x128xf32, #tpu.memory_space<any>> -> memref<128xf32, #tpu.memory_space<any>>
    %c0_i32_67 = arith.constant 0 : i32
    %85 = tpu.memref_slice %arg10[%9, %c0_i32_64, %c0_i32_65, %c0_i32_67] : memref<2x8x8x128xf32, #tpu.memory_space<vmem>> -> memref<1x1x1x128xf32, #tpu.memory_space<vmem>>
    %86 = tpu.memref_squeeze %85 : memref<1x1x1x128xf32, #tpu.memory_space<vmem>> -> memref<128xf32, #tpu.memory_space<vmem>>
    %87 = tpu.memref_slice %arg11[%9] : memref<2x!tpu.dma_semaphore, #tpu.memory_space<semaphore_mem>> -> memref<1x!tpu.dma_semaphore, #tpu.memory_space<semaphore_mem>>
    %88 = tpu.memref_squeeze %87 : memref<1x!tpu.dma_semaphore, #tpu.memory_space<semaphore_mem>> -> memref<!tpu.dma_semaphore, #tpu.memory_space<semaphore_mem>>
    tpu.wait_dma2 semaphore(%88 : memref<!tpu.dma_semaphore, #tpu.memory_space<semaphore_mem>>) src(%84 : memref<128xf32, #tpu.memory_space<any>>) dst(%86 : memref<128xf32, #tpu.memory_space<vmem>>)
    %c0_i32_68 = arith.constant 0 : i32
    %c0_i32_69 = arith.constant 0 : i32
    %c0_i32_70 = arith.constant 0 : i32
    %c0_i32_71 = arith.constant 0 : i32
    %89 = tpu.memref_slice %arg4[%c0_i32_68, %c0_i32_71] : memref<64x128xf32, #tpu.memory_space<any>> -> memref<1x128xf32, #tpu.memory_space<any>>
    %90 = tpu.memref_squeeze %89 : memref<1x128xf32, #tpu.memory_space<any>> -> memref<128xf32, #tpu.memory_space<any>>
    %c0_i32_72 = arith.constant 0 : i32
    %91 = tpu.memref_slice %arg10[%9, %c0_i32_69, %c0_i32_70, %c0_i32_72] : memref<2x8x8x128xf32, #tpu.memory_space<vmem>> -> memref<1x1x1x128xf32, #tpu.memory_space<vmem>>
    %92 = tpu.memref_squeeze %91 : memref<1x1x1x128xf32, #tpu.memory_space<vmem>> -> memref<128xf32, #tpu.memory_space<vmem>>
    %93 = tpu.memref_slice %arg11[%9] : memref<2x!tpu.dma_semaphore, #tpu.memory_space<semaphore_mem>> -> memref<1x!tpu.dma_semaphore, #tpu.memory_space<semaphore_mem>>
    %94 = tpu.memref_squeeze %93 : memref<1x!tpu.dma_semaphore, #tpu.memory_space<semaphore_mem>> -> memref<!tpu.dma_semaphore, #tpu.memory_space<semaphore_mem>>
    tpu.wait_dma2 semaphore(%94 : memref<!tpu.dma_semaphore, #tpu.memory_space<semaphore_mem>>) src(%90 : memref<128xf32, #tpu.memory_space<any>>) dst(%92 : memref<128xf32, #tpu.memory_space<vmem>>)
    %c0_i32_73 = arith.constant 0 : i32
    %c0_i32_74 = arith.constant 0 : i32
    %c0_i32_75 = arith.constant 0 : i32
    %c0_i32_76 = arith.constant 0 : i32
    %95 = tpu.memref_slice %arg4[%c0_i32_73, %c0_i32_76] : memref<64x128xf32, #tpu.memory_space<any>> -> memref<1x128xf32, #tpu.memory_space<any>>
    %96 = tpu.memref_squeeze %95 : memref<1x128xf32, #tpu.memory_space<any>> -> memref<128xf32, #tpu.memory_space<any>>
    %c0_i32_77 = arith.constant 0 : i32
    %97 = tpu.memref_slice %arg10[%9, %c0_i32_74, %c0_i32_75, %c0_i32_77] : memref<2x8x8x128xf32, #tpu.memory_space<vmem>> -> memref<1x1x1x128xf32, #tpu.memory_space<vmem>>
    %98 = tpu.memref_squeeze %97 : memref<1x1x1x128xf32, #tpu.memory_space<vmem>> -> memref<128xf32, #tpu.memory_space<vmem>>
    %99 = tpu.memref_slice %arg11[%9] : memref<2x!tpu.dma_semaphore, #tpu.memory_space<semaphore_mem>> -> memref<1x!tpu.dma_semaphore, #tpu.memory_space<semaphore_mem>>
    %100 = tpu.memref_squeeze %99 : memref<1x!tpu.dma_semaphore, #tpu.memory_space<semaphore_mem>> -> memref<!tpu.dma_semaphore, #tpu.memory_space<semaphore_mem>>
    tpu.wait_dma2 semaphore(%100 : memref<!tpu.dma_semaphore, #tpu.memory_space<semaphore_mem>>) src(%96 : memref<128xf32, #tpu.memory_space<any>>) dst(%98 : memref<128xf32, #tpu.memory_space<vmem>>)
    %c0_i32_78 = arith.constant 0 : i32
    %c0_i32_79 = arith.constant 0 : i32
    %c0_i32_80 = arith.constant 0 : i32
    %c0_i32_81 = arith.constant 0 : i32
    %101 = tpu.memref_slice %arg4[%c0_i32_78, %c0_i32_81] : memref<64x128xf32, #tpu.memory_space<any>> -> memref<1x128xf32, #tpu.memory_space<any>>
    %102 = tpu.memref_squeeze %101 : memref<1x128xf32, #tpu.memory_space<any>> -> memref<128xf32, #tpu.memory_space<any>>
    %c0_i32_82 = arith.constant 0 : i32
    %103 = tpu.memref_slice %arg10[%9, %c0_i32_79, %c0_i32_80, %c0_i32_82] : memref<2x8x8x128xf32, #tpu.memory_space<vmem>> -> memref<1x1x1x128xf32, #tpu.memory_space<vmem>>
    %104 = tpu.memref_squeeze %103 : memref<1x1x1x128xf32, #tpu.memory_space<vmem>> -> memref<128xf32, #tpu.memory_space<vmem>>
    %105 = tpu.memref_slice %arg11[%9] : memref<2x!tpu.dma_semaphore, #tpu.memory_space<semaphore_mem>> -> memref<1x!tpu.dma_semaphore, #tpu.memory_space<semaphore_mem>>
    %106 = tpu.memref_squeeze %105 : memref<1x!tpu.dma_semaphore, #tpu.memory_space<semaphore_mem>> -> memref<!tpu.dma_semaphore, #tpu.memory_space<semaphore_mem>>
    tpu.wait_dma2 semaphore(%106 : memref<!tpu.dma_semaphore, #tpu.memory_space<semaphore_mem>>) src(%102 : memref<128xf32, #tpu.memory_space<any>>) dst(%104 : memref<128xf32, #tpu.memory_space<vmem>>)
    %c0_i32_83 = arith.constant 0 : i32
    %c0_i32_84 = arith.constant 0 : i32
    %c0_i32_85 = arith.constant 0 : i32
    %c0_i32_86 = arith.constant 0 : i32
    %107 = tpu.memref_slice %arg4[%c0_i32_83, %c0_i32_86] : memref<64x128xf32, #tpu.memory_space<any>> -> memref<1x128xf32, #tpu.memory_space<any>>
    %108 = tpu.memref_squeeze %107 : memref<1x128xf32, #tpu.memory_space<any>> -> memref<128xf32, #tpu.memory_space<any>>
    %c0_i32_87 = arith.constant 0 : i32
    %109 = tpu.memref_slice %arg10[%9, %c0_i32_84, %c0_i32_85, %c0_i32_87] : memref<2x8x8x128xf32, #tpu.memory_space<vmem>> -> memref<1x1x1x128xf32, #tpu.memory_space<vmem>>
    %110 = tpu.memref_squeeze %109 : memref<1x1x1x128xf32, #tpu.memory_space<vmem>> -> memref<128xf32, #tpu.memory_space<vmem>>
    %111 = tpu.memref_slice %arg11[%9] : memref<2x!tpu.dma_semaphore, #tpu.memory_space<semaphore_mem>> -> memref<1x!tpu.dma_semaphore, #tpu.memory_space<semaphore_mem>>
    %112 = tpu.memref_squeeze %111 : memref<1x!tpu.dma_semaphore, #tpu.memory_space<semaphore_mem>> -> memref<!tpu.dma_semaphore, #tpu.memory_space<semaphore_mem>>
    tpu.wait_dma2 semaphore(%112 : memref<!tpu.dma_semaphore, #tpu.memory_space<semaphore_mem>>) src(%108 : memref<128xf32, #tpu.memory_space<any>>) dst(%110 : memref<128xf32, #tpu.memory_space<vmem>>)
    %c0_i32_88 = arith.constant 0 : i32
    %c0_i32_89 = arith.constant 0 : i32
    %c0_i32_90 = arith.constant 0 : i32
    %c0_i32_91 = arith.constant 0 : i32
    %113 = tpu.memref_slice %arg4[%c0_i32_88, %c0_i32_91] : memref<64x128xf32, #tpu.memory_space<any>> -> memref<1x128xf32, #tpu.memory_space<any>>
    %114 = tpu.memref_squeeze %113 : memref<1x128xf32, #tpu.memory_space<any>> -> memref<128xf32, #tpu.memory_space<any>>
    %c0_i32_92 = arith.constant 0 : i32
    %115 = tpu.memref_slice %arg10[%9, %c0_i32_89, %c0_i32_90, %c0_i32_92] : memref<2x8x8x128xf32, #tpu.memory_space<vmem>> -> memref<1x1x1x128xf32, #tpu.memory_space<vmem>>
    %116 = tpu.memref_squeeze %115 : memref<1x1x1x128xf32, #tpu.memory_space<vmem>> -> memref<128xf32, #tpu.memory_space<vmem>>
    %117 = tpu.memref_slice %arg11[%9] : memref<2x!tpu.dma_semaphore, #tpu.memory_space<semaphore_mem>> -> memref<1x!tpu.dma_semaphore, #tpu.memory_space<semaphore_mem>>
    %118 = tpu.memref_squeeze %117 : memref<1x!tpu.dma_semaphore, #tpu.memory_space<semaphore_mem>> -> memref<!tpu.dma_semaphore, #tpu.memory_space<semaphore_mem>>
    tpu.wait_dma2 semaphore(%118 : memref<!tpu.dma_semaphore, #tpu.memory_space<semaphore_mem>>) src(%114 : memref<128xf32, #tpu.memory_space<any>>) dst(%116 : memref<128xf32, #tpu.memory_space<vmem>>)
    %c0_i32_93 = arith.constant 0 : i32
    %c0_i32_94 = arith.constant 0 : i32
    %c0_i32_95 = arith.constant 0 : i32
    %c0_i32_96 = arith.constant 0 : i32
    %119 = tpu.memref_slice %arg4[%c0_i32_93, %c0_i32_96] : memref<64x128xf32, #tpu.memory_space<any>> -> memref<1x128xf32, #tpu.memory_space<any>>
    %120 = tpu.memref_squeeze %119 : memref<1x128xf32, #tpu.memory_space<any>> -> memref<128xf32, #tpu.memory_space<any>>
    %c0_i32_97 = arith.constant 0 : i32
    %121 = tpu.memref_slice %arg10[%9, %c0_i32_94, %c0_i32_95, %c0_i32_97] : memref<2x8x8x128xf32, #tpu.memory_space<vmem>> -> memref<1x1x1x128xf32, #tpu.memory_space<vmem>>
    %122 = tpu.memref_squeeze %121 : memref<1x1x1x128xf32, #tpu.memory_space<vmem>> -> memref<128xf32, #tpu.memory_space<vmem>>
    %123 = tpu.memref_slice %arg11[%9] : memref<2x!tpu.dma_semaphore, #tpu.memory_space<semaphore_mem>> -> memref<1x!tpu.dma_semaphore, #tpu.memory_space<semaphore_mem>>
    %124 = tpu.memref_squeeze %123 : memref<1x!tpu.dma_semaphore, #tpu.memory_space<semaphore_mem>> -> memref<!tpu.dma_semaphore, #tpu.memory_space<semaphore_mem>>
    tpu.wait_dma2 semaphore(%124 : memref<!tpu.dma_semaphore, #tpu.memory_space<semaphore_mem>>) src(%120 : memref<128xf32, #tpu.memory_space<any>>) dst(%122 : memref<128xf32, #tpu.memory_space<vmem>>)
    %c0_i32_98 = arith.constant 0 : i32
    %c0_i32_99 = arith.constant 0 : i32
    %c0_i32_100 = arith.constant 0 : i32
    %c0_i32_101 = arith.constant 0 : i32
    %125 = tpu.memref_slice %arg4[%c0_i32_98, %c0_i32_101] : memref<64x128xf32, #tpu.memory_space<any>> -> memref<1x128xf32, #tpu.memory_space<any>>
    %126 = tpu.memref_squeeze %125 : memref<1x128xf32, #tpu.memory_space<any>> -> memref<128xf32, #tpu.memory_space<any>>
    %c0_i32_102 = arith.constant 0 : i32
    %127 = tpu.memref_slice %arg10[%9, %c0_i32_99, %c0_i32_100, %c0_i32_102] : memref<2x8x8x128xf32, #tpu.memory_space<vmem>> -> memref<1x1x1x128xf32, #tpu.memory_space<vmem>>
    %128 = tpu.memref_squeeze %127 : memref<1x1x1x128xf32, #tpu.memory_space<vmem>> -> memref<128xf32, #tpu.memory_space<vmem>>
    %129 = tpu.memref_slice %arg11[%9] : memref<2x!tpu.dma_semaphore, #tpu.memory_space<semaphore_mem>> -> memref<1x!tpu.dma_semaphore, #tpu.memory_space<semaphore_mem>>
    %130 = tpu.memref_squeeze %129 : memref<1x!tpu.dma_semaphore, #tpu.memory_space<semaphore_mem>> -> memref<!tpu.dma_semaphore, #tpu.memory_space<semaphore_mem>>
    tpu.wait_dma2 semaphore(%130 : memref<!tpu.dma_semaphore, #tpu.memory_space<semaphore_mem>>) src(%126 : memref<128xf32, #tpu.memory_space<any>>) dst(%128 : memref<128xf32, #tpu.memory_space<vmem>>)
    %c0_i32_103 = arith.constant 0 : i32
    %c0_i32_104 = arith.constant 0 : i32
    %c0_i32_105 = arith.constant 0 : i32
    %c0_i32_106 = arith.constant 0 : i32
    %131 = tpu.memref_slice %arg4[%c0_i32_103, %c0_i32_106] : memref<64x128xf32, #tpu.memory_space<any>> -> memref<1x128xf32, #tpu.memory_space<any>>
    %132 = tpu.memref_squeeze %131 : memref<1x128xf32, #tpu.memory_space<any>> -> memref<128xf32, #tpu.memory_space<any>>
    %c0_i32_107 = arith.constant 0 : i32
    %133 = tpu.memref_slice %arg10[%9, %c0_i32_104, %c0_i32_105, %c0_i32_107] : memref<2x8x8x128xf32, #tpu.memory_space<vmem>> -> memref<1x1x1x128xf32, #tpu.memory_space<vmem>>
    %134 = tpu.memref_squeeze %133 : memref<1x1x1x128xf32, #tpu.memory_space<vmem>> -> memref<128xf32, #tpu.memory_space<vmem>>
    %135 = tpu.memref_slice %arg11[%9] : memref<2x!tpu.dma_semaphore, #tpu.memory_space<semaphore_mem>> -> memref<1x!tpu.dma_semaphore, #tpu.memory_space<semaphore_mem>>
    %136 = tpu.memref_squeeze %135 : memref<1x!tpu.dma_semaphore, #tpu.memory_space<semaphore_mem>> -> memref<!tpu.dma_semaphore, #tpu.memory_space<semaphore_mem>>
    tpu.wait_dma2 semaphore(%136 : memref<!tpu.dma_semaphore, #tpu.memory_space<semaphore_mem>>) src(%132 : memref<128xf32, #tpu.memory_space<any>>) dst(%134 : memref<128xf32, #tpu.memory_space<vmem>>)
    %c0_i32_108 = arith.constant 0 : i32
    %c0_i32_109 = arith.constant 0 : i32
    %c0_i32_110 = arith.constant 0 : i32
    %c0_i32_111 = arith.constant 0 : i32
    %137 = tpu.memref_slice %arg4[%c0_i32_108, %c0_i32_111] : memref<64x128xf32, #tpu.memory_space<any>> -> memref<1x128xf32, #tpu.memory_space<any>>
    %138 = tpu.memref_squeeze %137 : memref<1x128xf32, #tpu.memory_space<any>> -> memref<128xf32, #tpu.memory_space<any>>
    %c0_i32_112 = arith.constant 0 : i32
    %139 = tpu.memref_slice %arg10[%9, %c0_i32_109, %c0_i32_110, %c0_i32_112] : memref<2x8x8x128xf32, #tpu.memory_space<vmem>> -> memref<1x1x1x128xf32, #tpu.memory_space<vmem>>
    %140 = tpu.memref_squeeze %139 : memref<1x1x1x128xf32, #tpu.memory_space<vmem>> -> memref<128xf32, #tpu.memory_space<vmem>>
    %141 = tpu.memref_slice %arg11[%9] : memref<2x!tpu.dma_semaphore, #tpu.memory_space<semaphore_mem>> -> memref<1x!tpu.dma_semaphore, #tpu.memory_space<semaphore_mem>>
    %142 = tpu.memref_squeeze %141 : memref<1x!tpu.dma_semaphore, #tpu.memory_space<semaphore_mem>> -> memref<!tpu.dma_semaphore, #tpu.memory_space<semaphore_mem>>
    tpu.wait_dma2 semaphore(%142 : memref<!tpu.dma_semaphore, #tpu.memory_space<semaphore_mem>>) src(%138 : memref<128xf32, #tpu.memory_space<any>>) dst(%140 : memref<128xf32, #tpu.memory_space<vmem>>)
    %c0_i32_113 = arith.constant 0 : i32
    %c0_i32_114 = arith.constant 0 : i32
    %c0_i32_115 = arith.constant 0 : i32
    %c0_i32_116 = arith.constant 0 : i32
    %143 = tpu.memref_slice %arg4[%c0_i32_113, %c0_i32_116] : memref<64x128xf32, #tpu.memory_space<any>> -> memref<1x128xf32, #tpu.memory_space<any>>
    %144 = tpu.memref_squeeze %143 : memref<1x128xf32, #tpu.memory_space<any>> -> memref<128xf32, #tpu.memory_space<any>>
    %c0_i32_117 = arith.constant 0 : i32
    %145 = tpu.memref_slice %arg10[%9, %c0_i32_114, %c0_i32_115, %c0_i32_117] : memref<2x8x8x128xf32, #tpu.memory_space<vmem>> -> memref<1x1x1x128xf32, #tpu.memory_space<vmem>>
    %146 = tpu.memref_squeeze %145 : memref<1x1x1x128xf32, #tpu.memory_space<vmem>> -> memref<128xf32, #tpu.memory_space<vmem>>
    %147 = tpu.memref_slice %arg11[%9] : memref<2x!tpu.dma_semaphore, #tpu.memory_space<semaphore_mem>> -> memref<1x!tpu.dma_semaphore, #tpu.memory_space<semaphore_mem>>
    %148 = tpu.memref_squeeze %147 : memref<1x!tpu.dma_semaphore, #tpu.memory_space<semaphore_mem>> -> memref<!tpu.dma_semaphore, #tpu.memory_space<semaphore_mem>>
    tpu.wait_dma2 semaphore(%148 : memref<!tpu.dma_semaphore, #tpu.memory_space<semaphore_mem>>) src(%144 : memref<128xf32, #tpu.memory_space<any>>) dst(%146 : memref<128xf32, #tpu.memory_space<vmem>>)
    %c0_i32_118 = arith.constant 0 : i32
    %c0_i32_119 = arith.constant 0 : i32
    %c0_i32_120 = arith.constant 0 : i32
    %c0_i32_121 = arith.constant 0 : i32
    %149 = tpu.memref_slice %arg4[%c0_i32_118, %c0_i32_121] : memref<64x128xf32, #tpu.memory_space<any>> -> memref<1x128xf32, #tpu.memory_space<any>>
    %150 = tpu.memref_squeeze %149 : memref<1x128xf32, #tpu.memory_space<any>> -> memref<128xf32, #tpu.memory_space<any>>
    %c0_i32_122 = arith.constant 0 : i32
    %151 = tpu.memref_slice %arg10[%9, %c0_i32_119, %c0_i32_120, %c0_i32_122] : memref<2x8x8x128xf32, #tpu.memory_space<vmem>> -> memref<1x1x1x128xf32, #tpu.memory_space<vmem>>
    %152 = tpu.memref_squeeze %151 : memref<1x1x1x128xf32, #tpu.memory_space<vmem>> -> memref<128xf32, #tpu.memory_space<vmem>>
    %153 = tpu.memref_slice %arg11[%9] : memref<2x!tpu.dma_semaphore, #tpu.memory_space<semaphore_mem>> -> memref<1x!tpu.dma_semaphore, #tpu.memory_space<semaphore_mem>>
    %154 = tpu.memref_squeeze %153 : memref<1x!tpu.dma_semaphore, #tpu.memory_space<semaphore_mem>> -> memref<!tpu.dma_semaphore, #tpu.memory_space<semaphore_mem>>
    tpu.wait_dma2 semaphore(%154 : memref<!tpu.dma_semaphore, #tpu.memory_space<semaphore_mem>>) src(%150 : memref<128xf32, #tpu.memory_space<any>>) dst(%152 : memref<128xf32, #tpu.memory_space<vmem>>)
    %c0_i32_123 = arith.constant 0 : i32
    %c0_i32_124 = arith.constant 0 : i32
    %c0_i32_125 = arith.constant 0 : i32
    %c0_i32_126 = arith.constant 0 : i32
    %155 = tpu.memref_slice %arg4[%c0_i32_123, %c0_i32_126] : memref<64x128xf32, #tpu.memory_space<any>> -> memref<1x128xf32, #tpu.memory_space<any>>
    %156 = tpu.memref_squeeze %155 : memref<1x128xf32, #tpu.memory_space<any>> -> memref<128xf32, #tpu.memory_space<any>>
    %c0_i32_127 = arith.constant 0 : i32
    %157 = tpu.memref_slice %arg10[%9, %c0_i32_124, %c0_i32_125, %c0_i32_127] : memref<2x8x8x128xf32, #tpu.memory_space<vmem>> -> memref<1x1x1x128xf32, #tpu.memory_space<vmem>>
    %158 = tpu.memref_squeeze %157 : memref<1x1x1x128xf32, #tpu.memory_space<vmem>> -> memref<128xf32, #tpu.memory_space<vmem>>
    %159 = tpu.memref_slice %arg11[%9] : memref<2x!tpu.dma_semaphore, #tpu.memory_space<semaphore_mem>> -> memref<1x!tpu.dma_semaphore, #tpu.memory_space<semaphore_mem>>
    %160 = tpu.memref_squeeze %159 : memref<1x!tpu.dma_semaphore, #tpu.memory_space<semaphore_mem>> -> memref<!tpu.dma_semaphore, #tpu.memory_space<semaphore_mem>>
    tpu.wait_dma2 semaphore(%160 : memref<!tpu.dma_semaphore, #tpu.memory_space<semaphore_mem>>) src(%156 : memref<128xf32, #tpu.memory_space<any>>) dst(%158 : memref<128xf32, #tpu.memory_space<vmem>>)
    %c0_i32_128 = arith.constant 0 : i32
    %c0_i32_129 = arith.constant 0 : i32
    %c0_i32_130 = arith.constant 0 : i32
    %c0_i32_131 = arith.constant 0 : i32
    %161 = tpu.memref_slice %arg4[%c0_i32_128, %c0_i32_131] : memref<64x128xf32, #tpu.memory_space<any>> -> memref<1x128xf32, #tpu.memory_space<any>>
    %162 = tpu.memref_squeeze %161 : memref<1x128xf32, #tpu.memory_space<any>> -> memref<128xf32, #tpu.memory_space<any>>
    %c0_i32_132 = arith.constant 0 : i32
    %163 = tpu.memref_slice %arg10[%9, %c0_i32_129, %c0_i32_130, %c0_i32_132] : memref<2x8x8x128xf32, #tpu.memory_space<vmem>> -> memref<1x1x1x128xf32, #tpu.memory_space<vmem>>
    %164 = tpu.memref_squeeze %163 : memref<1x1x1x128xf32, #tpu.memory_space<vmem>> -> memref<128xf32, #tpu.memory_space<vmem>>
    %165 = tpu.memref_slice %arg11[%9] : memref<2x!tpu.dma_semaphore, #tpu.memory_space<semaphore_mem>> -> memref<1x!tpu.dma_semaphore, #tpu.memory_space<semaphore_mem>>
    %166 = tpu.memref_squeeze %165 : memref<1x!tpu.dma_semaphore, #tpu.memory_space<semaphore_mem>> -> memref<!tpu.dma_semaphore, #tpu.memory_space<semaphore_mem>>
    tpu.wait_dma2 semaphore(%166 : memref<!tpu.dma_semaphore, #tpu.memory_space<semaphore_mem>>) src(%162 : memref<128xf32, #tpu.memory_space<any>>) dst(%164 : memref<128xf32, #tpu.memory_space<vmem>>)
    %c0_i32_133 = arith.constant 0 : i32
    %c0_i32_134 = arith.constant 0 : i32
    %c0_i32_135 = arith.constant 0 : i32
    %c0_i32_136 = arith.constant 0 : i32
    %167 = tpu.memref_slice %arg4[%c0_i32_133, %c0_i32_136] : memref<64x128xf32, #tpu.memory_space<any>> -> memref<1x128xf32, #tpu.memory_space<any>>
    %168 = tpu.memref_squeeze %167 : memref<1x128xf32, #tpu.memory_space<any>> -> memref<128xf32, #tpu.memory_space<any>>
    %c0_i32_137 = arith.constant 0 : i32
    %169 = tpu.memref_slice %arg10[%9, %c0_i32_134, %c0_i32_135, %c0_i32_137] : memref<2x8x8x128xf32, #tpu.memory_space<vmem>> -> memref<1x1x1x128xf32, #tpu.memory_space<vmem>>
    %170 = tpu.memref_squeeze %169 : memref<1x1x1x128xf32, #tpu.memory_space<vmem>> -> memref<128xf32, #tpu.memory_space<vmem>>
    %171 = tpu.memref_slice %arg11[%9] : memref<2x!tpu.dma_semaphore, #tpu.memory_space<semaphore_mem>> -> memref<1x!tpu.dma_semaphore, #tpu.memory_space<semaphore_mem>>
    %172 = tpu.memref_squeeze %171 : memref<1x!tpu.dma_semaphore, #tpu.memory_space<semaphore_mem>> -> memref<!tpu.dma_semaphore, #tpu.memory_space<semaphore_mem>>
    tpu.wait_dma2 semaphore(%172 : memref<!tpu.dma_semaphore, #tpu.memory_space<semaphore_mem>>) src(%168 : memref<128xf32, #tpu.memory_space<any>>) dst(%170 : memref<128xf32, #tpu.memory_space<vmem>>)
    %c0_i32_138 = arith.constant 0 : i32
    %c0_i32_139 = arith.constant 0 : i32
    %c0_i32_140 = arith.constant 0 : i32
    %c0_i32_141 = arith.constant 0 : i32
    %173 = tpu.memref_slice %arg4[%c0_i32_138, %c0_i32_141] : memref<64x128xf32, #tpu.memory_space<any>> -> memref<1x128xf32, #tpu.memory_space<any>>
    %174 = tpu.memref_squeeze %173 : memref<1x128xf32, #tpu.memory_space<any>> -> memref<128xf32, #tpu.memory_space<any>>
    %c0_i32_142 = arith.constant 0 : i32
    %175 = tpu.memref_slice %arg10[%9, %c0_i32_139, %c0_i32_140, %c0_i32_142] : memref<2x8x8x128xf32, #tpu.memory_space<vmem>> -> memref<1x1x1x128xf32, #tpu.memory_space<vmem>>
    %176 = tpu.memref_squeeze %175 : memref<1x1x1x128xf32, #tpu.memory_space<vmem>> -> memref<128xf32, #tpu.memory_space<vmem>>
    %177 = tpu.memref_slice %arg11[%9] : memref<2x!tpu.dma_semaphore, #tpu.memory_space<semaphore_mem>> -> memref<1x!tpu.dma_semaphore, #tpu.memory_space<semaphore_mem>>
    %178 = tpu.memref_squeeze %177 : memref<1x!tpu.dma_semaphore, #tpu.memory_space<semaphore_mem>> -> memref<!tpu.dma_semaphore, #tpu.memory_space<semaphore_mem>>
    tpu.wait_dma2 semaphore(%178 : memref<!tpu.dma_semaphore, #tpu.memory_space<semaphore_mem>>) src(%174 : memref<128xf32, #tpu.memory_space<any>>) dst(%176 : memref<128xf32, #tpu.memory_space<vmem>>)
    %c0_i32_143 = arith.constant 0 : i32
    %c0_i32_144 = arith.constant 0 : i32
    %c0_i32_145 = arith.constant 0 : i32
    %c0_i32_146 = arith.constant 0 : i32
    %179 = tpu.memref_slice %arg4[%c0_i32_143, %c0_i32_146] : memref<64x128xf32, #tpu.memory_space<any>> -> memref<1x128xf32, #tpu.memory_space<any>>
    %180 = tpu.memref_squeeze %179 : memref<1x128xf32, #tpu.memory_space<any>> -> memref<128xf32, #tpu.memory_space<any>>
    %c0_i32_147 = arith.constant 0 : i32
    %181 = tpu.memref_slice %arg10[%9, %c0_i32_144, %c0_i32_145, %c0_i32_147] : memref<2x8x8x128xf32, #tpu.memory_space<vmem>> -> memref<1x1x1x128xf32, #tpu.memory_space<vmem>>
    %182 = tpu.memref_squeeze %181 : memref<1x1x1x128xf32, #tpu.memory_space<vmem>> -> memref<128xf32, #tpu.memory_space<vmem>>
    %183 = tpu.memref_slice %arg11[%9] : memref<2x!tpu.dma_semaphore, #tpu.memory_space<semaphore_mem>> -> memref<1x!tpu.dma_semaphore, #tpu.memory_space<semaphore_mem>>
    %184 = tpu.memref_squeeze %183 : memref<1x!tpu.dma_semaphore, #tpu.memory_space<semaphore_mem>> -> memref<!tpu.dma_semaphore, #tpu.memory_space<semaphore_mem>>
    tpu.wait_dma2 semaphore(%184 : memref<!tpu.dma_semaphore, #tpu.memory_space<semaphore_mem>>) src(%180 : memref<128xf32, #tpu.memory_space<any>>) dst(%182 : memref<128xf32, #tpu.memory_space<vmem>>)
    %c0_i32_148 = arith.constant 0 : i32
    %c0_i32_149 = arith.constant 0 : i32
    %c0_i32_150 = arith.constant 0 : i32
    %c0_i32_151 = arith.constant 0 : i32
    %185 = tpu.memref_slice %arg4[%c0_i32_148, %c0_i32_151] : memref<64x128xf32, #tpu.memory_space<any>> -> memref<1x128xf32, #tpu.memory_space<any>>
    %186 = tpu.memref_squeeze %185 : memref<1x128xf32, #tpu.memory_space<any>> -> memref<128xf32, #tpu.memory_space<any>>
    %c0_i32_152 = arith.constant 0 : i32
    %187 = tpu.memref_slice %arg10[%9, %c0_i32_149, %c0_i32_150, %c0_i32_152] : memref<2x8x8x128xf32, #tpu.memory_space<vmem>> -> memref<1x1x1x128xf32, #tpu.memory_space<vmem>>
    %188 = tpu.memref_squeeze %187 : memref<1x1x1x128xf32, #tpu.memory_space<vmem>> -> memref<128xf32, #tpu.memory_space<vmem>>
    %189 = tpu.memref_slice %arg11[%9] : memref<2x!tpu.dma_semaphore, #tpu.memory_space<semaphore_mem>> -> memref<1x!tpu.dma_semaphore, #tpu.memory_space<semaphore_mem>>
    %190 = tpu.memref_squeeze %189 : memref<1x!tpu.dma_semaphore, #tpu.memory_space<semaphore_mem>> -> memref<!tpu.dma_semaphore, #tpu.memory_space<semaphore_mem>>
    tpu.wait_dma2 semaphore(%190 : memref<!tpu.dma_semaphore, #tpu.memory_space<semaphore_mem>>) src(%186 : memref<128xf32, #tpu.memory_space<any>>) dst(%188 : memref<128xf32, #tpu.memory_space<vmem>>)
    %c0_i32_153 = arith.constant 0 : i32
    %c0_i32_154 = arith.constant 0 : i32
    %c0_i32_155 = arith.constant 0 : i32
    %c0_i32_156 = arith.constant 0 : i32
    %191 = tpu.memref_slice %arg4[%c0_i32_153, %c0_i32_156] : memref<64x128xf32, #tpu.memory_space<any>> -> memref<1x128xf32, #tpu.memory_space<any>>
    %192 = tpu.memref_squeeze %191 : memref<1x128xf32, #tpu.memory_space<any>> -> memref<128xf32, #tpu.memory_space<any>>
    %c0_i32_157 = arith.constant 0 : i32
    %193 = tpu.memref_slice %arg10[%9, %c0_i32_154, %c0_i32_155, %c0_i32_157] : memref<2x8x8x128xf32, #tpu.memory_space<vmem>> -> memref<1x1x1x128xf32, #tpu.memory_space<vmem>>
    %194 = tpu.memref_squeeze %193 : memref<1x1x1x128xf32, #tpu.memory_space<vmem>> -> memref<128xf32, #tpu.memory_space<vmem>>
    %195 = tpu.memref_slice %arg11[%9] : memref<2x!tpu.dma_semaphore, #tpu.memory_space<semaphore_mem>> -> memref<1x!tpu.dma_semaphore, #tpu.memory_space<semaphore_mem>>
    %196 = tpu.memref_squeeze %195 : memref<1x!tpu.dma_semaphore, #tpu.memory_space<semaphore_mem>> -> memref<!tpu.dma_semaphore, #tpu.memory_space<semaphore_mem>>
    tpu.wait_dma2 semaphore(%196 : memref<!tpu.dma_semaphore, #tpu.memory_space<semaphore_mem>>) src(%192 : memref<128xf32, #tpu.memory_space<any>>) dst(%194 : memref<128xf32, #tpu.memory_space<vmem>>)
    %c0_i32_158 = arith.constant 0 : i32
    %c0_i32_159 = arith.constant 0 : i32
    %c0_i32_160 = arith.constant 0 : i32
    %c0_i32_161 = arith.constant 0 : i32
    %197 = tpu.memref_slice %arg4[%c0_i32_158, %c0_i32_161] : memref<64x128xf32, #tpu.memory_space<any>> -> memref<1x128xf32, #tpu.memory_space<any>>
    %198 = tpu.memref_squeeze %197 : memref<1x128xf32, #tpu.memory_space<any>> -> memref<128xf32, #tpu.memory_space<any>>
    %c0_i32_162 = arith.constant 0 : i32
    %199 = tpu.memref_slice %arg10[%9, %c0_i32_159, %c0_i32_160, %c0_i32_162] : memref<2x8x8x128xf32, #tpu.memory_space<vmem>> -> memref<1x1x1x128xf32, #tpu.memory_space<vmem>>
    %200 = tpu.memref_squeeze %199 : memref<1x1x1x128xf32, #tpu.memory_space<vmem>> -> memref<128xf32, #tpu.memory_space<vmem>>
    %201 = tpu.memref_slice %arg11[%9] : memref<2x!tpu.dma_semaphore, #tpu.memory_space<semaphore_mem>> -> memref<1x!tpu.dma_semaphore, #tpu.memory_space<semaphore_mem>>
    %202 = tpu.memref_squeeze %201 : memref<1x!tpu.dma_semaphore, #tpu.memory_space<semaphore_mem>> -> memref<!tpu.dma_semaphore, #tpu.memory_space<semaphore_mem>>
    tpu.wait_dma2 semaphore(%202 : memref<!tpu.dma_semaphore, #tpu.memory_space<semaphore_mem>>) src(%198 : memref<128xf32, #tpu.memory_space<any>>) dst(%200 : memref<128xf32, #tpu.memory_space<vmem>>)
    %c0_i32_163 = arith.constant 0 : i32
    %c0_i32_164 = arith.constant 0 : i32
    %c0_i32_165 = arith.constant 0 : i32
    %c0_i32_166 = arith.constant 0 : i32
    %203 = tpu.memref_slice %arg4[%c0_i32_163, %c0_i32_166] : memref<64x128xf32, #tpu.memory_space<any>> -> memref<1x128xf32, #tpu.memory_space<any>>
    %204 = tpu.memref_squeeze %203 : memref<1x128xf32, #tpu.memory_space<any>> -> memref<128xf32, #tpu.memory_space<any>>
    %c0_i32_167 = arith.constant 0 : i32
    %205 = tpu.memref_slice %arg10[%9, %c0_i32_164, %c0_i32_165, %c0_i32_167] : memref<2x8x8x128xf32, #tpu.memory_space<vmem>> -> memref<1x1x1x128xf32, #tpu.memory_space<vmem>>
    %206 = tpu.memref_squeeze %205 : memref<1x1x1x128xf32, #tpu.memory_space<vmem>> -> memref<128xf32, #tpu.memory_space<vmem>>
    %207 = tpu.memref_slice %arg11[%9] : memref<2x!tpu.dma_semaphore, #tpu.memory_space<semaphore_mem>> -> memref<1x!tpu.dma_semaphore, #tpu.memory_space<semaphore_mem>>
    %208 = tpu.memref_squeeze %207 : memref<1x!tpu.dma_semaphore, #tpu.memory_space<semaphore_mem>> -> memref<!tpu.dma_semaphore, #tpu.memory_space<semaphore_mem>>
    tpu.wait_dma2 semaphore(%208 : memref<!tpu.dma_semaphore, #tpu.memory_space<semaphore_mem>>) src(%204 : memref<128xf32, #tpu.memory_space<any>>) dst(%206 : memref<128xf32, #tpu.memory_space<vmem>>)
    %c0_i32_168 = arith.constant 0 : i32
    %c0_i32_169 = arith.constant 0 : i32
    %c0_i32_170 = arith.constant 0 : i32
    %c0_i32_171 = arith.constant 0 : i32
    %209 = tpu.memref_slice %arg4[%c0_i32_168, %c0_i32_171] : memref<64x128xf32, #tpu.memory_space<any>> -> memref<1x128xf32, #tpu.memory_space<any>>
    %210 = tpu.memref_squeeze %209 : memref<1x128xf32, #tpu.memory_space<any>> -> memref<128xf32, #tpu.memory_space<any>>
    %c0_i32_172 = arith.constant 0 : i32
    %211 = tpu.memref_slice %arg10[%9, %c0_i32_169, %c0_i32_170, %c0_i32_172] : memref<2x8x8x128xf32, #tpu.memory_space<vmem>> -> memref<1x1x1x128xf32, #tpu.memory_space<vmem>>
    %212 = tpu.memref_squeeze %211 : memref<1x1x1x128xf32, #tpu.memory_space<vmem>> -> memref<128xf32, #tpu.memory_space<vmem>>
    %213 = tpu.memref_slice %arg11[%9] : memref<2x!tpu.dma_semaphore, #tpu.memory_space<semaphore_mem>> -> memref<1x!tpu.dma_semaphore, #tpu.memory_space<semaphore_mem>>
    %214 = tpu.memref_squeeze %213 : memref<1x!tpu.dma_semaphore, #tpu.memory_space<semaphore_mem>> -> memref<!tpu.dma_semaphore, #tpu.memory_space<semaphore_mem>>
    tpu.wait_dma2 semaphore(%214 : memref<!tpu.dma_semaphore, #tpu.memory_space<semaphore_mem>>) src(%210 : memref<128xf32, #tpu.memory_space<any>>) dst(%212 : memref<128xf32, #tpu.memory_space<vmem>>)
    %c0_i32_173 = arith.constant 0 : i32
    %c0_i32_174 = arith.constant 0 : i32
    %c0_i32_175 = arith.constant 0 : i32
    %c0_i32_176 = arith.constant 0 : i32
    %215 = tpu.memref_slice %arg4[%c0_i32_173, %c0_i32_176] : memref<64x128xf32, #tpu.memory_space<any>> -> memref<1x128xf32, #tpu.memory_space<any>>
    %216 = tpu.memref_squeeze %215 : memref<1x128xf32, #tpu.memory_space<any>> -> memref<128xf32, #tpu.memory_space<any>>
    %c0_i32_177 = arith.constant 0 : i32
    %217 = tpu.memref_slice %arg10[%9, %c0_i32_174, %c0_i32_175, %c0_i32_177] : memref<2x8x8x128xf32, #tpu.memory_space<vmem>> -> memref<1x1x1x128xf32, #tpu.memory_space<vmem>>
    %218 = tpu.memref_squeeze %217 : memref<1x1x1x128xf32, #tpu.memory_space<vmem>> -> memref<128xf32, #tpu.memory_space<vmem>>
    %219 = tpu.memref_slice %arg11[%9] : memref<2x!tpu.dma_semaphore, #tpu.memory_space<semaphore_mem>> -> memref<1x!tpu.dma_semaphore, #tpu.memory_space<semaphore_mem>>
    %220 = tpu.memref_squeeze %219 : memref<1x!tpu.dma_semaphore, #tpu.memory_space<semaphore_mem>> -> memref<!tpu.dma_semaphore, #tpu.memory_space<semaphore_mem>>
    tpu.wait_dma2 semaphore(%220 : memref<!tpu.dma_semaphore, #tpu.memory_space<semaphore_mem>>) src(%216 : memref<128xf32, #tpu.memory_space<any>>) dst(%218 : memref<128xf32, #tpu.memory_space<vmem>>)
    %c0_i32_178 = arith.constant 0 : i32
    %c0_i32_179 = arith.constant 0 : i32
    %c0_i32_180 = arith.constant 0 : i32
    %c0_i32_181 = arith.constant 0 : i32
    %221 = tpu.memref_slice %arg4[%c0_i32_178, %c0_i32_181] : memref<64x128xf32, #tpu.memory_space<any>> -> memref<1x128xf32, #tpu.memory_space<any>>
    %222 = tpu.memref_squeeze %221 : memref<1x128xf32, #tpu.memory_space<any>> -> memref<128xf32, #tpu.memory_space<any>>
    %c0_i32_182 = arith.constant 0 : i32
    %223 = tpu.memref_slice %arg10[%9, %c0_i32_179, %c0_i32_180, %c0_i32_182] : memref<2x8x8x128xf32, #tpu.memory_space<vmem>> -> memref<1x1x1x128xf32, #tpu.memory_space<vmem>>
    %224 = tpu.memref_squeeze %223 : memref<1x1x1x128xf32, #tpu.memory_space<vmem>> -> memref<128xf32, #tpu.memory_space<vmem>>
    %225 = tpu.memref_slice %arg11[%9] : memref<2x!tpu.dma_semaphore, #tpu.memory_space<semaphore_mem>> -> memref<1x!tpu.dma_semaphore, #tpu.memory_space<semaphore_mem>>
    %226 = tpu.memref_squeeze %225 : memref<1x!tpu.dma_semaphore, #tpu.memory_space<semaphore_mem>> -> memref<!tpu.dma_semaphore, #tpu.memory_space<semaphore_mem>>
    tpu.wait_dma2 semaphore(%226 : memref<!tpu.dma_semaphore, #tpu.memory_space<semaphore_mem>>) src(%222 : memref<128xf32, #tpu.memory_space<any>>) dst(%224 : memref<128xf32, #tpu.memory_space<vmem>>)
    %c0_i32_183 = arith.constant 0 : i32
    %c0_i32_184 = arith.constant 0 : i32
    %c0_i32_185 = arith.constant 0 : i32
    %c0_i32_186 = arith.constant 0 : i32
    %227 = tpu.memref_slice %arg4[%c0_i32_183, %c0_i32_186] : memref<64x128xf32, #tpu.memory_space<any>> -> memref<1x128xf32, #tpu.memory_space<any>>
    %228 = tpu.memref_squeeze %227 : memref<1x128xf32, #tpu.memory_space<any>> -> memref<128xf32, #tpu.memory_space<any>>
    %c0_i32_187 = arith.constant 0 : i32
    %229 = tpu.memref_slice %arg10[%9, %c0_i32_184, %c0_i32_185, %c0_i32_187] : memref<2x8x8x128xf32, #tpu.memory_space<vmem>> -> memref<1x1x1x128xf32, #tpu.memory_space<vmem>>
    %230 = tpu.memref_squeeze %229 : memref<1x1x1x128xf32, #tpu.memory_space<vmem>> -> memref<128xf32, #tpu.memory_space<vmem>>
    %231 = tpu.memref_slice %arg11[%9] : memref<2x!tpu.dma_semaphore, #tpu.memory_space<semaphore_mem>> -> memref<1x!tpu.dma_semaphore, #tpu.memory_space<semaphore_mem>>
    %232 = tpu.memref_squeeze %231 : memref<1x!tpu.dma_semaphore, #tpu.memory_space<semaphore_mem>> -> memref<!tpu.dma_semaphore, #tpu.memory_space<semaphore_mem>>
    tpu.wait_dma2 semaphore(%232 : memref<!tpu.dma_semaphore, #tpu.memory_space<semaphore_mem>>) src(%228 : memref<128xf32, #tpu.memory_space<any>>) dst(%230 : memref<128xf32, #tpu.memory_space<vmem>>)
    %c0_i32_188 = arith.constant 0 : i32
    %c0_i32_189 = arith.constant 0 : i32
    %c0_i32_190 = arith.constant 0 : i32
    %c0_i32_191 = arith.constant 0 : i32
    %233 = tpu.memref_slice %arg4[%c0_i32_188, %c0_i32_191] : memref<64x128xf32, #tpu.memory_space<any>> -> memref<1x128xf32, #tpu.memory_space<any>>
    %234 = tpu.memref_squeeze %233 : memref<1x128xf32, #tpu.memory_space<any>> -> memref<128xf32, #tpu.memory_space<any>>
    %c0_i32_192 = arith.constant 0 : i32
    %235 = tpu.memref_slice %arg10[%9, %c0_i32_189, %c0_i32_190, %c0_i32_192] : memref<2x8x8x128xf32, #tpu.memory_space<vmem>> -> memref<1x1x1x128xf32, #tpu.memory_space<vmem>>
    %236 = tpu.memref_squeeze %235 : memref<1x1x1x128xf32, #tpu.memory_space<vmem>> -> memref<128xf32, #tpu.memory_space<vmem>>
    %237 = tpu.memref_slice %arg11[%9] : memref<2x!tpu.dma_semaphore, #tpu.memory_space<semaphore_mem>> -> memref<1x!tpu.dma_semaphore, #tpu.memory_space<semaphore_mem>>
    %238 = tpu.memref_squeeze %237 : memref<1x!tpu.dma_semaphore, #tpu.memory_space<semaphore_mem>> -> memref<!tpu.dma_semaphore, #tpu.memory_space<semaphore_mem>>
    tpu.wait_dma2 semaphore(%238 : memref<!tpu.dma_semaphore, #tpu.memory_space<semaphore_mem>>) src(%234 : memref<128xf32, #tpu.memory_space<any>>) dst(%236 : memref<128xf32, #tpu.memory_space<vmem>>)
    %c0_i32_193 = arith.constant 0 : i32
    %c0_i32_194 = arith.constant 0 : i32
    %c0_i32_195 = arith.constant 0 : i32
    %c0_i32_196 = arith.constant 0 : i32
    %239 = tpu.memref_slice %arg4[%c0_i32_193, %c0_i32_196] : memref<64x128xf32, #tpu.memory_space<any>> -> memref<1x128xf32, #tpu.memory_space<any>>
    %240 = tpu.memref_squeeze %239 : memref<1x128xf32, #tpu.memory_space<any>> -> memref<128xf32, #tpu.memory_space<any>>
    %c0_i32_197 = arith.constant 0 : i32
    %241 = tpu.memref_slice %arg10[%9, %c0_i32_194, %c0_i32_195, %c0_i32_197] : memref<2x8x8x128xf32, #tpu.memory_space<vmem>> -> memref<1x1x1x128xf32, #tpu.memory_space<vmem>>
    %242 = tpu.memref_squeeze %241 : memref<1x1x1x128xf32, #tpu.memory_space<vmem>> -> memref<128xf32, #tpu.memory_space<vmem>>
    %243 = tpu.memref_slice %arg11[%9] : memref<2x!tpu.dma_semaphore, #tpu.memory_space<semaphore_mem>> -> memref<1x!tpu.dma_semaphore, #tpu.memory_space<semaphore_mem>>
    %244 = tpu.memref_squeeze %243 : memref<1x!tpu.dma_semaphore, #tpu.memory_space<semaphore_mem>> -> memref<!tpu.dma_semaphore, #tpu.memory_space<semaphore_mem>>
    tpu.wait_dma2 semaphore(%244 : memref<!tpu.dma_semaphore, #tpu.memory_space<semaphore_mem>>) src(%240 : memref<128xf32, #tpu.memory_space<any>>) dst(%242 : memref<128xf32, #tpu.memory_space<vmem>>)
    %c0_i32_198 = arith.constant 0 : i32
    %c0_i32_199 = arith.constant 0 : i32
    %c0_i32_200 = arith.constant 0 : i32
    %c0_i32_201 = arith.constant 0 : i32
    %245 = tpu.memref_slice %arg4[%c0_i32_198, %c0_i32_201] : memref<64x128xf32, #tpu.memory_space<any>> -> memref<1x128xf32, #tpu.memory_space<any>>
    %246 = tpu.memref_squeeze %245 : memref<1x128xf32, #tpu.memory_space<any>> -> memref<128xf32, #tpu.memory_space<any>>
    %c0_i32_202 = arith.constant 0 : i32
    %247 = tpu.memref_slice %arg10[%9, %c0_i32_199, %c0_i32_200, %c0_i32_202] : memref<2x8x8x128xf32, #tpu.memory_space<vmem>> -> memref<1x1x1x128xf32, #tpu.memory_space<vmem>>
    %248 = tpu.memref_squeeze %247 : memref<1x1x1x128xf32, #tpu.memory_space<vmem>> -> memref<128xf32, #tpu.memory_space<vmem>>
    %249 = tpu.memref_slice %arg11[%9] : memref<2x!tpu.dma_semaphore, #tpu.memory_space<semaphore_mem>> -> memref<1x!tpu.dma_semaphore, #tpu.memory_space<semaphore_mem>>
    %250 = tpu.memref_squeeze %249 : memref<1x!tpu.dma_semaphore, #tpu.memory_space<semaphore_mem>> -> memref<!tpu.dma_semaphore, #tpu.memory_space<semaphore_mem>>
    tpu.wait_dma2 semaphore(%250 : memref<!tpu.dma_semaphore, #tpu.memory_space<semaphore_mem>>) src(%246 : memref<128xf32, #tpu.memory_space<any>>) dst(%248 : memref<128xf32, #tpu.memory_space<vmem>>)
    %c0_i32_203 = arith.constant 0 : i32
    %c0_i32_204 = arith.constant 0 : i32
    %c0_i32_205 = arith.constant 0 : i32
    %c0_i32_206 = arith.constant 0 : i32
    %251 = tpu.memref_slice %arg4[%c0_i32_203, %c0_i32_206] : memref<64x128xf32, #tpu.memory_space<any>> -> memref<1x128xf32, #tpu.memory_space<any>>
    %252 = tpu.memref_squeeze %251 : memref<1x128xf32, #tpu.memory_space<any>> -> memref<128xf32, #tpu.memory_space<any>>
    %c0_i32_207 = arith.constant 0 : i32
    %253 = tpu.memref_slice %arg10[%9, %c0_i32_204, %c0_i32_205, %c0_i32_207] : memref<2x8x8x128xf32, #tpu.memory_space<vmem>> -> memref<1x1x1x128xf32, #tpu.memory_space<vmem>>
    %254 = tpu.memref_squeeze %253 : memref<1x1x1x128xf32, #tpu.memory_space<vmem>> -> memref<128xf32, #tpu.memory_space<vmem>>
    %255 = tpu.memref_slice %arg11[%9] : memref<2x!tpu.dma_semaphore, #tpu.memory_space<semaphore_mem>> -> memref<1x!tpu.dma_semaphore, #tpu.memory_space<semaphore_mem>>
    %256 = tpu.memref_squeeze %255 : memref<1x!tpu.dma_semaphore, #tpu.memory_space<semaphore_mem>> -> memref<!tpu.dma_semaphore, #tpu.memory_space<semaphore_mem>>
    tpu.wait_dma2 semaphore(%256 : memref<!tpu.dma_semaphore, #tpu.memory_space<semaphore_mem>>) src(%252 : memref<128xf32, #tpu.memory_space<any>>) dst(%254 : memref<128xf32, #tpu.memory_space<vmem>>)
    %c0_i32_208 = arith.constant 0 : i32
    %c0_i32_209 = arith.constant 0 : i32
    %c0_i32_210 = arith.constant 0 : i32
    %c0_i32_211 = arith.constant 0 : i32
    %257 = tpu.memref_slice %arg4[%c0_i32_208, %c0_i32_211] : memref<64x128xf32, #tpu.memory_space<any>> -> memref<1x128xf32, #tpu.memory_space<any>>
    %258 = tpu.memref_squeeze %257 : memref<1x128xf32, #tpu.memory_space<any>> -> memref<128xf32, #tpu.memory_space<any>>
    %c0_i32_212 = arith.constant 0 : i32
    %259 = tpu.memref_slice %arg10[%9, %c0_i32_209, %c0_i32_210, %c0_i32_212] : memref<2x8x8x128xf32, #tpu.memory_space<vmem>> -> memref<1x1x1x128xf32, #tpu.memory_space<vmem>>
    %260 = tpu.memref_squeeze %259 : memref<1x1x1x128xf32, #tpu.memory_space<vmem>> -> memref<128xf32, #tpu.memory_space<vmem>>
    %261 = tpu.memref_slice %arg11[%9] : memref<2x!tpu.dma_semaphore, #tpu.memory_space<semaphore_mem>> -> memref<1x!tpu.dma_semaphore, #tpu.memory_space<semaphore_mem>>
    %262 = tpu.memref_squeeze %261 : memref<1x!tpu.dma_semaphore, #tpu.memory_space<semaphore_mem>> -> memref<!tpu.dma_semaphore, #tpu.memory_space<semaphore_mem>>
    tpu.wait_dma2 semaphore(%262 : memref<!tpu.dma_semaphore, #tpu.memory_space<semaphore_mem>>) src(%258 : memref<128xf32, #tpu.memory_space<any>>) dst(%260 : memref<128xf32, #tpu.memory_space<vmem>>)
    %c0_i32_213 = arith.constant 0 : i32
    %c0_i32_214 = arith.constant 0 : i32
    %c0_i32_215 = arith.constant 0 : i32
    %c0_i32_216 = arith.constant 0 : i32
    %263 = tpu.memref_slice %arg4[%c0_i32_213, %c0_i32_216] : memref<64x128xf32, #tpu.memory_space<any>> -> memref<1x128xf32, #tpu.memory_space<any>>
    %264 = tpu.memref_squeeze %263 : memref<1x128xf32, #tpu.memory_space<any>> -> memref<128xf32, #tpu.memory_space<any>>
    %c0_i32_217 = arith.constant 0 : i32
    %265 = tpu.memref_slice %arg10[%9, %c0_i32_214, %c0_i32_215, %c0_i32_217] : memref<2x8x8x128xf32, #tpu.memory_space<vmem>> -> memref<1x1x1x128xf32, #tpu.memory_space<vmem>>
    %266 = tpu.memref_squeeze %265 : memref<1x1x1x128xf32, #tpu.memory_space<vmem>> -> memref<128xf32, #tpu.memory_space<vmem>>
    %267 = tpu.memref_slice %arg11[%9] : memref<2x!tpu.dma_semaphore, #tpu.memory_space<semaphore_mem>> -> memref<1x!tpu.dma_semaphore, #tpu.memory_space<semaphore_mem>>
    %268 = tpu.memref_squeeze %267 : memref<1x!tpu.dma_semaphore, #tpu.memory_space<semaphore_mem>> -> memref<!tpu.dma_semaphore, #tpu.memory_space<semaphore_mem>>
    tpu.wait_dma2 semaphore(%268 : memref<!tpu.dma_semaphore, #tpu.memory_space<semaphore_mem>>) src(%264 : memref<128xf32, #tpu.memory_space<any>>) dst(%266 : memref<128xf32, #tpu.memory_space<vmem>>)
    %c0_i32_218 = arith.constant 0 : i32
    %c0_i32_219 = arith.constant 0 : i32
    %c0_i32_220 = arith.constant 0 : i32
    %c0_i32_221 = arith.constant 0 : i32
    %269 = tpu.memref_slice %arg4[%c0_i32_218, %c0_i32_221] : memref<64x128xf32, #tpu.memory_space<any>> -> memref<1x128xf32, #tpu.memory_space<any>>
    %270 = tpu.memref_squeeze %269 : memref<1x128xf32, #tpu.memory_space<any>> -> memref<128xf32, #tpu.memory_space<any>>
    %c0_i32_222 = arith.constant 0 : i32
    %271 = tpu.memref_slice %arg10[%9, %c0_i32_219, %c0_i32_220, %c0_i32_222] : memref<2x8x8x128xf32, #tpu.memory_space<vmem>> -> memref<1x1x1x128xf32, #tpu.memory_space<vmem>>
    %272 = tpu.memref_squeeze %271 : memref<1x1x1x128xf32, #tpu.memory_space<vmem>> -> memref<128xf32, #tpu.memory_space<vmem>>
    %273 = tpu.memref_slice %arg11[%9] : memref<2x!tpu.dma_semaphore, #tpu.memory_space<semaphore_mem>> -> memref<1x!tpu.dma_semaphore, #tpu.memory_space<semaphore_mem>>
    %274 = tpu.memref_squeeze %273 : memref<1x!tpu.dma_semaphore, #tpu.memory_space<semaphore_mem>> -> memref<!tpu.dma_semaphore, #tpu.memory_space<semaphore_mem>>
    tpu.wait_dma2 semaphore(%274 : memref<!tpu.dma_semaphore, #tpu.memory_space<semaphore_mem>>) src(%270 : memref<128xf32, #tpu.memory_space<any>>) dst(%272 : memref<128xf32, #tpu.memory_space<vmem>>)
    %c0_i32_223 = arith.constant 0 : i32
    %c0_i32_224 = arith.constant 0 : i32
    %c0_i32_225 = arith.constant 0 : i32
    %c0_i32_226 = arith.constant 0 : i32
    %275 = tpu.memref_slice %arg4[%c0_i32_223, %c0_i32_226] : memref<64x128xf32, #tpu.memory_space<any>> -> memref<1x128xf32, #tpu.memory_space<any>>
    %276 = tpu.memref_squeeze %275 : memref<1x128xf32, #tpu.memory_space<any>> -> memref<128xf32, #tpu.memory_space<any>>
    %c0_i32_227 = arith.constant 0 : i32
    %277 = tpu.memref_slice %arg10[%9, %c0_i32_224, %c0_i32_225, %c0_i32_227] : memref<2x8x8x128xf32, #tpu.memory_space<vmem>> -> memref<1x1x1x128xf32, #tpu.memory_space<vmem>>
    %278 = tpu.memref_squeeze %277 : memref<1x1x1x128xf32, #tpu.memory_space<vmem>> -> memref<128xf32, #tpu.memory_space<vmem>>
    %279 = tpu.memref_slice %arg11[%9] : memref<2x!tpu.dma_semaphore, #tpu.memory_space<semaphore_mem>> -> memref<1x!tpu.dma_semaphore, #tpu.memory_space<semaphore_mem>>
    %280 = tpu.memref_squeeze %279 : memref<1x!tpu.dma_semaphore, #tpu.memory_space<semaphore_mem>> -> memref<!tpu.dma_semaphore, #tpu.memory_space<semaphore_mem>>
    tpu.wait_dma2 semaphore(%280 : memref<!tpu.dma_semaphore, #tpu.memory_space<semaphore_mem>>) src(%276 : memref<128xf32, #tpu.memory_space<any>>) dst(%278 : memref<128xf32, #tpu.memory_space<vmem>>)
    %c0_i32_228 = arith.constant 0 : i32
    %c0_i32_229 = arith.constant 0 : i32
    %c0_i32_230 = arith.constant 0 : i32
    %c0_i32_231 = arith.constant 0 : i32
    %281 = tpu.memref_slice %arg4[%c0_i32_228, %c0_i32_231] : memref<64x128xf32, #tpu.memory_space<any>> -> memref<1x128xf32, #tpu.memory_space<any>>
    %282 = tpu.memref_squeeze %281 : memref<1x128xf32, #tpu.memory_space<any>> -> memref<128xf32, #tpu.memory_space<any>>
    %c0_i32_232 = arith.constant 0 : i32
    %283 = tpu.memref_slice %arg10[%9, %c0_i32_229, %c0_i32_230, %c0_i32_232] : memref<2x8x8x128xf32, #tpu.memory_space<vmem>> -> memref<1x1x1x128xf32, #tpu.memory_space<vmem>>
    %284 = tpu.memref_squeeze %283 : memref<1x1x1x128xf32, #tpu.memory_space<vmem>> -> memref<128xf32, #tpu.memory_space<vmem>>
    %285 = tpu.memref_slice %arg11[%9] : memref<2x!tpu.dma_semaphore, #tpu.memory_space<semaphore_mem>> -> memref<1x!tpu.dma_semaphore, #tpu.memory_space<semaphore_mem>>
    %286 = tpu.memref_squeeze %285 : memref<1x!tpu.dma_semaphore, #tpu.memory_space<semaphore_mem>> -> memref<!tpu.dma_semaphore, #tpu.memory_space<semaphore_mem>>
    tpu.wait_dma2 semaphore(%286 : memref<!tpu.dma_semaphore, #tpu.memory_space<semaphore_mem>>) src(%282 : memref<128xf32, #tpu.memory_space<any>>) dst(%284 : memref<128xf32, #tpu.memory_space<vmem>>)
    %c0_i32_233 = arith.constant 0 : i32
    %c0_i32_234 = arith.constant 0 : i32
    %c0_i32_235 = arith.constant 0 : i32
    %c0_i32_236 = arith.constant 0 : i32
    %287 = tpu.memref_slice %arg4[%c0_i32_233, %c0_i32_236] : memref<64x128xf32, #tpu.memory_space<any>> -> memref<1x128xf32, #tpu.memory_space<any>>
    %288 = tpu.memref_squeeze %287 : memref<1x128xf32, #tpu.memory_space<any>> -> memref<128xf32, #tpu.memory_space<any>>
    %c0_i32_237 = arith.constant 0 : i32
    %289 = tpu.memref_slice %arg10[%9, %c0_i32_234, %c0_i32_235, %c0_i32_237] : memref<2x8x8x128xf32, #tpu.memory_space<vmem>> -> memref<1x1x1x128xf32, #tpu.memory_space<vmem>>
    %290 = tpu.memref_squeeze %289 : memref<1x1x1x128xf32, #tpu.memory_space<vmem>> -> memref<128xf32, #tpu.memory_space<vmem>>
    %291 = tpu.memref_slice %arg11[%9] : memref<2x!tpu.dma_semaphore, #tpu.memory_space<semaphore_mem>> -> memref<1x!tpu.dma_semaphore, #tpu.memory_space<semaphore_mem>>
    %292 = tpu.memref_squeeze %291 : memref<1x!tpu.dma_semaphore, #tpu.memory_space<semaphore_mem>> -> memref<!tpu.dma_semaphore, #tpu.memory_space<semaphore_mem>>
    tpu.wait_dma2 semaphore(%292 : memref<!tpu.dma_semaphore, #tpu.memory_space<semaphore_mem>>) src(%288 : memref<128xf32, #tpu.memory_space<any>>) dst(%290 : memref<128xf32, #tpu.memory_space<vmem>>)
    %c0_i32_238 = arith.constant 0 : i32
    %c0_i32_239 = arith.constant 0 : i32
    %c0_i32_240 = arith.constant 0 : i32
    %c0_i32_241 = arith.constant 0 : i32
    %293 = tpu.memref_slice %arg4[%c0_i32_238, %c0_i32_241] : memref<64x128xf32, #tpu.memory_space<any>> -> memref<1x128xf32, #tpu.memory_space<any>>
    %294 = tpu.memref_squeeze %293 : memref<1x128xf32, #tpu.memory_space<any>> -> memref<128xf32, #tpu.memory_space<any>>
    %c0_i32_242 = arith.constant 0 : i32
    %295 = tpu.memref_slice %arg10[%9, %c0_i32_239, %c0_i32_240, %c0_i32_242] : memref<2x8x8x128xf32, #tpu.memory_space<vmem>> -> memref<1x1x1x128xf32, #tpu.memory_space<vmem>>
    %296 = tpu.memref_squeeze %295 : memref<1x1x1x128xf32, #tpu.memory_space<vmem>> -> memref<128xf32, #tpu.memory_space<vmem>>
    %297 = tpu.memref_slice %arg11[%9] : memref<2x!tpu.dma_semaphore, #tpu.memory_space<semaphore_mem>> -> memref<1x!tpu.dma_semaphore, #tpu.memory_space<semaphore_mem>>
    %298 = tpu.memref_squeeze %297 : memref<1x!tpu.dma_semaphore, #tpu.memory_space<semaphore_mem>> -> memref<!tpu.dma_semaphore, #tpu.memory_space<semaphore_mem>>
    tpu.wait_dma2 semaphore(%298 : memref<!tpu.dma_semaphore, #tpu.memory_space<semaphore_mem>>) src(%294 : memref<128xf32, #tpu.memory_space<any>>) dst(%296 : memref<128xf32, #tpu.memory_space<vmem>>)
    %c0_i32_243 = arith.constant 0 : i32
    %c0_i32_244 = arith.constant 0 : i32
    %c0_i32_245 = arith.constant 0 : i32
    %c0_i32_246 = arith.constant 0 : i32
    %299 = tpu.memref_slice %arg4[%c0_i32_243, %c0_i32_246] : memref<64x128xf32, #tpu.memory_space<any>> -> memref<1x128xf32, #tpu.memory_space<any>>
    %300 = tpu.memref_squeeze %299 : memref<1x128xf32, #tpu.memory_space<any>> -> memref<128xf32, #tpu.memory_space<any>>
    %c0_i32_247 = arith.constant 0 : i32
    %301 = tpu.memref_slice %arg10[%9, %c0_i32_244, %c0_i32_245, %c0_i32_247] : memref<2x8x8x128xf32, #tpu.memory_space<vmem>> -> memref<1x1x1x128xf32, #tpu.memory_space<vmem>>
    %302 = tpu.memref_squeeze %301 : memref<1x1x1x128xf32, #tpu.memory_space<vmem>> -> memref<128xf32, #tpu.memory_space<vmem>>
    %303 = tpu.memref_slice %arg11[%9] : memref<2x!tpu.dma_semaphore, #tpu.memory_space<semaphore_mem>> -> memref<1x!tpu.dma_semaphore, #tpu.memory_space<semaphore_mem>>
    %304 = tpu.memref_squeeze %303 : memref<1x!tpu.dma_semaphore, #tpu.memory_space<semaphore_mem>> -> memref<!tpu.dma_semaphore, #tpu.memory_space<semaphore_mem>>
    tpu.wait_dma2 semaphore(%304 : memref<!tpu.dma_semaphore, #tpu.memory_space<semaphore_mem>>) src(%300 : memref<128xf32, #tpu.memory_space<any>>) dst(%302 : memref<128xf32, #tpu.memory_space<vmem>>)
    %c0_i32_248 = arith.constant 0 : i32
    %c0_i32_249 = arith.constant 0 : i32
    %c0_i32_250 = arith.constant 0 : i32
    %c0_i32_251 = arith.constant 0 : i32
    %305 = tpu.memref_slice %arg4[%c0_i32_248, %c0_i32_251] : memref<64x128xf32, #tpu.memory_space<any>> -> memref<1x128xf32, #tpu.memory_space<any>>
    %306 = tpu.memref_squeeze %305 : memref<1x128xf32, #tpu.memory_space<any>> -> memref<128xf32, #tpu.memory_space<any>>
    %c0_i32_252 = arith.constant 0 : i32
    %307 = tpu.memref_slice %arg10[%9, %c0_i32_249, %c0_i32_250, %c0_i32_252] : memref<2x8x8x128xf32, #tpu.memory_space<vmem>> -> memref<1x1x1x128xf32, #tpu.memory_space<vmem>>
    %308 = tpu.memref_squeeze %307 : memref<1x1x1x128xf32, #tpu.memory_space<vmem>> -> memref<128xf32, #tpu.memory_space<vmem>>
    %309 = tpu.memref_slice %arg11[%9] : memref<2x!tpu.dma_semaphore, #tpu.memory_space<semaphore_mem>> -> memref<1x!tpu.dma_semaphore, #tpu.memory_space<semaphore_mem>>
    %310 = tpu.memref_squeeze %309 : memref<1x!tpu.dma_semaphore, #tpu.memory_space<semaphore_mem>> -> memref<!tpu.dma_semaphore, #tpu.memory_space<semaphore_mem>>
    tpu.wait_dma2 semaphore(%310 : memref<!tpu.dma_semaphore, #tpu.memory_space<semaphore_mem>>) src(%306 : memref<128xf32, #tpu.memory_space<any>>) dst(%308 : memref<128xf32, #tpu.memory_space<vmem>>)
    %c0_i32_253 = arith.constant 0 : i32
    %c0_i32_254 = arith.constant 0 : i32
    %c0_i32_255 = arith.constant 0 : i32
    %c0_i32_256 = arith.constant 0 : i32
    %311 = tpu.memref_slice %arg4[%c0_i32_253, %c0_i32_256] : memref<64x128xf32, #tpu.memory_space<any>> -> memref<1x128xf32, #tpu.memory_space<any>>
    %312 = tpu.memref_squeeze %311 : memref<1x128xf32, #tpu.memory_space<any>> -> memref<128xf32, #tpu.memory_space<any>>
    %c0_i32_257 = arith.constant 0 : i32
    %313 = tpu.memref_slice %arg10[%9, %c0_i32_254, %c0_i32_255, %c0_i32_257] : memref<2x8x8x128xf32, #tpu.memory_space<vmem>> -> memref<1x1x1x128xf32, #tpu.memory_space<vmem>>
    %314 = tpu.memref_squeeze %313 : memref<1x1x1x128xf32, #tpu.memory_space<vmem>> -> memref<128xf32, #tpu.memory_space<vmem>>
    %315 = tpu.memref_slice %arg11[%9] : memref<2x!tpu.dma_semaphore, #tpu.memory_space<semaphore_mem>> -> memref<1x!tpu.dma_semaphore, #tpu.memory_space<semaphore_mem>>
    %316 = tpu.memref_squeeze %315 : memref<1x!tpu.dma_semaphore, #tpu.memory_space<semaphore_mem>> -> memref<!tpu.dma_semaphore, #tpu.memory_space<semaphore_mem>>
    tpu.wait_dma2 semaphore(%316 : memref<!tpu.dma_semaphore, #tpu.memory_space<semaphore_mem>>) src(%312 : memref<128xf32, #tpu.memory_space<any>>) dst(%314 : memref<128xf32, #tpu.memory_space<vmem>>)
    %c0_i32_258 = arith.constant 0 : i32
    %c0_i32_259 = arith.constant 0 : i32
    %c0_i32_260 = arith.constant 0 : i32
    %c0_i32_261 = arith.constant 0 : i32
    %317 = tpu.memref_slice %arg4[%c0_i32_258, %c0_i32_261] : memref<64x128xf32, #tpu.memory_space<any>> -> memref<1x128xf32, #tpu.memory_space<any>>
    %318 = tpu.memref_squeeze %317 : memref<1x128xf32, #tpu.memory_space<any>> -> memref<128xf32, #tpu.memory_space<any>>
    %c0_i32_262 = arith.constant 0 : i32
    %319 = tpu.memref_slice %arg10[%9, %c0_i32_259, %c0_i32_260, %c0_i32_262] : memref<2x8x8x128xf32, #tpu.memory_space<vmem>> -> memref<1x1x1x128xf32, #tpu.memory_space<vmem>>
    %320 = tpu.memref_squeeze %319 : memref<1x1x1x128xf32, #tpu.memory_space<vmem>> -> memref<128xf32, #tpu.memory_space<vmem>>
    %321 = tpu.memref_slice %arg11[%9] : memref<2x!tpu.dma_semaphore, #tpu.memory_space<semaphore_mem>> -> memref<1x!tpu.dma_semaphore, #tpu.memory_space<semaphore_mem>>
    %322 = tpu.memref_squeeze %321 : memref<1x!tpu.dma_semaphore, #tpu.memory_space<semaphore_mem>> -> memref<!tpu.dma_semaphore, #tpu.memory_space<semaphore_mem>>
    tpu.wait_dma2 semaphore(%322 : memref<!tpu.dma_semaphore, #tpu.memory_space<semaphore_mem>>) src(%318 : memref<128xf32, #tpu.memory_space<any>>) dst(%320 : memref<128xf32, #tpu.memory_space<vmem>>)
    %c0_i32_263 = arith.constant 0 : i32
    %c0_i32_264 = arith.constant 0 : i32
    %c0_i32_265 = arith.constant 0 : i32
    %c0_i32_266 = arith.constant 0 : i32
    %323 = tpu.memref_slice %arg4[%c0_i32_263, %c0_i32_266] : memref<64x128xf32, #tpu.memory_space<any>> -> memref<1x128xf32, #tpu.memory_space<any>>
    %324 = tpu.memref_squeeze %323 : memref<1x128xf32, #tpu.memory_space<any>> -> memref<128xf32, #tpu.memory_space<any>>
    %c0_i32_267 = arith.constant 0 : i32
    %325 = tpu.memref_slice %arg10[%9, %c0_i32_264, %c0_i32_265, %c0_i32_267] : memref<2x8x8x128xf32, #tpu.memory_space<vmem>> -> memref<1x1x1x128xf32, #tpu.memory_space<vmem>>
    %326 = tpu.memref_squeeze %325 : memref<1x1x1x128xf32, #tpu.memory_space<vmem>> -> memref<128xf32, #tpu.memory_space<vmem>>
    %327 = tpu.memref_slice %arg11[%9] : memref<2x!tpu.dma_semaphore, #tpu.memory_space<semaphore_mem>> -> memref<1x!tpu.dma_semaphore, #tpu.memory_space<semaphore_mem>>
    %328 = tpu.memref_squeeze %327 : memref<1x!tpu.dma_semaphore, #tpu.memory_space<semaphore_mem>> -> memref<!tpu.dma_semaphore, #tpu.memory_space<semaphore_mem>>
    tpu.wait_dma2 semaphore(%328 : memref<!tpu.dma_semaphore, #tpu.memory_space<semaphore_mem>>) src(%324 : memref<128xf32, #tpu.memory_space<any>>) dst(%326 : memref<128xf32, #tpu.memory_space<vmem>>)
    %c0_i32_268 = arith.constant 0 : i32
    %c0_i32_269 = arith.constant 0 : i32
    %c0_i32_270 = arith.constant 0 : i32
    %c0_i32_271 = arith.constant 0 : i32
    %329 = tpu.memref_slice %arg4[%c0_i32_268, %c0_i32_271] : memref<64x128xf32, #tpu.memory_space<any>> -> memref<1x128xf32, #tpu.memory_space<any>>
    %330 = tpu.memref_squeeze %329 : memref<1x128xf32, #tpu.memory_space<any>> -> memref<128xf32, #tpu.memory_space<any>>
    %c0_i32_272 = arith.constant 0 : i32
    %331 = tpu.memref_slice %arg10[%9, %c0_i32_269, %c0_i32_270, %c0_i32_272] : memref<2x8x8x128xf32, #tpu.memory_space<vmem>> -> memref<1x1x1x128xf32, #tpu.memory_space<vmem>>
    %332 = tpu.memref_squeeze %331 : memref<1x1x1x128xf32, #tpu.memory_space<vmem>> -> memref<128xf32, #tpu.memory_space<vmem>>
    %333 = tpu.memref_slice %arg11[%9] : memref<2x!tpu.dma_semaphore, #tpu.memory_space<semaphore_mem>> -> memref<1x!tpu.dma_semaphore, #tpu.memory_space<semaphore_mem>>
    %334 = tpu.memref_squeeze %333 : memref<1x!tpu.dma_semaphore, #tpu.memory_space<semaphore_mem>> -> memref<!tpu.dma_semaphore, #tpu.memory_space<semaphore_mem>>
    tpu.wait_dma2 semaphore(%334 : memref<!tpu.dma_semaphore, #tpu.memory_space<semaphore_mem>>) src(%330 : memref<128xf32, #tpu.memory_space<any>>) dst(%332 : memref<128xf32, #tpu.memory_space<vmem>>)
    %c0_i32_273 = arith.constant 0 : i32
    %c0_i32_274 = arith.constant 0 : i32
    %c0_i32_275 = arith.constant 0 : i32
    %c0_i32_276 = arith.constant 0 : i32
    %335 = tpu.memref_slice %arg4[%c0_i32_273, %c0_i32_276] : memref<64x128xf32, #tpu.memory_space<any>> -> memref<1x128xf32, #tpu.memory_space<any>>
    %336 = tpu.memref_squeeze %335 : memref<1x128xf32, #tpu.memory_space<any>> -> memref<128xf32, #tpu.memory_space<any>>
    %c0_i32_277 = arith.constant 0 : i32
    %337 = tpu.memref_slice %arg10[%9, %c0_i32_274, %c0_i32_275, %c0_i32_277] : memref<2x8x8x128xf32, #tpu.memory_space<vmem>> -> memref<1x1x1x128xf32, #tpu.memory_space<vmem>>
    %338 = tpu.memref_squeeze %337 : memref<1x1x1x128xf32, #tpu.memory_space<vmem>> -> memref<128xf32, #tpu.memory_space<vmem>>
    %339 = tpu.memref_slice %arg11[%9] : memref<2x!tpu.dma_semaphore, #tpu.memory_space<semaphore_mem>> -> memref<1x!tpu.dma_semaphore, #tpu.memory_space<semaphore_mem>>
    %340 = tpu.memref_squeeze %339 : memref<1x!tpu.dma_semaphore, #tpu.memory_space<semaphore_mem>> -> memref<!tpu.dma_semaphore, #tpu.memory_space<semaphore_mem>>
    tpu.wait_dma2 semaphore(%340 : memref<!tpu.dma_semaphore, #tpu.memory_space<semaphore_mem>>) src(%336 : memref<128xf32, #tpu.memory_space<any>>) dst(%338 : memref<128xf32, #tpu.memory_space<vmem>>)
    %c0_i32_278 = arith.constant 0 : i32
    %c0_i32_279 = arith.constant 0 : i32
    %c0_i32_280 = arith.constant 0 : i32
    %c0_i32_281 = arith.constant 0 : i32
    %341 = tpu.memref_slice %arg4[%c0_i32_278, %c0_i32_281] : memref<64x128xf32, #tpu.memory_space<any>> -> memref<1x128xf32, #tpu.memory_space<any>>
    %342 = tpu.memref_squeeze %341 : memref<1x128xf32, #tpu.memory_space<any>> -> memref<128xf32, #tpu.memory_space<any>>
    %c0_i32_282 = arith.constant 0 : i32
    %343 = tpu.memref_slice %arg10[%9, %c0_i32_279, %c0_i32_280, %c0_i32_282] : memref<2x8x8x128xf32, #tpu.memory_space<vmem>> -> memref<1x1x1x128xf32, #tpu.memory_space<vmem>>
    %344 = tpu.memref_squeeze %343 : memref<1x1x1x128xf32, #tpu.memory_space<vmem>> -> memref<128xf32, #tpu.memory_space<vmem>>
    %345 = tpu.memref_slice %arg11[%9] : memref<2x!tpu.dma_semaphore, #tpu.memory_space<semaphore_mem>> -> memref<1x!tpu.dma_semaphore, #tpu.memory_space<semaphore_mem>>
    %346 = tpu.memref_squeeze %345 : memref<1x!tpu.dma_semaphore, #tpu.memory_space<semaphore_mem>> -> memref<!tpu.dma_semaphore, #tpu.memory_space<semaphore_mem>>
    tpu.wait_dma2 semaphore(%346 : memref<!tpu.dma_semaphore, #tpu.memory_space<semaphore_mem>>) src(%342 : memref<128xf32, #tpu.memory_space<any>>) dst(%344 : memref<128xf32, #tpu.memory_space<vmem>>)
    %c0_i32_283 = arith.constant 0 : i32
    %c0_i32_284 = arith.constant 0 : i32
    %c0_i32_285 = arith.constant 0 : i32
    %c0_i32_286 = arith.constant 0 : i32
    %347 = tpu.memref_slice %arg4[%c0_i32_283, %c0_i32_286] : memref<64x128xf32, #tpu.memory_space<any>> -> memref<1x128xf32, #tpu.memory_space<any>>
    %348 = tpu.memref_squeeze %347 : memref<1x128xf32, #tpu.memory_space<any>> -> memref<128xf32, #tpu.memory_space<any>>
    %c0_i32_287 = arith.constant 0 : i32
    %349 = tpu.memref_slice %arg10[%9, %c0_i32_284, %c0_i32_285, %c0_i32_287] : memref<2x8x8x128xf32, #tpu.memory_space<vmem>> -> memref<1x1x1x128xf32, #tpu.memory_space<vmem>>
    %350 = tpu.memref_squeeze %349 : memref<1x1x1x128xf32, #tpu.memory_space<vmem>> -> memref<128xf32, #tpu.memory_space<vmem>>
    %351 = tpu.memref_slice %arg11[%9] : memref<2x!tpu.dma_semaphore, #tpu.memory_space<semaphore_mem>> -> memref<1x!tpu.dma_semaphore, #tpu.memory_space<semaphore_mem>>
    %352 = tpu.memref_squeeze %351 : memref<1x!tpu.dma_semaphore, #tpu.memory_space<semaphore_mem>> -> memref<!tpu.dma_semaphore, #tpu.memory_space<semaphore_mem>>
    tpu.wait_dma2 semaphore(%352 : memref<!tpu.dma_semaphore, #tpu.memory_space<semaphore_mem>>) src(%348 : memref<128xf32, #tpu.memory_space<any>>) dst(%350 : memref<128xf32, #tpu.memory_space<vmem>>)
    %c0_i32_288 = arith.constant 0 : i32
    %c0_i32_289 = arith.constant 0 : i32
    %c0_i32_290 = arith.constant 0 : i32
    %c0_i32_291 = arith.constant 0 : i32
    %353 = tpu.memref_slice %arg4[%c0_i32_288, %c0_i32_291] : memref<64x128xf32, #tpu.memory_space<any>> -> memref<1x128xf32, #tpu.memory_space<any>>
    %354 = tpu.memref_squeeze %353 : memref<1x128xf32, #tpu.memory_space<any>> -> memref<128xf32, #tpu.memory_space<any>>
    %c0_i32_292 = arith.constant 0 : i32
    %355 = tpu.memref_slice %arg10[%9, %c0_i32_289, %c0_i32_290, %c0_i32_292] : memref<2x8x8x128xf32, #tpu.memory_space<vmem>> -> memref<1x1x1x128xf32, #tpu.memory_space<vmem>>
    %356 = tpu.memref_squeeze %355 : memref<1x1x1x128xf32, #tpu.memory_space<vmem>> -> memref<128xf32, #tpu.memory_space<vmem>>
    %357 = tpu.memref_slice %arg11[%9] : memref<2x!tpu.dma_semaphore, #tpu.memory_space<semaphore_mem>> -> memref<1x!tpu.dma_semaphore, #tpu.memory_space<semaphore_mem>>
    %358 = tpu.memref_squeeze %357 : memref<1x!tpu.dma_semaphore, #tpu.memory_space<semaphore_mem>> -> memref<!tpu.dma_semaphore, #tpu.memory_space<semaphore_mem>>
    tpu.wait_dma2 semaphore(%358 : memref<!tpu.dma_semaphore, #tpu.memory_space<semaphore_mem>>) src(%354 : memref<128xf32, #tpu.memory_space<any>>) dst(%356 : memref<128xf32, #tpu.memory_space<vmem>>)
    %c0_i32_293 = arith.constant 0 : i32
    %c0_i32_294 = arith.constant 0 : i32
    %c0_i32_295 = arith.constant 0 : i32
    %c0_i32_296 = arith.constant 0 : i32
    %359 = tpu.memref_slice %arg4[%c0_i32_293, %c0_i32_296] : memref<64x128xf32, #tpu.memory_space<any>> -> memref<1x128xf32, #tpu.memory_space<any>>
    %360 = tpu.memref_squeeze %359 : memref<1x128xf32, #tpu.memory_space<any>> -> memref<128xf32, #tpu.memory_space<any>>
    %c0_i32_297 = arith.constant 0 : i32
    %361 = tpu.memref_slice %arg10[%9, %c0_i32_294, %c0_i32_295, %c0_i32_297] : memref<2x8x8x128xf32, #tpu.memory_space<vmem>> -> memref<1x1x1x128xf32, #tpu.memory_space<vmem>>
    %362 = tpu.memref_squeeze %361 : memref<1x1x1x128xf32, #tpu.memory_space<vmem>> -> memref<128xf32, #tpu.memory_space<vmem>>
    %363 = tpu.memref_slice %arg11[%9] : memref<2x!tpu.dma_semaphore, #tpu.memory_space<semaphore_mem>> -> memref<1x!tpu.dma_semaphore, #tpu.memory_space<semaphore_mem>>
    %364 = tpu.memref_squeeze %363 : memref<1x!tpu.dma_semaphore, #tpu.memory_space<semaphore_mem>> -> memref<!tpu.dma_semaphore, #tpu.memory_space<semaphore_mem>>
    tpu.wait_dma2 semaphore(%364 : memref<!tpu.dma_semaphore, #tpu.memory_space<semaphore_mem>>) src(%360 : memref<128xf32, #tpu.memory_space<any>>) dst(%362 : memref<128xf32, #tpu.memory_space<vmem>>)
    %c0_i32_298 = arith.constant 0 : i32
    %c0_i32_299 = arith.constant 0 : i32
    %c0_i32_300 = arith.constant 0 : i32
    %c0_i32_301 = arith.constant 0 : i32
    %365 = tpu.memref_slice %arg4[%c0_i32_298, %c0_i32_301] : memref<64x128xf32, #tpu.memory_space<any>> -> memref<1x128xf32, #tpu.memory_space<any>>
    %366 = tpu.memref_squeeze %365 : memref<1x128xf32, #tpu.memory_space<any>> -> memref<128xf32, #tpu.memory_space<any>>
    %c0_i32_302 = arith.constant 0 : i32
    %367 = tpu.memref_slice %arg10[%9, %c0_i32_299, %c0_i32_300, %c0_i32_302] : memref<2x8x8x128xf32, #tpu.memory_space<vmem>> -> memref<1x1x1x128xf32, #tpu.memory_space<vmem>>
    %368 = tpu.memref_squeeze %367 : memref<1x1x1x128xf32, #tpu.memory_space<vmem>> -> memref<128xf32, #tpu.memory_space<vmem>>
    %369 = tpu.memref_slice %arg11[%9] : memref<2x!tpu.dma_semaphore, #tpu.memory_space<semaphore_mem>> -> memref<1x!tpu.dma_semaphore, #tpu.memory_space<semaphore_mem>>
    %370 = tpu.memref_squeeze %369 : memref<1x!tpu.dma_semaphore, #tpu.memory_space<semaphore_mem>> -> memref<!tpu.dma_semaphore, #tpu.memory_space<semaphore_mem>>
    tpu.wait_dma2 semaphore(%370 : memref<!tpu.dma_semaphore, #tpu.memory_space<semaphore_mem>>) src(%366 : memref<128xf32, #tpu.memory_space<any>>) dst(%368 : memref<128xf32, #tpu.memory_space<vmem>>)
    %c0_i32_303 = arith.constant 0 : i32
    %c0_i32_304 = arith.constant 0 : i32
    %c0_i32_305 = arith.constant 0 : i32
    %c0_i32_306 = arith.constant 0 : i32
    %371 = tpu.memref_slice %arg4[%c0_i32_303, %c0_i32_306] : memref<64x128xf32, #tpu.memory_space<any>> -> memref<1x128xf32, #tpu.memory_space<any>>
    %372 = tpu.memref_squeeze %371 : memref<1x128xf32, #tpu.memory_space<any>> -> memref<128xf32, #tpu.memory_space<any>>
    %c0_i32_307 = arith.constant 0 : i32
    %373 = tpu.memref_slice %arg10[%9, %c0_i32_304, %c0_i32_305, %c0_i32_307] : memref<2x8x8x128xf32, #tpu.memory_space<vmem>> -> memref<1x1x1x128xf32, #tpu.memory_space<vmem>>
    %374 = tpu.memref_squeeze %373 : memref<1x1x1x128xf32, #tpu.memory_space<vmem>> -> memref<128xf32, #tpu.memory_space<vmem>>
    %375 = tpu.memref_slice %arg11[%9] : memref<2x!tpu.dma_semaphore, #tpu.memory_space<semaphore_mem>> -> memref<1x!tpu.dma_semaphore, #tpu.memory_space<semaphore_mem>>
    %376 = tpu.memref_squeeze %375 : memref<1x!tpu.dma_semaphore, #tpu.memory_space<semaphore_mem>> -> memref<!tpu.dma_semaphore, #tpu.memory_space<semaphore_mem>>
    tpu.wait_dma2 semaphore(%376 : memref<!tpu.dma_semaphore, #tpu.memory_space<semaphore_mem>>) src(%372 : memref<128xf32, #tpu.memory_space<any>>) dst(%374 : memref<128xf32, #tpu.memory_space<vmem>>)
    %c0_i32_308 = arith.constant 0 : i32
    %c0_i32_309 = arith.constant 0 : i32
    %c0_i32_310 = arith.constant 0 : i32
    %c0_i32_311 = arith.constant 0 : i32
    %377 = tpu.memref_slice %arg4[%c0_i32_308, %c0_i32_311] : memref<64x128xf32, #tpu.memory_space<any>> -> memref<1x128xf32, #tpu.memory_space<any>>
    %378 = tpu.memref_squeeze %377 : memref<1x128xf32, #tpu.memory_space<any>> -> memref<128xf32, #tpu.memory_space<any>>
    %c0_i32_312 = arith.constant 0 : i32
    %379 = tpu.memref_slice %arg10[%9, %c0_i32_309, %c0_i32_310, %c0_i32_312] : memref<2x8x8x128xf32, #tpu.memory_space<vmem>> -> memref<1x1x1x128xf32, #tpu.memory_space<vmem>>
    %380 = tpu.memref_squeeze %379 : memref<1x1x1x128xf32, #tpu.memory_space<vmem>> -> memref<128xf32, #tpu.memory_space<vmem>>
    %381 = tpu.memref_slice %arg11[%9] : memref<2x!tpu.dma_semaphore, #tpu.memory_space<semaphore_mem>> -> memref<1x!tpu.dma_semaphore, #tpu.memory_space<semaphore_mem>>
    %382 = tpu.memref_squeeze %381 : memref<1x!tpu.dma_semaphore, #tpu.memory_space<semaphore_mem>> -> memref<!tpu.dma_semaphore, #tpu.memory_space<semaphore_mem>>
    tpu.wait_dma2 semaphore(%382 : memref<!tpu.dma_semaphore, #tpu.memory_space<semaphore_mem>>) src(%378 : memref<128xf32, #tpu.memory_space<any>>) dst(%380 : memref<128xf32, #tpu.memory_space<vmem>>)
    %c0_i32_313 = arith.constant 0 : i32
    %c0_i32_314 = arith.constant 0 : i32
    %c0_i32_315 = arith.constant 0 : i32
    %c0_i32_316 = arith.constant 0 : i32
    %383 = tpu.memref_slice %arg4[%c0_i32_313, %c0_i32_316] : memref<64x128xf32, #tpu.memory_space<any>> -> memref<1x128xf32, #tpu.memory_space<any>>
    %384 = tpu.memref_squeeze %383 : memref<1x128xf32, #tpu.memory_space<any>> -> memref<128xf32, #tpu.memory_space<any>>
    %c0_i32_317 = arith.constant 0 : i32
    %385 = tpu.memref_slice %arg10[%9, %c0_i32_314, %c0_i32_315, %c0_i32_317] : memref<2x8x8x128xf32, #tpu.memory_space<vmem>> -> memref<1x1x1x128xf32, #tpu.memory_space<vmem>>
    %386 = tpu.memref_squeeze %385 : memref<1x1x1x128xf32, #tpu.memory_space<vmem>> -> memref<128xf32, #tpu.memory_space<vmem>>
    %387 = tpu.memref_slice %arg11[%9] : memref<2x!tpu.dma_semaphore, #tpu.memory_space<semaphore_mem>> -> memref<1x!tpu.dma_semaphore, #tpu.memory_space<semaphore_mem>>
    %388 = tpu.memref_squeeze %387 : memref<1x!tpu.dma_semaphore, #tpu.memory_space<semaphore_mem>> -> memref<!tpu.dma_semaphore, #tpu.memory_space<semaphore_mem>>
    tpu.wait_dma2 semaphore(%388 : memref<!tpu.dma_semaphore, #tpu.memory_space<semaphore_mem>>) src(%384 : memref<128xf32, #tpu.memory_space<any>>) dst(%386 : memref<128xf32, #tpu.memory_space<vmem>>)
    %c0_i32_318 = arith.constant 0 : i32
    %c0_i32_319 = arith.constant 0 : i32
    %c0_i32_320 = arith.constant 0 : i32
    %c0_i32_321 = arith.constant 0 : i32
    %389 = tpu.memref_slice %arg4[%c0_i32_318, %c0_i32_321] : memref<64x128xf32, #tpu.memory_space<any>> -> memref<1x128xf32, #tpu.memory_space<any>>
    %390 = tpu.memref_squeeze %389 : memref<1x128xf32, #tpu.memory_space<any>> -> memref<128xf32, #tpu.memory_space<any>>
    %c0_i32_322 = arith.constant 0 : i32
    %391 = tpu.memref_slice %arg10[%9, %c0_i32_319, %c0_i32_320, %c0_i32_322] : memref<2x8x8x128xf32, #tpu.memory_space<vmem>> -> memref<1x1x1x128xf32, #tpu.memory_space<vmem>>
    %392 = tpu.memref_squeeze %391 : memref<1x1x1x128xf32, #tpu.memory_space<vmem>> -> memref<128xf32, #tpu.memory_space<vmem>>
    %393 = tpu.memref_slice %arg11[%9] : memref<2x!tpu.dma_semaphore, #tpu.memory_space<semaphore_mem>> -> memref<1x!tpu.dma_semaphore, #tpu.memory_space<semaphore_mem>>
    %394 = tpu.memref_squeeze %393 : memref<1x!tpu.dma_semaphore, #tpu.memory_space<semaphore_mem>> -> memref<!tpu.dma_semaphore, #tpu.memory_space<semaphore_mem>>
    tpu.wait_dma2 semaphore(%394 : memref<!tpu.dma_semaphore, #tpu.memory_space<semaphore_mem>>) src(%390 : memref<128xf32, #tpu.memory_space<any>>) dst(%392 : memref<128xf32, #tpu.memory_space<vmem>>)
    %c0_i32_323 = arith.constant 0 : i32
    %c0_i32_324 = arith.constant 0 : i32
    %c0_i32_325 = arith.constant 0 : i32
    %c0_i32_326 = arith.constant 0 : i32
    %395 = tpu.memref_slice %arg4[%c0_i32_323, %c0_i32_326] : memref<64x128xf32, #tpu.memory_space<any>> -> memref<1x128xf32, #tpu.memory_space<any>>
    %396 = tpu.memref_squeeze %395 : memref<1x128xf32, #tpu.memory_space<any>> -> memref<128xf32, #tpu.memory_space<any>>
    %c0_i32_327 = arith.constant 0 : i32
    %397 = tpu.memref_slice %arg10[%9, %c0_i32_324, %c0_i32_325, %c0_i32_327] : memref<2x8x8x128xf32, #tpu.memory_space<vmem>> -> memref<1x1x1x128xf32, #tpu.memory_space<vmem>>
    %398 = tpu.memref_squeeze %397 : memref<1x1x1x128xf32, #tpu.memory_space<vmem>> -> memref<128xf32, #tpu.memory_space<vmem>>
    %399 = tpu.memref_slice %arg11[%9] : memref<2x!tpu.dma_semaphore, #tpu.memory_space<semaphore_mem>> -> memref<1x!tpu.dma_semaphore, #tpu.memory_space<semaphore_mem>>
    %400 = tpu.memref_squeeze %399 : memref<1x!tpu.dma_semaphore, #tpu.memory_space<semaphore_mem>> -> memref<!tpu.dma_semaphore, #tpu.memory_space<semaphore_mem>>
    tpu.wait_dma2 semaphore(%400 : memref<!tpu.dma_semaphore, #tpu.memory_space<semaphore_mem>>) src(%396 : memref<128xf32, #tpu.memory_space<any>>) dst(%398 : memref<128xf32, #tpu.memory_space<vmem>>)
    %c0 = arith.constant 0 : index
    %c0_328 = arith.constant 0 : index
    %401 = vector.load %arg3[%c0, %c0_328] : memref<8x8xf32, #tpu.memory_space<vmem>>, vector<8x8xf32>
    %402 = arith.index_cast %9 : i32 to index
    %c0_329 = arith.constant 0 : index
    %c0_330 = arith.constant 0 : index
    %c0_331 = arith.constant 0 : index
    %403 = vector.load %arg10[%402, %c0_329, %c0_330, %c0_331] : memref<2x8x8x128xf32, #tpu.memory_space<vmem>>, vector<1x8x8x128xf32>
    %404 = vector.shape_cast %403 : vector<1x8x8x128xf32> to vector<8x8x128xf32>
    %405 = arith.truncf %404 : vector<8x8x128xf32> to vector<8x8x128xbf16>
    %406 = arith.truncf %401 : vector<8x8xf32> to vector<8x8xbf16>
    %407 = vector.shape_cast %406 : vector<8x8xbf16> to vector<8x1x8xbf16>
    "tpu.trace_start"() <{level = 10 : i32, message = "bqs,bsd->bqd"}> : () -> ()
    %cst = arith.constant dense<0.000000e+00> : vector<8x1x128xf32>
    %408 = tpu.matmul %407, %405, %cst {dimension_numbers = #tpu.dot_dimension_numbers<[2], [1], [1], [2], [0, 0, 0, 1, 1, 2], [0], [0]>} : vector<8x1x8xbf16>, vector<8x8x128xbf16>, vector<8x1x128xf32> -> vector<8x1x128xf32>
    "tpu.trace_stop"() : () -> ()
    %c0_332 = arith.constant 0 : index
    %c0_333 = arith.constant 0 : index
    %409 = vector.load %arg12[%c0_332, %c0_333] : memref<8x128xf32, #tpu.memory_space<vmem>>, vector<8x128xf32>
    %410 = vector.shape_cast %408 : vector<8x1x128xf32> to vector<8x128xf32>
    %411 = arith.addf %409, %410 : vector<8x128xf32>
    %c0_334 = arith.constant 0 : index
    %c0_335 = arith.constant 0 : index
    %412 = vector.load %arg12[%c0_334, %c0_335] : memref<8x128xf32, #tpu.memory_space<vmem>>, vector<8x128xf32>
    tpu.vector_store %arg12[%c0_334, %c0_335], %411 {strides = array<i32>} : memref<8x128xf32, #tpu.memory_space<vmem>>, vector<8x128xf32>,
    %c0_336 = arith.constant 0 : index
    %c0_337 = arith.constant 0 : index
    %413 = vector.load %arg13[%c0_336, %c0_337] : memref<8x1xf32, #tpu.memory_space<vmem>>, vector<8x1xf32>
    %cst_338 = arith.constant dense<0.000000e+00> : vector<8xf32>
    %414 = vector.multi_reduction <add>, %401, %cst_338 [1] : vector<8x8xf32> to vector<8xf32>
    %415 = vector.shape_cast %414 : vector<8xf32> to vector<8x1xf32>
    %416 = arith.addf %413, %415 : vector<8x1xf32>
    %c0_339 = arith.constant 0 : index
    %c0_340 = arith.constant 0 : index
    %417 = vector.load %arg13[%c0_339, %c0_340] : memref<8x1xf32, #tpu.memory_space<vmem>>, vector<8x1xf32>
    tpu.vector_store %arg13[%c0_339, %c0_340], %416 {strides = array<i32>} : memref<8x1xf32, #tpu.memory_space<vmem>>, vector<8x1xf32>,
    %c0_i32_341 = arith.constant 0 : i32
    %418 = arith.cmpi eq, %arg1, %c0_i32_341 : i32
    %419 = arith.extui %418 : i1 to i32
    %c0_i32_342 = arith.constant 0 : i32
    %420 = arith.cmpi ne, %419, %c0_i32_342 : i32
    scf.if %420 {
      %c0_343 = arith.constant 0 : index
      %c0_344 = arith.constant 0 : index
      %421 = vector.load %arg13[%c0_343, %c0_344] : memref<8x1xf32, #tpu.memory_space<vmem>>, vector<8x1xf32>
      %422 = tpu.reciprocal %421 {approx = true} : vector<8x1xf32> -> vector<8x1xf32>
      %c0_345 = arith.constant 0 : index
      %c0_346 = arith.constant 0 : index
      %423 = vector.load %arg12[%c0_345, %c0_346] : memref<8x128xf32, #tpu.memory_space<vmem>>, vector<8x128xf32>
      %424 = vector.broadcast %422 : vector<8x1xf32> to vector<8x128xf32>
      %425 = arith.mulf %423, %424 : vector<8x128xf32>
      %426 = arith.truncf %425 : vector<8x128xf32> to vector<8x128xbf16>
      %c0_347 = arith.constant 0 : index
      %c0_348 = arith.constant 0 : index
      %427 = vector.load %arg5[%c0_347, %c0_348] : memref<128x128xbf16, #tpu.memory_space<vmem>>, vector<128x128xbf16>
      %cst_349 = arith.constant dense<0.000000e+00> : vector<8x128xf32>
      %428 = tpu.matmul %426, %427, %cst_349 {dimension_numbers = #tpu.dot_dimension_numbers<[1], [0], [0], [1], [0, 0, 1, 1], [], []>} : vector<8x128xbf16>, vector<128x128xbf16>, vector<8x128xf32> -> vector<8x128xf32>
      %c0_350 = arith.constant 0 : index
      %c0_351 = arith.constant 0 : index
      %429 = vector.load %arg6[%c0_350, %c0_351] : memref<1x128xf32, #tpu.memory_space<vmem>>, vector<1x128xf32>
      %430 = vector.broadcast %429 : vector<1x128xf32> to vector<8x128xf32>
      %431 = arith.addf %428, %430 : vector<8x128xf32>
      %cst_352 = arith.constant 0.000000e+00 : f32
      %432 = vector.broadcast %cst_352 : f32 to vector<8x128xf32>
      %433 = arith.maximumf %431, %432 : vector<8x128xf32>
      %434 = arith.truncf %433 : vector<8x128xf32> to vector<8x128xbf16>
      %c0_353 = arith.constant 0 : index
      %c0_354 = arith.constant 0 : index
      %435 = vector.load %arg7[%c0_353, %c0_354] : memref<128x128xbf16, #tpu.memory_space<vmem>>, vector<128x128xbf16>
      %cst_355 = arith.constant dense<0.000000e+00> : vector<8x128xf32>
      %436 = tpu.matmul %434, %435, %cst_355 {dimension_numbers = #tpu.dot_dimension_numbers<[1], [0], [0], [1], [0, 0, 1, 1], [], []>} : vector<8x128xbf16>, vector<128x128xbf16>, vector<8x128xf32> -> vector<8x128xf32>
      %c0_356 = arith.constant 0 : index
      %c0_357 = arith.constant 0 : index
      %437 = vector.load %arg8[%c0_356, %c0_357] : memref<1x128xf32, #tpu.memory_space<vmem>>, vector<1x128xf32>
      %438 = vector.broadcast %437 : vector<1x128xf32> to vector<8x128xf32>
      %439 = arith.addf %436, %438 : vector<8x128xf32>
      %c0_358 = arith.constant 0 : index
      %c0_359 = arith.constant 0 : index
      %440 = vector.load %arg9[%c0_358, %c0_359] : memref<8x128xf32, #tpu.memory_space<vmem>>, vector<8x128xf32>
      tpu.vector_store %arg9[%c0_358, %c0_359], %439 {strides = array<i32>} : memref<8x128xf32, #tpu.memory_space<vmem>>, vector<8x128xf32>,
    } else {
    }
    return
  }
  func.func @transform_0(%arg0: i32, %arg1: i32, %arg2: memref<8x8xi32, #tpu.memory_space<smem>>) -> (i32, i32) {
    %c0_i32 = arith.constant 0 : i32
    return %arg0, %arg1 : i32, i32
  }
  func.func @transform_2(%arg0: i32, %arg1: i32, %arg2: memref<8x8xi32, #tpu.memory_space<smem>>) -> (i32, i32) {
    %c0_i32 = arith.constant 0 : i32
    %c0_i32_0 = arith.constant 0 : i32
    %c0_i32_1 = arith.constant 0 : i32
    return %c0_i32, %c0_i32_0 : i32, i32
  }
  func.func @transform_3(%arg0: i32, %arg1: i32, %arg2: memref<8x8xi32, #tpu.memory_space<smem>>) -> (i32, i32) {
    %c0_i32 = arith.constant 0 : i32
    %c0_i32_0 = arith.constant 0 : i32
    %c0_i32_1 = arith.constant 0 : i32
    return %c0_i32, %c0_i32_0 : i32, i32
  }
  func.func @transform_4(%arg0: i32, %arg1: i32, %arg2: memref<8x8xi32, #tpu.memory_space<smem>>) -> (i32, i32) {
    %c0_i32 = arith.constant 0 : i32
    %c0_i32_0 = arith.constant 0 : i32
    %c0_i32_1 = arith.constant 0 : i32
    return %c0_i32, %c0_i32_0 : i32, i32
  }
  func.func @transform_5(%arg0: i32, %arg1: i32, %arg2: memref<8x8xi32, #tpu.memory_space<smem>>) -> (i32, i32) {
    %c0_i32 = arith.constant 0 : i32
    %c0_i32_0 = arith.constant 0 : i32
    %c0_i32_1 = arith.constant 0 : i32
    return %c0_i32, %c0_i32_0 : i32, i32
  }
  func.func @transform_6(%arg0: i32, %arg1: i32, %arg2: memref<8x8xi32, #tpu.memory_space<smem>>) -> (i32, i32) {
    %c0_i32 = arith.constant 0 : i32
    %c0_i32_0 = arith.constant 0 : i32
    return %arg0, %c0_i32 : i32, i32
  }
}

</mosaic_0001>

<bundles_post_ra>
// kernel: tpu_custom_call.1
= control target key start
LH: loop header
LB: loop body
LE: loop exit
PB: predicated region body
PF: predicated region fallthrough
CT: control target
= control target key end

     0   :  { %s7587_s0 = inlined_call_operand.hbm [shape: s32[8,8], index: 0, kind: input, shape index: {}]   ;;  %s7588_s1 = inlined_call_operand.hbm [shape: f32[8,8], index: 1, kind: input, shape index: {}]   ;;  %s7589_s2 = inlined_call_operand.hbm [shape: f32[64,128], index: 2, kind: input, shape index: {}]   ;;  %s7590_s3 = inlined_call_operand.hbm [shape: bf16[128,128], index: 3, kind: input, shape index: {}]   ;;  %s7591_s4 = inlined_call_operand.vmem [shape: f32[1,128], index: 4, kind: input, shape index: {}]   ;;  %s7592_s5 = inlined_call_operand.hbm [shape: bf16[128,128], index: 5, kind: input, shape index: {}]   ;;  %s7593_s6 = inlined_call_operand.vmem [shape: f32[1,128], index: 6, kind: input, shape index: {}]   ;;  %s7594_s7 = inlined_call_operand.hbm [shape: f32[8,128], index: 7, kind: output, shape index: {}]  }
   0x1   :  { %s4663_s26 = scalar_lea.hbm %s7587_s0, 128 }
   0x2   :  { %p4664_p0 = scmp.ne.s32.totalorder %s7587_s0, %s4663_s26  ;;  %p4667_p1 = scmp.lt.u32.totalorder %s4663_s26, %s7587_s0 }
   0x4   :  { %p4669_p2 = pnand %p4667_p1, %p4664_p0 }
   0x6   :  { %4672 = shalt.err (!%p4669_p2)  }
   0x7   :  { %s6307_s8 = smov [#allocation7]  }
   0x8   :  { %13 = dma.hbm_to_smem %s7587_s0, 128, %s6307_s8, [#allocation6] }
   0x9   :  { %6297 = dma.done.wait [#allocation6], 128 }
   0xa   :  { %6298 = vsyncadd [#allocation6], 4294967168 }
   0xb   :  { %15 = sfence }
   0xc   :  { %16 = vsyncpa [#allocation9], 0 }
   0xd   :  { %17 = vsyncpa [#allocation12], 0 }
   0xe   :  { %18 = vsyncpa [#allocation10], 0  ;;  %s6308_s11 = smov [#allocation11]   ;;  %s4673_s15 = scalar_lea.hbm %s7590_s3, 1024 }
   0xf   :  { %s34_s12 = sshll.u32 %s6308_s11, 4  ;;  %p4674_p3 = scmp.ne.s32.totalorder %s7590_s3, %s4673_s15  ;;  %s35_s12 = int_to_ptr.vmem [resolvable:$true] %s34_s12 }
  0x10   :  { %p4677_p4 = scmp.lt.u32.totalorder %s4673_s15, %s7590_s3 }
  0x12   :  { %p4679_p5 = pnand %p4677_p4, %p4674_p3 }
  0x14   :  { %4682 = shalt.err (!%p4679_p5)
}
  0x15   :  { %s4683_s0 = scalar_lea.vmem %s35_s12, 1024  ;;  %p4688_p7 = scmp.lt.s32.totalorder %s35_s12, %s35_s12 }
  0x16   :  { %p4684_p6 = scmp.ne.s32.totalorder %s35_s12, %s4683_s0  ;;  %p4689_p8 = scmp.lt.s32.totalorder %s4683_s0, %s4683_s0 }
  0x18   :  { %p4690_p9 = por %p4689_p8, %p4688_p7 }
  0x1a   :  { %p4691_p10 = pnand %p4690_p9, %p4684_p6 }
  0x1c   :  { %4694 = shalt.err (!%p4691_p10)
}
  0x1d   :  { %s6309_s20 = smov 64   ;;  %s6310_s21 = smov 4  }
  0x1e   :  { %40 = dma.hbm_to_vmem [thread:$0]  %s7590_s3, 1024, %s35_s12, [#allocation12], %s6309_s20, %s6309_s20, %s6310_s21  }
  0x1f   :  { %s6311_s24 = smov [#allocation8]   ;;  %s6312_s26 = smov [#allocation13]  }
  0x20   :  { %s25_s25 = sshll.u32 %s6311_s24, 4  ;;  %s48_s27 = sshll.u32 %s6312_s26, 4  ;;  %s26_s25 = int_to_ptr.vmem [resolvable:$true] %s25_s25  ;;  %s49_s27 = int_to_ptr.vmem [resolvable:$true] %s48_s27 }
  0x21   :  { %s4695_s30 = scalar_lea.hbm %s7588_s1, 128 }
  0x22   :  { %p4696_p11 = scmp.ne.s32.totalorder %s7588_s1, %s4695_s30  ;;  %p4699_p12 = scmp.lt.u32.totalorder %s4695_s30, %s7588_s1 }
  0x24   :  { %p4701_p13 = pnand %p4699_p12, %p4696_p11 }
  0x26   :  { %4704 = shalt.err (!%p4701_p13)
}
  0x27   :  { %s4705_s3 = scalar_lea.vmem %s26_s25, 128  ;;  %p4710_p1 = scmp.lt.s32.totalorder %s26_s25, %s26_s25 }
  0x28   :  { %p4706_p0 = scmp.ne.s32.totalorder %s26_s25, %s4705_s3  ;;  %p4711_p2 = scmp.lt.s32.totalorder %s4705_s3, %s4705_s3 }
  0x2a   :  { %p4712_p3 = por %p4711_p2, %p4710_p1 }
  0x2c   :  { %p4713_p4 = pnand %p4712_p3, %p4706_p0 }
  0x2e   :  { %4716 = shalt.err (!%p4713_p4)
}
  0x2f   :  { %28 = dma.hbm_to_vmem [thread:$0]  %s7588_s1, 128, %s26_s25, [#allocation9]  }
  0x30   :  { %s4717_s16 = scalar_lea.hbm %s7592_s5, 1024 }
  0x31   :  { %p4718_p5 = scmp.ne.s32.totalorder %s7592_s5, %s4717_s16  ;;  %p4721_p6 = scmp.lt.u32.totalorder %s4717_s16, %s7592_s5 }
  0x33   :  { %p4723_p7 = pnand %p4721_p6, %p4718_p5 }
  0x35   :  { %4726 = shalt.err (!%p4723_p7)
}
  0x36   :  { %s4727_s22 = scalar_lea.vmem %s49_s27, 1024  ;;  %p4732_p9 = scmp.lt.s32.totalorder %s49_s27, %s49_s27 }
  0x37   :  { %p4728_p8 = scmp.ne.s32.totalorder %s49_s27, %s4727_s22  ;;  %p4733_p10 = scmp.lt.s32.totalorder %s4727_s22, %s4727_s22 }
  0x39   :  { %p4734_p11 = por %p4733_p10, %p4732_p9 }
  0x3b   :  { %p4735_p12 = pnand %p4734_p11, %p4728_p8 }
  0x3d   :  { %4738 = shalt.err (!%p4735_p12)
}
  0x3e   :  { %54 = dma.hbm_to_vmem [thread:$0]  %s7592_s5, 1024, %s49_s27, [#allocation12], %s6309_s20, %s6309_s20, %s6310_s21  }
  0x3f   :  { %6299 = dma.done.wait [#allocation9], 128  }
  0x40   :  { %6300 = vsyncadd [#allocation9], 4294967168 }
  0x41   :  { %6301 = dma.done.wait [#allocation12], 2048  }
  0x42   :  { %6302 = vsyncadd [#allocation12], 4294965248  ;;  %s91_s24 = sld [smem:[#allocation7]]  ;;  %s6313_s25 = smov [#allocation2]  }
  0x43   :  { %s104_s26 = sshll.u32 %s6313_s25, 4  ;;  %s6478_s28 = sld [smem:[#allocation7 + $0x1]]  ;;  %s6476_s26 = int_to_ptr.vmem [resolvable:$true] %s104_s26 }
  0x44   :  { %s6314_s29 = smov [#allocation2 + $0x1]   ;;  %s6480_s8 = sld [smem:[#allocation7 + $0x2]] }
  0x45   :  { %s128_s30 = sshll.u32 %s6314_s29, 4  ;;  %s6315_s9 = smov [#allocation2 + $0x2]   ;;  %s6482_s30 = int_to_ptr.vmem [resolvable:$true] %s128_s30 }
  0x46   :  { %s152_s5 = sshll.u32 %s6315_s9, 4  ;;  %s6484_s20 = sld [smem:[#allocation7 + $0x3]]  ;;  %s6486_s5 = int_to_ptr.vmem [resolvable:$true] %s152_s5 }
  0x47   :  { %s6316_s27 = smov [#allocation2 + $0x3]   ;;  %s6497_s17 = scalar_lea.hbm %s7589_s2, 1024 }
  0x48   :  { %s4160_s21 = sshll.u32 %s91_s24, 4  ;;  %s6488_s10 = sshll.u32 %s6316_s27, 4  ;;  %s177_s10 = int_to_ptr.vmem [resolvable:$true] %s6488_s10 }
  0x49   :  { %s93_s12 = scalar_lea.hbm %s7589_s2, %s4160_s21  ;;  %s4162_s13 = sshll.u32 %s6478_s28, 4 }
  0x4a   :  { %s4739_s14 = scalar_lea.hbm %s93_s12, 16  ;;  %p4742_p0 = scmp.lt.u32.totalorder %s93_s12, %s7589_s2 }
  0x4b   :  { %p4740_p13 = scmp.ne.s32.totalorder %s93_s12, %s4739_s14  ;;  %p4743_p1 = scmp.lt.u32.totalorder %s6497_s17, %s4739_s14 }
  0x4c   :  { %p4745_p3 = scmp.lt.u32.totalorder %s4739_s14, %s93_s12 }
  0x4d   :  { %p4744_p2 = por %p4743_p1, %p4742_p0 }
  0x4f   :  { %p4746_p4 = por %p4745_p3, %p4744_p2 }
  0x51   :  { %p4747_p5 = pnand %p4746_p4, %p4740_p13 }
  0x53   :  { %4750 = shalt.err (!%p4747_p5)  }
  0x54   :  { %s4751_s0 = scalar_lea.vmem %s6476_s26, 16  ;;  %s6506_s22 = scalar_lea.vmem %s6476_s26, 2048 }
  0x55   :  { %p4752_p6 = scmp.ne.s32.totalorder %s6476_s26, %s4751_s0  ;;  %p4756_p7 = scmp.lt.s32.totalorder %s6476_s26, %s6476_s26 }
  0x56   :  { %p4757_p8 = scmp.lt.s32.totalorder %s6506_s22, %s4751_s0 }
  0x58   :  { %p4758_p9 = por %p4757_p8, %p4756_p7 }
  0x5a   :  { %p4759_p10 = pnand %p4758_p9, %p4752_p6 }
  0x5c   :  { %4762 = shalt.err (!%p4759_p10)  }
  0x5d   :  { %107 = dma.hbm_to_vmem [thread:$0]  %s93_s12, 16, %s6476_s26, [#allocation3] }
  0x5e   :  { %s118_s24 = scalar_lea.hbm %s7589_s2, %s4162_s13  ;;  %s4164_s25 = sshll.u32 %s6480_s8, 4 }
  0x5f   :  { %s4763_s28 = scalar_lea.hbm %s118_s24, 16  ;;  %p4766_p12 = scmp.lt.u32.totalorder %s118_s24, %s7589_s2 }
  0x60   :  { %p4764_p11 = scmp.ne.s32.totalorder %s118_s24, %s4763_s28  ;;  %p4767_p13 = scmp.lt.u32.totalorder %s6497_s17, %s4763_s28 }
  0x61   :  { %p4769_p1 = scmp.lt.u32.totalorder %s4763_s28, %s118_s24 }
  0x62   :  { %p4768_p0 = por %p4767_p13, %p4766_p12 }
  0x64   :  { %p4770_p2 = por %p4769_p1, %p4768_p0 }
  0x66   :  { %p4771_p3 = pnand %p4770_p2, %p4764_p11 }
  0x68   :  { %4774 = shalt.err (!%p4771_p3)  }
  0x69   :  { %s4775_s21 = scalar_lea.vmem %s6482_s30, 16  ;;  %p4780_p5 = scmp.lt.s32.totalorder %s6482_s30, %s6476_s26 }
  0x6a   :  { %p4776_p4 = scmp.ne.s32.totalorder %s6482_s30, %s4775_s21  ;;  %p4781_p6 = scmp.lt.s32.totalorder %s6506_s22, %s4775_s21 }
  0x6c   :  { %p4782_p7 = por %p4781_p6, %p4780_p5 }
  0x6e   :  { %p4783_p8 = pnand %p4782_p7, %p4776_p4 }
  0x70   :  { %4786 = shalt.err (!%p4783_p8)  }
  0x71   :  { %131 = dma.hbm_to_vmem [thread:$0]  %s118_s24, 16, %s6482_s30, [#allocation3] }
  0x72   :  { %s142_s11 = scalar_lea.hbm %s7589_s2, %s4164_s25  ;;  %s4166_s3 = sshll.u32 %s6484_s20, 4 }
  0x73   :  { %s4787_s12 = scalar_lea.hbm %s142_s11, 16  ;;  %p4790_p10 = scmp.lt.u32.totalorder %s142_s11, %s7589_s2 }
  0x74   :  { %p4788_p9 = scmp.ne.s32.totalorder %s142_s11, %s4787_s12  ;;  %p4791_p11 = scmp.lt.u32.totalorder %s6497_s17, %s4787_s12 }
  0x75   :  { %p4793_p13 = scmp.lt.u32.totalorder %s4787_s12, %s142_s11 }
  0x76   :  { %p4792_p12 = por %p4791_p11, %p4790_p10 }
  0x78   :  { %p4794_p0 = por %p4793_p13, %p4792_p12 }
  0x7a   :  { %p4795_p1 = pnand %p4794_p0, %p4788_p9 }
  0x7c   :  { %4798 = shalt.err (!%p4795_p1)  }
  0x7d   :  { %s4799_s30 = scalar_lea.vmem %s6486_s5, 16  ;;  %p4804_p3 = scmp.lt.s32.totalorder %s6486_s5, %s6476_s26 }
  0x7e   :  { %p4800_p2 = scmp.ne.s32.totalorder %s6486_s5, %s4799_s30  ;;  %p4805_p4 = scmp.lt.s32.totalorder %s6506_s22, %s4799_s30 }
  0x80   :  { %p4806_p5 = por %p4805_p4, %p4804_p3 }
  0x82   :  { %p4807_p6 = pnand %p4806_p5, %p4800_p2 }
  0x84   :  { %4810 = shalt.err (!%p4807_p6)  }
  0x85   :  { %155 = dma.hbm_to_vmem [thread:$0]  %s142_s11, 16, %s6486_s5, [#allocation3] }
  0x86   :  { %s166_s16 = scalar_lea.hbm %s7589_s2, %s4166_s3 }
  0x87   :  { %s4811_s18 = scalar_lea.hbm %s166_s16, 16  ;;  %p4814_p8 = scmp.lt.u32.totalorder %s166_s16, %s7589_s2 }
  0x88   :  { %p4812_p7 = scmp.ne.s32.totalorder %s166_s16, %s4811_s18  ;;  %p4815_p9 = scmp.lt.u32.totalorder %s6497_s17, %s4811_s18 }
  0x89   :  { %p4817_p11 = scmp.lt.u32.totalorder %s4811_s18, %s166_s16 }
  0x8a   :  { %p4816_p10 = por %p4815_p9, %p4814_p8 }
  0x8c   :  { %p4818_p12 = por %p4817_p11, %p4816_p10 }
  0x8e   :  { %p4819_p13 = pnand %p4818_p12, %p4812_p7 }
  0x90   :  { %4822 = shalt.err (!%p4819_p13)  }
  0x91   :  { %s4823_s1 = scalar_lea.vmem %s177_s10, 16  ;;  %p4828_p1 = scmp.lt.s32.totalorder %s177_s10, %s6476_s26 }
  0x92   :  { %p4824_p0 = scmp.ne.s32.totalorder %s177_s10, %s4823_s1  ;;  %p4829_p2 = scmp.lt.s32.totalorder %s6506_s22, %s4823_s1 }
  0x94   :  { %p4830_p3 = por %p4829_p2, %p4828_p1 }
  0x96   :  { %p4831_p4 = pnand %p4830_p3, %p4824_p0 }
  0x98   :  { %4834 = shalt.err (!%p4831_p4)  }
  0x99   :  { %179 = dma.hbm_to_vmem [thread:$0]  %s166_s16, 16, %s177_s10, [#allocation3] }
  0x9a   :  { %s4167_s5 = sld [smem:[#allocation7 + $0x4]]  ;;  %s6317_s23 = smov [#allocation2 + $0x4]  }
  0x9b   :  { %s200_s24 = sshll.u32 %s6317_s23, 4  ;;  %s6550_s25 = sld [smem:[#allocation7 + $0x5]]  ;;  %s201_s24 = int_to_ptr.vmem [resolvable:$true] %s200_s24 }
  0x9c   :  { %s6318_s28 = smov [#allocation2 + $0x5]   ;;  %s6552_s9 = sld [smem:[#allocation7 + $0x6]] }
  0x9d   :  { %s224_s29 = sshll.u32 %s6318_s28, 4  ;;  %s6319_s21 = smov [#allocation2 + $0x6]   ;;  %s6554_s29 = int_to_ptr.vmem [resolvable:$true] %s224_s29 }
  0x9e   :  { %s248_s8 = sshll.u32 %s6319_s21, 4  ;;  %s6556_s27 = sld [smem:[#allocation7 + $0x7]]  ;;  %s6558_s8 = int_to_ptr.vmem [resolvable:$true] %s248_s8 }
  0xa0   :  { %s4168_s11 = sshll.u32 %s4167_s5, 4 }
  0xa1   :  { %s190_s12 = scalar_lea.hbm %s7589_s2, %s4168_s11  ;;  %s4170_s13 = sshll.u32 %s6550_s25, 4 }
  0xa2   :  { %s4835_s14 = scalar_lea.hbm %s190_s12, 16  ;;  %p4838_p6 = scmp.lt.u32.totalorder %s190_s12, %s7589_s2 }
  0xa3   :  { %p4836_p5 = scmp.ne.s32.totalorder %s190_s12, %s4835_s14  ;;  %p4839_p7 = scmp.lt.u32.totalorder %s6497_s17, %s4835_s14 }
  0xa4   :  { %p4841_p9 = scmp.lt.u32.totalorder %s4835_s14, %s190_s12 }
  0xa5   :  { %p4840_p8 = por %p4839_p7, %p4838_p6 }
  0xa7   :  { %p4842_p10 = por %p4841_p9, %p4840_p8 }
  0xa9   :  { %p4843_p11 = pnand %p4842_p10, %p4836_p5 }
  0xab   :  { %4846 = shalt.err (!%p4843_p11)  }
  0xac   :  { %s4847_s15 = scalar_lea.vmem %s201_s24, 16  ;;  %p4852_p13 = scmp.lt.s32.totalorder %s201_s24, %s6476_s26 }
  0xad   :  { %p4848_p12 = scmp.ne.s32.totalorder %s201_s24, %s4847_s15  ;;  %p4853_p0 = scmp.lt.s32.totalorder %s6506_s22, %s4847_s15 }
  0xaf   :  { %p4854_p1 = por %p4853_p0, %p4852_p13 }
  0xb1   :  { %p4855_p2 = pnand %p4854_p1, %p4848_p12 }
  0xb3   :  { %4858 = shalt.err (!%p4855_p2)  }
  0xb4   :  { %203 = dma.hbm_to_vmem [thread:$0]  %s190_s12, 16, %s201_s24, [#allocation3] }
  0xb5   :  { %s214_s19 = scalar_lea.hbm %s7589_s2, %s4170_s13  ;;  %s4172_s0 = sshll.u32 %s6552_s9, 4 }
  0xb6   :  { %s4859_s1 = scalar_lea.hbm %s214_s19, 16  ;;  %p4862_p4 = scmp.lt.u32.totalorder %s214_s19, %s7589_s2 }
  0xb7   :  { %p4860_p3 = scmp.ne.s32.totalorder %s214_s19, %s4859_s1  ;;  %p4863_p5 = scmp.lt.u32.totalorder %s6497_s17, %s4859_s1 }
  0xb8   :  { %p4865_p7 = scmp.lt.u32.totalorder %s4859_s1, %s214_s19 }
  0xb9   :  { %p4864_p6 = por %p4863_p5, %p4862_p4 }
  0xbb   :  { %p4866_p8 = por %p4865_p7, %p4864_p6 }
  0xbd   :  { %p4867_p9 = pnand %p4866_p8, %p4860_p3 }
  0xbf   :  { %4870 = shalt.err (!%p4867_p9)  }
  0xc0   :  { %s4871_s24 = scalar_lea.vmem %s6554_s29, 16  ;;  %p4876_p11 = scmp.lt.s32.totalorder %s6554_s29, %s6476_s26 }
  0xc1   :  { %p4872_p10 = scmp.ne.s32.totalorder %s6554_s29, %s4871_s24  ;;  %p4877_p12 = scmp.lt.s32.totalorder %s6506_s22, %s4871_s24 }
  0xc3   :  { %p4878_p13 = por %p4877_p12, %p4876_p11 }
  0xc5   :  { %p4879_p0 = pnand %p4878_p13, %p4872_p10 }
  0xc7   :  { %4882 = shalt.err (!%p4879_p0)  }
  0xc8   :  { %227 = dma.hbm_to_vmem [thread:$0]  %s214_s19, 16, %s6554_s29, [#allocation3] }
  0xc9   :  { %s238_s9 = scalar_lea.hbm %s7589_s2, %s4172_s0  ;;  %s4174_s21 = sshll.u32 %s6556_s27, 4 }
  0xca   :  { %s4883_s11 = scalar_lea.hbm %s238_s9, 16  ;;  %p4886_p2 = scmp.lt.u32.totalorder %s238_s9, %s7589_s2 }
  0xcb   :  { %p4884_p1 = scmp.ne.s32.totalorder %s238_s9, %s4883_s11  ;;  %p4887_p3 = scmp.lt.u32.totalorder %s6497_s17, %s4883_s11 }
  0xcc   :  { %p4889_p5 = scmp.lt.u32.totalorder %s4883_s11, %s238_s9 }
  0xcd   :  { %p4888_p4 = por %p4887_p3, %p4886_p2 }
  0xcf   :  { %p4890_p6 = por %p4889_p5, %p4888_p4 }
  0xd1   :  { %p4891_p7 = pnand %p4890_p6, %p4884_p1 }
  0xd3   :  { %4894 = shalt.err (!%p4891_p7)  }
  0xd4   :  { %s4895_s29 = scalar_lea.vmem %s6558_s8, 16  ;;  %p4900_p9 = scmp.lt.s32.totalorder %s6558_s8, %s6476_s26 }
  0xd5   :  { %p4896_p8 = scmp.ne.s32.totalorder %s6558_s8, %s4895_s29  ;;  %p4901_p10 = scmp.lt.s32.totalorder %s6506_s22, %s4895_s29 }
  0xd7   :  { %p4902_p11 = por %p4901_p10, %p4900_p9 }
  0xd9   :  { %p4903_p12 = pnand %p4902_p11, %p4896_p8 }
  0xdb   :  { %4906 = shalt.err (!%p4903_p12)  }
  0xdc   :  { %251 = dma.hbm_to_vmem [thread:$0]  %s238_s9, 16, %s6558_s8, [#allocation3] }
  0xdd   :  { %s262_s13 = scalar_lea.hbm %s7589_s2, %s4174_s21  ;;  %s6320_s14 = smov [#allocation2 + $0x7]  }
  0xde   :  { %s272_s30 = sshll.u32 %s6320_s14, 4  ;;  %s6601_s20 = sld [smem:[#allocation7 + $0x80]]  ;;  %s273_s30 = int_to_ptr.vmem [resolvable:$true] %s272_s30 }
  0xdf   :  { %s4907_s15 = scalar_lea.hbm %s262_s13, 16  ;;  %p4910_p0 = scmp.lt.u32.totalorder %s262_s13, %s7589_s2 }
  0xe0   :  { %p4908_p13 = scmp.ne.s32.totalorder %s262_s13, %s4907_s15  ;;  %p4911_p1 = scmp.lt.u32.totalorder %s6497_s17, %s4907_s15 }
  0xe1   :  { %p4913_p3 = scmp.lt.u32.totalorder %s4907_s15, %s262_s13 }
  0xe2   :  { %p4912_p2 = por %p4911_p1, %p4910_p0 }
  0xe4   :  { %p4914_p4 = por %p4913_p3, %p4912_p2 }
  0xe6   :  { %p4915_p5 = pnand %p4914_p4, %p4908_p13 }
  0xe8   :  { %4918 = shalt.err (!%p4915_p5)  }
  0xe9   :  { %s4919_s8 = scalar_lea.vmem %s273_s30, 16  ;;  %p4924_p7 = scmp.lt.s32.totalorder %s273_s30, %s6476_s26 }
  0xea   :  { %p4920_p6 = scmp.ne.s32.totalorder %s273_s30, %s4919_s8  ;;  %p4925_p8 = scmp.lt.s32.totalorder %s6506_s22, %s4919_s8 }
  0xec   :  { %p4926_p9 = por %p4925_p8, %p4924_p7 }
  0xee   :  { %p4927_p10 = pnand %p4926_p9, %p4920_p6 }
  0xf0   :  { %4930 = shalt.err (!%p4927_p10)  }
  0xf1   :  { %275 = dma.hbm_to_vmem [thread:$0]  %s262_s13, 16, %s273_s30, [#allocation3] }
  0xf2   :  { %s6321_s19 = smov [#allocation2 + $0x8]   ;;  %s6609_s1 = sld [smem:[#allocation7 + $0x81]] }
  0xf3   :  { %s292_s0 = sshll.u32 %s6321_s19, 4  ;;  %s6322_s5 = smov [#allocation2 + $0x9]   ;;  %s293_s0 = int_to_ptr.vmem [resolvable:$true] %s292_s0 }
  0xf4   :  { %s311_s23 = sshll.u32 %s6322_s5, 4  ;;  %s6611_s24 = sld [smem:[#allocation7 + $0x82]]  ;;  %s6614_s23 = int_to_ptr.vmem [resolvable:$true] %s311_s23 }
  0xf5   :  { %s4176_s25 = sshll.u32 %s6601_s20, 4 }
  0xf6   :  { %s282_s21 = scalar_lea.hbm %s7589_s2, %s4176_s25 }
  0xf7   :  { %s4931_s11 = scalar_lea.hbm %s282_s21, 16  ;;  %p4934_p12 = scmp.lt.u32.totalorder %s282_s21, %s7589_s2 }
  0xf8   :  { %p4932_p11 = scmp.ne.s32.totalorder %s282_s21, %s4931_s11  ;;  %p4935_p13 = scmp.lt.u32.totalorder %s6497_s17, %s4931_s11 }
  0xf9   :  { %p4937_p1 = scmp.lt.u32.totalorder %s4931_s11, %s282_s21 }
  0xfa   :  { %p4936_p0 = por %p4935_p13, %p4934_p12 }
  0xfc   :  { %p4938_p2 = por %p4937_p1, %p4936_p0 }
  0xfe   :  { %p4939_p3 = pnand %p4938_p2, %p4932_p11 }
 0x100   :  { %4942 = shalt.err (!%p4939_p3)  }
 0x101   :  { %s4943_s29 = scalar_lea.vmem %s293_s0, 16  ;;  %p4948_p5 = scmp.lt.s32.totalorder %s293_s0, %s6476_s26 }
 0x102   :  { %p4944_p4 = scmp.ne.s32.totalorder %s293_s0, %s4943_s29  ;;  %p4949_p6 = scmp.lt.s32.totalorder %s6506_s22, %s4943_s29 }
 0x104   :  { %p4950_p7 = por %p4949_p6, %p4948_p5 }
 0x106   :  { %p4951_p8 = pnand %p4950_p7, %p4944_p4 }
 0x108   :  { %4954 = shalt.err (!%p4951_p8)  }
 0x109   :  { %295 = dma.hbm_to_vmem [thread:$0]  %s282_s21, 16, %s293_s0, [#allocation3] }
 0x10a   :  { %s4178_s27 = sshll.u32 %s6609_s1, 4  ;;  %s6323_s12 = smov [#allocation2 + $0xa]  }
 0x10b   :  { %s330_s13 = sshll.u32 %s6323_s12, 4  ;;  %s301_s20 = scalar_lea.hbm %s7589_s2, %s4178_s27  ;;  %s6629_s13 = int_to_ptr.vmem [resolvable:$true] %s330_s13 }
 0x10c   :  { %s4955_s15 = scalar_lea.hbm %s301_s20, 16  ;;  %p4958_p10 = scmp.lt.u32.totalorder %s301_s20, %s7589_s2 }
 0x10d   :  { %p4956_p9 = scmp.ne.s32.totalorder %s301_s20, %s4955_s15  ;;  %p4959_p11 = scmp.lt.u32.totalorder %s6497_s17, %s4955_s15 }
 0x10e   :  { %p4961_p13 = scmp.lt.u32.totalorder %s4955_s15, %s301_s20 }
 0x10f   :  { %p4960_p12 = por %p4959_p11, %p4958_p10 }
 0x111   :  { %p4962_p0 = por %p4961_p13, %p4960_p12 }
 0x113   :  { %p4963_p1 = pnand %p4962_p0, %p4956_p9 }
 0x115   :  { %4966 = shalt.err (!%p4963_p1)  }
 0x116   :  { %s4967_s8 = scalar_lea.vmem %s6614_s23, 16  ;;  %p4972_p3 = scmp.lt.s32.totalorder %s6614_s23, %s6476_s26 }
 0x117   :  { %p4968_p2 = scmp.ne.s32.totalorder %s6614_s23, %s4967_s8  ;;  %p4973_p4 = scmp.lt.s32.totalorder %s6506_s22, %s4967_s8 }
 0x119   :  { %p4974_p5 = por %p4973_p4, %p4972_p3 }
 0x11b   :  { %p4975_p6 = pnand %p4974_p5, %p4968_p2 }
 0x11d   :  { %4978 = shalt.err (!%p4975_p6)  }
 0x11e   :  { %314 = dma.hbm_to_vmem [thread:$0]  %s301_s20, 16, %s6614_s23, [#allocation3] }
 0x11f   :  { %s4180_s19 = sshll.u32 %s6611_s24, 4  ;;  %s6642_s0 = sld [smem:[#allocation7 + $0x83]] }
 0x120   :  { %s320_s25 = scalar_lea.hbm %s7589_s2, %s4180_s19 }
 0x121   :  { %s4979_s28 = scalar_lea.hbm %s320_s25, 16  ;;  %p4982_p8 = scmp.lt.u32.totalorder %s320_s25, %s7589_s2 }
 0x122   :  { %p4980_p7 = scmp.ne.s32.totalorder %s320_s25, %s4979_s28  ;;  %p4983_p9 = scmp.lt.u32.totalorder %s6497_s17, %s4979_s28 }
 0x123   :  { %p4985_p11 = scmp.lt.u32.totalorder %s4979_s28, %s320_s25 }
 0x124   :  { %p4984_p10 = por %p4983_p9, %p4982_p8 }
 0x126   :  { %p4986_p12 = por %p4985_p11, %p4984_p10 }
 0x128   :  { %p4987_p13 = pnand %p4986_p12, %p4980_p7 }
 0x12a   :  { %4990 = shalt.err (!%p4987_p13)  }
 0x12b   :  { %s4991_s23 = scalar_lea.vmem %s6629_s13, 16  ;;  %p4996_p1 = scmp.lt.s32.totalorder %s6629_s13, %s6476_s26 }
 0x12c   :  { %p4992_p0 = scmp.ne.s32.totalorder %s6629_s13, %s4991_s23  ;;  %p4997_p2 = scmp.lt.s32.totalorder %s6506_s22, %s4991_s23 }
 0x12e   :  { %p4998_p3 = por %p4997_p2, %p4996_p1 }
 0x130   :  { %p4999_p4 = pnand %p4998_p3, %p4992_p0 }
 0x132   :  { %5002 = shalt.err (!%p4999_p4)  }
 0x133   :  { %333 = dma.hbm_to_vmem [thread:$0]  %s320_s25, 16, %s6629_s13, [#allocation3] }
 0x134   :  { %s6324_s24 = smov [#allocation2 + $0xb]   ;;  %s6657_s10 = sld [smem:[#allocation7 + $0x84]] }
 0x135   :  { %s349_s11 = sshll.u32 %s6324_s24, 4  ;;  %s6325_s3 = smov [#allocation2 + $0xc]   ;;  %s350_s11 = int_to_ptr.vmem [resolvable:$true] %s349_s11 }
 0x136   :  { %s368_s29 = sshll.u32 %s6325_s3, 4  ;;  %s6659_s27 = sld [smem:[#allocation7 + $0x85]]  ;;  %s6662_s29 = int_to_ptr.vmem [resolvable:$true] %s368_s29 }
 0x137   :  { %s4182_s12 = sshll.u32 %s6642_s0, 4 }
 0x138   :  { %s339_s20 = scalar_lea.hbm %s7589_s2, %s4182_s12 }
 0x139   :  { %s5003_s15 = scalar_lea.hbm %s339_s20, 16  ;;  %p5006_p6 = scmp.lt.u32.totalorder %s339_s20, %s7589_s2 }
 0x13a   :  { %p5004_p5 = scmp.ne.s32.totalorder %s339_s20, %s5003_s15  ;;  %p5007_p7 = scmp.lt.u32.totalorder %s6497_s17, %s5003_s15 }
 0x13b   :  { %p5009_p9 = scmp.lt.u32.totalorder %s5003_s15, %s339_s20 }
 0x13c   :  { %p5008_p8 = por %p5007_p7, %p5006_p6 }
 0x13e   :  { %p5010_p10 = por %p5009_p9, %p5008_p8 }
 0x140   :  { %p5011_p11 = pnand %p5010_p10, %p5004_p5 }
 0x142   :  { %5014 = shalt.err (!%p5011_p11)  }
 0x143   :  { %s5015_s18 = scalar_lea.vmem %s350_s11, 16  ;;  %p5020_p13 = scmp.lt.s32.totalorder %s350_s11, %s6476_s26 }
 0x144   :  { %p5016_p12 = scmp.ne.s32.totalorder %s350_s11, %s5015_s18  ;;  %p5021_p0 = scmp.lt.s32.totalorder %s6506_s22, %s5015_s18 }
 0x146   :  { %p5022_p1 = por %p5021_p0, %p5020_p13 }
 0x148   :  { %p5023_p2 = pnand %p5022_p1, %p5016_p12 }
 0x14a   :  { %5026 = shalt.err (!%p5023_p2)  }
 0x14b   :  { %352 = dma.hbm_to_vmem [thread:$0]  %s339_s20, 16, %s350_s11, [#allocation3] }
 0x14c   :  { %s4184_s8 = sshll.u32 %s6657_s10, 4  ;;  %s6326_s19 = smov [#allocation2 + $0xd]  }
 0x14d   :  { %s387_s0 = sshll.u32 %s6326_s19, 4  ;;  %s358_s25 = scalar_lea.hbm %s7589_s2, %s4184_s8  ;;  %s6677_s0 = int_to_ptr.vmem [resolvable:$true] %s387_s0 }
 0x14e   :  { %s5027_s28 = scalar_lea.hbm %s358_s25, 16  ;;  %p5030_p4 = scmp.lt.u32.totalorder %s358_s25, %s7589_s2 }
 0x14f   :  { %p5028_p3 = scmp.ne.s32.totalorder %s358_s25, %s5027_s28  ;;  %p5031_p5 = scmp.lt.u32.totalorder %s6497_s17, %s5027_s28 }
 0x150   :  { %p5033_p7 = scmp.lt.u32.totalorder %s5027_s28, %s358_s25 }
 0x151   :  { %p5032_p6 = por %p5031_p5, %p5030_p4 }
 0x153   :  { %p5034_p8 = por %p5033_p7, %p5032_p6 }
 0x155   :  { %p5035_p9 = pnand %p5034_p8, %p5028_p3 }
 0x157   :  { %5038 = shalt.err (!%p5035_p9)  }
 0x158   :  { %s5039_s23 = scalar_lea.vmem %s6662_s29, 16  ;;  %p5044_p11 = scmp.lt.s32.totalorder %s6662_s29, %s6476_s26 }
 0x159   :  { %p5040_p10 = scmp.ne.s32.totalorder %s6662_s29, %s5039_s23  ;;  %p5045_p12 = scmp.lt.s32.totalorder %s6506_s22, %s5039_s23 }
 0x15b   :  { %p5046_p13 = por %p5045_p12, %p5044_p11 }
 0x15d   :  { %p5047_p0 = pnand %p5046_p13, %p5040_p10 }
 0x15f   :  { %5050 = shalt.err (!%p5047_p0)  }
 0x160   :  { %371 = dma.hbm_to_vmem [thread:$0]  %s358_s25, 16, %s6662_s29, [#allocation3] }
 0x161   :  { %s4186_s24 = sshll.u32 %s6659_s27, 4  ;;  %s6690_s11 = sld [smem:[#allocation7 + $0x86]] }
 0x162   :  { %s377_s12 = scalar_lea.hbm %s7589_s2, %s4186_s24 }
 0x163   :  { %s5051_s14 = scalar_lea.hbm %s377_s12, 16  ;;  %p5054_p2 = scmp.lt.u32.totalorder %s377_s12, %s7589_s2 }
 0x164   :  { %p5052_p1 = scmp.ne.s32.totalorder %s377_s12, %s5051_s14  ;;  %p5055_p3 = scmp.lt.u32.totalorder %s6497_s17, %s5051_s14 }
 0x165   :  { %p5057_p5 = scmp.lt.u32.totalorder %s5051_s14, %s377_s12 }
 0x166   :  { %p5056_p4 = por %p5055_p3, %p5054_p2 }
 0x168   :  { %p5058_p6 = por %p5057_p5, %p5056_p4 }
 0x16a   :  { %p5059_p7 = pnand %p5058_p6, %p5052_p1 }
 0x16c   :  { %5062 = shalt.err (!%p5059_p7)  }
 0x16d   :  { %s5063_s29 = scalar_lea.vmem %s6677_s0, 16  ;;  %p5068_p9 = scmp.lt.s32.totalorder %s6677_s0, %s6476_s26 }
 0x16e   :  { %p5064_p8 = scmp.ne.s32.totalorder %s6677_s0, %s5063_s29  ;;  %p5069_p10 = scmp.lt.s32.totalorder %s6506_s22, %s5063_s29 }
 0x170   :  { %p5070_p11 = por %p5069_p10, %p5068_p9 }
 0x172   :  { %p5071_p12 = pnand %p5070_p11, %p5064_p8 }
 0x174   :  { %5074 = shalt.err (!%p5071_p12)  }
 0x175   :  { %390 = dma.hbm_to_vmem [thread:$0]  %s377_s12, 16, %s6677_s0, [#allocation3] }
 0x176   :  { %s6327_s27 = smov [#allocation2 + $0xe]   ;;  %s6705_s16 = sld [smem:[#allocation7 + $0x87]] }
 0x177   :  { %s406_s15 = sshll.u32 %s6327_s27, 4  ;;  %s6328_s13 = smov [#allocation2 + $0xf]   ;;  %s407_s15 = int_to_ptr.vmem [resolvable:$true] %s406_s15 }
 0x178   :  { %s425_s18 = sshll.u32 %s6328_s13, 4  ;;  %s6707_s8 = sld [smem:[#allocation7 + $0x100]]  ;;  %s6710_s18 = int_to_ptr.vmem [resolvable:$true] %s425_s18 }
 0x179   :  { %s4188_s19 = sshll.u32 %s6690_s11, 4 }
 0x17a   :  { %s396_s25 = scalar_lea.hbm %s7589_s2, %s4188_s19 }
 0x17b   :  { %s5075_s28 = scalar_lea.hbm %s396_s25, 16  ;;  %p5078_p0 = scmp.lt.u32.totalorder %s396_s25, %s7589_s2 }
 0x17c   :  { %p5076_p13 = scmp.ne.s32.totalorder %s396_s25, %s5075_s28  ;;  %p5079_p1 = scmp.lt.u32.totalorder %s6497_s17, %s5075_s28 }
 0x17d   :  { %p5081_p3 = scmp.lt.u32.totalorder %s5075_s28, %s396_s25 }
 0x17e   :  { %p5080_p2 = por %p5079_p1, %p5078_p0 }
 0x180   :  { %p5082_p4 = por %p5081_p3, %p5080_p2 }
 0x182   :  { %p5083_p5 = pnand %p5082_p4, %p5076_p13 }
 0x184   :  { %5086 = shalt.err (!%p5083_p5)  }
 0x185   :  { %s5087_s21 = scalar_lea.vmem %s407_s15, 16  ;;  %p5092_p7 = scmp.lt.s32.totalorder %s407_s15, %s6476_s26 }
 0x186   :  { %p5088_p6 = scmp.ne.s32.totalorder %s407_s15, %s5087_s21  ;;  %p5093_p8 = scmp.lt.s32.totalorder %s6506_s22, %s5087_s21 }
 0x188   :  { %p5094_p9 = por %p5093_p8, %p5092_p7 }
 0x18a   :  { %p5095_p10 = pnand %p5094_p9, %p5088_p6 }
 0x18c   :  { %5098 = shalt.err (!%p5095_p10)  }
 0x18d   :  { %409 = dma.hbm_to_vmem [thread:$0]  %s396_s25, 16, %s407_s15, [#allocation3] }
 0x18e   :  { %s4190_s23 = sshll.u32 %s6705_s16, 4  ;;  %s6329_s24 = smov [#allocation2 + $0x10]  }
 0x18f   :  { %s445_s11 = sshll.u32 %s6329_s24, 4  ;;  %s415_s12 = scalar_lea.hbm %s7589_s2, %s4190_s23  ;;  %s6725_s11 = int_to_ptr.vmem [resolvable:$true] %s445_s11 }
 0x190   :  { %s5099_s14 = scalar_lea.hbm %s415_s12, 16  ;;  %p5102_p12 = scmp.lt.u32.totalorder %s415_s12, %s7589_s2 }
 0x191   :  { %p5100_p11 = scmp.ne.s32.totalorder %s415_s12, %s5099_s14  ;;  %p5103_p13 = scmp.lt.u32.totalorder %s6497_s17, %s5099_s14 }
 0x192   :  { %p5105_p1 = scmp.lt.u32.totalorder %s5099_s14, %s415_s12 }
 0x193   :  { %p5104_p0 = por %p5103_p13, %p5102_p12 }
 0x195   :  { %p5106_p2 = por %p5105_p1, %p5104_p0 }
 0x197   :  { %p5107_p3 = pnand %p5106_p2, %p5100_p11 }
 0x199   :  { %5110 = shalt.err (!%p5107_p3)  }
 0x19a   :  { %s5111_s29 = scalar_lea.vmem %s6710_s18, 16  ;;  %p5116_p5 = scmp.lt.s32.totalorder %s6710_s18, %s6476_s26 }
 0x19b   :  { %p5112_p4 = scmp.ne.s32.totalorder %s6710_s18, %s5111_s29  ;;  %p5117_p6 = scmp.lt.s32.totalorder %s6506_s22, %s5111_s29 }
 0x19d   :  { %p5118_p7 = por %p5117_p6, %p5116_p5 }
 0x19f   :  { %p5119_p8 = pnand %p5118_p7, %p5112_p4 }
 0x1a1   :  { %5122 = shalt.err (!%p5119_p8)  }
 0x1a2   :  { %428 = dma.hbm_to_vmem [thread:$0]  %s415_s12, 16, %s6710_s18, [#allocation3] }
 0x1a3   :  { %s4192_s27 = sshll.u32 %s6707_s8, 4  ;;  %s6738_s15 = sld [smem:[#allocation7 + $0x101]] }
 0x1a4   :  { %s435_s19 = scalar_lea.hbm %s7589_s2, %s4192_s27 }
 0x1a5   :  { %s5123_s1 = scalar_lea.hbm %s435_s19, 16  ;;  %p5126_p10 = scmp.lt.u32.totalorder %s435_s19, %s7589_s2 }
 0x1a6   :  { %p5124_p9 = scmp.ne.s32.totalorder %s435_s19, %s5123_s1  ;;  %p5127_p11 = scmp.lt.u32.totalorder %s6497_s17, %s5123_s1 }
 0x1a7   :  { %p5129_p13 = scmp.lt.u32.totalorder %s5123_s1, %s435_s19 }
 0x1a8   :  { %p5128_p12 = por %p5127_p11, %p5126_p10 }
 0x1aa   :  { %p5130_p0 = por %p5129_p13, %p5128_p12 }
 0x1ac   :  { %p5131_p1 = pnand %p5130_p0, %p5124_p9 }
 0x1ae   :  { %5134 = shalt.err (!%p5131_p1)  }
 0x1af   :  { %s5135_s18 = scalar_lea.vmem %s6725_s11, 16  ;;  %p5140_p3 = scmp.lt.s32.totalorder %s6725_s11, %s6476_s26 }
 0x1b0   :  { %p5136_p2 = scmp.ne.s32.totalorder %s6725_s11, %s5135_s18  ;;  %p5141_p4 = scmp.lt.s32.totalorder %s6506_s22, %s5135_s18 }
 0x1b2   :  { %p5142_p5 = por %p5141_p4, %p5140_p3 }
 0x1b4   :  { %p5143_p6 = pnand %p5142_p5, %p5136_p2 }
 0x1b6   :  { %5146 = shalt.err (!%p5143_p6)  }
 0x1b7   :  { %448 = dma.hbm_to_vmem [thread:$0]  %s435_s19, 16, %s6725_s11, [#allocation3] }
 0x1b8   :  { %s6330_s8 = smov [#allocation2 + $0x11]   ;;  %s6753_s9 = sld [smem:[#allocation7 + $0x102]] }
 0x1b9   :  { %s464_s28 = sshll.u32 %s6330_s8, 4  ;;  %s6331_s0 = smov [#allocation2 + $0x12]   ;;  %s465_s28 = int_to_ptr.vmem [resolvable:$true] %s464_s28 }
 0x1ba   :  { %s483_s21 = sshll.u32 %s6331_s0, 4  ;;  %s6755_s23 = sld [smem:[#allocation7 + $0x103]]  ;;  %s6758_s21 = int_to_ptr.vmem [resolvable:$true] %s483_s21 }
 0x1bb   :  { %s4194_s24 = sshll.u32 %s6738_s15, 4 }
 0x1bc   :  { %s454_s12 = scalar_lea.hbm %s7589_s2, %s4194_s24 }
 0x1bd   :  { %s5147_s14 = scalar_lea.hbm %s454_s12, 16  ;;  %p5150_p8 = scmp.lt.u32.totalorder %s454_s12, %s7589_s2 }
 0x1be   :  { %p5148_p7 = scmp.ne.s32.totalorder %s454_s12, %s5147_s14  ;;  %p5151_p9 = scmp.lt.u32.totalorder %s6497_s17, %s5147_s14 }
 0x1bf   :  { %p5153_p11 = scmp.lt.u32.totalorder %s5147_s14, %s454_s12 }
 0x1c0   :  { %p5152_p10 = por %p5151_p9, %p5150_p8 }
 0x1c2   :  { %p5154_p12 = por %p5153_p11, %p5152_p10 }
 0x1c4   :  { %p5155_p13 = pnand %p5154_p12, %p5148_p7 }
 0x1c6   :  { %5158 = shalt.err (!%p5155_p13)  }
 0x1c7   :  { %s5159_s20 = scalar_lea.vmem %s465_s28, 16  ;;  %p5164_p1 = scmp.lt.s32.totalorder %s465_s28, %s6476_s26 }
 0x1c8   :  { %p5160_p0 = scmp.ne.s32.totalorder %s465_s28, %s5159_s20  ;;  %p5165_p2 = scmp.lt.s32.totalorder %s6506_s22, %s5159_s20 }
 0x1ca   :  { %p5166_p3 = por %p5165_p2, %p5164_p1 }
 0x1cc   :  { %p5167_p4 = pnand %p5166_p3, %p5160_p0 }
 0x1ce   :  { %5170 = shalt.err (!%p5167_p4)  }
 0x1cf   :  { %467 = dma.hbm_to_vmem [thread:$0]  %s454_s12, 16, %s465_s28, [#allocation3] }
 0x1d0   :  { %s4196_s29 = sshll.u32 %s6753_s9, 4  ;;  %s6332_s27 = smov [#allocation2 + $0x13]  }
 0x1d1   :  { %s502_s15 = sshll.u32 %s6332_s27, 4  ;;  %s473_s19 = scalar_lea.hbm %s7589_s2, %s4196_s29  ;;  %s6773_s15 = int_to_ptr.vmem [resolvable:$true] %s502_s15 }
 0x1d2   :  { %s5171_s1 = scalar_lea.hbm %s473_s19, 16  ;;  %p5174_p6 = scmp.lt.u32.totalorder %s473_s19, %s7589_s2 }
 0x1d3   :  { %p5172_p5 = scmp.ne.s32.totalorder %s473_s19, %s5171_s1  ;;  %p5175_p7 = scmp.lt.u32.totalorder %s6497_s17, %s5171_s1 }
 0x1d4   :  { %p5177_p9 = scmp.lt.u32.totalorder %s5171_s1, %s473_s19 }
 0x1d5   :  { %p5176_p8 = por %p5175_p7, %p5174_p6 }
 0x1d7   :  { %p5178_p10 = por %p5177_p9, %p5176_p8 }
 0x1d9   :  { %p5179_p11 = pnand %p5178_p10, %p5172_p5 }
 0x1db   :  { %5182 = shalt.err (!%p5179_p11)  }
 0x1dc   :  { %s5183_s18 = scalar_lea.vmem %s6758_s21, 16  ;;  %p5188_p13 = scmp.lt.s32.totalorder %s6758_s21, %s6476_s26 }
 0x1dd   :  { %p5184_p12 = scmp.ne.s32.totalorder %s6758_s21, %s5183_s18  ;;  %p5189_p0 = scmp.lt.s32.totalorder %s6506_s22, %s5183_s18 }
 0x1df   :  { %p5190_p1 = por %p5189_p0, %p5188_p13 }
 0x1e1   :  { %p5191_p2 = pnand %p5190_p1, %p5184_p12 }
 0x1e3   :  { %5194 = shalt.err (!%p5191_p2)  }
 0x1e4   :  { %486 = dma.hbm_to_vmem [thread:$0]  %s473_s19, 16, %s6758_s21, [#allocation3] }
 0x1e5   :  { %s4198_s8 = sshll.u32 %s6755_s23, 4  ;;  %s6786_s28 = sld [smem:[#allocation7 + $0x104]] }
 0x1e6   :  { %s492_s24 = scalar_lea.hbm %s7589_s2, %s4198_s8 }
 0x1e7   :  { %s5195_s10 = scalar_lea.hbm %s492_s24, 16  ;;  %p5198_p4 = scmp.lt.u32.totalorder %s492_s24, %s7589_s2 }
 0x1e8   :  { %p5196_p3 = scmp.ne.s32.totalorder %s492_s24, %s5195_s10  ;;  %p5199_p5 = scmp.lt.u32.totalorder %s6497_s17, %s5195_s10 }
 0x1e9   :  { %p5201_p7 = scmp.lt.u32.totalorder %s5195_s10, %s492_s24 }
 0x1ea   :  { %p5200_p6 = por %p5199_p5, %p5198_p4 }
 0x1ec   :  { %p5202_p8 = por %p5201_p7, %p5200_p6 }
 0x1ee   :  { %p5203_p9 = pnand %p5202_p8, %p5196_p3 }
 0x1f0   :  { %5206 = shalt.err (!%p5203_p9)  }
 0x1f1   :  { %s5207_s21 = scalar_lea.vmem %s6773_s15, 16  ;;  %p5212_p11 = scmp.lt.s32.totalorder %s6773_s15, %s6476_s26 }
 0x1f2   :  { %p5208_p10 = scmp.ne.s32.totalorder %s6773_s15, %s5207_s21  ;;  %p5213_p12 = scmp.lt.s32.totalorder %s6506_s22, %s5207_s21 }
 0x1f4   :  { %p5214_p13 = por %p5213_p12, %p5212_p11 }
 0x1f6   :  { %p5215_p0 = pnand %p5214_p13, %p5208_p10 }
 0x1f8   :  { %5218 = shalt.err (!%p5215_p0)  }
 0x1f9   :  { %505 = dma.hbm_to_vmem [thread:$0]  %s492_s24, 16, %s6773_s15, [#allocation3] }
 0x1fa   :  { %s6333_s23 = smov [#allocation2 + $0x14]   ;;  %s6801_s30 = sld [smem:[#allocation7 + $0x105]] }
 0x1fb   :  { %s521_s14 = sshll.u32 %s6333_s23, 4  ;;  %s6334_s11 = smov [#allocation2 + $0x15]   ;;  %s522_s14 = int_to_ptr.vmem [resolvable:$true] %s521_s14 }
 0x1fc   :  { %s540_s20 = sshll.u32 %s6334_s11, 4  ;;  %s6803_s29 = sld [smem:[#allocation7 + $0x106]]  ;;  %s6806_s20 = int_to_ptr.vmem [resolvable:$true] %s540_s20 }
 0x1fd   :  { %s4200_s27 = sshll.u32 %s6786_s28, 4 }
 0x1fe   :  { %s511_s19 = scalar_lea.hbm %s7589_s2, %s4200_s27 }
 0x1ff   :  { %s5219_s1 = scalar_lea.hbm %s511_s19, 16  ;;  %p5222_p2 = scmp.lt.u32.totalorder %s511_s19, %s7589_s2 }
 0x200   :  { %p5220_p1 = scmp.ne.s32.totalorder %s511_s19, %s5219_s1  ;;  %p5223_p3 = scmp.lt.u32.totalorder %s6497_s17, %s5219_s1 }
 0x201   :  { %p5225_p5 = scmp.lt.u32.totalorder %s5219_s1, %s511_s19 }
 0x202   :  { %p5224_p4 = por %p5223_p3, %p5222_p2 }
 0x204   :  { %p5226_p6 = por %p5225_p5, %p5224_p4 }
 0x206   :  { %p5227_p7 = pnand %p5226_p6, %p5220_p1 }
 0x208   :  { %5230 = shalt.err (!%p5227_p7)  }
 0x209   :  { %s5231_s25 = scalar_lea.vmem %s522_s14, 16  ;;  %p5236_p9 = scmp.lt.s32.totalorder %s522_s14, %s6476_s26 }
 0x20a   :  { %p5232_p8 = scmp.ne.s32.totalorder %s522_s14, %s5231_s25  ;;  %p5237_p10 = scmp.lt.s32.totalorder %s6506_s22, %s5231_s25 }
 0x20c   :  { %p5238_p11 = por %p5237_p10, %p5236_p9 }
 0x20e   :  { %p5239_p12 = pnand %p5238_p11, %p5232_p8 }
 0x210   :  { %5242 = shalt.err (!%p5239_p12)  }
 0x211   :  { %524 = dma.hbm_to_vmem [thread:$0]  %s511_s19, 16, %s522_s14, [#allocation3] }
 0x212   :  { %s4202_s18 = sshll.u32 %s6801_s30, 4  ;;  %s6335_s8 = smov [#allocation2 + $0x16]  }
 0x213   :  { %s559_s28 = sshll.u32 %s6335_s8, 4  ;;  %s530_s24 = scalar_lea.hbm %s7589_s2, %s4202_s18  ;;  %s6821_s28 = int_to_ptr.vmem [resolvable:$true] %s559_s28 }
 0x214   :  { %s5243_s10 = scalar_lea.hbm %s530_s24, 16  ;;  %p5246_p0 = scmp.lt.u32.totalorder %s530_s24, %s7589_s2 }
 0x215   :  { %p5244_p13 = scmp.ne.s32.totalorder %s530_s24, %s5243_s10  ;;  %p5247_p1 = scmp.lt.u32.totalorder %s6497_s17, %s5243_s10 }
 0x216   :  { %p5249_p3 = scmp.lt.u32.totalorder %s5243_s10, %s530_s24 }
 0x217   :  { %p5248_p2 = por %p5247_p1, %p5246_p0 }
 0x219   :  { %p5250_p4 = por %p5249_p3, %p5248_p2 }
 0x21b   :  { %p5251_p5 = pnand %p5250_p4, %p5244_p13 }
 0x21d   :  { %5254 = shalt.err (!%p5251_p5)  }
 0x21e   :  { %s5255_s21 = scalar_lea.vmem %s6806_s20, 16  ;;  %p5260_p7 = scmp.lt.s32.totalorder %s6806_s20, %s6476_s26 }
 0x21f   :  { %p5256_p6 = scmp.ne.s32.totalorder %s6806_s20, %s5255_s21  ;;  %p5261_p8 = scmp.lt.s32.totalorder %s6506_s22, %s5255_s21 }
 0x221   :  { %p5262_p9 = por %p5261_p8, %p5260_p7 }
 0x223   :  { %p5263_p10 = pnand %p5262_p9, %p5256_p6 }
 0x225   :  { %5266 = shalt.err (!%p5263_p10)  }
 0x226   :  { %543 = dma.hbm_to_vmem [thread:$0]  %s530_s24, 16, %s6806_s20, [#allocation3] }
 0x227   :  { %s4204_s23 = sshll.u32 %s6803_s29, 4  ;;  %s6834_s14 = sld [smem:[#allocation7 + $0x107]] }
 0x228   :  { %s549_s27 = scalar_lea.hbm %s7589_s2, %s4204_s23 }
 0x229   :  { %s5267_s16 = scalar_lea.hbm %s549_s27, 16  ;;  %p5270_p12 = scmp.lt.u32.totalorder %s549_s27, %s7589_s2 }
 0x22a   :  { %p5268_p11 = scmp.ne.s32.totalorder %s549_s27, %s5267_s16  ;;  %p5271_p13 = scmp.lt.u32.totalorder %s6497_s17, %s5267_s16 }
 0x22b   :  { %p5273_p1 = scmp.lt.u32.totalorder %s5267_s16, %s549_s27 }
 0x22c   :  { %p5272_p0 = por %p5271_p13, %p5270_p12 }
 0x22e   :  { %p5274_p2 = por %p5273_p1, %p5272_p0 }
 0x230   :  { %p5275_p3 = pnand %p5274_p2, %p5268_p11 }
 0x232   :  { %5278 = shalt.err (!%p5275_p3)  }
 0x233   :  { %s5279_s20 = scalar_lea.vmem %s6821_s28, 16  ;;  %p5284_p5 = scmp.lt.s32.totalorder %s6821_s28, %s6476_s26 }
 0x234   :  { %p5280_p4 = scmp.ne.s32.totalorder %s6821_s28, %s5279_s20  ;;  %p5285_p6 = scmp.lt.s32.totalorder %s6506_s22, %s5279_s20 }
 0x236   :  { %p5286_p7 = por %p5285_p6, %p5284_p5 }
 0x238   :  { %p5287_p8 = pnand %p5286_p7, %p5280_p4 }
 0x23a   :  { %5290 = shalt.err (!%p5287_p8)  }
 0x23b   :  { %562 = dma.hbm_to_vmem [thread:$0]  %s549_s27, 16, %s6821_s28, [#allocation3] }
 0x23c   :  { %s6336_s29 = smov [#allocation2 + $0x17]   ;;  %s6849_s5 = sld [smem:[#allocation7 + $0x180]] }
 0x23d   :  { %s578_s1 = sshll.u32 %s6336_s29, 4  ;;  %s6337_s15 = smov [#allocation2 + $0x18]   ;;  %s579_s1 = int_to_ptr.vmem [resolvable:$true] %s578_s1 }
 0x23e   :  { %s598_s25 = sshll.u32 %s6337_s15, 4  ;;  %s6851_s18 = sld [smem:[#allocation7 + $0x181]]  ;;  %s6854_s25 = int_to_ptr.vmem [resolvable:$true] %s598_s25 }
 0x23f   :  { %s4206_s8 = sshll.u32 %s6834_s14, 4 }
 0x240   :  { %s568_s24 = scalar_lea.hbm %s7589_s2, %s4206_s8 }
 0x241   :  { %s5291_s10 = scalar_lea.hbm %s568_s24, 16  ;;  %p5294_p10 = scmp.lt.u32.totalorder %s568_s24, %s7589_s2 }
 0x242   :  { %p5292_p9 = scmp.ne.s32.totalorder %s568_s24, %s5291_s10  ;;  %p5295_p11 = scmp.lt.u32.totalorder %s6497_s17, %s5291_s10 }
 0x243   :  { %p5297_p13 = scmp.lt.u32.totalorder %s5291_s10, %s568_s24 }
 0x244   :  { %p5296_p12 = por %p5295_p11, %p5294_p10 }
 0x246   :  { %p5298_p0 = por %p5297_p13, %p5296_p12 }
 0x248   :  { %p5299_p1 = pnand %p5298_p0, %p5292_p9 }
 0x24a   :  { %5302 = shalt.err (!%p5299_p1)  }
 0x24b   :  { %s5303_s12 = scalar_lea.vmem %s579_s1, 16  ;;  %p5308_p3 = scmp.lt.s32.totalorder %s579_s1, %s6476_s26 }
 0x24c   :  { %p5304_p2 = scmp.ne.s32.totalorder %s579_s1, %s5303_s12  ;;  %p5309_p4 = scmp.lt.s32.totalorder %s6506_s22, %s5303_s12 }
 0x24e   :  { %p5310_p5 = por %p5309_p4, %p5308_p3 }
 0x250   :  { %p5311_p6 = pnand %p5310_p5, %p5304_p2 }
 0x252   :  { %5314 = shalt.err (!%p5311_p6)  }
 0x253   :  { %581 = dma.hbm_to_vmem [thread:$0]  %s568_s24, 16, %s579_s1, [#allocation3] }
 0x254   :  { %s4208_s21 = sshll.u32 %s6849_s5, 4  ;;  %s6338_s23 = smov [#allocation2 + $0x19]  }
 0x255   :  { %s617_s14 = sshll.u32 %s6338_s23, 4  ;;  %s588_s27 = scalar_lea.hbm %s7589_s2, %s4208_s21  ;;  %s6869_s14 = int_to_ptr.vmem [resolvable:$true] %s617_s14 }
 0x256   :  { %s5315_s16 = scalar_lea.hbm %s588_s27, 16  ;;  %p5318_p8 = scmp.lt.u32.totalorder %s588_s27, %s7589_s2 }
 0x257   :  { %p5316_p7 = scmp.ne.s32.totalorder %s588_s27, %s5315_s16  ;;  %p5319_p9 = scmp.lt.u32.totalorder %s6497_s17, %s5315_s16 }
 0x258   :  { %p5321_p11 = scmp.lt.u32.totalorder %s5315_s16, %s588_s27 }
 0x259   :  { %p5320_p10 = por %p5319_p9, %p5318_p8 }
 0x25b   :  { %p5322_p12 = por %p5321_p11, %p5320_p10 }
 0x25d   :  { %p5323_p13 = pnand %p5322_p12, %p5316_p7 }
 0x25f   :  { %5326 = shalt.err (!%p5323_p13)  }
 0x260   :  { %s5327_s20 = scalar_lea.vmem %s6854_s25, 16  ;;  %p5332_p1 = scmp.lt.s32.totalorder %s6854_s25, %s6476_s26 }
 0x261   :  { %p5328_p0 = scmp.ne.s32.totalorder %s6854_s25, %s5327_s20  ;;  %p5333_p2 = scmp.lt.s32.totalorder %s6506_s22, %s5327_s20 }
 0x263   :  { %p5334_p3 = por %p5333_p2, %p5332_p1 }
 0x265   :  { %p5335_p4 = pnand %p5334_p3, %p5328_p0 }
 0x267   :  { %5338 = shalt.err (!%p5335_p4)  }
 0x268   :  { %601 = dma.hbm_to_vmem [thread:$0]  %s588_s27, 16, %s6854_s25, [#allocation3] }
 0x269   :  { %s4210_s29 = sshll.u32 %s6851_s18, 4  ;;  %s6882_s1 = sld [smem:[#allocation7 + $0x182]] }
 0x26a   :  { %s607_s8 = scalar_lea.hbm %s7589_s2, %s4210_s29 }
 0x26b   :  { %s5339_s9 = scalar_lea.hbm %s607_s8, 16  ;;  %p5342_p6 = scmp.lt.u32.totalorder %s607_s8, %s7589_s2 }
 0x26c   :  { %p5340_p5 = scmp.ne.s32.totalorder %s607_s8, %s5339_s9  ;;  %p5343_p7 = scmp.lt.u32.totalorder %s6497_s17, %s5339_s9 }
 0x26d   :  { %p5345_p9 = scmp.lt.u32.totalorder %s5339_s9, %s607_s8 }
 0x26e   :  { %p5344_p8 = por %p5343_p7, %p5342_p6 }
 0x270   :  { %p5346_p10 = por %p5345_p9, %p5344_p8 }
 0x272   :  { %p5347_p11 = pnand %p5346_p10, %p5340_p5 }
 0x274   :  { %5350 = shalt.err (!%p5347_p11)  }
 0x275   :  { %s5351_s25 = scalar_lea.vmem %s6869_s14, 16  ;;  %p5356_p13 = scmp.lt.s32.totalorder %s6869_s14, %s6476_s26 }
 0x276   :  { %p5352_p12 = scmp.ne.s32.totalorder %s6869_s14, %s5351_s25  ;;  %p5357_p0 = scmp.lt.s32.totalorder %s6506_s22, %s5351_s25 }
 0x278   :  { %p5358_p1 = por %p5357_p0, %p5356_p13 }
 0x27a   :  { %p5359_p2 = pnand %p5358_p1, %p5352_p12 }
 0x27c   :  { %5362 = shalt.err (!%p5359_p2)  }
 0x27d   :  { %620 = dma.hbm_to_vmem [thread:$0]  %s607_s8, 16, %s6869_s14, [#allocation3] }
 0x27e   :  { %s6339_s18 = smov [#allocation2 + $0x1a]   ;;  %s6897_s3 = sld [smem:[#allocation7 + $0x183]] }
 0x27f   :  { %s636_s10 = sshll.u32 %s6339_s18, 4  ;;  %s6340_s28 = smov [#allocation2 + $0x1b]   ;;  %s637_s10 = int_to_ptr.vmem [resolvable:$true] %s636_s10 }
 0x280   :  { %s655_s12 = sshll.u32 %s6340_s28, 4  ;;  %s6899_s21 = sld [smem:[#allocation7 + $0x184]]  ;;  %s6902_s12 = int_to_ptr.vmem [resolvable:$true] %s655_s12 }
 0x281   :  { %s4212_s23 = sshll.u32 %s6882_s1, 4 }
 0x282   :  { %s626_s27 = scalar_lea.hbm %s7589_s2, %s4212_s23 }
 0x283   :  { %s5363_s16 = scalar_lea.hbm %s626_s27, 16  ;;  %p5366_p4 = scmp.lt.u32.totalorder %s626_s27, %s7589_s2 }
 0x284   :  { %p5364_p3 = scmp.ne.s32.totalorder %s626_s27, %s5363_s16  ;;  %p5367_p5 = scmp.lt.u32.totalorder %s6497_s17, %s5363_s16 }
 0x285   :  { %p5369_p7 = scmp.lt.u32.totalorder %s5363_s16, %s626_s27 }
 0x286   :  { %p5368_p6 = por %p5367_p5, %p5366_p4 }
 0x288   :  { %p5370_p8 = por %p5369_p7, %p5368_p6 }
 0x28a   :  { %p5371_p9 = pnand %p5370_p8, %p5364_p3 }
 0x28c   :  { %5374 = shalt.err (!%p5371_p9)  }
 0x28d   :  { %s5375_s19 = scalar_lea.vmem %s637_s10, 16  ;;  %p5380_p11 = scmp.lt.s32.totalorder %s637_s10, %s6476_s26 }
 0x28e   :  { %p5376_p10 = scmp.ne.s32.totalorder %s637_s10, %s5375_s19  ;;  %p5381_p12 = scmp.lt.s32.totalorder %s6506_s22, %s5375_s19 }
 0x290   :  { %p5382_p13 = por %p5381_p12, %p5380_p11 }
 0x292   :  { %p5383_p0 = pnand %p5382_p13, %p5376_p10 }
 0x294   :  { %5386 = shalt.err (!%p5383_p0)  }
 0x295   :  { %639 = dma.hbm_to_vmem [thread:$0]  %s626_s27, 16, %s637_s10, [#allocation3] }
 0x296   :  { %s4214_s20 = sshll.u32 %s6897_s3, 4  ;;  %s6341_s29 = smov [#allocation2 + $0x1c]  }
 0x297   :  { %s674_s1 = sshll.u32 %s6341_s29, 4  ;;  %s645_s8 = scalar_lea.hbm %s7589_s2, %s4214_s20  ;;  %s6917_s1 = int_to_ptr.vmem [resolvable:$true] %s674_s1 }
 0x298   :  { %s5387_s9 = scalar_lea.hbm %s645_s8, 16  ;;  %p5390_p2 = scmp.lt.u32.totalorder %s645_s8, %s7589_s2 }
 0x299   :  { %p5388_p1 = scmp.ne.s32.totalorder %s645_s8, %s5387_s9  ;;  %p5391_p3 = scmp.lt.u32.totalorder %s6497_s17, %s5387_s9 }
 0x29a   :  { %p5393_p5 = scmp.lt.u32.totalorder %s5387_s9, %s645_s8 }
 0x29b   :  { %p5392_p4 = por %p5391_p3, %p5390_p2 }
 0x29d   :  { %p5394_p6 = por %p5393_p5, %p5392_p4 }
 0x29f   :  { %p5395_p7 = pnand %p5394_p6, %p5388_p1 }
 0x2a1   :  { %5398 = shalt.err (!%p5395_p7)  }
 0x2a2   :  { %s5399_s25 = scalar_lea.vmem %s6902_s12, 16  ;;  %p5404_p9 = scmp.lt.s32.totalorder %s6902_s12, %s6476_s26 }
 0x2a3   :  { %p5400_p8 = scmp.ne.s32.totalorder %s6902_s12, %s5399_s25  ;;  %p5405_p10 = scmp.lt.s32.totalorder %s6506_s22, %s5399_s25 }
 0x2a5   :  { %p5406_p11 = por %p5405_p10, %p5404_p9 }
 0x2a7   :  { %p5407_p12 = pnand %p5406_p11, %p5400_p8 }
 0x2a9   :  { %5410 = shalt.err (!%p5407_p12)  }
 0x2aa   :  { %658 = dma.hbm_to_vmem [thread:$0]  %s645_s8, 16, %s6902_s12, [#allocation3] }
 0x2ab   :  { %s4216_s18 = sshll.u32 %s6899_s21, 4  ;;  %s6930_s10 = sld [smem:[#allocation7 + $0x185]] }
 0x2ac   :  { %s664_s23 = scalar_lea.hbm %s7589_s2, %s4216_s18 }
 0x2ad   :  { %s5411_s30 = scalar_lea.hbm %s664_s23, 16  ;;  %p5414_p0 = scmp.lt.u32.totalorder %s664_s23, %s7589_s2 }
 0x2ae   :  { %p5412_p13 = scmp.ne.s32.totalorder %s664_s23, %s5411_s30  ;;  %p5415_p1 = scmp.lt.u32.totalorder %s6497_s17, %s5411_s30 }
 0x2af   :  { %p5417_p3 = scmp.lt.u32.totalorder %s5411_s30, %s664_s23 }
 0x2b0   :  { %p5416_p2 = por %p5415_p1, %p5414_p0 }
 0x2b2   :  { %p5418_p4 = por %p5417_p3, %p5416_p2 }
 0x2b4   :  { %p5419_p5 = pnand %p5418_p4, %p5412_p13 }
 0x2b6   :  { %5422 = shalt.err (!%p5419_p5)  }
 0x2b7   :  { %s5423_s12 = scalar_lea.vmem %s6917_s1, 16  ;;  %p5428_p7 = scmp.lt.s32.totalorder %s6917_s1, %s6476_s26 }
 0x2b8   :  { %p5424_p6 = scmp.ne.s32.totalorder %s6917_s1, %s5423_s12  ;;  %p5429_p8 = scmp.lt.s32.totalorder %s6506_s22, %s5423_s12 }
 0x2ba   :  { %p5430_p9 = por %p5429_p8, %p5428_p7 }
 0x2bc   :  { %p5431_p10 = pnand %p5430_p9, %p5424_p6 }
 0x2be   :  { %5434 = shalt.err (!%p5431_p10)  }
 0x2bf   :  { %677 = dma.hbm_to_vmem [thread:$0]  %s664_s23, 16, %s6917_s1, [#allocation3] }
 0x2c0   :  { %s6342_s21 = smov [#allocation2 + $0x1d]   ;;  %s6945_s13 = sld [smem:[#allocation7 + $0x186]] }
 0x2c1   :  { %s693_s16 = sshll.u32 %s6342_s21, 4  ;;  %s6343_s14 = smov [#allocation2 + $0x1e]   ;;  %s694_s16 = int_to_ptr.vmem [resolvable:$true] %s693_s16 }
 0x2c2   :  { %s712_s19 = sshll.u32 %s6343_s14, 4  ;;  %s6947_s20 = sld [smem:[#allocation7 + $0x187]]  ;;  %s6950_s19 = int_to_ptr.vmem [resolvable:$true] %s712_s19 }
 0x2c3   :  { %s4218_s29 = sshll.u32 %s6930_s10, 4 }
 0x2c4   :  { %s683_s8 = scalar_lea.hbm %s7589_s2, %s4218_s29 }
 0x2c5   :  { %s5435_s9 = scalar_lea.hbm %s683_s8, 16  ;;  %p5438_p12 = scmp.lt.u32.totalorder %s683_s8, %s7589_s2 }
 0x2c6   :  { %p5436_p11 = scmp.ne.s32.totalorder %s683_s8, %s5435_s9  ;;  %p5439_p13 = scmp.lt.u32.totalorder %s6497_s17, %s5435_s9 }
 0x2c7   :  { %p5441_p1 = scmp.lt.u32.totalorder %s5435_s9, %s683_s8 }
 0x2c8   :  { %p5440_p0 = por %p5439_p13, %p5438_p12 }
 0x2ca   :  { %p5442_p2 = por %p5441_p1, %p5440_p0 }
 0x2cc   :  { %p5443_p3 = pnand %p5442_p2, %p5436_p11 }
 0x2ce   :  { %5446 = shalt.err (!%p5443_p3)  }
 0x2cf   :  { %s5447_s24 = scalar_lea.vmem %s694_s16, 16  ;;  %p5452_p5 = scmp.lt.s32.totalorder %s694_s16, %s6476_s26 }
 0x2d0   :  { %p5448_p4 = scmp.ne.s32.totalorder %s694_s16, %s5447_s24  ;;  %p5453_p6 = scmp.lt.s32.totalorder %s6506_s22, %s5447_s24 }
 0x2d2   :  { %p5454_p7 = por %p5453_p6, %p5452_p5 }
 0x2d4   :  { %p5455_p8 = pnand %p5454_p7, %p5448_p4 }
 0x2d6   :  { %5458 = shalt.err (!%p5455_p8)  }
 0x2d7   :  { %696 = dma.hbm_to_vmem [thread:$0]  %s683_s8, 16, %s694_s16, [#allocation3] }
 0x2d8   :  { %s4220_s25 = sshll.u32 %s6945_s13, 4  ;;  %s6344_s18 = smov [#allocation2 + $0x1f]  }
 0x2d9   :  { %s731_s10 = sshll.u32 %s6344_s18, 4  ;;  %s702_s23 = scalar_lea.hbm %s7589_s2, %s4220_s25  ;;  %s6965_s10 = int_to_ptr.vmem [resolvable:$true] %s731_s10 }
 0x2da   :  { %s5459_s30 = scalar_lea.hbm %s702_s23, 16  ;;  %p5462_p10 = scmp.lt.u32.totalorder %s702_s23, %s7589_s2 }
 0x2db   :  { %p5460_p9 = scmp.ne.s32.totalorder %s702_s23, %s5459_s30  ;;  %p5463_p11 = scmp.lt.u32.totalorder %s6497_s17, %s5459_s30 }
 0x2dc   :  { %p5465_p13 = scmp.lt.u32.totalorder %s5459_s30, %s702_s23 }
 0x2dd   :  { %p5464_p12 = por %p5463_p11, %p5462_p10 }
 0x2df   :  { %p5466_p0 = por %p5465_p13, %p5464_p12 }
 0x2e1   :  { %p5467_p1 = pnand %p5466_p0, %p5460_p9 }
 0x2e3   :  { %5470 = shalt.err (!%p5467_p1)  }
 0x2e4   :  { %s5471_s12 = scalar_lea.vmem %s6950_s19, 16  ;;  %p5476_p3 = scmp.lt.s32.totalorder %s6950_s19, %s6476_s26 }
 0x2e5   :  { %p5472_p2 = scmp.ne.s32.totalorder %s6950_s19, %s5471_s12  ;;  %p5477_p4 = scmp.lt.s32.totalorder %s6506_s22, %s5471_s12 }
 0x2e7   :  { %p5478_p5 = por %p5477_p4, %p5476_p3 }
 0x2e9   :  { %p5479_p6 = pnand %p5478_p5, %p5472_p2 }
 0x2eb   :  { %5482 = shalt.err (!%p5479_p6)  }
 0x2ec   :  { %715 = dma.hbm_to_vmem [thread:$0]  %s702_s23, 16, %s6950_s19, [#allocation3]  ;;  %vm80_vm0 = vcmask 7168   ;;  %v6345_v0 = vmov 0.0  }
 0x2ed   :  { %s4222_s21 = sshll.u32 %s6947_s20, 4  ;;  %s6978_s16 = sld [smem:[#allocation7 + $0x200]]  ;;  %81 = vst.msk [vmem:[#allocation5] sm:$0xff] %vm80_vm0, %v6345_v0 }
 0x2ee   :  { %s721_s29 = scalar_lea.hbm %s7589_s2, %s4222_s21 }
 0x2ef   :  { %s5483_s5 = scalar_lea.hbm %s721_s29, 16  ;;  %p5486_p8 = scmp.lt.u32.totalorder %s721_s29, %s7589_s2 }
 0x2f0   :  { %p5484_p7 = scmp.ne.s32.totalorder %s721_s29, %s5483_s5  ;;  %p5487_p9 = scmp.lt.u32.totalorder %s6497_s17, %s5483_s5 }
 0x2f1   :  { %p5489_p11 = scmp.lt.u32.totalorder %s5483_s5, %s721_s29 }
 0x2f2   :  { %p5488_p10 = por %p5487_p9, %p5486_p8 }
 0x2f4   :  { %p5490_p12 = por %p5489_p11, %p5488_p10 }
 0x2f6   :  { %p5491_p13 = pnand %p5490_p12, %p5484_p7 }
 0x2f8   :  { %5494 = shalt.err (!%p5491_p13)  }
 0x2f9   :  { %s5495_s19 = scalar_lea.vmem %s6965_s10, 16  ;;  %p5500_p1 = scmp.lt.s32.totalorder %s6965_s10, %s6476_s26 }
 0x2fa   :  { %p5496_p0 = scmp.ne.s32.totalorder %s6965_s10, %s5495_s19  ;;  %p5501_p2 = scmp.lt.s32.totalorder %s6506_s22, %s5495_s19 }
 0x2fc   :  { %p5502_p3 = por %p5501_p2, %p5500_p1 }
 0x2fe   :  { %p5503_p4 = pnand %p5502_p3, %p5496_p0 }
 0x300   :  { %5506 = shalt.err (!%p5503_p4)  }
 0x301   :  { %734 = dma.hbm_to_vmem [thread:$0]  %s721_s29, 16, %s6965_s10, [#allocation3] }
 0x302   :  { %s6346_s20 = smov [#allocation2 + $0x20]   ;;  %s6995_s0 = sld [smem:[#allocation7 + $0x201]] }
 0x303   :  { %s751_s9 = sshll.u32 %s6346_s20, 4  ;;  %s6347_s1 = smov [#allocation2 + $0x21]   ;;  %s752_s9 = int_to_ptr.vmem [resolvable:$true] %s751_s9 }
 0x304   :  { %s770_s24 = sshll.u32 %s6347_s1, 4  ;;  %s6997_s25 = sld [smem:[#allocation7 + $0x202]]  ;;  %s7000_s24 = int_to_ptr.vmem [resolvable:$true] %s770_s24 }
 0x305   :  { %s4224_s18 = sshll.u32 %s6978_s16, 4 }
 0x306   :  { %s741_s23 = scalar_lea.hbm %s7589_s2, %s4224_s18 }
 0x307   :  { %s5507_s30 = scalar_lea.hbm %s741_s23, 16  ;;  %p5510_p6 = scmp.lt.u32.totalorder %s741_s23, %s7589_s2 }
 0x308   :  { %p5508_p5 = scmp.ne.s32.totalorder %s741_s23, %s5507_s30  ;;  %p5511_p7 = scmp.lt.u32.totalorder %s6497_s17, %s5507_s30 }
 0x309   :  { %p5513_p9 = scmp.lt.u32.totalorder %s5507_s30, %s741_s23 }
 0x30a   :  { %p5512_p8 = por %p5511_p7, %p5510_p6 }
 0x30c   :  { %p5514_p10 = por %p5513_p9, %p5512_p8 }
 0x30e   :  { %p5515_p11 = pnand %p5514_p10, %p5508_p5 }
 0x310   :  { %5518 = shalt.err (!%p5515_p11)  }
 0x311   :  { %s5519_s27 = scalar_lea.vmem %s752_s9, 16  ;;  %p5524_p13 = scmp.lt.s32.totalorder %s752_s9, %s6476_s26 }
 0x312   :  { %p5520_p12 = scmp.ne.s32.totalorder %s752_s9, %s5519_s27  ;;  %p5525_p0 = scmp.lt.s32.totalorder %s6506_s22, %s5519_s27 }
 0x314   :  { %p5526_p1 = por %p5525_p0, %p5524_p13 }
 0x316   :  { %p5527_p2 = pnand %p5526_p1, %p5520_p12 }
 0x318   :  { %5530 = shalt.err (!%p5527_p2)  }
 0x319   :  { %754 = dma.hbm_to_vmem [thread:$0]  %s741_s23, 16, %s752_s9, [#allocation3] }
 0x31a   :  { %s4226_s12 = sshll.u32 %s6995_s0, 4  ;;  %s6348_s21 = smov [#allocation2 + $0x22]  }
 0x31b   :  { %s789_s16 = sshll.u32 %s6348_s21, 4  ;;  %s760_s29 = scalar_lea.hbm %s7589_s2, %s4226_s12  ;;  %s7015_s16 = int_to_ptr.vmem [resolvable:$true] %s789_s16 }
 0x31c   :  { %s5531_s5 = scalar_lea.hbm %s760_s29, 16  ;;  %p5534_p4 = scmp.lt.u32.totalorder %s760_s29, %s7589_s2 }
 0x31d   :  { %p5532_p3 = scmp.ne.s32.totalorder %s760_s29, %s5531_s5  ;;  %p5535_p5 = scmp.lt.u32.totalorder %s6497_s17, %s5531_s5 }
 0x31e   :  { %p5537_p7 = scmp.lt.u32.totalorder %s5531_s5, %s760_s29 }
 0x31f   :  { %p5536_p6 = por %p5535_p5, %p5534_p4 }
 0x321   :  { %p5538_p8 = por %p5537_p7, %p5536_p6 }
 0x323   :  { %p5539_p9 = pnand %p5538_p8, %p5532_p3 }
 0x325   :  { %5542 = shalt.err (!%p5539_p9)  }
 0x326   :  { %s5543_s19 = scalar_lea.vmem %s7000_s24, 16  ;;  %p5548_p11 = scmp.lt.s32.totalorder %s7000_s24, %s6476_s26 }
 0x327   :  { %p5544_p10 = scmp.ne.s32.totalorder %s7000_s24, %s5543_s19  ;;  %p5549_p12 = scmp.lt.s32.totalorder %s6506_s22, %s5543_s19 }
 0x329   :  { %p5550_p13 = por %p5549_p12, %p5548_p11 }
 0x32b   :  { %p5551_p0 = pnand %p5550_p13, %p5544_p10 }
 0x32d   :  { %5554 = shalt.err (!%p5551_p0)  }
 0x32e   :  { %773 = dma.hbm_to_vmem [thread:$0]  %s760_s29, 16, %s7000_s24, [#allocation3] }
 0x32f   :  { %s4228_s20 = sshll.u32 %s6997_s25, 4  ;;  %s7028_s9 = sld [smem:[#allocation7 + $0x203]] }
 0x330   :  { %s779_s18 = scalar_lea.hbm %s7589_s2, %s4228_s20 }
 0x331   :  { %s5555_s3 = scalar_lea.hbm %s779_s18, 16  ;;  %p5558_p2 = scmp.lt.u32.totalorder %s779_s18, %s7589_s2 }
 0x332   :  { %p5556_p1 = scmp.ne.s32.totalorder %s779_s18, %s5555_s3  ;;  %p5559_p3 = scmp.lt.u32.totalorder %s6497_s17, %s5555_s3 }
 0x333   :  { %p5561_p5 = scmp.lt.u32.totalorder %s5555_s3, %s779_s18 }
 0x334   :  { %p5560_p4 = por %p5559_p3, %p5558_p2 }
 0x336   :  { %p5562_p6 = por %p5561_p5, %p5560_p4 }
 0x338   :  { %p5563_p7 = pnand %p5562_p6, %p5556_p1 }
 0x33a   :  { %5566 = shalt.err (!%p5563_p7)  }
 0x33b   :  { %s5567_s24 = scalar_lea.vmem %s7015_s16, 16  ;;  %p5572_p9 = scmp.lt.s32.totalorder %s7015_s16, %s6476_s26 }
 0x33c   :  { %p5568_p8 = scmp.ne.s32.totalorder %s7015_s16, %s5567_s24  ;;  %p5573_p10 = scmp.lt.s32.totalorder %s6506_s22, %s5567_s24 }
 0x33e   :  { %p5574_p11 = por %p5573_p10, %p5572_p9 }
 0x340   :  { %p5575_p12 = pnand %p5574_p11, %p5568_p8 }
 0x342   :  { %5578 = shalt.err (!%p5575_p12)  }
 0x343   :  { %792 = dma.hbm_to_vmem [thread:$0]  %s779_s18, 16, %s7015_s16, [#allocation3] }
 0x344   :  { %s6349_s25 = smov [#allocation2 + $0x23]   ;;  %s7043_s11 = sld [smem:[#allocation7 + $0x204]] }
 0x345   :  { %s808_s30 = sshll.u32 %s6349_s25, 4  ;;  %s6350_s10 = smov [#allocation2 + $0x24]   ;;  %s809_s30 = int_to_ptr.vmem [resolvable:$true] %s808_s30 }
 0x346   :  { %s827_s27 = sshll.u32 %s6350_s10, 4  ;;  %s7045_s12 = sld [smem:[#allocation7 + $0x205]]  ;;  %s7048_s27 = int_to_ptr.vmem [resolvable:$true] %s827_s27 }
 0x347   :  { %s4230_s21 = sshll.u32 %s7028_s9, 4 }
 0x348   :  { %s798_s29 = scalar_lea.hbm %s7589_s2, %s4230_s21 }
 0x349   :  { %s5579_s5 = scalar_lea.hbm %s798_s29, 16  ;;  %p5582_p0 = scmp.lt.u32.totalorder %s798_s29, %s7589_s2 }
 0x34a   :  { %p5580_p13 = scmp.ne.s32.totalorder %s798_s29, %s5579_s5  ;;  %p5583_p1 = scmp.lt.u32.totalorder %s6497_s17, %s5579_s5 }
 0x34b   :  { %p5585_p3 = scmp.lt.u32.totalorder %s5579_s5, %s798_s29 }
 0x34c   :  { %p5584_p2 = por %p5583_p1, %p5582_p0 }
 0x34e   :  { %p5586_p4 = por %p5585_p3, %p5584_p2 }
 0x350   :  { %p5587_p5 = pnand %p5586_p4, %p5580_p13 }
 0x352   :  { %5590 = shalt.err (!%p5587_p5)  }
 0x353   :  { %s5591_s8 = scalar_lea.vmem %s809_s30, 16  ;;  %p5596_p7 = scmp.lt.s32.totalorder %s809_s30, %s6476_s26 }
 0x354   :  { %p5592_p6 = scmp.ne.s32.totalorder %s809_s30, %s5591_s8  ;;  %p5597_p8 = scmp.lt.s32.totalorder %s6506_s22, %s5591_s8 }
 0x356   :  { %p5598_p9 = por %p5597_p8, %p5596_p7 }
 0x358   :  { %p5599_p10 = pnand %p5598_p9, %p5592_p6 }
 0x35a   :  { %5602 = shalt.err (!%p5599_p10)  }
 0x35b   :  { %811 = dma.hbm_to_vmem [thread:$0]  %s798_s29, 16, %s809_s30, [#allocation3] }
 0x35c   :  { %s4232_s19 = sshll.u32 %s7043_s11, 4  ;;  %s6351_s20 = smov [#allocation2 + $0x25]  }
 0x35d   :  { %s846_s9 = sshll.u32 %s6351_s20, 4  ;;  %s817_s18 = scalar_lea.hbm %s7589_s2, %s4232_s19  ;;  %s7063_s9 = int_to_ptr.vmem [resolvable:$true] %s846_s9 }
 0x35e   :  { %s5603_s3 = scalar_lea.hbm %s817_s18, 16  ;;  %p5606_p12 = scmp.lt.u32.totalorder %s817_s18, %s7589_s2 }
 0x35f   :  { %p5604_p11 = scmp.ne.s32.totalorder %s817_s18, %s5603_s3  ;;  %p5607_p13 = scmp.lt.u32.totalorder %s6497_s17, %s5603_s3 }
 0x360   :  { %p5609_p1 = scmp.lt.u32.totalorder %s5603_s3, %s817_s18 }
 0x361   :  { %p5608_p0 = por %p5607_p13, %p5606_p12 }
 0x363   :  { %p5610_p2 = por %p5609_p1, %p5608_p0 }
 0x365   :  { %p5611_p3 = pnand %p5610_p2, %p5604_p11 }
 0x367   :  { %5614 = shalt.err (!%p5611_p3)  }
 0x368   :  { %s5615_s24 = scalar_lea.vmem %s7048_s27, 16  ;;  %p5620_p5 = scmp.lt.s32.totalorder %s7048_s27, %s6476_s26 }
 0x369   :  { %p5616_p4 = scmp.ne.s32.totalorder %s7048_s27, %s5615_s24  ;;  %p5621_p6 = scmp.lt.s32.totalorder %s6506_s22, %s5615_s24 }
 0x36b   :  { %p5622_p7 = por %p5621_p6, %p5620_p5 }
 0x36d   :  { %p5623_p8 = pnand %p5622_p7, %p5616_p4 }
 0x36f   :  { %5626 = shalt.err (!%p5623_p8)  }
 0x370   :  { %830 = dma.hbm_to_vmem [thread:$0]  %s817_s18, 16, %s7048_s27, [#allocation3] }
 0x371   :  { %s4234_s25 = sshll.u32 %s7045_s12, 4  ;;  %s7076_s30 = sld [smem:[#allocation7 + $0x206]] }
 0x372   :  { %s836_s21 = scalar_lea.hbm %s7589_s2, %s4234_s25 }
 0x373   :  { %s5627_s13 = scalar_lea.hbm %s836_s21, 16  ;;  %p5630_p10 = scmp.lt.u32.totalorder %s836_s21, %s7589_s2 }
 0x374   :  { %p5628_p9 = scmp.ne.s32.totalorder %s836_s21, %s5627_s13  ;;  %p5631_p11 = scmp.lt.u32.totalorder %s6497_s17, %s5627_s13 }
 0x375   :  { %p5633_p13 = scmp.lt.u32.totalorder %s5627_s13, %s836_s21 }
 0x376   :  { %p5632_p12 = por %p5631_p11, %p5630_p10 }
 0x378   :  { %p5634_p0 = por %p5633_p13, %p5632_p12 }
 0x37a   :  { %p5635_p1 = pnand %p5634_p0, %p5628_p9 }
 0x37c   :  { %5638 = shalt.err (!%p5635_p1)  }
 0x37d   :  { %s5639_s27 = scalar_lea.vmem %s7063_s9, 16  ;;  %p5644_p3 = scmp.lt.s32.totalorder %s7063_s9, %s6476_s26 }
 0x37e   :  { %p5640_p2 = scmp.ne.s32.totalorder %s7063_s9, %s5639_s27  ;;  %p5645_p4 = scmp.lt.s32.totalorder %s6506_s22, %s5639_s27 }
 0x380   :  { %p5646_p5 = por %p5645_p4, %p5644_p3 }
 0x382   :  { %p5647_p6 = pnand %p5646_p5, %p5640_p2 }
 0x384   :  { %5650 = shalt.err (!%p5647_p6)  }
 0x385   :  { %849 = dma.hbm_to_vmem [thread:$0]  %s836_s21, 16, %s7063_s9, [#allocation3] }
 0x386   :  { %s6352_s12 = smov [#allocation2 + $0x26]   ;;  %s7091_s15 = sld [smem:[#allocation7 + $0x207]] }
 0x387   :  { %s865_s5 = sshll.u32 %s6352_s12, 4  ;;  %s6353_s16 = smov [#allocation2 + $0x27]   ;;  %s866_s5 = int_to_ptr.vmem [resolvable:$true] %s865_s5 }
 0x388   :  { %s884_s8 = sshll.u32 %s6353_s16, 4  ;;  %s7093_s19 = sld [smem:[#allocation7 + $0x280]]  ;;  %s7096_s8 = int_to_ptr.vmem [resolvable:$true] %s884_s8 }
 0x389   :  { %s4236_s20 = sshll.u32 %s7076_s30, 4 }
 0x38a   :  { %s855_s18 = scalar_lea.hbm %s7589_s2, %s4236_s20 }
 0x38b   :  { %s5651_s3 = scalar_lea.hbm %s855_s18, 16  ;;  %p5654_p8 = scmp.lt.u32.totalorder %s855_s18, %s7589_s2 }
 0x38c   :  { %p5652_p7 = scmp.ne.s32.totalorder %s855_s18, %s5651_s3  ;;  %p5655_p9 = scmp.lt.u32.totalorder %s6497_s17, %s5651_s3 }
 0x38d   :  { %p5657_p11 = scmp.lt.u32.totalorder %s5651_s3, %s855_s18 }
 0x38e   :  { %p5656_p10 = por %p5655_p9, %p5654_p8 }
 0x390   :  { %p5658_p12 = por %p5657_p11, %p5656_p10 }
 0x392   :  { %p5659_p13 = pnand %p5658_p12, %p5652_p7 }
 0x394   :  { %5662 = shalt.err (!%p5659_p13)  }
 0x395   :  { %s5663_s23 = scalar_lea.vmem %s866_s5, 16  ;;  %p5668_p1 = scmp.lt.s32.totalorder %s866_s5, %s6476_s26 }
 0x396   :  { %p5664_p0 = scmp.ne.s32.totalorder %s866_s5, %s5663_s23  ;;  %p5669_p2 = scmp.lt.s32.totalorder %s6506_s22, %s5663_s23 }
 0x398   :  { %p5670_p3 = por %p5669_p2, %p5668_p1 }
 0x39a   :  { %p5671_p4 = pnand %p5670_p3, %p5664_p0 }
 0x39c   :  { %5674 = shalt.err (!%p5671_p4)  }
 0x39d   :  { %868 = dma.hbm_to_vmem [thread:$0]  %s855_s18, 16, %s866_s5, [#allocation3] }
 0x39e   :  { %s4238_s24 = sshll.u32 %s7091_s15, 4  ;;  %s6354_s25 = smov [#allocation2 + $0x28]  }
 0x39f   :  { %s904_s30 = sshll.u32 %s6354_s25, 4  ;;  %s874_s21 = scalar_lea.hbm %s7589_s2, %s4238_s24  ;;  %s7111_s30 = int_to_ptr.vmem [resolvable:$true] %s904_s30 }
 0x3a0   :  { %s5675_s13 = scalar_lea.hbm %s874_s21, 16  ;;  %p5678_p6 = scmp.lt.u32.totalorder %s874_s21, %s7589_s2 }
 0x3a1   :  { %p5676_p5 = scmp.ne.s32.totalorder %s874_s21, %s5675_s13  ;;  %p5679_p7 = scmp.lt.u32.totalorder %s6497_s17, %s5675_s13 }
 0x3a2   :  { %p5681_p9 = scmp.lt.u32.totalorder %s5675_s13, %s874_s21 }
 0x3a3   :  { %p5680_p8 = por %p5679_p7, %p5678_p6 }
 0x3a5   :  { %p5682_p10 = por %p5681_p9, %p5680_p8 }
 0x3a7   :  { %p5683_p11 = pnand %p5682_p10, %p5676_p5 }
 0x3a9   :  { %5686 = shalt.err (!%p5683_p11)  }
 0x3aa   :  { %s5687_s27 = scalar_lea.vmem %s7096_s8, 16  ;;  %p5692_p13 = scmp.lt.s32.totalorder %s7096_s8, %s6476_s26 }
 0x3ab   :  { %p5688_p12 = scmp.ne.s32.totalorder %s7096_s8, %s5687_s27  ;;  %p5693_p0 = scmp.lt.s32.totalorder %s6506_s22, %s5687_s27 }
 0x3ad   :  { %p5694_p1 = por %p5693_p0, %p5692_p13 }
 0x3af   :  { %p5695_p2 = pnand %p5694_p1, %p5688_p12 }
 0x3b1   :  { %5698 = shalt.err (!%p5695_p2)  }
 0x3b2   :  { %887 = dma.hbm_to_vmem [thread:$0]  %s874_s21, 16, %s7096_s8, [#allocation3] }
 0x3b3   :  { %s4240_s12 = sshll.u32 %s7093_s19, 4  ;;  %s7124_s5 = sld [smem:[#allocation7 + $0x281]] }
 0x3b4   :  { %s894_s20 = scalar_lea.hbm %s7589_s2, %s4240_s12 }
 0x3b5   :  { %s5699_s0 = scalar_lea.hbm %s894_s20, 16  ;;  %p5702_p4 = scmp.lt.u32.totalorder %s894_s20, %s7589_s2 }
 0x3b6   :  { %p5700_p3 = scmp.ne.s32.totalorder %s894_s20, %s5699_s0  ;;  %p5703_p5 = scmp.lt.u32.totalorder %s6497_s17, %s5699_s0 }
 0x3b7   :  { %p5705_p7 = scmp.lt.u32.totalorder %s5699_s0, %s894_s20 }
 0x3b8   :  { %p5704_p6 = por %p5703_p5, %p5702_p4 }
 0x3ba   :  { %p5706_p8 = por %p5705_p7, %p5704_p6 }
 0x3bc   :  { %p5707_p9 = pnand %p5706_p8, %p5700_p3 }
 0x3be   :  { %5710 = shalt.err (!%p5707_p9)  }
 0x3bf   :  { %s5711_s8 = scalar_lea.vmem %s7111_s30, 16  ;;  %p5716_p11 = scmp.lt.s32.totalorder %s7111_s30, %s6476_s26 }
 0x3c0   :  { %p5712_p10 = scmp.ne.s32.totalorder %s7111_s30, %s5711_s8  ;;  %p5717_p12 = scmp.lt.s32.totalorder %s6506_s22, %s5711_s8 }
 0x3c2   :  { %p5718_p13 = por %p5717_p12, %p5716_p11 }
 0x3c4   :  { %p5719_p0 = pnand %p5718_p13, %p5712_p10 }
 0x3c6   :  { %5722 = shalt.err (!%p5719_p0)  }
 0x3c7   :  { %907 = dma.hbm_to_vmem [thread:$0]  %s894_s20, 16, %s7111_s30, [#allocation3] }
 0x3c8   :  { %s6355_s19 = smov [#allocation2 + $0x29]   ;;  %s7139_s28 = sld [smem:[#allocation7 + $0x282]] }
 0x3c9   :  { %s923_s3 = sshll.u32 %s6355_s19, 4  ;;  %s6356_s9 = smov [#allocation2 + $0x2a]   ;;  %s924_s3 = int_to_ptr.vmem [resolvable:$true] %s923_s3 }
 0x3ca   :  { %s942_s23 = sshll.u32 %s6356_s9, 4  ;;  %s7141_s24 = sld [smem:[#allocation7 + $0x283]]  ;;  %s7144_s23 = int_to_ptr.vmem [resolvable:$true] %s942_s23 }
 0x3cb   :  { %s4242_s25 = sshll.u32 %s7124_s5, 4 }
 0x3cc   :  { %s913_s21 = scalar_lea.hbm %s7589_s2, %s4242_s25 }
 0x3cd   :  { %s5723_s13 = scalar_lea.hbm %s913_s21, 16  ;;  %p5726_p2 = scmp.lt.u32.totalorder %s913_s21, %s7589_s2 }
 0x3ce   :  { %p5724_p1 = scmp.ne.s32.totalorder %s913_s21, %s5723_s13  ;;  %p5727_p3 = scmp.lt.u32.totalorder %s6497_s17, %s5723_s13 }
 0x3cf   :  { %p5729_p5 = scmp.lt.u32.totalorder %s5723_s13, %s913_s21 }
 0x3d0   :  { %p5728_p4 = por %p5727_p3, %p5726_p2 }
 0x3d2   :  { %p5730_p6 = por %p5729_p5, %p5728_p4 }
 0x3d4   :  { %p5731_p7 = pnand %p5730_p6, %p5724_p1 }
 0x3d6   :  { %5734 = shalt.err (!%p5731_p7)  }
 0x3d7   :  { %s5735_s29 = scalar_lea.vmem %s924_s3, 16  ;;  %p5740_p9 = scmp.lt.s32.totalorder %s924_s3, %s6476_s26 }
 0x3d8   :  { %p5736_p8 = scmp.ne.s32.totalorder %s924_s3, %s5735_s29  ;;  %p5741_p10 = scmp.lt.s32.totalorder %s6506_s22, %s5735_s29 }
 0x3da   :  { %p5742_p11 = por %p5741_p10, %p5740_p9 }
 0x3dc   :  { %p5743_p12 = pnand %p5742_p11, %p5736_p8 }
 0x3de   :  { %5746 = shalt.err (!%p5743_p12)  }
 0x3df   :  { %926 = dma.hbm_to_vmem [thread:$0]  %s913_s21, 16, %s924_s3, [#allocation3] }
 0x3e0   :  { %s4244_s27 = sshll.u32 %s7139_s28, 4  ;;  %s6357_s12 = smov [#allocation2 + $0x2b]  }
 0x3e1   :  { %s961_s5 = sshll.u32 %s6357_s12, 4  ;;  %s932_s20 = scalar_lea.hbm %s7589_s2, %s4244_s27  ;;  %s7159_s5 = int_to_ptr.vmem [resolvable:$true] %s961_s5 }
 0x3e2   :  { %s5747_s0 = scalar_lea.hbm %s932_s20, 16  ;;  %p5750_p0 = scmp.lt.u32.totalorder %s932_s20, %s7589_s2 }
 0x3e3   :  { %p5748_p13 = scmp.ne.s32.totalorder %s932_s20, %s5747_s0  ;;  %p5751_p1 = scmp.lt.u32.totalorder %s6497_s17, %s5747_s0 }
 0x3e4   :  { %p5753_p3 = scmp.lt.u32.totalorder %s5747_s0, %s932_s20 }
 0x3e5   :  { %p5752_p2 = por %p5751_p1, %p5750_p0 }
 0x3e7   :  { %p5754_p4 = por %p5753_p3, %p5752_p2 }
 0x3e9   :  { %p5755_p5 = pnand %p5754_p4, %p5748_p13 }
 0x3eb   :  { %5758 = shalt.err (!%p5755_p5)  }
 0x3ec   :  { %s5759_s8 = scalar_lea.vmem %s7144_s23, 16  ;;  %p5764_p7 = scmp.lt.s32.totalorder %s7144_s23, %s6476_s26 }
 0x3ed   :  { %p5760_p6 = scmp.ne.s32.totalorder %s7144_s23, %s5759_s8  ;;  %p5765_p8 = scmp.lt.s32.totalorder %s6506_s22, %s5759_s8 }
 0x3ef   :  { %p5766_p9 = por %p5765_p8, %p5764_p7 }
 0x3f1   :  { %p5767_p10 = pnand %p5766_p9, %p5760_p6 }
 0x3f3   :  { %5770 = shalt.err (!%p5767_p10)  }
 0x3f4   :  { %945 = dma.hbm_to_vmem [thread:$0]  %s932_s20, 16, %s7144_s23, [#allocation3] }
 0x3f5   :  { %s4246_s19 = sshll.u32 %s7141_s24, 4  ;;  %s7172_s3 = sld [smem:[#allocation7 + $0x284]] }
 0x3f6   :  { %s951_s25 = scalar_lea.hbm %s7589_s2, %s4246_s19 }
 0x3f7   :  { %s5771_s11 = scalar_lea.hbm %s951_s25, 16  ;;  %p5774_p12 = scmp.lt.u32.totalorder %s951_s25, %s7589_s2 }
 0x3f8   :  { %p5772_p11 = scmp.ne.s32.totalorder %s951_s25, %s5771_s11  ;;  %p5775_p13 = scmp.lt.u32.totalorder %s6497_s17, %s5771_s11 }
 0x3f9   :  { %p5777_p1 = scmp.lt.u32.totalorder %s5771_s11, %s951_s25 }
 0x3fa   :  { %p5776_p0 = por %p5775_p13, %p5774_p12 }
 0x3fc   :  { %p5778_p2 = por %p5777_p1, %p5776_p0 }
 0x3fe   :  { %p5779_p3 = pnand %p5778_p2, %p5772_p11 }
 0x400   :  { %5782 = shalt.err (!%p5779_p3)  }
 0x401   :  { %s5783_s23 = scalar_lea.vmem %s7159_s5, 16  ;;  %p5788_p5 = scmp.lt.s32.totalorder %s7159_s5, %s6476_s26 }
 0x402   :  { %p5784_p4 = scmp.ne.s32.totalorder %s7159_s5, %s5783_s23  ;;  %p5789_p6 = scmp.lt.s32.totalorder %s6506_s22, %s5783_s23 }
 0x404   :  { %p5790_p7 = por %p5789_p6, %p5788_p5 }
 0x406   :  { %p5791_p8 = pnand %p5790_p7, %p5784_p4 }
 0x408   :  { %5794 = shalt.err (!%p5791_p8)  }
 0x409   :  { %964 = dma.hbm_to_vmem [thread:$0]  %s951_s25, 16, %s7159_s5, [#allocation3] }
 0x40a   :  { %s6358_s24 = smov [#allocation2 + $0x2c]   ;;  %s7187_s14 = sld [smem:[#allocation7 + $0x285]] }
 0x40b   :  { %s980_s13 = sshll.u32 %s6358_s24, 4  ;;  %s6359_s30 = smov [#allocation2 + $0x2d]   ;;  %s981_s13 = int_to_ptr.vmem [resolvable:$true] %s980_s13 }
 0x40c   :  { %s999_s29 = sshll.u32 %s6359_s30, 4  ;;  %s7189_s27 = sld [smem:[#allocation7 + $0x286]]  ;;  %s7192_s29 = int_to_ptr.vmem [resolvable:$true] %s999_s29 }
 0x40d   :  { %s4248_s12 = sshll.u32 %s7172_s3, 4 }
 0x40e   :  { %s970_s20 = scalar_lea.hbm %s7589_s2, %s4248_s12 }
 0x40f   :  { %s5795_s0 = scalar_lea.hbm %s970_s20, 16  ;;  %p5798_p10 = scmp.lt.u32.totalorder %s970_s20, %s7589_s2 }
 0x410   :  { %p5796_p9 = scmp.ne.s32.totalorder %s970_s20, %s5795_s0  ;;  %p5799_p11 = scmp.lt.u32.totalorder %s6497_s17, %s5795_s0 }
 0x411   :  { %p5801_p13 = scmp.lt.u32.totalorder %s5795_s0, %s970_s20 }
 0x412   :  { %p5800_p12 = por %p5799_p11, %p5798_p10 }
 0x414   :  { %p5802_p0 = por %p5801_p13, %p5800_p12 }
 0x416   :  { %p5803_p1 = pnand %p5802_p0, %p5796_p9 }
 0x418   :  { %5806 = shalt.err (!%p5803_p1)  }
 0x419   :  { %s5807_s18 = scalar_lea.vmem %s981_s13, 16  ;;  %p5812_p3 = scmp.lt.s32.totalorder %s981_s13, %s6476_s26 }
 0x41a   :  { %p5808_p2 = scmp.ne.s32.totalorder %s981_s13, %s5807_s18  ;;  %p5813_p4 = scmp.lt.s32.totalorder %s6506_s22, %s5807_s18 }
 0x41c   :  { %p5814_p5 = por %p5813_p4, %p5812_p3 }
 0x41e   :  { %p5815_p6 = pnand %p5814_p5, %p5808_p2 }
 0x420   :  { %5818 = shalt.err (!%p5815_p6)  }
 0x421   :  { %983 = dma.hbm_to_vmem [thread:$0]  %s970_s20, 16, %s981_s13, [#allocation3] }
 0x422   :  { %s4250_s8 = sshll.u32 %s7187_s14, 4  ;;  %s6360_s19 = smov [#allocation2 + $0x2e]  }
 0x423   :  { %s1018_s3 = sshll.u32 %s6360_s19, 4  ;;  %s989_s25 = scalar_lea.hbm %s7589_s2, %s4250_s8  ;;  %s7207_s3 = int_to_ptr.vmem [resolvable:$true] %s1018_s3 }
 0x424   :  { %s5819_s11 = scalar_lea.hbm %s989_s25, 16  ;;  %p5822_p8 = scmp.lt.u32.totalorder %s989_s25, %s7589_s2 }
 0x425   :  { %p5820_p7 = scmp.ne.s32.totalorder %s989_s25, %s5819_s11  ;;  %p5823_p9 = scmp.lt.u32.totalorder %s6497_s17, %s5819_s11 }
 0x426   :  { %p5825_p11 = scmp.lt.u32.totalorder %s5819_s11, %s989_s25 }
 0x427   :  { %p5824_p10 = por %p5823_p9, %p5822_p8 }
 0x429   :  { %p5826_p12 = por %p5825_p11, %p5824_p10 }
 0x42b   :  { %p5827_p13 = pnand %p5826_p12, %p5820_p7 }
 0x42d   :  { %5830 = shalt.err (!%p5827_p13)  }
 0x42e   :  { %s5831_s23 = scalar_lea.vmem %s7192_s29, 16  ;;  %p5836_p1 = scmp.lt.s32.totalorder %s7192_s29, %s6476_s26 }
 0x42f   :  { %p5832_p0 = scmp.ne.s32.totalorder %s7192_s29, %s5831_s23  ;;  %p5837_p2 = scmp.lt.s32.totalorder %s6506_s22, %s5831_s23 }
 0x431   :  { %p5838_p3 = por %p5837_p2, %p5836_p1 }
 0x433   :  { %p5839_p4 = pnand %p5838_p3, %p5832_p0 }
 0x435   :  { %5842 = shalt.err (!%p5839_p4)  }
 0x436   :  { %1002 = dma.hbm_to_vmem [thread:$0]  %s989_s25, 16, %s7192_s29, [#allocation3] }
 0x437   :  { %s4252_s24 = sshll.u32 %s7189_s27, 4  ;;  %s7220_s13 = sld [smem:[#allocation7 + $0x287]] }
 0x438   :  { %s1008_s12 = scalar_lea.hbm %s7589_s2, %s4252_s24 }
 0x439   :  { %s5843_s15 = scalar_lea.hbm %s1008_s12, 16  ;;  %p5846_p6 = scmp.lt.u32.totalorder %s1008_s12, %s7589_s2 }
 0x43a   :  { %p5844_p5 = scmp.ne.s32.totalorder %s1008_s12, %s5843_s15  ;;  %p5847_p7 = scmp.lt.u32.totalorder %s6497_s17, %s5843_s15 }
 0x43b   :  { %p5849_p9 = scmp.lt.u32.totalorder %s5843_s15, %s1008_s12 }
 0x43c   :  { %p5848_p8 = por %p5847_p7, %p5846_p6 }
 0x43e   :  { %p5850_p10 = por %p5849_p9, %p5848_p8 }
 0x440   :  { %p5851_p11 = pnand %p5850_p10, %p5844_p5 }
 0x442   :  { %5854 = shalt.err (!%p5851_p11)  }
 0x443   :  { %s5855_s29 = scalar_lea.vmem %s7207_s3, 16  ;;  %p5860_p13 = scmp.lt.s32.totalorder %s7207_s3, %s6476_s26 }
 0x444   :  { %p5856_p12 = scmp.ne.s32.totalorder %s7207_s3, %s5855_s29  ;;  %p5861_p0 = scmp.lt.s32.totalorder %s6506_s22, %s5855_s29 }
 0x446   :  { %p5862_p1 = por %p5861_p0, %p5860_p13 }
 0x448   :  { %p5863_p2 = pnand %p5862_p1, %p5856_p12 }
 0x44a   :  { %5866 = shalt.err (!%p5863_p2)  }
 0x44b   :  { %1021 = dma.hbm_to_vmem [thread:$0]  %s1008_s12, 16, %s7207_s3, [#allocation3] }
 0x44c   :  { %s6361_s27 = smov [#allocation2 + $0x2f]   ;;  %s7235_s1 = sld [smem:[#allocation7 + $0x300]] }
 0x44d   :  { %s1037_s0 = sshll.u32 %s6361_s27, 4  ;;  %s6362_s5 = smov [#allocation2 + $0x30]   ;;  %s1038_s0 = int_to_ptr.vmem [resolvable:$true] %s1037_s0 }
 0x44e   :  { %s1057_s18 = sshll.u32 %s6362_s5, 4  ;;  %s7237_s8 = sld [smem:[#allocation7 + $0x301]]  ;;  %s7240_s18 = int_to_ptr.vmem [resolvable:$true] %s1057_s18 }
 0x44f   :  { %s4254_s19 = sshll.u32 %s7220_s13, 4 }
 0x450   :  { %s1027_s25 = scalar_lea.hbm %s7589_s2, %s4254_s19 }
 0x451   :  { %s5867_s11 = scalar_lea.hbm %s1027_s25, 16  ;;  %p5870_p4 = scmp.lt.u32.totalorder %s1027_s25, %s7589_s2 }
 0x452   :  { %p5868_p3 = scmp.ne.s32.totalorder %s1027_s25, %s5867_s11  ;;  %p5871_p5 = scmp.lt.u32.totalorder %s6497_s17, %s5867_s11 }
 0x453   :  { %p5873_p7 = scmp.lt.u32.totalorder %s5867_s11, %s1027_s25 }
 0x454   :  { %p5872_p6 = por %p5871_p5, %p5870_p4 }
 0x456   :  { %p5874_p8 = por %p5873_p7, %p5872_p6 }
 0x458   :  { %p5875_p9 = pnand %p5874_p8, %p5868_p3 }
 0x45a   :  { %5878 = shalt.err (!%p5875_p9)  }
 0x45b   :  { %s5879_s21 = scalar_lea.vmem %s1038_s0, 16  ;;  %p5884_p11 = scmp.lt.s32.totalorder %s1038_s0, %s6476_s26 }
 0x45c   :  { %p5880_p10 = scmp.ne.s32.totalorder %s1038_s0, %s5879_s21  ;;  %p5885_p12 = scmp.lt.s32.totalorder %s6506_s22, %s5879_s21 }
 0x45e   :  { %p5886_p13 = por %p5885_p12, %p5884_p11 }
 0x460   :  { %p5887_p0 = pnand %p5886_p13, %p5880_p10 }
 0x462   :  { %5890 = shalt.err (!%p5887_p0)  }
 0x463   :  { %1040 = dma.hbm_to_vmem [thread:$0]  %s1027_s25, 16, %s1038_s0, [#allocation3] }
 0x464   :  { %s4256_s23 = sshll.u32 %s7235_s1, 4  ;;  %s6363_s24 = smov [#allocation2 + $0x31]  }
 0x465   :  { %s1076_s13 = sshll.u32 %s6363_s24, 4  ;;  %s1047_s12 = scalar_lea.hbm %s7589_s2, %s4256_s23  ;;  %s7255_s13 = int_to_ptr.vmem [resolvable:$true] %s1076_s13 }
 0x466   :  { %s5891_s15 = scalar_lea.hbm %s1047_s12, 16  ;;  %p5894_p2 = scmp.lt.u32.totalorder %s1047_s12, %s7589_s2 }
 0x467   :  { %p5892_p1 = scmp.ne.s32.totalorder %s1047_s12, %s5891_s15  ;;  %p5895_p3 = scmp.lt.u32.totalorder %s6497_s17, %s5891_s15 }
 0x468   :  { %p5897_p5 = scmp.lt.u32.totalorder %s5891_s15, %s1047_s12 }
 0x469   :  { %p5896_p4 = por %p5895_p3, %p5894_p2 }
 0x46b   :  { %p5898_p6 = por %p5897_p5, %p5896_p4 }
 0x46d   :  { %p5899_p7 = pnand %p5898_p6, %p5892_p1 }
 0x46f   :  { %5902 = shalt.err (!%p5899_p7)  }
 0x470   :  { %s5903_s29 = scalar_lea.vmem %s7240_s18, 16  ;;  %p5908_p9 = scmp.lt.s32.totalorder %s7240_s18, %s6476_s26 }
 0x471   :  { %p5904_p8 = scmp.ne.s32.totalorder %s7240_s18, %s5903_s29  ;;  %p5909_p10 = scmp.lt.s32.totalorder %s6506_s22, %s5903_s29 }
 0x473   :  { %p5910_p11 = por %p5909_p10, %p5908_p9 }
 0x475   :  { %p5911_p12 = pnand %p5910_p11, %p5904_p8 }
 0x477   :  { %5914 = shalt.err (!%p5911_p12)  }
 0x478   :  { %1060 = dma.hbm_to_vmem [thread:$0]  %s1047_s12, 16, %s7240_s18, [#allocation3] }
 0x479   :  { %s4258_s27 = sshll.u32 %s7237_s8, 4  ;;  %s7268_s0 = sld [smem:[#allocation7 + $0x302]] }
 0x47a   :  { %s1066_s19 = scalar_lea.hbm %s7589_s2, %s4258_s27 }
 0x47b   :  { %s5915_s28 = scalar_lea.hbm %s1066_s19, 16  ;;  %p5918_p0 = scmp.lt.u32.totalorder %s1066_s19, %s7589_s2 }
 0x47c   :  { %p5916_p13 = scmp.ne.s32.totalorder %s1066_s19, %s5915_s28  ;;  %p5919_p1 = scmp.lt.u32.totalorder %s6497_s17, %s5915_s28 }
 0x47d   :  { %p5921_p3 = scmp.lt.u32.totalorder %s5915_s28, %s1066_s19 }
 0x47e   :  { %p5920_p2 = por %p5919_p1, %p5918_p0 }
 0x480   :  { %p5922_p4 = por %p5921_p3, %p5920_p2 }
 0x482   :  { %p5923_p5 = pnand %p5922_p4, %p5916_p13 }
 0x484   :  { %5926 = shalt.err (!%p5923_p5)  }
 0x485   :  { %s5927_s18 = scalar_lea.vmem %s7255_s13, 16  ;;  %p5932_p7 = scmp.lt.s32.totalorder %s7255_s13, %s6476_s26 }
 0x486   :  { %p5928_p6 = scmp.ne.s32.totalorder %s7255_s13, %s5927_s18  ;;  %p5933_p8 = scmp.lt.s32.totalorder %s6506_s22, %s5927_s18 }
 0x488   :  { %p5934_p9 = por %p5933_p8, %p5932_p7 }
 0x48a   :  { %p5935_p10 = pnand %p5934_p9, %p5928_p6 }
 0x48c   :  { %5938 = shalt.err (!%p5935_p10)  }
 0x48d   :  { %1079 = dma.hbm_to_vmem [thread:$0]  %s1066_s19, 16, %s7255_s13, [#allocation3] }
 0x48e   :  { %s6364_s8 = smov [#allocation2 + $0x32]   ;;  %s7283_s10 = sld [smem:[#allocation7 + $0x303]] }
 0x48f   :  { %s1095_s11 = sshll.u32 %s6364_s8, 4  ;;  %s6365_s3 = smov [#allocation2 + $0x33]   ;;  %s1096_s11 = int_to_ptr.vmem [resolvable:$true] %s1095_s11 }
 0x490   :  { %s1114_s21 = sshll.u32 %s6365_s3, 4  ;;  %s7285_s23 = sld [smem:[#allocation7 + $0x304]]  ;;  %s7288_s21 = int_to_ptr.vmem [resolvable:$true] %s1114_s21 }
 0x491   :  { %s4260_s24 = sshll.u32 %s7268_s0, 4 }
 0x492   :  { %s1085_s12 = scalar_lea.hbm %s7589_s2, %s4260_s24 }
 0x493   :  { %s5939_s15 = scalar_lea.hbm %s1085_s12, 16  ;;  %p5942_p12 = scmp.lt.u32.totalorder %s1085_s12, %s7589_s2 }
 0x494   :  { %p5940_p11 = scmp.ne.s32.totalorder %s1085_s12, %s5939_s15  ;;  %p5943_p13 = scmp.lt.u32.totalorder %s6497_s17, %s5939_s15 }
 0x495   :  { %p5945_p1 = scmp.lt.u32.totalorder %s5939_s15, %s1085_s12 }
 0x496   :  { %p5944_p0 = por %p5943_p13, %p5942_p12 }
 0x498   :  { %p5946_p2 = por %p5945_p1, %p5944_p0 }
 0x49a   :  { %p5947_p3 = pnand %p5946_p2, %p5940_p11 }
 0x49c   :  { %5950 = shalt.err (!%p5947_p3)  }
 0x49d   :  { %s5951_s20 = scalar_lea.vmem %s1096_s11, 16  ;;  %p5956_p5 = scmp.lt.s32.totalorder %s1096_s11, %s6476_s26 }
 0x49e   :  { %p5952_p4 = scmp.ne.s32.totalorder %s1096_s11, %s5951_s20  ;;  %p5957_p6 = scmp.lt.s32.totalorder %s6506_s22, %s5951_s20 }
 0x4a0   :  { %p5958_p7 = por %p5957_p6, %p5956_p5 }
 0x4a2   :  { %p5959_p8 = pnand %p5958_p7, %p5952_p4 }
 0x4a4   :  { %5962 = shalt.err (!%p5959_p8)  }
 0x4a5   :  { %1098 = dma.hbm_to_vmem [thread:$0]  %s1085_s12, 16, %s1096_s11, [#allocation3] }
 0x4a6   :  { %s4262_s29 = sshll.u32 %s7283_s10, 4  ;;  %s6366_s27 = smov [#allocation2 + $0x34]  }
 0x4a7   :  { %s1133_s0 = sshll.u32 %s6366_s27, 4  ;;  %s1104_s19 = scalar_lea.hbm %s7589_s2, %s4262_s29  ;;  %s7303_s0 = int_to_ptr.vmem [resolvable:$true] %s1133_s0 }
 0x4a8   :  { %s5963_s28 = scalar_lea.hbm %s1104_s19, 16  ;;  %p5966_p10 = scmp.lt.u32.totalorder %s1104_s19, %s7589_s2 }
 0x4a9   :  { %p5964_p9 = scmp.ne.s32.totalorder %s1104_s19, %s5963_s28  ;;  %p5967_p11 = scmp.lt.u32.totalorder %s6497_s17, %s5963_s28 }
 0x4aa   :  { %p5969_p13 = scmp.lt.u32.totalorder %s5963_s28, %s1104_s19 }
 0x4ab   :  { %p5968_p12 = por %p5967_p11, %p5966_p10 }
 0x4ad   :  { %p5970_p0 = por %p5969_p13, %p5968_p12 }
 0x4af   :  { %p5971_p1 = pnand %p5970_p0, %p5964_p9 }
 0x4b1   :  { %5974 = shalt.err (!%p5971_p1)  }
 0x4b2   :  { %s5975_s18 = scalar_lea.vmem %s7288_s21, 16  ;;  %p5980_p3 = scmp.lt.s32.totalorder %s7288_s21, %s6476_s26 }
 0x4b3   :  { %p5976_p2 = scmp.ne.s32.totalorder %s7288_s21, %s5975_s18  ;;  %p5981_p4 = scmp.lt.s32.totalorder %s6506_s22, %s5975_s18 }
 0x4b5   :  { %p5982_p5 = por %p5981_p4, %p5980_p3 }
 0x4b7   :  { %p5983_p6 = pnand %p5982_p5, %p5976_p2 }
 0x4b9   :  { %5986 = shalt.err (!%p5983_p6)  }
 0x4ba   :  { %1117 = dma.hbm_to_vmem [thread:$0]  %s1104_s19, 16, %s7288_s21, [#allocation3] }
 0x4bb   :  { %s4264_s8 = sshll.u32 %s7285_s23, 4  ;;  %s7316_s11 = sld [smem:[#allocation7 + $0x305]] }
 0x4bc   :  { %s1123_s24 = scalar_lea.hbm %s7589_s2, %s4264_s8 }
 0x4bd   :  { %s5987_s14 = scalar_lea.hbm %s1123_s24, 16  ;;  %p5990_p8 = scmp.lt.u32.totalorder %s1123_s24, %s7589_s2 }
 0x4be   :  { %p5988_p7 = scmp.ne.s32.totalorder %s1123_s24, %s5987_s14  ;;  %p5991_p9 = scmp.lt.u32.totalorder %s6497_s17, %s5987_s14 }
 0x4bf   :  { %p5993_p11 = scmp.lt.u32.totalorder %s5987_s14, %s1123_s24 }
 0x4c0   :  { %p5992_p10 = por %p5991_p9, %p5990_p8 }
 0x4c2   :  { %p5994_p12 = por %p5993_p11, %p5992_p10 }
 0x4c4   :  { %p5995_p13 = pnand %p5994_p12, %p5988_p7 }
 0x4c6   :  { %5998 = shalt.err (!%p5995_p13)  }
 0x4c7   :  { %s5999_s21 = scalar_lea.vmem %s7303_s0, 16  ;;  %p6004_p1 = scmp.lt.s32.totalorder %s7303_s0, %s6476_s26 }
 0x4c8   :  { %p6000_p0 = scmp.ne.s32.totalorder %s7303_s0, %s5999_s21  ;;  %p6005_p2 = scmp.lt.s32.totalorder %s6506_s22, %s5999_s21 }
 0x4ca   :  { %p6006_p3 = por %p6005_p2, %p6004_p1 }
 0x4cc   :  { %p6007_p4 = pnand %p6006_p3, %p6000_p0 }
 0x4ce   :  { %6010 = shalt.err (!%p6007_p4)  }
 0x4cf   :  { %1136 = dma.hbm_to_vmem [thread:$0]  %s1123_s24, 16, %s7303_s0, [#allocation3] }
 0x4d0   :  { %s6367_s23 = smov [#allocation2 + $0x35]   ;;  %s7331_s16 = sld [smem:[#allocation7 + $0x306]] }
 0x4d1   :  { %s1152_s15 = sshll.u32 %s6367_s23, 4  ;;  %s6368_s13 = smov [#allocation2 + $0x36]   ;;  %s1153_s15 = int_to_ptr.vmem [resolvable:$true] %s1152_s15 }
 0x4d2   :  { %s1171_s20 = sshll.u32 %s6368_s13, 4  ;;  %s7333_s29 = sld [smem:[#allocation7 + $0x307]]  ;;  %s7336_s20 = int_to_ptr.vmem [resolvable:$true] %s1171_s20 }
 0x4d3   :  { %s4266_s27 = sshll.u32 %s7316_s11, 4 }
 0x4d4   :  { %s1142_s19 = scalar_lea.hbm %s7589_s2, %s4266_s27 }
 0x4d5   :  { %s6011_s28 = scalar_lea.hbm %s1142_s19, 16  ;;  %p6014_p6 = scmp.lt.u32.totalorder %s1142_s19, %s7589_s2 }
 0x4d6   :  { %p6012_p5 = scmp.ne.s32.totalorder %s1142_s19, %s6011_s28  ;;  %p6015_p7 = scmp.lt.u32.totalorder %s6497_s17, %s6011_s28 }
 0x4d7   :  { %p6017_p9 = scmp.lt.u32.totalorder %s6011_s28, %s1142_s19 }
 0x4d8   :  { %p6016_p8 = por %p6015_p7, %p6014_p6 }
 0x4da   :  { %p6018_p10 = por %p6017_p9, %p6016_p8 }
 0x4dc   :  { %p6019_p11 = pnand %p6018_p10, %p6012_p5 }
 0x4de   :  { %6022 = shalt.err (!%p6019_p11)  }
 0x4df   :  { %s6023_s25 = scalar_lea.vmem %s1153_s15, 16  ;;  %p6028_p13 = scmp.lt.s32.totalorder %s1153_s15, %s6476_s26 }
 0x4e0   :  { %p6024_p12 = scmp.ne.s32.totalorder %s1153_s15, %s6023_s25  ;;  %p6029_p0 = scmp.lt.s32.totalorder %s6506_s22, %s6023_s25 }
 0x4e2   :  { %p6030_p1 = por %p6029_p0, %p6028_p13 }
 0x4e4   :  { %p6031_p2 = pnand %p6030_p1, %p6024_p12 }
 0x4e6   :  { %6034 = shalt.err (!%p6031_p2)  }
 0x4e7   :  { %1155 = dma.hbm_to_vmem [thread:$0]  %s1142_s19, 16, %s1153_s15, [#allocation3] }
 0x4e8   :  { %s4268_s18 = sshll.u32 %s7331_s16, 4  ;;  %s6369_s8 = smov [#allocation2 + $0x37]  }
 0x4e9   :  { %s1190_s11 = sshll.u32 %s6369_s8, 4  ;;  %s1161_s24 = scalar_lea.hbm %s7589_s2, %s4268_s18  ;;  %s7351_s11 = int_to_ptr.vmem [resolvable:$true] %s1190_s11 }
 0x4ea   :  { %s6035_s14 = scalar_lea.hbm %s1161_s24, 16  ;;  %p6038_p4 = scmp.lt.u32.totalorder %s1161_s24, %s7589_s2 }
 0x4eb   :  { %p6036_p3 = scmp.ne.s32.totalorder %s1161_s24, %s6035_s14  ;;  %p6039_p5 = scmp.lt.u32.totalorder %s6497_s17, %s6035_s14 }
 0x4ec   :  { %p6041_p7 = scmp.lt.u32.totalorder %s6035_s14, %s1161_s24 }
 0x4ed   :  { %p6040_p6 = por %p6039_p5, %p6038_p4 }
 0x4ef   :  { %p6042_p8 = por %p6041_p7, %p6040_p6 }
 0x4f1   :  { %p6043_p9 = pnand %p6042_p8, %p6036_p3 }
 0x4f3   :  { %6046 = shalt.err (!%p6043_p9)  }
 0x4f4   :  { %s6047_s21 = scalar_lea.vmem %s7336_s20, 16  ;;  %p6052_p11 = scmp.lt.s32.totalorder %s7336_s20, %s6476_s26 }
 0x4f5   :  { %p6048_p10 = scmp.ne.s32.totalorder %s7336_s20, %s6047_s21  ;;  %p6053_p12 = scmp.lt.s32.totalorder %s6506_s22, %s6047_s21 }
 0x4f7   :  { %p6054_p13 = por %p6053_p12, %p6052_p11 }
 0x4f9   :  { %p6055_p0 = pnand %p6054_p13, %p6048_p10 }
 0x4fb   :  { %6058 = shalt.err (!%p6055_p0)  }
 0x4fc   :  { %1174 = dma.hbm_to_vmem [thread:$0]  %s1161_s24, 16, %s7336_s20, [#allocation3] }
 0x4fd   :  { %s4270_s23 = sshll.u32 %s7333_s29, 4  ;;  %s7364_s15 = sld [smem:[#allocation7 + $0x380]] }
 0x4fe   :  { %s1180_s27 = scalar_lea.hbm %s7589_s2, %s4270_s23 }
 0x4ff   :  { %s6059_s1 = scalar_lea.hbm %s1180_s27, 16  ;;  %p6062_p2 = scmp.lt.u32.totalorder %s1180_s27, %s7589_s2 }
 0x500   :  { %p6060_p1 = scmp.ne.s32.totalorder %s1180_s27, %s6059_s1  ;;  %p6063_p3 = scmp.lt.u32.totalorder %s6497_s17, %s6059_s1 }
 0x501   :  { %p6065_p5 = scmp.lt.u32.totalorder %s6059_s1, %s1180_s27 }
 0x502   :  { %p6064_p4 = por %p6063_p3, %p6062_p2 }
 0x504   :  { %p6066_p6 = por %p6065_p5, %p6064_p4 }
 0x506   :  { %p6067_p7 = pnand %p6066_p6, %p6060_p1 }
 0x508   :  { %6070 = shalt.err (!%p6067_p7)  }
 0x509   :  { %s6071_s20 = scalar_lea.vmem %s7351_s11, 16  ;;  %p6076_p9 = scmp.lt.s32.totalorder %s7351_s11, %s6476_s26 }
 0x50a   :  { %p6072_p8 = scmp.ne.s32.totalorder %s7351_s11, %s6071_s20  ;;  %p6077_p10 = scmp.lt.s32.totalorder %s6506_s22, %s6071_s20 }
 0x50c   :  { %p6078_p11 = por %p6077_p10, %p6076_p9 }
 0x50e   :  { %p6079_p12 = pnand %p6078_p11, %p6072_p8 }
 0x510   :  { %6082 = shalt.err (!%p6079_p12)  }
 0x511   :  { %1193 = dma.hbm_to_vmem [thread:$0]  %s1180_s27, 16, %s7351_s11, [#allocation3] }
 0x512   :  { %s6370_s29 = smov [#allocation2 + $0x38]   ;;  %s7379_s9 = sld [smem:[#allocation7 + $0x381]] }
 0x513   :  { %s1210_s28 = sshll.u32 %s6370_s29, 4  ;;  %s6371_s0 = smov [#allocation2 + $0x39]   ;;  %s1211_s28 = int_to_ptr.vmem [resolvable:$true] %s1210_s28 }
 0x514   :  { %s1229_s25 = sshll.u32 %s6371_s0, 4  ;;  %s7381_s18 = sld [smem:[#allocation7 + $0x382]]  ;;  %s7384_s25 = int_to_ptr.vmem [resolvable:$true] %s1229_s25 }
 0x515   :  { %s4272_s8 = sshll.u32 %s7364_s15, 4 }
 0x516   :  { %s1200_s24 = scalar_lea.hbm %s7589_s2, %s4272_s8 }
 0x517   :  { %s6083_s14 = scalar_lea.hbm %s1200_s24, 16  ;;  %p6086_p0 = scmp.lt.u32.totalorder %s1200_s24, %s7589_s2 }
 0x518   :  { %p6084_p13 = scmp.ne.s32.totalorder %s1200_s24, %s6083_s14  ;;  %p6087_p1 = scmp.lt.u32.totalorder %s6497_s17, %s6083_s14 }
 0x519   :  { %p6089_p3 = scmp.lt.u32.totalorder %s6083_s14, %s1200_s24 }
 0x51a   :  { %p6088_p2 = por %p6087_p1, %p6086_p0 }
 0x51c   :  { %p6090_p4 = por %p6089_p3, %p6088_p2 }
 0x51e   :  { %p6091_p5 = pnand %p6090_p4, %p6084_p13 }
 0x520   :  { %6094 = shalt.err (!%p6091_p5)  }
 0x521   :  { %s6095_s12 = scalar_lea.vmem %s1211_s28, 16  ;;  %p6100_p7 = scmp.lt.s32.totalorder %s1211_s28, %s6476_s26 }
 0x522   :  { %p6096_p6 = scmp.ne.s32.totalorder %s1211_s28, %s6095_s12  ;;  %p6101_p8 = scmp.lt.s32.totalorder %s6506_s22, %s6095_s12 }
 0x524   :  { %p6102_p9 = por %p6101_p8, %p6100_p7 }
 0x526   :  { %p6103_p10 = pnand %p6102_p9, %p6096_p6 }
 0x528   :  { %6106 = shalt.err (!%p6103_p10)  }
 0x529   :  { %1213 = dma.hbm_to_vmem [thread:$0]  %s1200_s24, 16, %s1211_s28, [#allocation3] }
 0x52a   :  { %s4274_s21 = sshll.u32 %s7379_s9, 4  ;;  %s6372_s23 = smov [#allocation2 + $0x3a]  }
 0x52b   :  { %s1248_s15 = sshll.u32 %s6372_s23, 4  ;;  %s1219_s27 = scalar_lea.hbm %s7589_s2, %s4274_s21  ;;  %s7399_s15 = int_to_ptr.vmem [resolvable:$true] %s1248_s15 }
 0x52c   :  { %s6107_s1 = scalar_lea.hbm %s1219_s27, 16  ;;  %p6110_p12 = scmp.lt.u32.totalorder %s1219_s27, %s7589_s2 }
 0x52d   :  { %p6108_p11 = scmp.ne.s32.totalorder %s1219_s27, %s6107_s1  ;;  %p6111_p13 = scmp.lt.u32.totalorder %s6497_s17, %s6107_s1 }
 0x52e   :  { %p6113_p1 = scmp.lt.u32.totalorder %s6107_s1, %s1219_s27 }
 0x52f   :  { %p6112_p0 = por %p6111_p13, %p6110_p12 }
 0x531   :  { %p6114_p2 = por %p6113_p1, %p6112_p0 }
 0x533   :  { %p6115_p3 = pnand %p6114_p2, %p6108_p11 }
 0x535   :  { %6118 = shalt.err (!%p6115_p3)  }
 0x536   :  { %s6119_s20 = scalar_lea.vmem %s7384_s25, 16  ;;  %p6124_p5 = scmp.lt.s32.totalorder %s7384_s25, %s6476_s26 }
 0x537   :  { %p6120_p4 = scmp.ne.s32.totalorder %s7384_s25, %s6119_s20  ;;  %p6125_p6 = scmp.lt.s32.totalorder %s6506_s22, %s6119_s20 }
 0x539   :  { %p6126_p7 = por %p6125_p6, %p6124_p5 }
 0x53b   :  { %p6127_p8 = pnand %p6126_p7, %p6120_p4 }
 0x53d   :  { %6130 = shalt.err (!%p6127_p8)  }
 0x53e   :  { %1232 = dma.hbm_to_vmem [thread:$0]  %s1219_s27, 16, %s7384_s25, [#allocation3] }
 0x53f   :  { %s4276_s29 = sshll.u32 %s7381_s18, 4  ;;  %s7412_s28 = sld [smem:[#allocation7 + $0x383]] }
 0x540   :  { %s1238_s8 = scalar_lea.hbm %s7589_s2, %s4276_s29 }
 0x541   :  { %s6131_s10 = scalar_lea.hbm %s1238_s8, 16  ;;  %p6134_p10 = scmp.lt.u32.totalorder %s1238_s8, %s7589_s2 }
 0x542   :  { %p6132_p9 = scmp.ne.s32.totalorder %s1238_s8, %s6131_s10  ;;  %p6135_p11 = scmp.lt.u32.totalorder %s6497_s17, %s6131_s10 }
 0x543   :  { %p6137_p13 = scmp.lt.u32.totalorder %s6131_s10, %s1238_s8 }
 0x544   :  { %p6136_p12 = por %p6135_p11, %p6134_p10 }
 0x546   :  { %p6138_p0 = por %p6137_p13, %p6136_p12 }
 0x548   :  { %p6139_p1 = pnand %p6138_p0, %p6132_p9 }
 0x54a   :  { %6142 = shalt.err (!%p6139_p1)  }
 0x54b   :  { %s6143_s25 = scalar_lea.vmem %s7399_s15, 16  ;;  %p6148_p3 = scmp.lt.s32.totalorder %s7399_s15, %s6476_s26 }
 0x54c   :  { %p6144_p2 = scmp.ne.s32.totalorder %s7399_s15, %s6143_s25  ;;  %p6149_p4 = scmp.lt.s32.totalorder %s6506_s22, %s6143_s25 }
 0x54e   :  { %p6150_p5 = por %p6149_p4, %p6148_p3 }
 0x550   :  { %p6151_p6 = pnand %p6150_p5, %p6144_p2 }
 0x552   :  { %6154 = shalt.err (!%p6151_p6)  }
 0x553   :  { %1251 = dma.hbm_to_vmem [thread:$0]  %s1238_s8, 16, %s7399_s15, [#allocation3] }
 0x554   :  { %s6373_s18 = smov [#allocation2 + $0x3b]   ;;  %s7427_s30 = sld [smem:[#allocation7 + $0x384]] }
 0x555   :  { %s1267_s14 = sshll.u32 %s6373_s18, 4  ;;  %s6374_s11 = smov [#allocation2 + $0x3c]   ;;  %s1268_s14 = int_to_ptr.vmem [resolvable:$true] %s1267_s14 }
 0x556   :  { %s1286_s12 = sshll.u32 %s6374_s11, 4  ;;  %s7429_s21 = sld [smem:[#allocation7 + $0x385]]  ;;  %s7432_s12 = int_to_ptr.vmem [resolvable:$true] %s1286_s12 }
 0x557   :  { %s4278_s23 = sshll.u32 %s7412_s28, 4 }
 0x558   :  { %s1257_s27 = scalar_lea.hbm %s7589_s2, %s4278_s23 }
 0x559   :  { %s6155_s1 = scalar_lea.hbm %s1257_s27, 16  ;;  %p6158_p8 = scmp.lt.u32.totalorder %s1257_s27, %s7589_s2 }
 0x55a   :  { %p6156_p7 = scmp.ne.s32.totalorder %s1257_s27, %s6155_s1  ;;  %p6159_p9 = scmp.lt.u32.totalorder %s6497_s17, %s6155_s1 }
 0x55b   :  { %p6161_p11 = scmp.lt.u32.totalorder %s6155_s1, %s1257_s27 }
 0x55c   :  { %p6160_p10 = por %p6159_p9, %p6158_p8 }
 0x55e   :  { %p6162_p12 = por %p6161_p11, %p6160_p10 }
 0x560   :  { %p6163_p13 = pnand %p6162_p12, %p6156_p7 }
 0x562   :  { %6166 = shalt.err (!%p6163_p13)  }
 0x563   :  { %s6167_s19 = scalar_lea.vmem %s1268_s14, 16  ;;  %p6172_p1 = scmp.lt.s32.totalorder %s1268_s14, %s6476_s26 }
 0x564   :  { %p6168_p0 = scmp.ne.s32.totalorder %s1268_s14, %s6167_s19  ;;  %p6173_p2 = scmp.lt.s32.totalorder %s6506_s22, %s6167_s19 }
 0x566   :  { %p6174_p3 = por %p6173_p2, %p6172_p1 }
 0x568   :  { %p6175_p4 = pnand %p6174_p3, %p6168_p0 }
 0x56a   :  { %6178 = shalt.err (!%p6175_p4)  }
 0x56b   :  { %1270 = dma.hbm_to_vmem [thread:$0]  %s1257_s27, 16, %s1268_s14, [#allocation3] }
 0x56c   :  { %s4280_s20 = sshll.u32 %s7427_s30, 4  ;;  %s6375_s29 = smov [#allocation2 + $0x3d]  }
 0x56d   :  { %s1305_s28 = sshll.u32 %s6375_s29, 4  ;;  %s1276_s8 = scalar_lea.hbm %s7589_s2, %s4280_s20  ;;  %s7447_s28 = int_to_ptr.vmem [resolvable:$true] %s1305_s28 }
 0x56e   :  { %s6179_s10 = scalar_lea.hbm %s1276_s8, 16  ;;  %p6182_p6 = scmp.lt.u32.totalorder %s1276_s8, %s7589_s2 }
 0x56f   :  { %p6180_p5 = scmp.ne.s32.totalorder %s1276_s8, %s6179_s10  ;;  %p6183_p7 = scmp.lt.u32.totalorder %s6497_s17, %s6179_s10 }
 0x570   :  { %p6185_p9 = scmp.lt.u32.totalorder %s6179_s10, %s1276_s8 }
 0x571   :  { %p6184_p8 = por %p6183_p7, %p6182_p6 }
 0x573   :  { %p6186_p10 = por %p6185_p9, %p6184_p8 }
 0x575   :  { %p6187_p11 = pnand %p6186_p10, %p6180_p5 }
 0x577   :  { %6190 = shalt.err (!%p6187_p11)  }
 0x578   :  { %s6191_s25 = scalar_lea.vmem %s7432_s12, 16  ;;  %p6196_p13 = scmp.lt.s32.totalorder %s7432_s12, %s6476_s26 }
 0x579   :  { %p6192_p12 = scmp.ne.s32.totalorder %s7432_s12, %s6191_s25  ;;  %p6197_p0 = scmp.lt.s32.totalorder %s6506_s22, %s6191_s25 }
 0x57b   :  { %p6198_p1 = por %p6197_p0, %p6196_p13 }
 0x57d   :  { %p6199_p2 = pnand %p6198_p1, %p6192_p12 }
 0x57f   :  { %6202 = shalt.err (!%p6199_p2)  }
 0x580   :  { %1289 = dma.hbm_to_vmem [thread:$0]  %s1276_s8, 16, %s7432_s12, [#allocation3] }
 0x581   :  { %s4282_s18 = sshll.u32 %s7429_s21, 4  ;;  %s4283_s14 = sld [smem:[#allocation7 + $0x386]] }
 0x582   :  { %s1295_s23 = scalar_lea.hbm %s7589_s2, %s4282_s18 }
 0x583   :  { %s6203_s16 = scalar_lea.hbm %s1295_s23, 16  ;;  %p6206_p4 = scmp.lt.u32.totalorder %s1295_s23, %s7589_s2 }
 0x584   :  { %p6204_p3 = scmp.ne.s32.totalorder %s1295_s23, %s6203_s16  ;;  %p6207_p5 = scmp.lt.u32.totalorder %s6497_s17, %s6203_s16 }
 0x585   :  { %p6209_p7 = scmp.lt.u32.totalorder %s6203_s16, %s1295_s23 }
 0x586   :  { %p6208_p6 = por %p6207_p5, %p6206_p4 }
 0x588   :  { %p6210_p8 = por %p6209_p7, %p6208_p6 }
 0x58a   :  { %p6211_p9 = pnand %p6210_p8, %p6204_p3 }
 0x58c   :  { %6214 = shalt.err (!%p6211_p9)  }
 0x58d   :  { %s6215_s12 = scalar_lea.vmem %s7447_s28, 16  ;;  %p6220_p11 = scmp.lt.s32.totalorder %s7447_s28, %s6476_s26 }
 0x58e   :  { %p6216_p10 = scmp.ne.s32.totalorder %s7447_s28, %s6215_s12  ;;  %p6221_p12 = scmp.lt.s32.totalorder %s6506_s22, %s6215_s12 }
 0x590   :  { %p6222_p13 = por %p6221_p12, %p6220_p11 }
 0x592   :  { %p6223_p0 = pnand %p6222_p13, %p6216_p10 }
 0x594   :  { %6226 = shalt.err (!%p6223_p0)  }
 0x595   :  { %1308 = dma.hbm_to_vmem [thread:$0]  %s1295_s23, 16, %s7447_s28, [#allocation3] }
 0x596   :  { %s6376_s21 = smov [#allocation2 + $0x3e]   ;;  %s4285_s5 = sld [smem:[#allocation7 + $0x387]] }
 0x597   :  { %s1324_s1 = sshll.u32 %s6376_s21, 4  ;;  %s6377_s15 = smov [#allocation2 + $0x3f]   ;;  %s1325_s1 = int_to_ptr.vmem [resolvable:$true] %s1324_s1 }
 0x598   :  { %s1343_s19 = sshll.u32 %s6377_s15, 4  ;;  %s4284_s20 = sshll.u32 %s4283_s14, 4  ;;  %s7476_s19 = int_to_ptr.vmem [resolvable:$true] %s1343_s19 }
 0x599   :  { %s1314_s0 = scalar_lea.hbm %s7589_s2, %s4284_s20 }
 0x59a   :  { %s6227_s8 = scalar_lea.hbm %s1314_s0, 16  ;;  %p6230_p2 = scmp.lt.u32.totalorder %s1314_s0, %s7589_s2 }
 0x59b   :  { %p6228_p1 = scmp.ne.s32.totalorder %s1314_s0, %s6227_s8  ;;  %p6231_p3 = scmp.lt.u32.totalorder %s6497_s17, %s6227_s8 }
 0x59c   :  { %p6233_p5 = scmp.lt.u32.totalorder %s6227_s8, %s1314_s0 }
 0x59d   :  { %p6232_p4 = por %p6231_p3, %p6230_p2 }
 0x59f   :  { %p6234_p6 = por %p6233_p5, %p6232_p4 }
 0x5a1   :  { %p6235_p7 = pnand %p6234_p6, %p6228_p1 }
 0x5a3   :  { %6238 = shalt.err (!%p6235_p7)  }
 0x5a4   :  { %s6239_s28 = scalar_lea.vmem %s1325_s1, 16  ;;  %p6244_p9 = scmp.lt.s32.totalorder %s1325_s1, %s6476_s26 }
 0x5a5   :  { %p6240_p8 = scmp.ne.s32.totalorder %s1325_s1, %s6239_s28  ;;  %p6245_p10 = scmp.lt.s32.totalorder %s6506_s22, %s6239_s28 }
 0x5a7   :  { %p6246_p11 = por %p6245_p10, %p6244_p9 }
 0x5a9   :  { %p6247_p12 = pnand %p6246_p11, %p6240_p8 }
 0x5ab   :  { %6250 = shalt.err (!%p6247_p12)  }
 0x5ac   :  { %1327 = dma.hbm_to_vmem [thread:$0]  %s1314_s0, 16, %s1325_s1, [#allocation3] }
 0x5ad   :  { %s4286_s24 = sshll.u32 %s4285_s5, 4 }
 0x5ae   :  { %s1333_s14 = scalar_lea.hbm %s7589_s2, %s4286_s24 }
 0x5af   :  { %s6251_s30 = scalar_lea.hbm %s1333_s14, 16  ;;  %p6254_p0 = scmp.lt.u32.totalorder %s1333_s14, %s7589_s2 }
 0x5b0   :  { %p6252_p13 = scmp.ne.s32.totalorder %s1333_s14, %s6251_s30  ;;  %p6255_p1 = scmp.lt.u32.totalorder %s6497_s17, %s6251_s30 }
 0x5b1   :  { %p6257_p3 = scmp.lt.u32.totalorder %s6251_s30, %s1333_s14 }
 0x5b2   :  { %p6256_p2 = por %p6255_p1, %p6254_p0 }
 0x5b4   :  { %p6258_p4 = por %p6257_p3, %p6256_p2 }
 0x5b6   :  { %p6259_p5 = pnand %p6258_p4, %p6252_p13 }
 0x5b8   :  { %6262 = shalt.err (!%p6259_p5)  }
 0x5b9   :  { %s6263_s16 = scalar_lea.vmem %s7476_s19, 16  ;;  %p6268_p7 = scmp.lt.s32.totalorder %s7476_s19, %s6476_s26 }
 0x5ba   :  { %p6264_p6 = scmp.ne.s32.totalorder %s7476_s19, %s6263_s16  ;;  %p6269_p8 = scmp.lt.s32.totalorder %s6506_s22, %s6263_s16 }
 0x5bc   :  { %p6270_p9 = por %p6269_p8, %p6268_p7 }
 0x5be   :  { %p6271_p10 = pnand %p6270_p9, %p6264_p6 }
 0x5c0   :  { %6274 = shalt.err (!%p6271_p10)  }
 0x5c1   :  { %1346 = dma.hbm_to_vmem [thread:$0]  %s1333_s14, 16, %s7476_s19, [#allocation3] }
 0x5c2   :  { %6303 = dma.done.wait [#allocation3], 1024 }
 0x5c3   :  { %6304 = vsyncadd [#allocation3], 4294966272  ;;  %v2771_v1 = vlaneseq  ;;  %4481 = vmatprep.subr.bf16.mxu0 %v6345_v0  ;;  %4487 = vmatprep.subr.bf16.mxu1 %v6345_v0  ;;  %v6378_v2 = vmov 1966171168   ;;  %vm6379_vm1 = vmmov 0   ;;  %vm2805_vm2 = vcmask 64512  }
 0x5c4   :  { %v2769_v3 = vunpack.c.l.s4 %v6378_v2  ;;  %4483 = vmatprep.mubr.msk.bf16.mxu0 %vm6379_vm1, %v6345_v0  ;;  %4489 = vmatprep.mubr.msk.bf16.mxu1 %vm6379_vm1, %v6345_v0  ;;  %v2747_v7 = vld [vmem:[#allocation8] sm:$0xff]  ;;  %v2750_v8 = vld [vmem:[#allocation2] sm:$0xff]  ;;  %vm2809_vm3 = vcmask 1043456   ;;  %v2752_v14 = vld [vmem:[#allocation2 + $0x10] sm:$0xff]  ;;  %v6380_v45 = vmov 0   ;;  %vm3220_vm4 = vcmask 1041409  }
 0x5c5   :  { %v2772_v4 = vshrl.u32 %v2771_v1, 7  ;;  %v2751_v9 = vld [vmem:[#allocation2 + $0x8] sm:$0xff]  ;;  %v3244_v10 = vsel %vm2805_vm2, %v2747_v7, 0.0  ;;  %v2766_v11 = vpack.c.bf16 %v2747_v7, %v2747_v7  ;;  %v2758_v12 = vpack.c.bf16 %v2750_v8, %v2750_v8  ;;  %v2753_v15 = vld [vmem:[#allocation2 + $0x18] sm:$0xff]  ;;  %v2754_v29 = vld [vmem:[#allocation2 + $0x20] sm:$0xff]  ;;  %4644 = vset.pattern.permute.xlu0 %v6380_v45  ;;  %s6381_s13 = smov [#allocation14]  }
 0x5c6   :  { %v2770_v5 = vunpack.c.0.s8 %v2769_v3  ;;  %v2759_v13 = vpack.c.bf16 %v2751_v9, %v2751_v9  ;;  %3245 = vadd.xlane.f32.xlu0 %v3244_v10  ;;  %v2760_v19 = vpack.c.bf16 %v2752_v14, %v2752_v14  ;;  %v2761_v20 = vpack.c.bf16 %v2753_v15, %v2753_v15  ;;  %v2755_v33 = vld [vmem:[#allocation2 + $0x28] sm:$0xff]  ;;  %v2756_v44 = vld [vmem:[#allocation2 + $0x30] sm:$0xff]  ;;  %v2757_v48 = vld [vmem:[#allocation2 + $0x38] sm:$0xff]  ;;  %s3494_s27 = sshll.u32 %s6381_s13, 4  ;;  %s3495_s27 = int_to_ptr.vmem [resolvable:$true] %s3494_s27 }
 0x5c7   :  { %v2811_v17 = vsel %vm2809_vm3, %v2758_v12, 0  ;;  %v7508_v23 = vsub.s32 0, %v2772_v4  ;;  %v2762_v38 = vpack.c.bf16 %v2754_v29, %v2754_v29  ;;  %v2763_v40 = vpack.c.bf16 %v2755_v33, %v2755_v33  ;;  %v4645_v62 = vld [vmem:[#allocation11] sm:$0xff]   ;;  %v4646_v63 = vld [vmem:[#allocation11 + $0x8] sm:$0xff]   ;;  %v4647_v1 = vld [vmem:[#allocation11 + $0x10] sm:$0xff]   ;;  %p6280_p12 = scmp.lt.s32.totalorder %s3495_s27, %s3495_s27 }
 0x5c8   :  { %v2773_v6 = vsub.s32 %v2770_v5, %v2772_v4  ;;  %v2862_v18 = vsel %vm2809_vm3, %v2759_v13, 0  ;;  %4482 = vmatpush3.bf16.msra.mxu0 %v2811_v17  ;;  %v2913_v27 = vsel %vm2809_vm3, %v2760_v19, 0  ;;  %v2964_v28 = vsel %vm2809_vm3, %v2761_v20, 0  ;;  %v4648_v2 = vld [vmem:[#allocation11 + $0x18] sm:$0xff]   ;;  %v4649_v3 = vld [vmem:[#allocation11 + $0x20] sm:$0xff]   ;;  %v4650_v4 = vld [vmem:[#allocation11 + $0x28] sm:$0xff]  }
 0x5c9   :  { %4488 = vmatpush3.bf16.msra.mxu1 %v2862_v18  ;;  %4493 = vmatprep.subr.bf16.mxu0 %v6345_v0  ;;  %v3015_v43 = vsel %vm2809_vm3, %v2762_v38, 0  ;;  %v3066_v47 = vsel %vm2809_vm3, %v2763_v40, 0  ;;  %v2764_v51 = vpack.c.bf16 %v2756_v44, %v2756_v44  ;;  %v2765_v53 = vpack.c.bf16 %v2757_v48, %v2757_v48  ;;  %v4651_v5 = vld [vmem:[#allocation11 + $0x30] sm:$0xff]   ;;  %v4653_v12 = vld [vmem:[#allocation13] sm:$0xff]   ;;  %v4654_v13 = vld [vmem:[#allocation13 + $0x8] sm:$0xff]  }
 0x5ca   :  { %v2774_v16 = vrot.slane %v2766_v11, %v2773_v6  ;;  %4499 = vmatprep.subr.bf16.mxu1 %v6345_v0  ;;  %v4652_v11 = vld [vmem:[#allocation11 + $0x38] sm:$0xff]   ;;  %v4655_v14 = vld [vmem:[#allocation13 + $0x10] sm:$0xff]   ;;  %v4658_v17 = vld [vmem:[#allocation13 + $0x28] sm:$0xff]   ;;  %vm3223_vm5 = vcmask 1042434   ;;  %vm3226_vm6 = vcmask 1043459   ;;  %vm3229_vm7 = vcmask 1044484  }
 0x5cb   :  { %v3117_v56 = vsel %vm2809_vm3, %v2764_v51, 0  ;;  %v3168_v57 = vsel %vm2809_vm3, %v2765_v53, 0  ;;  %v4656_v15 = vld [vmem:[#allocation13 + $0x18] sm:$0xff]   ;;  %vm3232_vm8 = vcmask 1045509   ;;  %vm3235_vm9 = vcmask 1046534  }
 0x5cc   :  { %v2775_v21 = vcombine.high %v2774_v16, %v2774_v16  ;;  %v2782_v22 = vrot.slane %v2774_v16, %v2773_v6  ;;  %v4657_v16 = vld [vmem:[#allocation13 + $0x20] sm:$0xff]   ;;  %vm3238_vm10 = vcmask 1047559  }
 0x5ce   :  { %v2789_v24 = vrot.slane %v2775_v21, %v2773_v6  ;;  %v4415_v25 = vpack.i.b16 %v2782_v22, %v2782_v22  ;;  %v2793_v26 = vunpack.i.h.s16 %v2782_v22  ;;  %v2790_v36 = vcombine.high %v2782_v22, %v2782_v22  ;;  %v3243_v6 = vld [vmem:[#allocation5] sm:$0xff] }
 0x5d0   :  { %v2795_v30 = vunpack.i.h.s16 %v2789_v24  ;;  %v2804_v31 = vrot.slane %v4415_v25, %v7508_v23  ;;  %v2853_v32 = vpack.i.b16 %v2793_v26, %v2793_v26  ;;  %v4418_v34 = vpack.i.b16 %v2789_v24, %v2789_v24 }
 0x5d1   :  { %v2797_v41 = vunpack.i.h.s16 %v2790_v36  ;;  %v4421_v46 = vpack.i.b16 %v2790_v36, %v2790_v36  ;;  %v2791_v49 = vcombine.high %v2789_v24, %v2789_v24 }
 0x5d2   :  { %4484 = vmatmul.mubr.msk.bf16.vlgmr.msra.gmra.mrb[0].mxu0 %vm2805_vm2, %v2804_v31  ;;  %v2857_v35 = vrot.slane %v2853_v32, %v7508_v23  ;;  %v2955_v37 = vpack.i.b16 %v2795_v30, %v2795_v30  ;;  %v2908_v39 = vrot.slane %v4418_v34, %v7508_v23 }
 0x5d3   :  { %4494 = vmatpush3.bf16.msra.mxu0 %v2913_v27  ;;  %4495 = vmatprep.mubr.msk.bf16.mxu0 %vm6379_vm1, %v6345_v0  ;;  %v3057_v50 = vpack.i.b16 %v2797_v41, %v2797_v41  ;;  %v3010_v52 = vrot.slane %v4421_v46, %v7508_v23  ;;  %v2799_v54 = vunpack.i.h.s16 %v2791_v49  ;;  %v4424_v58 = vpack.i.b16 %v2791_v49, %v2791_v49 }
 0x5d4   :  { %4490 = vmatmul.mubr.msk.bf16.vlgmr.msra.gmra.mrb[0].mxu1 %vm2805_vm2, %v2857_v35  ;;  %4505 = vmatprep.subr.bf16.mxu0 %v6345_v0  ;;  %v2959_v42 = vrot.slane %v2955_v37, %v7508_v23 }
 0x5d5   :  { %4500 = vmatpush3.bf16.msra.mxu1 %v2964_v28  ;;  %4501 = vmatprep.mubr.msk.bf16.mxu1 %vm6379_vm1, %v6345_v0  ;;  %v3061_v55 = vrot.slane %v3057_v50, %v7508_v23  ;;  %v3159_v59 = vpack.i.b16 %v2799_v54, %v2799_v54  ;;  %v3112_v60 = vrot.slane %v4424_v58, %v7508_v23 }
 0x5d6   :  { %4511 = vmatprep.subr.bf16.mxu1 %v6345_v0 }
 0x5d7   :  { %v3163_v61 = vrot.slane %v3159_v59, %v7508_v23 }
 0x5da   :  { %4496 = vmatmul.mubr.msk.bf16.vlgmr.msra.gmra.mrb[4].mxu0 %vm2805_vm2, %v2908_v39 }
 0x5db   :  { %4506 = vmatpush3.bf16.msra.mxu0 %v3015_v43  ;;  %4507 = vmatprep.mubr.msk.bf16.mxu0 %vm6379_vm1, %v6345_v0 }
 0x5dc   :  { %4502 = vmatmul.mubr.msk.bf16.vlgmr.msra.gmra.mrb[4].mxu1 %vm2805_vm2, %v2959_v42  ;;  %4517 = vmatprep.subr.bf16.mxu0 %v6345_v0 }
 0x5dd   :  { %4512 = vmatpush3.bf16.msra.mxu1 %v3066_v47  ;;  %4513 = vmatprep.mubr.msk.bf16.mxu1 %vm6379_vm1, %v6345_v0 }
 0x5de   :  { %4523 = vmatprep.subr.bf16.mxu1 %v6345_v0 }
 0x5e2   :  { %4508 = vmatmul.mubr.msk.bf16.vlgmr.msra.gmra.mrb[8].mxu0 %vm2805_vm2, %v3010_v52 }
 0x5e3   :  { %4518 = vmatpush3.bf16.msra.mxu0 %v3117_v56  ;;  %4519 = vmatprep.mubr.msk.bf16.mxu0 %vm6379_vm1, %v6345_v0 }
 0x5e4   :  { %4514 = vmatmul.mubr.msk.bf16.vlgmr.msra.gmra.mrb[8].mxu1 %vm2805_vm2, %v3061_v55  ;;  %4529 = vmatprep.subr.bf16.mxu0 %v6345_v0 }
 0x5e5   :  { %4524 = vmatpush3.bf16.msra.mxu1 %v3168_v57  ;;  %4525 = vmatprep.mubr.msk.bf16.mxu1 %vm6379_vm1, %v6345_v0 }
 0x5e6   :  { %4549 = vmatprep.subr.bf16.mxu1 %v6345_v0 }
 0x5ea   :  { %4520 = vmatmul.mubr.msk.bf16.vlgmr.msra.gmra.mrb[12].mxu0 %vm2805_vm2, %v3112_v60 }
 0x5eb   :  { %4545 = vmatprep.mubr.msk.bf16.mxu0 %vm6379_vm1, %v6345_v0  ;;  %4530 = vmatpush3.bf16.msra.mxu0 %v4645_v62 }
 0x5ec   :  { %4526 = vmatmul.mubr.msk.bf16.vlgmr.msra.gmra.mrb[12].mxu1 %vm2805_vm2, %v3163_v61  ;;  %4531 = vmatprep.subr.bf16.mxu0 %v6345_v0 }
 0x5ed   :  { %4565 = vmatprep.mubr.msk.bf16.mxu1 %vm6379_vm1, %v6345_v0  ;;  %4550 = vmatpush3.bf16.msra.mxu1 %v4653_v12 }
 0x5ee   :  { %4551 = vmatprep.subr.bf16.mxu1 %v6345_v0 }
 0x5ef   :  { %4532 = vmatpush3.bf16.msra.mxu0 %v4646_v63 }
 0x5f0   :  { %4533 = vmatprep.subr.bf16.mxu0 %v6345_v0 }
 0x5f1   :  { %4552 = vmatpush3.bf16.msra.mxu1 %v4654_v13 }
 0x5f2   :  { %4553 = vmatprep.subr.bf16.mxu1 %v6345_v0 }
 0x5f3   :  { %4534 = vmatpush3.bf16.msra.mxu0 %v4647_v1 }
 0x5f4   :  { %4535 = vmatprep.subr.bf16.mxu0 %v6345_v0 }
 0x5f5   :  { %4554 = vmatpush3.bf16.msra.mxu1 %v4655_v14  ;;  %v4436_v14 = vld [vmem:[%s7593_s6] ss:$0 sm:$0xff] }
 0x5f6   :  { %4555 = vmatprep.subr.bf16.mxu1 %v6345_v0 }
 0x5f7   :  { %4536 = vmatpush3.bf16.msra.mxu0 %v4648_v2 }
 0x5f8   :  { %4537 = vmatprep.subr.bf16.mxu0 %v6345_v0 }
 0x5f9   :  { %4556 = vmatpush3.bf16.msra.mxu1 %v4656_v15 }
 0x5fa   :  { %4557 = vmatprep.subr.bf16.mxu1 %v6345_v0 }
 0x5fb   :  { %4538 = vmatpush3.bf16.msra.mxu0 %v4649_v3 }
 0x5fc   :  { %4539 = vmatprep.subr.bf16.mxu0 %v6345_v0 }
 0x5fd   :  { %4558 = vmatpush3.bf16.msra.mxu1 %v4657_v16 }
 0x5fe   :  { %4559 = vmatprep.subr.bf16.mxu1 %v6345_v0 }
 0x5ff   :  { %4540 = vmatpush3.bf16.msra.mxu0 %v4650_v4  ;;  %v4659_v4 = vld [vmem:[#allocation13 + $0x30] sm:$0xff]  }
 0x600   :  { %4541 = vmatprep.subr.bf16.mxu0 %v6345_v0 }
 0x601   :  { %4560 = vmatpush3.bf16.msra.mxu1 %v4658_v17 }
 0x602   :  { %4561 = vmatprep.subr.bf16.mxu1 %v6345_v0 }
 0x603   :  { %4542 = vmatpush3.bf16.msra.mxu0 %v4651_v5  ;;  %v4660_v5 = vld [vmem:[#allocation13 + $0x38] sm:$0xff]  }
 0x604   :  { %4543 = vmatprep.subr.bf16.mxu0 %v6345_v0 }
 0x605   :  { %4562 = vmatpush3.bf16.msra.mxu1 %v4659_v4 }
 0x606   :  { %4563 = vmatprep.subr.bf16.mxu1 %v6345_v0 }
 0x607   :  { %4544 = vmatpush3.bf16.msra.mxu0 %v4652_v11 }
 0x609   :  { %4564 = vmatpush3.bf16.msra.mxu1 %v4660_v5 }
 0x653   :  { %v3246_v7 = vpop.xlane.xlu0 %3245 }
 0x654   :  { %v3247_v8 = vadd.f32 %v3246_v7, %v3243_v6  ;;  %v4427_v6 = vld [vmem:[%s7591_s4] ss:$0 sm:$0xff]  ;;  %s6275_s4 = scalar_lea.vmem %s3495_s27, 128 }
 0x655   :  { %p6276_p11 = scmp.ne.s32.totalorder %s3495_s27, %s6275_s4  ;;  %p6281_p13 = scmp.lt.s32.totalorder %s6275_s4, %s6275_s4 }
 0x656   :  { %3249 = vst.msk [vmem:[#allocation5] sm:$0xff] %vm80_vm0, %v3247_v8 }
 0x657   :  { %p6282_p0 = por %p6281_p13, %p6280_p12 }
 0x659   :  { %p6283_p1 = pnand %p6282_p0, %p6276_p11 }
 0x65d   :  { %v3253_v9 = vld [vmem:[#allocation5] sm:$0xff] }
 0x65e   :  { %4661 = vrcp.f32 %v3253_v9 }
 0x668   :  { %v4662_v10 = vpop.eup %4661 }
 0x669   :  { %3258 = vperm.xlu0 %4644, %v4662_v10  }
 0x6a5   :  { %v2847_v18 = vpop.f32.mrb[0].mxu0 }
 0x6a6   :  { %v4485_v19 = vpop.f32.mrb[1].mxu0 }
 0x6a7   :  { %v2898_v20 = vpop.f32.mrb[0].mxu1  ;;  %v2850_v21 = vpop.f32.mrb[2].mxu0 }
 0x6a8   :  { %v3219_v22 = vrot.slane %v2898_v20, 7  ;;  %v4491_v23 = vpop.f32.mrb[1].mxu1  ;;  %v4486_v24 = vpop.f32.mrb[3].mxu0 }
 0x6a9   :  { %v2901_v25 = vpop.f32.mrb[2].mxu1 }
 0x6aa   :  { %v3221_v26 = vsel %vm3220_vm4, %v3219_v22, %v2847_v18  ;;  %v4492_v27 = vpop.f32.mrb[3].mxu1 }
 0x6ad   :  { %v2949_v28 = vpop.f32.mrb[4].mxu0 }
 0x6ae   :  { %v3222_v29 = vrot.slane %v2949_v28, 6  ;;  %v4497_v30 = vpop.f32.mrb[5].mxu0 }
 0x6af   :  { %v3000_v31 = vpop.f32.mrb[4].mxu1  ;;  %v2952_v32 = vpop.f32.mrb[6].mxu0 }
 0x6b0   :  { %v3224_v33 = vsel %vm3223_vm5, %v3222_v29, %v3221_v26  ;;  %v3225_v34 = vrot.slane %v3000_v31, 5  ;;  %v4503_v35 = vpop.f32.mrb[5].mxu1  ;;  %v4498_v36 = vpop.f32.mrb[7].mxu0 }
 0x6b1   :  { %v3003_v37 = vpop.f32.mrb[6].mxu1 }
 0x6b2   :  { %v3227_v38 = vsel %vm3226_vm6, %v3225_v34, %v3224_v33  ;;  %v4504_v39 = vpop.f32.mrb[7].mxu1 }
 0x6b5   :  { %v3051_v40 = vpop.f32.mrb[8].mxu0 }
 0x6b6   :  { %v3228_v41 = vrot.slane %v3051_v40, 4  ;;  %v4509_v42 = vpop.f32.mrb[9].mxu0 }
 0x6b7   :  { %v3102_v43 = vpop.f32.mrb[8].mxu1  ;;  %v3054_v44 = vpop.f32.mrb[10].mxu0 }
 0x6b8   :  { %v3230_v45 = vsel %vm3229_vm7, %v3228_v41, %v3227_v38  ;;  %v3231_v46 = vrot.slane %v3102_v43, 3  ;;  %v4515_v47 = vpop.f32.mrb[9].mxu1  ;;  %v4510_v48 = vpop.f32.mrb[11].mxu0 }
 0x6b9   :  { %v3105_v49 = vpop.f32.mrb[10].mxu1 }
 0x6ba   :  { %v3233_v50 = vsel %vm3232_vm8, %v3231_v46, %v3230_v45  ;;  %v4516_v51 = vpop.f32.mrb[11].mxu1 }
 0x6bd   :  { %v3153_v52 = vpop.f32.mrb[12].mxu0 }
 0x6be   :  { %v3234_v53 = vrot.slane %v3153_v52, 2  ;;  %v4521_v54 = vpop.f32.mrb[13].mxu0 }
 0x6bf   :  { %v3204_v55 = vpop.f32.mrb[12].mxu1  ;;  %v3156_v56 = vpop.f32.mrb[14].mxu0 }
 0x6c0   :  { %v3237_v57 = vrot.slane %v3204_v55, 1  ;;  %v4527_v58 = vpop.f32.mrb[13].mxu1  ;;  %v4522_v59 = vpop.f32.mrb[15].mxu0  ;;  %v3236_v60 = vsel %vm3235_vm9, %v3234_v53, %v3233_v50 }
 0x6c1   :  { %v3207_v61 = vpop.f32.mrb[14].mxu1 }
 0x6c2   :  { %v4528_v62 = vpop.f32.mrb[15].mxu1  ;;  %v3239_v63 = vsel %vm3238_vm10, %v3237_v57, %v3236_v60 }
 0x6e8   :  { %v3259_v1 = vpop.permute.xlu0 %3258 }
 0x6e9   :  { %v3261_v2 = vmul.f32 %v3259_v1, %v3239_v63 }
 0x6eb   :  { %v3262_v3 = vpack.c.bf16 %v3261_v2, %v3261_v2 }
 0x6ed   :  { %4546 = vmatmul.mubr.bf16.vlgmr.msra.gmra.mrb[16].mxu0 %v3262_v3 }
 0x7c0   :  { %v3368_v7 = vpop.f32.mrb[16].mxu0 }
 0x7c1   :  { %v3369_v8 = vadd.f32 %v4427_v6, %v3368_v7  ;;  %v4547_v9 = vpop.f32.mrb[17].mxu0 }
 0x7c2   :  { %v3371_v10 = vpop.f32.mrb[18].mxu0 }
 0x7c3   :  { %v3374_v11 = vmax.f32 %v3369_v8, 0.0  ;;  %v4548_v12 = vpop.f32.mrb[19].mxu0 }
 0x7c5   :  { %v3375_v13 = vpack.c.bf16 %v3374_v11, %v3374_v11 }
 0x7c7   :  { %4566 = vmatmul.mubr.bf16.vlgmr.msra.gmra.mrb[16].mxu1 %v3375_v13 }
 0x89a   :  { %v3481_v0 = vpop.f32.mrb[16].mxu1 }
 0x89b   :  { %v3482_v15 = vadd.f32 %v4436_v14, %v3481_v0  ;;  %v4567_v16 = vpop.f32.mrb[17].mxu1 }
 0x89c   :  { %v3484_v17 = vpop.f32.mrb[18].mxu1 }
 0x89d   :  { %3487 = vst [vmem:[#allocation14] sm:$0xff] %v3482_v15  ;;  %v4568_v18 = vpop.f32.mrb[19].mxu1 }
 0x89e   :  { %6286 = shalt.err (!%p6283_p1)
}
 0x89f   :  { %s6287_s6 = scalar_lea.hbm %s7594_s7, 128 }
 0x8a0   :  { %p6288_p2 = scmp.ne.s32.totalorder %s7594_s7, %s6287_s6  ;;  %p6291_p3 = scmp.lt.u32.totalorder %s6287_s6, %s7594_s7 }
 0x8a2   :  { %p6293_p4 = pnand %p6291_p3, %p6288_p2 }
 0x8a4   :  { %6296 = shalt.err (!%p6293_p4)
}
 0x8a5   :  { %3497 = dma.vmem_to_hbm [thread:$0]  %s3495_s27, 128, %s7594_s7, [#allocation10]  }
 0x8a6   :  { %6305 = dma.done.wait [#allocation10], 128  }
 0x8a7   :  { %6306 = vsyncadd [#allocation10], 4294967168 }
 0x8a8   :  { %3501 = vsyncpa [#allocation9], 1 }
 0x8a9   :  { %3502 = vsyncpa [#allocation12], 1 }
 0x8aa   :  { %3503 = vsyncpa [#allocation10], 1 }
 0x8ab   :  { %3504 = vsyncmov [#allocation3] }
 0x8ae   :  { %s3505_s9 = vpop.sfrf %3504 }
 0x8af   :  { %p4445_p5 = scmp.ne.s32.totalorder %s3505_s9, 0 }
 0x8b1   :  { %3509 = shalt.err (%p4445_p5)  }
 0x8b2   :  { %3511 = vsyncmov [#allocation3 + $0x1] }
 0x8b5   :  { %s3512_s0 = vpop.sfrf %3511 }
 0x8b6   :  { %p4446_p6 = scmp.ne.s32.totalorder %s3512_s0, 0 }
 0x8b8   :  { %3516 = shalt.err (%p4446_p6)  }

</bundles_post_ra>
